<compile_context>
chip_gen: v5e
topology: v5e:2x2
jax: 0.10.0
libtpu: 0.0.40
codegen_flags: <defaults>
</compile_context>

<pallas_src>
import math
import random

import numpy as np
import jax
import jax.numpy as jnp
from jax import lax
from jax.experimental import pallas as pl
from jax.experimental.pallas import tpu as pltpu


def _round_up(v, m):
    return ((v + m - 1) // m) * m


# ----------------------------------------------------------------------------
# Parameter preparation (host side, once).
# ----------------------------------------------------------------------------
def _toeplitz_taps(w, Wdim, pad_out):
    """Conv weight (Cout, Cin, 5, 5) -> per-row-tap matrices
    (5, Wp*Cin, Wo*Cout) such that for every kh:
        out_row[h] += inpad_row[h + kh] @ M[kh]
    reproduces the 5x5 'same' convolution along the width.  If pad_out, the
    output columns are already zero-padded by 2 per side (next conv's input)."""
    w = np.asarray(w, np.float32)
    Cout, Cin, KH, KW = w.shape
    assert KH == 5 and KW == 5
    Wp = Wdim + 4
    Wo = Wp if pad_out else Wdim
    off = 2 if pad_out else 0
    M = np.zeros((5, Wp * Cin, Wo * Cout), np.float32)
    for kh in range(5):
        for kw in range(5):
            blk = w[:, :, kh, kw].T                      # (Cin, Cout)
            for c in range(Wdim):
                wp = c + kw
                M[kh,
                  wp * Cin:(wp + 1) * Cin,
                  (off + c) * Cout:(off + c + 1) * Cout] += blk
    return M


def _branch_stage(w, b, Wdim, pad_out):
    """One conv stage of one branch: bf16 tap matrices + f32 bias row whose
    border (padding) columns are zero so the column padding stays exactly 0
    after ReLU."""
    M = _toeplitz_taps(w, Wdim, pad_out)
    Cout = np.asarray(w).shape[0]
    Wp = Wdim + 4
    Wo = Wp if pad_out else Wdim
    off = 2 if pad_out else 0
    bias = np.zeros((1, Wo * Cout), np.float32)
    bvec = np.asarray(b, np.float32)
    for c in range(Wdim):
        bias[0, (off + c) * Cout:(off + c + 1) * Cout] = bvec
    return jnp.asarray(M, jnp.bfloat16), jnp.asarray(bias, jnp.float32)


def prepare_params(params, node_number, node_feature_dim):
    N, F = node_number, node_feature_dim
    assert N == F, "forward()'s cosine similarity requires node_feature_dim == node_number"
    assert N % 2 == 0, "MaxPool2d(2) path assumes an even node_number"
    prep = {}
    prep["m1x"], prep["b1x"] = _branch_stage(params["conv1_w"], params["conv1_b"], N, True)
    prep["m2x"], prep["b2x"] = _branch_stage(params["conv2_w"], params["conv2_b"], N, True)
    prep["m3x"], prep["b3x"] = _branch_stage(params["conv3_w"], params["conv3_b"], N, False)
    prep["m1a"], prep["b1a"] = _branch_stage(params["conv4_w"], params["conv4_b"], N, True)
    prep["m2a"], prep["b2a"] = _branch_stage(params["conv5_w"], params["conv5_b"], N, True)
    prep["m3a"], prep["b3a"] = _branch_stage(params["conv6_w"], params["conv6_b"], N, False)

    # even-lane selector for the MaxPool width compaction: (2N, N), exact in f32
    PW = 2 * N
    csel = np.zeros((PW, PW // 2), np.float32)
    for j in range(PW // 2):
        csel[2 * j, j] = 1.0
    prep["csel"] = jnp.asarray(csel)

    prep["w1"] = jnp.asarray(params["cls_w1"], jnp.float32).astype(jnp.bfloat16)  # (128, 512)
    prep["cb1"] = jnp.asarray(params["cls_b1"], jnp.float32).reshape(1, -1)
    prep["w2"] = jnp.asarray(params["cls_w2"], jnp.float32).astype(jnp.bfloat16)
    prep["cb2"] = jnp.asarray(params["cls_b2"], jnp.float32).reshape(1, -1)
    prep["w3"] = jnp.asarray(params["cls_w3"], jnp.float32)                        # tiny, keep f32
    prep["cb3"] = jnp.asarray(params["cls_b3"], jnp.float32).reshape(1, -1)
    return prep


# ----------------------------------------------------------------------------
# The fused Pallas kernel.
# ----------------------------------------------------------------------------
def _make_fused_kernel(B, N, OUT, out_w, eps=1e-8):
    H = N                          # image height (x: NxF, adj: NxN, F == N)
    Hp = N + 4                     # padded height/width
    Hs = _round_up(Hp, 8)          # 8-aligned per-batch row stride
    R = B * Hs                     # total rows of the padded activation slabs
    PW = 2 * N                     # width of cat(x, adj)
    PWh = PW // 2
    f32 = jnp.float32
    bf16 = jnp.bfloat16

    def shift_rows(v, k):          # result[r] = v[(r + k) % R]   (static k)
        k = k % v.shape[0]
        if k == 0:
            return v
        return jnp.concatenate([v[k:, :], v[:k, :]], axis=0)

    def shift_lanes(v, k):         # result[:, l] = v[:, (l + k) % L]
        k = k % v.shape[1]
        if k == 0:
            return v
        return jnp.concatenate([v[:, k:], v[:, :k]], axis=1)

    def kernel(xpad_ref, apad_ref,
               m1x_ref, b1x_ref, m2x_ref, b2x_ref, m3x_ref, b3x_ref,
               m1a_ref, b1a_ref, m2a_ref, b2a_ref, m3a_ref, b3a_ref,
               csel_ref, w1_ref, cb1_ref, w2_ref, cb2_ref, w3_ref, cb3_ref,
               out_ref, flat_s):
        # mask of valid output rows: rows [b*Hs+2, b*Hs+2+H) per batch block
        r_idx = lax.broadcasted_iota(jnp.int32, (R, 1), 0)
        row_mask = None
        for b in range(B):
            mb = (r_idx >= b * Hs + 2) & (r_idx < b * Hs + 2 + H)
            row_mask = mb if row_mask is None else (row_mask | mb)
        row_mask = row_mask.astype(f32)

        def conv_stage(z, m_ref, b_ref):
            # 5 row-tap bf16 matmuls over ALL rows; static sublane shifts place
            # each tap so the (bias+ReLU'd) output already sits at the padded
            # interior row positions; the row mask re-zeroes the padding rows.
            zb = z.astype(bf16)
            acc = None
            for kh in range(5):
                t = jnp.dot(zb, m_ref[kh], preferred_element_type=f32)
                t = shift_rows(t, kh - 2)
                acc = t if acc is None else acc + t
            return jnp.maximum(acc + b_ref[...], 0.0) * row_mask

        def branch(inp_ref, m1, b1, m2, b2, m3, b3):
            z = conv_stage(inp_ref[...], m1, b1)     # conv1/4
            z = conv_stage(z, m2, b2)                # conv2/5
            return conv_stage(z, m3, b3)             # conv3/6 -> (R, N)

        x3 = branch(xpad_ref, m1x_ref, b1x_ref, m2x_ref, b2x_ref, m3x_ref, b3x_ref)
        a3 = branch(apad_ref, m1a_ref, b1a_ref, m2a_ref, b2a_ref, m3a_ref, b3a_ref)

        # ---- cat + ReLU(no-op) + MaxPool2d(2) + flatten + classifier MLP ----
        v = jnp.concatenate([x3, a3], axis=1)               # (R, 2N), already >= 0
        p = jnp.maximum(v, shift_rows(v, 1))                 # 2x1 max (even rows valid)
        p = jnp.maximum(p, shift_lanes(p, 1))                # 2x2 max (even lanes valid)
        q = jnp.dot(p, csel_ref[...], preferred_element_type=f32)   # even-lane compaction (R, N)
        for i in range(H // 2):                              # only the even pooled rows
            rows = jnp.concatenate(
                [q[b * Hs + 2 + 2 * i: b * Hs + 3 + 2 * i, :] for b in range(B)],
                axis=0)                                      # (B, PWh)
            flat_s[:, i * PWh:(i + 1) * PWh] = rows
        h1 = jnp.maximum(jnp.dot(flat_s[...].astype(bf16), w1_ref[...],
                                 preferred_element_type=f32) + cb1_ref[...], 0.0)
        # TODO(synk): Dropout(p=0.5) layers skipped (inference/eval semantics).
        h2 = jnp.maximum(jnp.dot(h1.astype(bf16), w2_ref[...],
                                 preferred_element_type=f32) + cb2_ref[...], 0.0)
        logits = jnp.dot(h2, w3_ref[...], preferred_element_type=f32) + cb3_ref[...]

        # ---- pairwise mean cosine similarity: sim[i,j] = mean cos(x3_i, a3_j)
        xn = jnp.maximum(jnp.sqrt(jnp.sum(x3 * x3, axis=1, keepdims=True)), eps)
        an = jnp.maximum(jnp.sqrt(jnp.sum(a3 * a3, axis=1, keepdims=True)), eps)
        g = lax.dot_general(x3 / xn, a3 / an,
                            dimension_numbers=(((1,), (1,)), ((), ())),
                            preferred_element_type=f32)      # (R, R)
        col = lax.broadcasted_iota(jnp.int32, (B, R), 1)
        row = lax.broadcasted_iota(jnp.int32, (B, R), 0)
        grp = ((col >= row * Hs + 2) & (col < row * Hs + 2 + H)).astype(f32)    # (B, R)
        colt = lax.broadcasted_iota(jnp.int32, (R, B), 0)
        rowt = lax.broadcasted_iota(jnp.int32, (R, B), 1)
        grp_t = ((colt >= rowt * Hs + 2) & (colt < rowt * Hs + 2 + H)).astype(f32)  # (R, B)
        sim = jnp.dot(jnp.dot(grp, g, preferred_element_type=f32), grp_t,
                      preferred_element_type=f32) * (1.0 / (N * N))

        # single lane-dense packed output: [logits | sim | zero pad]
        pad = jnp.zeros((B, out_w - OUT - B), f32)
        out_ref[...] = jnp.concatenate([logits, sim, pad], axis=1)

    return kernel, Hs


# ----------------------------------------------------------------------------
# Device-side forward (single pallas_call, no grid -- weights fit VMEM easily).
# ----------------------------------------------------------------------------
def cmc_forward(prep, x, adj):
    B, N, F = x.shape
    assert F == N and adj.shape == (B, N, N)
    OUT = prep["w3"].shape[1]
    OUT_W = 128
    assert OUT + B <= OUT_W
    Hp = N + 4
    d0 = (N * (N + F)) // 4

    kernel, Hs = _make_fused_kernel(B, N, OUT, OUT_W)

    def pad_input(z):
        # (B, N, N) -> (B*Hs, Hp): zero-pad 2 on each side, then pad each batch
        # block to Hs rows (8-aligned per-batch row stride).
        zp = jnp.pad(z.astype(jnp.float32), ((0, 0), (2, 2 + Hs - Hp), (2, 2)))
        return zp.reshape(B * Hs, Hp)

    packed = pl.pallas_call(
        kernel,
        out_shape=jax.ShapeDtypeStruct((B, OUT_W), jnp.float32),
        scratch_shapes=[pltpu.VMEM((B, d0), jnp.float32)],   # flattened pooled map
    )(pad_input(x), pad_input(adj),
      prep["m1x"], prep["b1x"], prep["m2x"], prep["b2x"], prep["m3x"], prep["b3x"],
      prep["m1a"], prep["b1a"], prep["m2a"], prep["b2a"], prep["m3a"], prep["b3a"],
      prep["csel"], prep["w1"], prep["cb1"], prep["w2"], prep["cb2"],
      prep["w3"], prep["cb3"])

    logits = packed[:, :OUT]
    sim = packed[:, OUT:OUT + B]
    return logits[..., None], sim                            # (B, out, 1), (B, B)


# ----------------------------------------------------------------------------
# Pure-JAX reference (same bf16-rounded weights) for a correctness check.
# ----------------------------------------------------------------------------
def reference_forward(params, x, adj, eps=1e-8):
    q = lambda w: jnp.asarray(w, jnp.float32).astype(jnp.bfloat16).astype(jnp.float32)

    def conv(z, w, b):
        y = lax.conv_general_dilated(z, q(w), window_strides=(1, 1), padding="SAME",
                                     dimension_numbers=("NCHW", "OIHW", "NCHW"))
        return jax.nn.relu(y + jnp.asarray(b, jnp.float32).reshape(1, -1, 1, 1))

    xb = x[:, None].astype(jnp.float32)
    ab = adj[:, None].astype(jnp.float32)
    x1 = conv(xb, params["conv1_w"], params["conv1_b"])
    x2 = conv(x1, params["conv2_w"], params["conv2_b"])
    x3 = conv(x2, params["conv3_w"], params["conv3_b"])[:, 0]       # (B, N, F)
    a1 = conv(ab, params["conv4_w"], params["conv4_b"])
    a2 = conv(a1, params["conv5_w"], params["conv5_b"])
    a3 = conv(a2, params["conv6_w"], params["conv6_b"])[:, 0]       # (B, N, N)

    bcat = jax.nn.relu(jnp.concatenate([x3, a3], axis=2))           # (B, N, N+F)
    pooled = lax.reduce_window(bcat, -jnp.inf, lax.max, (1, 2, 2), (1, 2, 2), "VALID")
    flat = pooled.reshape(x.shape[0], -1)
    h1 = jax.nn.relu(flat @ q(params["cls_w1"]) + jnp.asarray(params["cls_b1"], jnp.float32))
    h2 = jax.nn.relu(h1 @ q(params["cls_w2"]) + jnp.asarray(params["cls_b2"], jnp.float32))
    logits = h2 @ jnp.asarray(params["cls_w3"], jnp.float32) + jnp.asarray(params["cls_b3"], jnp.float32)

    xn = jnp.maximum(jnp.linalg.norm(x3, axis=2, keepdims=True), eps)
    an = jnp.maximum(jnp.linalg.norm(a3, axis=2, keepdims=True), eps)
    sim = jnp.einsum("ipd,jqd->ij", x3 / xn, a3 / an) / (x3.shape[1] * a3.shape[1])
    return logits, sim


# ----------------------------------------------------------------------------
# Host-side contrastive loss (python `random` negative sampling, as in the
# reference module).
# ----------------------------------------------------------------------------
def contrastive_loss(sim_np, batch_size, k):
    B = sim_np.shape[0]
    loss_1, loss_2 = [], []
    for i in range(B):
        z = [math.exp(float(sim_np[i, i]))]
        neg = [random.randint(0, min(B - 1, batch_size - 1)) for _ in range(k)]
        for t in neg:
            z.append(float(sim_np[i, t]))
        loss_1.append(math.log(z[0] / sum(z)))

        z = [math.exp(float(sim_np[i, i]))]
        neg = [random.randint(0, min(B - 1, batch_size - 1)) for _ in range(k)]
        for t in neg:
            # mean cos(adj[i] rows, x[t] rows) == sim[t, i] by symmetry of cos
            z.append(float(sim_np[t, i]))
        loss_2.append(math.log(z[0] / sum(z)))
    return -1.0 * (np.mean(loss_1) + np.mean(loss_2))


# ----------------------------------------------------------------------------
# Deterministic synthetic parameters (shapes from the module __init__).
# ----------------------------------------------------------------------------
def init_params(key, node_feature_dim, node_number, hidden_dim, output_dim):
    keys = jax.random.split(key, 16)
    d0 = int(node_number * (node_number + node_feature_dim) / 4)

    def conv_w(kk, cout, cin):
        scale = 1.0 / math.sqrt(cin * 25)
        return scale * jax.random.normal(kk, (cout, cin, 5, 5), jnp.float32)

    def lin_w(kk, din, dout):
        scale = 1.0 / math.sqrt(din)
        return scale * jax.random.normal(kk, (din, dout), jnp.float32)

    return {
        "conv1_w": conv_w(keys[0], hidden_dim, 1),
        "conv1_b": jnp.zeros((hidden_dim,), jnp.float32),
        "conv2_w": conv_w(keys[1], hidden_dim, hidden_dim),
        "conv2_b": jnp.zeros((hidden_dim,), jnp.float32),
        "conv3_w": conv_w(keys[2], 1, hidden_dim),
        "conv3_b": jnp.zeros((1,), jnp.float32),
        "conv4_w": conv_w(keys[3], hidden_dim, 1),
        "conv4_b": jnp.zeros((hidden_dim,), jnp.float32),
        "conv5_w": conv_w(keys[4], hidden_dim, hidden_dim),
        "conv5_b": jnp.zeros((hidden_dim,), jnp.float32),
        "conv6_w": conv_w(keys[5], 1, hidden_dim),
        "conv6_b": jnp.zeros((1,), jnp.float32),
        "cls_w1": lin_w(keys[6], d0, 512),
        "cls_b1": jnp.zeros((512,), jnp.float32),
        "cls_w2": lin_w(keys[7], 512, hidden_dim),
        "cls_b2": jnp.zeros((hidden_dim,), jnp.float32),
        "cls_w3": lin_w(keys[8], hidden_dim, output_dim),
        "cls_b3": jnp.zeros((output_dim,), jnp.float32),
        # note: lin2 (Linear(node_number, node_feature_dim)) is unused in forward
    }


if __name__ == "__main__":
    batch_size = 2
    node_number = 16
    node_feature_dim = 16   # forward() requires node_feature_dim == node_number
    hidden_dim = 8
    output_dim = 4
    k = 2

    random.seed(0)
    key = jax.random.PRNGKey(0)
    kx, kadj, kp = jax.random.split(key, 3)

    x = jax.random.normal(kx, (batch_size, node_number, node_feature_dim), jnp.float32)
    adj = (jax.random.uniform(kadj, (batch_size, node_number, node_number))
           > 0.5).astype(jnp.float32)

    params = init_params(kp, node_feature_dim, node_number, hidden_dim, output_dim)
    prep = prepare_params(params, node_number, node_feature_dim)

    fwd = jax.jit(cmc_forward)
    b_out, sim = fwd(prep, x, adj)
    b_out = jax.block_until_ready(b_out)
    sim = jax.block_until_ready(sim)

    out_np = np.asarray(b_out)[..., 0]
    sim_np = np.asarray(sim)
    assert b_out.shape == (batch_size, output_dim, 1)
    assert sim_np.shape == (batch_size, batch_size)
    assert np.all(np.isfinite(out_np)) and np.all(np.isfinite(sim_np))

    # correctness check vs. a pure-JAX reference using the same bf16-rounded weights
    ref_logits, ref_sim = reference_forward(params, x, adj)
    ref_logits = np.asarray(jax.block_until_ready(ref_logits))
    ref_sim = np.asarray(jax.block_until_ready(ref_sim))
    assert np.allclose(out_np, ref_logits, rtol=8e-2, atol=8e-2), (out_np, ref_logits)
    assert np.allclose(sim_np, ref_sim, rtol=8e-2, atol=3e-2), (sim_np, ref_sim)

    loss = contrastive_loss(sim_np, batch_size, k)
    assert np.isfinite(loss)
    print("KERNEL_OK")
</pallas_src>

<mosaic_0001>
module attributes {stable_mosaic.version = 11 : i64} {
  func.func @kernel(%arg0: memref<48x20xf32, #tpu.memory_space<vmem>>, %arg1: memref<48x20xf32, #tpu.memory_space<vmem>>, %arg2: memref<5x20x160xbf16, #tpu.memory_space<vmem>>, %arg3: memref<1x160xf32, #tpu.memory_space<vmem>>, %arg4: memref<5x160x160xbf16, #tpu.memory_space<vmem>>, %arg5: memref<1x160xf32, #tpu.memory_space<vmem>>, %arg6: memref<5x160x16xbf16, #tpu.memory_space<vmem>>, %arg7: memref<1x16xf32, #tpu.memory_space<vmem>>, %arg8: memref<5x20x160xbf16, #tpu.memory_space<vmem>>, %arg9: memref<1x160xf32, #tpu.memory_space<vmem>>, %arg10: memref<5x160x160xbf16, #tpu.memory_space<vmem>>, %arg11: memref<1x160xf32, #tpu.memory_space<vmem>>, %arg12: memref<5x160x16xbf16, #tpu.memory_space<vmem>>, %arg13: memref<1x16xf32, #tpu.memory_space<vmem>>, %arg14: memref<32x16xf32, #tpu.memory_space<vmem>>, %arg15: memref<128x512xbf16, #tpu.memory_space<vmem>>, %arg16: memref<1x512xf32, #tpu.memory_space<vmem>>, %arg17: memref<512x8xbf16, #tpu.memory_space<vmem>>, %arg18: memref<1x8xf32, #tpu.memory_space<vmem>>, %arg19: memref<8x4xf32, #tpu.memory_space<vmem>>, %arg20: memref<1x4xf32, #tpu.memory_space<vmem>>, %arg21: memref<2x128xf32, #tpu.memory_space<vmem>>, %arg22: memref<2x128xf32, #tpu.memory_space<vmem>>) attributes {dimension_semantics = [], scalar_prefetch = 0 : i64, scratch_operands = 1 : i64, tpu.core_type = #tpu.core_type<tc>} {
    %0 = tpu.iota {dimensions = array<i32: 0>} : vector<48x1xi32>
    %c2_i32 = arith.constant 2 : i32
    %1 = vector.broadcast %c2_i32 : i32 to vector<48x1xi32>
    %2 = arith.cmpi sge, %0, %1 : vector<48x1xi32>
    %c18_i32 = arith.constant 18 : i32
    %3 = vector.broadcast %c18_i32 : i32 to vector<48x1xi32>
    %4 = arith.cmpi slt, %0, %3 : vector<48x1xi32>
    %5 = arith.andi %2, %4 : vector<48x1xi1>
    %c26_i32 = arith.constant 26 : i32
    %6 = vector.broadcast %c26_i32 : i32 to vector<48x1xi32>
    %7 = arith.cmpi sge, %0, %6 : vector<48x1xi32>
    %c42_i32 = arith.constant 42 : i32
    %8 = vector.broadcast %c42_i32 : i32 to vector<48x1xi32>
    %9 = arith.cmpi slt, %0, %8 : vector<48x1xi32>
    %10 = arith.andi %7, %9 : vector<48x1xi1>
    %11 = arith.ori %5, %10 : vector<48x1xi1>
    %12 = arith.extui %11 : vector<48x1xi1> to vector<48x1xi32>
    %13 = arith.sitofp %12 : vector<48x1xi32> to vector<48x1xf32>
    %c0 = arith.constant 0 : index
    %c0_0 = arith.constant 0 : index
    %14 = vector.load %arg0[%c0, %c0_0] : memref<48x20xf32, #tpu.memory_space<vmem>>, vector<48x20xf32>
    %15 = arith.truncf %14 : vector<48x20xf32> to vector<48x20xbf16>
    %c0_1 = arith.constant 0 : index
    %c0_2 = arith.constant 0 : index
    %c0_3 = arith.constant 0 : index
    %16 = vector.load %arg2[%c0_1, %c0_2, %c0_3] : memref<5x20x160xbf16, #tpu.memory_space<vmem>>, vector<1x20x160xbf16>
    %17 = vector.shape_cast %16 : vector<1x20x160xbf16> to vector<20x160xbf16>
    %cst = arith.constant dense<0.000000e+00> : vector<48x160xf32>
    %18 = tpu.matmul %15, %17, %cst {dimension_numbers = #tpu.dot_dimension_numbers<[1], [0], [0], [1], [0, 0, 1, 1], [], []>} : vector<48x20xbf16>, vector<20x160xbf16>, vector<48x160xf32> -> vector<48x160xf32>
    %19 = vector.extract_strided_slice %18 {offsets = [46, 0], sizes = [2, 160], strides = [1, 1]} : vector<48x160xf32> to vector<2x160xf32>
    %20 = vector.extract_strided_slice %18 {offsets = [0, 0], sizes = [46, 160], strides = [1, 1]} : vector<48x160xf32> to vector<46x160xf32>
    %21 = tpu.concatenate %19, %20 in 0 : vector<2x160xf32>, vector<46x160xf32> -> vector<48x160xf32>
    %c1 = arith.constant 1 : index
    %c0_4 = arith.constant 0 : index
    %c0_5 = arith.constant 0 : index
    %22 = vector.load %arg2[%c1, %c0_4, %c0_5] : memref<5x20x160xbf16, #tpu.memory_space<vmem>>, vector<1x20x160xbf16>
    %23 = vector.shape_cast %22 : vector<1x20x160xbf16> to vector<20x160xbf16>
    %cst_6 = arith.constant dense<0.000000e+00> : vector<48x160xf32>
    %24 = tpu.matmul %15, %23, %cst_6 {dimension_numbers = #tpu.dot_dimension_numbers<[1], [0], [0], [1], [0, 0, 1, 1], [], []>} : vector<48x20xbf16>, vector<20x160xbf16>, vector<48x160xf32> -> vector<48x160xf32>
    %25 = vector.extract_strided_slice %24 {offsets = [47, 0], sizes = [1, 160], strides = [1, 1]} : vector<48x160xf32> to vector<1x160xf32>
    %26 = vector.extract_strided_slice %24 {offsets = [0, 0], sizes = [47, 160], strides = [1, 1]} : vector<48x160xf32> to vector<47x160xf32>
    %27 = tpu.concatenate %25, %26 in 0 : vector<1x160xf32>, vector<47x160xf32> -> vector<48x160xf32>
    %28 = arith.addf %21, %27 : vector<48x160xf32>
    %c2 = arith.constant 2 : index
    %c0_7 = arith.constant 0 : index
    %c0_8 = arith.constant 0 : index
    %29 = vector.load %arg2[%c2, %c0_7, %c0_8] : memref<5x20x160xbf16, #tpu.memory_space<vmem>>, vector<1x20x160xbf16>
    %30 = vector.shape_cast %29 : vector<1x20x160xbf16> to vector<20x160xbf16>
    %cst_9 = arith.constant dense<0.000000e+00> : vector<48x160xf32>
    %31 = tpu.matmul %15, %30, %cst_9 {dimension_numbers = #tpu.dot_dimension_numbers<[1], [0], [0], [1], [0, 0, 1, 1], [], []>} : vector<48x20xbf16>, vector<20x160xbf16>, vector<48x160xf32> -> vector<48x160xf32>
    %32 = arith.addf %28, %31 : vector<48x160xf32>
    %c3 = arith.constant 3 : index
    %c0_10 = arith.constant 0 : index
    %c0_11 = arith.constant 0 : index
    %33 = vector.load %arg2[%c3, %c0_10, %c0_11] : memref<5x20x160xbf16, #tpu.memory_space<vmem>>, vector<1x20x160xbf16>
    %34 = vector.shape_cast %33 : vector<1x20x160xbf16> to vector<20x160xbf16>
    %cst_12 = arith.constant dense<0.000000e+00> : vector<48x160xf32>
    %35 = tpu.matmul %15, %34, %cst_12 {dimension_numbers = #tpu.dot_dimension_numbers<[1], [0], [0], [1], [0, 0, 1, 1], [], []>} : vector<48x20xbf16>, vector<20x160xbf16>, vector<48x160xf32> -> vector<48x160xf32>
    %36 = vector.extract_strided_slice %35 {offsets = [1, 0], sizes = [47, 160], strides = [1, 1]} : vector<48x160xf32> to vector<47x160xf32>
    %37 = vector.extract_strided_slice %35 {offsets = [0, 0], sizes = [1, 160], strides = [1, 1]} : vector<48x160xf32> to vector<1x160xf32>
    %38 = tpu.concatenate %36, %37 in 0 : vector<47x160xf32>, vector<1x160xf32> -> vector<48x160xf32>
    %39 = arith.addf %32, %38 : vector<48x160xf32>
    %c4 = arith.constant 4 : index
    %c0_13 = arith.constant 0 : index
    %c0_14 = arith.constant 0 : index
    %40 = vector.load %arg2[%c4, %c0_13, %c0_14] : memref<5x20x160xbf16, #tpu.memory_space<vmem>>, vector<1x20x160xbf16>
    %41 = vector.shape_cast %40 : vector<1x20x160xbf16> to vector<20x160xbf16>
    %cst_15 = arith.constant dense<0.000000e+00> : vector<48x160xf32>
    %42 = tpu.matmul %15, %41, %cst_15 {dimension_numbers = #tpu.dot_dimension_numbers<[1], [0], [0], [1], [0, 0, 1, 1], [], []>} : vector<48x20xbf16>, vector<20x160xbf16>, vector<48x160xf32> -> vector<48x160xf32>
    %43 = vector.extract_strided_slice %42 {offsets = [2, 0], sizes = [46, 160], strides = [1, 1]} : vector<48x160xf32> to vector<46x160xf32>
    %44 = vector.extract_strided_slice %42 {offsets = [0, 0], sizes = [2, 160], strides = [1, 1]} : vector<48x160xf32> to vector<2x160xf32>
    %45 = tpu.concatenate %43, %44 in 0 : vector<46x160xf32>, vector<2x160xf32> -> vector<48x160xf32>
    %46 = arith.addf %39, %45 : vector<48x160xf32>
    %c0_16 = arith.constant 0 : index
    %c0_17 = arith.constant 0 : index
    %47 = vector.load %arg3[%c0_16, %c0_17] : memref<1x160xf32, #tpu.memory_space<vmem>>, vector<1x160xf32>
    %48 = vector.broadcast %47 : vector<1x160xf32> to vector<48x160xf32>
    %49 = arith.addf %46, %48 : vector<48x160xf32>
    %cst_18 = arith.constant 0.000000e+00 : f32
    %50 = vector.broadcast %cst_18 : f32 to vector<48x160xf32>
    %51 = arith.maximumf %49, %50 : vector<48x160xf32>
    %52 = vector.broadcast %13 : vector<48x1xf32> to vector<48x160xf32>
    %53 = arith.mulf %51, %52 : vector<48x160xf32>
    %54 = arith.truncf %53 : vector<48x160xf32> to vector<48x160xbf16>
    %c0_19 = arith.constant 0 : index
    %c0_20 = arith.constant 0 : index
    %c0_21 = arith.constant 0 : index
    %55 = vector.load %arg4[%c0_19, %c0_20, %c0_21] : memref<5x160x160xbf16, #tpu.memory_space<vmem>>, vector<1x160x160xbf16>
    %56 = vector.shape_cast %55 : vector<1x160x160xbf16> to vector<160x160xbf16>
    %cst_22 = arith.constant dense<0.000000e+00> : vector<48x160xf32>
    %57 = tpu.matmul %54, %56, %cst_22 {dimension_numbers = #tpu.dot_dimension_numbers<[1], [0], [0], [1], [0, 0, 1, 1], [], []>} : vector<48x160xbf16>, vector<160x160xbf16>, vector<48x160xf32> -> vector<48x160xf32>
    %58 = vector.extract_strided_slice %57 {offsets = [46, 0], sizes = [2, 160], strides = [1, 1]} : vector<48x160xf32> to vector<2x160xf32>
    %59 = vector.extract_strided_slice %57 {offsets = [0, 0], sizes = [46, 160], strides = [1, 1]} : vector<48x160xf32> to vector<46x160xf32>
    %60 = tpu.concatenate %58, %59 in 0 : vector<2x160xf32>, vector<46x160xf32> -> vector<48x160xf32>
    %c1_23 = arith.constant 1 : index
    %c0_24 = arith.constant 0 : index
    %c0_25 = arith.constant 0 : index
    %61 = vector.load %arg4[%c1_23, %c0_24, %c0_25] : memref<5x160x160xbf16, #tpu.memory_space<vmem>>, vector<1x160x160xbf16>
    %62 = vector.shape_cast %61 : vector<1x160x160xbf16> to vector<160x160xbf16>
    %cst_26 = arith.constant dense<0.000000e+00> : vector<48x160xf32>
    %63 = tpu.matmul %54, %62, %cst_26 {dimension_numbers = #tpu.dot_dimension_numbers<[1], [0], [0], [1], [0, 0, 1, 1], [], []>} : vector<48x160xbf16>, vector<160x160xbf16>, vector<48x160xf32> -> vector<48x160xf32>
    %64 = vector.extract_strided_slice %63 {offsets = [47, 0], sizes = [1, 160], strides = [1, 1]} : vector<48x160xf32> to vector<1x160xf32>
    %65 = vector.extract_strided_slice %63 {offsets = [0, 0], sizes = [47, 160], strides = [1, 1]} : vector<48x160xf32> to vector<47x160xf32>
    %66 = tpu.concatenate %64, %65 in 0 : vector<1x160xf32>, vector<47x160xf32> -> vector<48x160xf32>
    %67 = arith.addf %60, %66 : vector<48x160xf32>
    %c2_27 = arith.constant 2 : index
    %c0_28 = arith.constant 0 : index
    %c0_29 = arith.constant 0 : index
    %68 = vector.load %arg4[%c2_27, %c0_28, %c0_29] : memref<5x160x160xbf16, #tpu.memory_space<vmem>>, vector<1x160x160xbf16>
    %69 = vector.shape_cast %68 : vector<1x160x160xbf16> to vector<160x160xbf16>
    %cst_30 = arith.constant dense<0.000000e+00> : vector<48x160xf32>
    %70 = tpu.matmul %54, %69, %cst_30 {dimension_numbers = #tpu.dot_dimension_numbers<[1], [0], [0], [1], [0, 0, 1, 1], [], []>} : vector<48x160xbf16>, vector<160x160xbf16>, vector<48x160xf32> -> vector<48x160xf32>
    %71 = arith.addf %67, %70 : vector<48x160xf32>
    %c3_31 = arith.constant 3 : index
    %c0_32 = arith.constant 0 : index
    %c0_33 = arith.constant 0 : index
    %72 = vector.load %arg4[%c3_31, %c0_32, %c0_33] : memref<5x160x160xbf16, #tpu.memory_space<vmem>>, vector<1x160x160xbf16>
    %73 = vector.shape_cast %72 : vector<1x160x160xbf16> to vector<160x160xbf16>
    %cst_34 = arith.constant dense<0.000000e+00> : vector<48x160xf32>
    %74 = tpu.matmul %54, %73, %cst_34 {dimension_numbers = #tpu.dot_dimension_numbers<[1], [0], [0], [1], [0, 0, 1, 1], [], []>} : vector<48x160xbf16>, vector<160x160xbf16>, vector<48x160xf32> -> vector<48x160xf32>
    %75 = vector.extract_strided_slice %74 {offsets = [1, 0], sizes = [47, 160], strides = [1, 1]} : vector<48x160xf32> to vector<47x160xf32>
    %76 = vector.extract_strided_slice %74 {offsets = [0, 0], sizes = [1, 160], strides = [1, 1]} : vector<48x160xf32> to vector<1x160xf32>
    %77 = tpu.concatenate %75, %76 in 0 : vector<47x160xf32>, vector<1x160xf32> -> vector<48x160xf32>
    %78 = arith.addf %71, %77 : vector<48x160xf32>
    %c4_35 = arith.constant 4 : index
    %c0_36 = arith.constant 0 : index
    %c0_37 = arith.constant 0 : index
    %79 = vector.load %arg4[%c4_35, %c0_36, %c0_37] : memref<5x160x160xbf16, #tpu.memory_space<vmem>>, vector<1x160x160xbf16>
    %80 = vector.shape_cast %79 : vector<1x160x160xbf16> to vector<160x160xbf16>
    %cst_38 = arith.constant dense<0.000000e+00> : vector<48x160xf32>
    %81 = tpu.matmul %54, %80, %cst_38 {dimension_numbers = #tpu.dot_dimension_numbers<[1], [0], [0], [1], [0, 0, 1, 1], [], []>} : vector<48x160xbf16>, vector<160x160xbf16>, vector<48x160xf32> -> vector<48x160xf32>
    %82 = vector.extract_strided_slice %81 {offsets = [2, 0], sizes = [46, 160], strides = [1, 1]} : vector<48x160xf32> to vector<46x160xf32>
    %83 = vector.extract_strided_slice %81 {offsets = [0, 0], sizes = [2, 160], strides = [1, 1]} : vector<48x160xf32> to vector<2x160xf32>
    %84 = tpu.concatenate %82, %83 in 0 : vector<46x160xf32>, vector<2x160xf32> -> vector<48x160xf32>
    %85 = arith.addf %78, %84 : vector<48x160xf32>
    %c0_39 = arith.constant 0 : index
    %c0_40 = arith.constant 0 : index
    %86 = vector.load %arg5[%c0_39, %c0_40] : memref<1x160xf32, #tpu.memory_space<vmem>>, vector<1x160xf32>
    %87 = vector.broadcast %86 : vector<1x160xf32> to vector<48x160xf32>
    %88 = arith.addf %85, %87 : vector<48x160xf32>
    %cst_41 = arith.constant 0.000000e+00 : f32
    %89 = vector.broadcast %cst_41 : f32 to vector<48x160xf32>
    %90 = arith.maximumf %88, %89 : vector<48x160xf32>
    %91 = vector.broadcast %13 : vector<48x1xf32> to vector<48x160xf32>
    %92 = arith.mulf %90, %91 : vector<48x160xf32>
    %93 = arith.truncf %92 : vector<48x160xf32> to vector<48x160xbf16>
    %c0_42 = arith.constant 0 : index
    %c0_43 = arith.constant 0 : index
    %c0_44 = arith.constant 0 : index
    %94 = vector.load %arg6[%c0_42, %c0_43, %c0_44] : memref<5x160x16xbf16, #tpu.memory_space<vmem>>, vector<1x160x16xbf16>
    %95 = vector.shape_cast %94 : vector<1x160x16xbf16> to vector<160x16xbf16>
    %cst_45 = arith.constant dense<0.000000e+00> : vector<48x16xf32>
    %96 = tpu.matmul %93, %95, %cst_45 {dimension_numbers = #tpu.dot_dimension_numbers<[1], [0], [0], [1], [0, 0, 1, 1], [], []>} : vector<48x160xbf16>, vector<160x16xbf16>, vector<48x16xf32> -> vector<48x16xf32>
    %97 = vector.extract_strided_slice %96 {offsets = [46, 0], sizes = [2, 16], strides = [1, 1]} : vector<48x16xf32> to vector<2x16xf32>
    %98 = vector.extract_strided_slice %96 {offsets = [0, 0], sizes = [46, 16], strides = [1, 1]} : vector<48x16xf32> to vector<46x16xf32>
    %99 = tpu.concatenate %97, %98 in 0 : vector<2x16xf32>, vector<46x16xf32> -> vector<48x16xf32>
    %c1_46 = arith.constant 1 : index
    %c0_47 = arith.constant 0 : index
    %c0_48 = arith.constant 0 : index
    %100 = vector.load %arg6[%c1_46, %c0_47, %c0_48] : memref<5x160x16xbf16, #tpu.memory_space<vmem>>, vector<1x160x16xbf16>
    %101 = vector.shape_cast %100 : vector<1x160x16xbf16> to vector<160x16xbf16>
    %cst_49 = arith.constant dense<0.000000e+00> : vector<48x16xf32>
    %102 = tpu.matmul %93, %101, %cst_49 {dimension_numbers = #tpu.dot_dimension_numbers<[1], [0], [0], [1], [0, 0, 1, 1], [], []>} : vector<48x160xbf16>, vector<160x16xbf16>, vector<48x16xf32> -> vector<48x16xf32>
    %103 = vector.extract_strided_slice %102 {offsets = [47, 0], sizes = [1, 16], strides = [1, 1]} : vector<48x16xf32> to vector<1x16xf32>
    %104 = vector.extract_strided_slice %102 {offsets = [0, 0], sizes = [47, 16], strides = [1, 1]} : vector<48x16xf32> to vector<47x16xf32>
    %105 = tpu.concatenate %103, %104 in 0 : vector<1x16xf32>, vector<47x16xf32> -> vector<48x16xf32>
    %106 = arith.addf %99, %105 : vector<48x16xf32>
    %c2_50 = arith.constant 2 : index
    %c0_51 = arith.constant 0 : index
    %c0_52 = arith.constant 0 : index
    %107 = vector.load %arg6[%c2_50, %c0_51, %c0_52] : memref<5x160x16xbf16, #tpu.memory_space<vmem>>, vector<1x160x16xbf16>
    %108 = vector.shape_cast %107 : vector<1x160x16xbf16> to vector<160x16xbf16>
    %cst_53 = arith.constant dense<0.000000e+00> : vector<48x16xf32>
    %109 = tpu.matmul %93, %108, %cst_53 {dimension_numbers = #tpu.dot_dimension_numbers<[1], [0], [0], [1], [0, 0, 1, 1], [], []>} : vector<48x160xbf16>, vector<160x16xbf16>, vector<48x16xf32> -> vector<48x16xf32>
    %110 = arith.addf %106, %109 : vector<48x16xf32>
    %c3_54 = arith.constant 3 : index
    %c0_55 = arith.constant 0 : index
    %c0_56 = arith.constant 0 : index
    %111 = vector.load %arg6[%c3_54, %c0_55, %c0_56] : memref<5x160x16xbf16, #tpu.memory_space<vmem>>, vector<1x160x16xbf16>
    %112 = vector.shape_cast %111 : vector<1x160x16xbf16> to vector<160x16xbf16>
    %cst_57 = arith.constant dense<0.000000e+00> : vector<48x16xf32>
    %113 = tpu.matmul %93, %112, %cst_57 {dimension_numbers = #tpu.dot_dimension_numbers<[1], [0], [0], [1], [0, 0, 1, 1], [], []>} : vector<48x160xbf16>, vector<160x16xbf16>, vector<48x16xf32> -> vector<48x16xf32>
    %114 = vector.extract_strided_slice %113 {offsets = [1, 0], sizes = [47, 16], strides = [1, 1]} : vector<48x16xf32> to vector<47x16xf32>
    %115 = vector.extract_strided_slice %113 {offsets = [0, 0], sizes = [1, 16], strides = [1, 1]} : vector<48x16xf32> to vector<1x16xf32>
    %116 = tpu.concatenate %114, %115 in 0 : vector<47x16xf32>, vector<1x16xf32> -> vector<48x16xf32>
    %117 = arith.addf %110, %116 : vector<48x16xf32>
    %c4_58 = arith.constant 4 : index
    %c0_59 = arith.constant 0 : index
    %c0_60 = arith.constant 0 : index
    %118 = vector.load %arg6[%c4_58, %c0_59, %c0_60] : memref<5x160x16xbf16, #tpu.memory_space<vmem>>, vector<1x160x16xbf16>
    %119 = vector.shape_cast %118 : vector<1x160x16xbf16> to vector<160x16xbf16>
    %cst_61 = arith.constant dense<0.000000e+00> : vector<48x16xf32>
    %120 = tpu.matmul %93, %119, %cst_61 {dimension_numbers = #tpu.dot_dimension_numbers<[1], [0], [0], [1], [0, 0, 1, 1], [], []>} : vector<48x160xbf16>, vector<160x16xbf16>, vector<48x16xf32> -> vector<48x16xf32>
    %121 = vector.extract_strided_slice %120 {offsets = [2, 0], sizes = [46, 16], strides = [1, 1]} : vector<48x16xf32> to vector<46x16xf32>
    %122 = vector.extract_strided_slice %120 {offsets = [0, 0], sizes = [2, 16], strides = [1, 1]} : vector<48x16xf32> to vector<2x16xf32>
    %123 = tpu.concatenate %121, %122 in 0 : vector<46x16xf32>, vector<2x16xf32> -> vector<48x16xf32>
    %124 = arith.addf %117, %123 : vector<48x16xf32>
    %c0_62 = arith.constant 0 : index
    %c0_63 = arith.constant 0 : index
    %125 = vector.load %arg7[%c0_62, %c0_63] : memref<1x16xf32, #tpu.memory_space<vmem>>, vector<1x16xf32>
    %126 = vector.broadcast %125 : vector<1x16xf32> to vector<48x16xf32>
    %127 = arith.addf %124, %126 : vector<48x16xf32>
    %cst_64 = arith.constant 0.000000e+00 : f32
    %128 = vector.broadcast %cst_64 : f32 to vector<48x16xf32>
    %129 = arith.maximumf %127, %128 : vector<48x16xf32>
    %130 = vector.broadcast %13 : vector<48x1xf32> to vector<48x16xf32>
    %131 = arith.mulf %129, %130 : vector<48x16xf32>
    %c0_65 = arith.constant 0 : index
    %c0_66 = arith.constant 0 : index
    %132 = vector.load %arg1[%c0_65, %c0_66] : memref<48x20xf32, #tpu.memory_space<vmem>>, vector<48x20xf32>
    %133 = arith.truncf %132 : vector<48x20xf32> to vector<48x20xbf16>
    %c0_67 = arith.constant 0 : index
    %c0_68 = arith.constant 0 : index
    %c0_69 = arith.constant 0 : index
    %134 = vector.load %arg8[%c0_67, %c0_68, %c0_69] : memref<5x20x160xbf16, #tpu.memory_space<vmem>>, vector<1x20x160xbf16>
    %135 = vector.shape_cast %134 : vector<1x20x160xbf16> to vector<20x160xbf16>
    %cst_70 = arith.constant dense<0.000000e+00> : vector<48x160xf32>
    %136 = tpu.matmul %133, %135, %cst_70 {dimension_numbers = #tpu.dot_dimension_numbers<[1], [0], [0], [1], [0, 0, 1, 1], [], []>} : vector<48x20xbf16>, vector<20x160xbf16>, vector<48x160xf32> -> vector<48x160xf32>
    %137 = vector.extract_strided_slice %136 {offsets = [46, 0], sizes = [2, 160], strides = [1, 1]} : vector<48x160xf32> to vector<2x160xf32>
    %138 = vector.extract_strided_slice %136 {offsets = [0, 0], sizes = [46, 160], strides = [1, 1]} : vector<48x160xf32> to vector<46x160xf32>
    %139 = tpu.concatenate %137, %138 in 0 : vector<2x160xf32>, vector<46x160xf32> -> vector<48x160xf32>
    %c1_71 = arith.constant 1 : index
    %c0_72 = arith.constant 0 : index
    %c0_73 = arith.constant 0 : index
    %140 = vector.load %arg8[%c1_71, %c0_72, %c0_73] : memref<5x20x160xbf16, #tpu.memory_space<vmem>>, vector<1x20x160xbf16>
    %141 = vector.shape_cast %140 : vector<1x20x160xbf16> to vector<20x160xbf16>
    %cst_74 = arith.constant dense<0.000000e+00> : vector<48x160xf32>
    %142 = tpu.matmul %133, %141, %cst_74 {dimension_numbers = #tpu.dot_dimension_numbers<[1], [0], [0], [1], [0, 0, 1, 1], [], []>} : vector<48x20xbf16>, vector<20x160xbf16>, vector<48x160xf32> -> vector<48x160xf32>
    %143 = vector.extract_strided_slice %142 {offsets = [47, 0], sizes = [1, 160], strides = [1, 1]} : vector<48x160xf32> to vector<1x160xf32>
    %144 = vector.extract_strided_slice %142 {offsets = [0, 0], sizes = [47, 160], strides = [1, 1]} : vector<48x160xf32> to vector<47x160xf32>
    %145 = tpu.concatenate %143, %144 in 0 : vector<1x160xf32>, vector<47x160xf32> -> vector<48x160xf32>
    %146 = arith.addf %139, %145 : vector<48x160xf32>
    %c2_75 = arith.constant 2 : index
    %c0_76 = arith.constant 0 : index
    %c0_77 = arith.constant 0 : index
    %147 = vector.load %arg8[%c2_75, %c0_76, %c0_77] : memref<5x20x160xbf16, #tpu.memory_space<vmem>>, vector<1x20x160xbf16>
    %148 = vector.shape_cast %147 : vector<1x20x160xbf16> to vector<20x160xbf16>
    %cst_78 = arith.constant dense<0.000000e+00> : vector<48x160xf32>
    %149 = tpu.matmul %133, %148, %cst_78 {dimension_numbers = #tpu.dot_dimension_numbers<[1], [0], [0], [1], [0, 0, 1, 1], [], []>} : vector<48x20xbf16>, vector<20x160xbf16>, vector<48x160xf32> -> vector<48x160xf32>
    %150 = arith.addf %146, %149 : vector<48x160xf32>
    %c3_79 = arith.constant 3 : index
    %c0_80 = arith.constant 0 : index
    %c0_81 = arith.constant 0 : index
    %151 = vector.load %arg8[%c3_79, %c0_80, %c0_81] : memref<5x20x160xbf16, #tpu.memory_space<vmem>>, vector<1x20x160xbf16>
    %152 = vector.shape_cast %151 : vector<1x20x160xbf16> to vector<20x160xbf16>
    %cst_82 = arith.constant dense<0.000000e+00> : vector<48x160xf32>
    %153 = tpu.matmul %133, %152, %cst_82 {dimension_numbers = #tpu.dot_dimension_numbers<[1], [0], [0], [1], [0, 0, 1, 1], [], []>} : vector<48x20xbf16>, vector<20x160xbf16>, vector<48x160xf32> -> vector<48x160xf32>
    %154 = vector.extract_strided_slice %153 {offsets = [1, 0], sizes = [47, 160], strides = [1, 1]} : vector<48x160xf32> to vector<47x160xf32>
    %155 = vector.extract_strided_slice %153 {offsets = [0, 0], sizes = [1, 160], strides = [1, 1]} : vector<48x160xf32> to vector<1x160xf32>
    %156 = tpu.concatenate %154, %155 in 0 : vector<47x160xf32>, vector<1x160xf32> -> vector<48x160xf32>
    %157 = arith.addf %150, %156 : vector<48x160xf32>
    %c4_83 = arith.constant 4 : index
    %c0_84 = arith.constant 0 : index
    %c0_85 = arith.constant 0 : index
    %158 = vector.load %arg8[%c4_83, %c0_84, %c0_85] : memref<5x20x160xbf16, #tpu.memory_space<vmem>>, vector<1x20x160xbf16>
    %159 = vector.shape_cast %158 : vector<1x20x160xbf16> to vector<20x160xbf16>
    %cst_86 = arith.constant dense<0.000000e+00> : vector<48x160xf32>
    %160 = tpu.matmul %133, %159, %cst_86 {dimension_numbers = #tpu.dot_dimension_numbers<[1], [0], [0], [1], [0, 0, 1, 1], [], []>} : vector<48x20xbf16>, vector<20x160xbf16>, vector<48x160xf32> -> vector<48x160xf32>
    %161 = vector.extract_strided_slice %160 {offsets = [2, 0], sizes = [46, 160], strides = [1, 1]} : vector<48x160xf32> to vector<46x160xf32>
    %162 = vector.extract_strided_slice %160 {offsets = [0, 0], sizes = [2, 160], strides = [1, 1]} : vector<48x160xf32> to vector<2x160xf32>
    %163 = tpu.concatenate %161, %162 in 0 : vector<46x160xf32>, vector<2x160xf32> -> vector<48x160xf32>
    %164 = arith.addf %157, %163 : vector<48x160xf32>
    %c0_87 = arith.constant 0 : index
    %c0_88 = arith.constant 0 : index
    %165 = vector.load %arg9[%c0_87, %c0_88] : memref<1x160xf32, #tpu.memory_space<vmem>>, vector<1x160xf32>
    %166 = vector.broadcast %165 : vector<1x160xf32> to vector<48x160xf32>
    %167 = arith.addf %164, %166 : vector<48x160xf32>
    %cst_89 = arith.constant 0.000000e+00 : f32
    %168 = vector.broadcast %cst_89 : f32 to vector<48x160xf32>
    %169 = arith.maximumf %167, %168 : vector<48x160xf32>
    %170 = vector.broadcast %13 : vector<48x1xf32> to vector<48x160xf32>
    %171 = arith.mulf %169, %170 : vector<48x160xf32>
    %172 = arith.truncf %171 : vector<48x160xf32> to vector<48x160xbf16>
    %c0_90 = arith.constant 0 : index
    %c0_91 = arith.constant 0 : index
    %c0_92 = arith.constant 0 : index
    %173 = vector.load %arg10[%c0_90, %c0_91, %c0_92] : memref<5x160x160xbf16, #tpu.memory_space<vmem>>, vector<1x160x160xbf16>
    %174 = vector.shape_cast %173 : vector<1x160x160xbf16> to vector<160x160xbf16>
    %cst_93 = arith.constant dense<0.000000e+00> : vector<48x160xf32>
    %175 = tpu.matmul %172, %174, %cst_93 {dimension_numbers = #tpu.dot_dimension_numbers<[1], [0], [0], [1], [0, 0, 1, 1], [], []>} : vector<48x160xbf16>, vector<160x160xbf16>, vector<48x160xf32> -> vector<48x160xf32>
    %176 = vector.extract_strided_slice %175 {offsets = [46, 0], sizes = [2, 160], strides = [1, 1]} : vector<48x160xf32> to vector<2x160xf32>
    %177 = vector.extract_strided_slice %175 {offsets = [0, 0], sizes = [46, 160], strides = [1, 1]} : vector<48x160xf32> to vector<46x160xf32>
    %178 = tpu.concatenate %176, %177 in 0 : vector<2x160xf32>, vector<46x160xf32> -> vector<48x160xf32>
    %c1_94 = arith.constant 1 : index
    %c0_95 = arith.constant 0 : index
    %c0_96 = arith.constant 0 : index
    %179 = vector.load %arg10[%c1_94, %c0_95, %c0_96] : memref<5x160x160xbf16, #tpu.memory_space<vmem>>, vector<1x160x160xbf16>
    %180 = vector.shape_cast %179 : vector<1x160x160xbf16> to vector<160x160xbf16>
    %cst_97 = arith.constant dense<0.000000e+00> : vector<48x160xf32>
    %181 = tpu.matmul %172, %180, %cst_97 {dimension_numbers = #tpu.dot_dimension_numbers<[1], [0], [0], [1], [0, 0, 1, 1], [], []>} : vector<48x160xbf16>, vector<160x160xbf16>, vector<48x160xf32> -> vector<48x160xf32>
    %182 = vector.extract_strided_slice %181 {offsets = [47, 0], sizes = [1, 160], strides = [1, 1]} : vector<48x160xf32> to vector<1x160xf32>
    %183 = vector.extract_strided_slice %181 {offsets = [0, 0], sizes = [47, 160], strides = [1, 1]} : vector<48x160xf32> to vector<47x160xf32>
    %184 = tpu.concatenate %182, %183 in 0 : vector<1x160xf32>, vector<47x160xf32> -> vector<48x160xf32>
    %185 = arith.addf %178, %184 : vector<48x160xf32>
    %c2_98 = arith.constant 2 : index
    %c0_99 = arith.constant 0 : index
    %c0_100 = arith.constant 0 : index
    %186 = vector.load %arg10[%c2_98, %c0_99, %c0_100] : memref<5x160x160xbf16, #tpu.memory_space<vmem>>, vector<1x160x160xbf16>
    %187 = vector.shape_cast %186 : vector<1x160x160xbf16> to vector<160x160xbf16>
    %cst_101 = arith.constant dense<0.000000e+00> : vector<48x160xf32>
    %188 = tpu.matmul %172, %187, %cst_101 {dimension_numbers = #tpu.dot_dimension_numbers<[1], [0], [0], [1], [0, 0, 1, 1], [], []>} : vector<48x160xbf16>, vector<160x160xbf16>, vector<48x160xf32> -> vector<48x160xf32>
    %189 = arith.addf %185, %188 : vector<48x160xf32>
    %c3_102 = arith.constant 3 : index
    %c0_103 = arith.constant 0 : index
    %c0_104 = arith.constant 0 : index
    %190 = vector.load %arg10[%c3_102, %c0_103, %c0_104] : memref<5x160x160xbf16, #tpu.memory_space<vmem>>, vector<1x160x160xbf16>
    %191 = vector.shape_cast %190 : vector<1x160x160xbf16> to vector<160x160xbf16>
    %cst_105 = arith.constant dense<0.000000e+00> : vector<48x160xf32>
    %192 = tpu.matmul %172, %191, %cst_105 {dimension_numbers = #tpu.dot_dimension_numbers<[1], [0], [0], [1], [0, 0, 1, 1], [], []>} : vector<48x160xbf16>, vector<160x160xbf16>, vector<48x160xf32> -> vector<48x160xf32>
    %193 = vector.extract_strided_slice %192 {offsets = [1, 0], sizes = [47, 160], strides = [1, 1]} : vector<48x160xf32> to vector<47x160xf32>
    %194 = vector.extract_strided_slice %192 {offsets = [0, 0], sizes = [1, 160], strides = [1, 1]} : vector<48x160xf32> to vector<1x160xf32>
    %195 = tpu.concatenate %193, %194 in 0 : vector<47x160xf32>, vector<1x160xf32> -> vector<48x160xf32>
    %196 = arith.addf %189, %195 : vector<48x160xf32>
    %c4_106 = arith.constant 4 : index
    %c0_107 = arith.constant 0 : index
    %c0_108 = arith.constant 0 : index
    %197 = vector.load %arg10[%c4_106, %c0_107, %c0_108] : memref<5x160x160xbf16, #tpu.memory_space<vmem>>, vector<1x160x160xbf16>
    %198 = vector.shape_cast %197 : vector<1x160x160xbf16> to vector<160x160xbf16>
    %cst_109 = arith.constant dense<0.000000e+00> : vector<48x160xf32>
    %199 = tpu.matmul %172, %198, %cst_109 {dimension_numbers = #tpu.dot_dimension_numbers<[1], [0], [0], [1], [0, 0, 1, 1], [], []>} : vector<48x160xbf16>, vector<160x160xbf16>, vector<48x160xf32> -> vector<48x160xf32>
    %200 = vector.extract_strided_slice %199 {offsets = [2, 0], sizes = [46, 160], strides = [1, 1]} : vector<48x160xf32> to vector<46x160xf32>
    %201 = vector.extract_strided_slice %199 {offsets = [0, 0], sizes = [2, 160], strides = [1, 1]} : vector<48x160xf32> to vector<2x160xf32>
    %202 = tpu.concatenate %200, %201 in 0 : vector<46x160xf32>, vector<2x160xf32> -> vector<48x160xf32>
    %203 = arith.addf %196, %202 : vector<48x160xf32>
    %c0_110 = arith.constant 0 : index
    %c0_111 = arith.constant 0 : index
    %204 = vector.load %arg11[%c0_110, %c0_111] : memref<1x160xf32, #tpu.memory_space<vmem>>, vector<1x160xf32>
    %205 = vector.broadcast %204 : vector<1x160xf32> to vector<48x160xf32>
    %206 = arith.addf %203, %205 : vector<48x160xf32>
    %cst_112 = arith.constant 0.000000e+00 : f32
    %207 = vector.broadcast %cst_112 : f32 to vector<48x160xf32>
    %208 = arith.maximumf %206, %207 : vector<48x160xf32>
    %209 = vector.broadcast %13 : vector<48x1xf32> to vector<48x160xf32>
    %210 = arith.mulf %208, %209 : vector<48x160xf32>
    %211 = arith.truncf %210 : vector<48x160xf32> to vector<48x160xbf16>
    %c0_113 = arith.constant 0 : index
    %c0_114 = arith.constant 0 : index
    %c0_115 = arith.constant 0 : index
    %212 = vector.load %arg12[%c0_113, %c0_114, %c0_115] : memref<5x160x16xbf16, #tpu.memory_space<vmem>>, vector<1x160x16xbf16>
    %213 = vector.shape_cast %212 : vector<1x160x16xbf16> to vector<160x16xbf16>
    %cst_116 = arith.constant dense<0.000000e+00> : vector<48x16xf32>
    %214 = tpu.matmul %211, %213, %cst_116 {dimension_numbers = #tpu.dot_dimension_numbers<[1], [0], [0], [1], [0, 0, 1, 1], [], []>} : vector<48x160xbf16>, vector<160x16xbf16>, vector<48x16xf32> -> vector<48x16xf32>
    %215 = vector.extract_strided_slice %214 {offsets = [46, 0], sizes = [2, 16], strides = [1, 1]} : vector<48x16xf32> to vector<2x16xf32>
    %216 = vector.extract_strided_slice %214 {offsets = [0, 0], sizes = [46, 16], strides = [1, 1]} : vector<48x16xf32> to vector<46x16xf32>
    %217 = tpu.concatenate %215, %216 in 0 : vector<2x16xf32>, vector<46x16xf32> -> vector<48x16xf32>
    %c1_117 = arith.constant 1 : index
    %c0_118 = arith.constant 0 : index
    %c0_119 = arith.constant 0 : index
    %218 = vector.load %arg12[%c1_117, %c0_118, %c0_119] : memref<5x160x16xbf16, #tpu.memory_space<vmem>>, vector<1x160x16xbf16>
    %219 = vector.shape_cast %218 : vector<1x160x16xbf16> to vector<160x16xbf16>
    %cst_120 = arith.constant dense<0.000000e+00> : vector<48x16xf32>
    %220 = tpu.matmul %211, %219, %cst_120 {dimension_numbers = #tpu.dot_dimension_numbers<[1], [0], [0], [1], [0, 0, 1, 1], [], []>} : vector<48x160xbf16>, vector<160x16xbf16>, vector<48x16xf32> -> vector<48x16xf32>
    %221 = vector.extract_strided_slice %220 {offsets = [47, 0], sizes = [1, 16], strides = [1, 1]} : vector<48x16xf32> to vector<1x16xf32>
    %222 = vector.extract_strided_slice %220 {offsets = [0, 0], sizes = [47, 16], strides = [1, 1]} : vector<48x16xf32> to vector<47x16xf32>
    %223 = tpu.concatenate %221, %222 in 0 : vector<1x16xf32>, vector<47x16xf32> -> vector<48x16xf32>
    %224 = arith.addf %217, %223 : vector<48x16xf32>
    %c2_121 = arith.constant 2 : index
    %c0_122 = arith.constant 0 : index
    %c0_123 = arith.constant 0 : index
    %225 = vector.load %arg12[%c2_121, %c0_122, %c0_123] : memref<5x160x16xbf16, #tpu.memory_space<vmem>>, vector<1x160x16xbf16>
    %226 = vector.shape_cast %225 : vector<1x160x16xbf16> to vector<160x16xbf16>
    %cst_124 = arith.constant dense<0.000000e+00> : vector<48x16xf32>
    %227 = tpu.matmul %211, %226, %cst_124 {dimension_numbers = #tpu.dot_dimension_numbers<[1], [0], [0], [1], [0, 0, 1, 1], [], []>} : vector<48x160xbf16>, vector<160x16xbf16>, vector<48x16xf32> -> vector<48x16xf32>
    %228 = arith.addf %224, %227 : vector<48x16xf32>
    %c3_125 = arith.constant 3 : index
    %c0_126 = arith.constant 0 : index
    %c0_127 = arith.constant 0 : index
    %229 = vector.load %arg12[%c3_125, %c0_126, %c0_127] : memref<5x160x16xbf16, #tpu.memory_space<vmem>>, vector<1x160x16xbf16>
    %230 = vector.shape_cast %229 : vector<1x160x16xbf16> to vector<160x16xbf16>
    %cst_128 = arith.constant dense<0.000000e+00> : vector<48x16xf32>
    %231 = tpu.matmul %211, %230, %cst_128 {dimension_numbers = #tpu.dot_dimension_numbers<[1], [0], [0], [1], [0, 0, 1, 1], [], []>} : vector<48x160xbf16>, vector<160x16xbf16>, vector<48x16xf32> -> vector<48x16xf32>
    %232 = vector.extract_strided_slice %231 {offsets = [1, 0], sizes = [47, 16], strides = [1, 1]} : vector<48x16xf32> to vector<47x16xf32>
    %233 = vector.extract_strided_slice %231 {offsets = [0, 0], sizes = [1, 16], strides = [1, 1]} : vector<48x16xf32> to vector<1x16xf32>
    %234 = tpu.concatenate %232, %233 in 0 : vector<47x16xf32>, vector<1x16xf32> -> vector<48x16xf32>
    %235 = arith.addf %228, %234 : vector<48x16xf32>
    %c4_129 = arith.constant 4 : index
    %c0_130 = arith.constant 0 : index
    %c0_131 = arith.constant 0 : index
    %236 = vector.load %arg12[%c4_129, %c0_130, %c0_131] : memref<5x160x16xbf16, #tpu.memory_space<vmem>>, vector<1x160x16xbf16>
    %237 = vector.shape_cast %236 : vector<1x160x16xbf16> to vector<160x16xbf16>
    %cst_132 = arith.constant dense<0.000000e+00> : vector<48x16xf32>
    %238 = tpu.matmul %211, %237, %cst_132 {dimension_numbers = #tpu.dot_dimension_numbers<[1], [0], [0], [1], [0, 0, 1, 1], [], []>} : vector<48x160xbf16>, vector<160x16xbf16>, vector<48x16xf32> -> vector<48x16xf32>
    %239 = vector.extract_strided_slice %238 {offsets = [2, 0], sizes = [46, 16], strides = [1, 1]} : vector<48x16xf32> to vector<46x16xf32>
    %240 = vector.extract_strided_slice %238 {offsets = [0, 0], sizes = [2, 16], strides = [1, 1]} : vector<48x16xf32> to vector<2x16xf32>
    %241 = tpu.concatenate %239, %240 in 0 : vector<46x16xf32>, vector<2x16xf32> -> vector<48x16xf32>
    %242 = arith.addf %235, %241 : vector<48x16xf32>
    %c0_133 = arith.constant 0 : index
    %c0_134 = arith.constant 0 : index
    %243 = vector.load %arg13[%c0_133, %c0_134] : memref<1x16xf32, #tpu.memory_space<vmem>>, vector<1x16xf32>
    %244 = vector.broadcast %243 : vector<1x16xf32> to vector<48x16xf32>
    %245 = arith.addf %242, %244 : vector<48x16xf32>
    %cst_135 = arith.constant 0.000000e+00 : f32
    %246 = vector.broadcast %cst_135 : f32 to vector<48x16xf32>
    %247 = arith.maximumf %245, %246 : vector<48x16xf32>
    %248 = vector.broadcast %13 : vector<48x1xf32> to vector<48x16xf32>
    %249 = arith.mulf %247, %248 : vector<48x16xf32>
    %250 = tpu.concatenate %131, %249 in 1 : vector<48x16xf32>, vector<48x16xf32> -> vector<48x32xf32>
    %251 = vector.extract_strided_slice %250 {offsets = [1, 0], sizes = [47, 32], strides = [1, 1]} : vector<48x32xf32> to vector<47x32xf32>
    %252 = vector.extract_strided_slice %250 {offsets = [0, 0], sizes = [1, 32], strides = [1, 1]} : vector<48x32xf32> to vector<1x32xf32>
    %253 = tpu.concatenate %251, %252 in 0 : vector<47x32xf32>, vector<1x32xf32> -> vector<48x32xf32>
    %254 = arith.maximumf %250, %253 : vector<48x32xf32>
    %255 = vector.extract_strided_slice %254 {offsets = [0, 1], sizes = [48, 31], strides = [1, 1]} : vector<48x32xf32> to vector<48x31xf32>
    %256 = vector.extract_strided_slice %254 {offsets = [0, 0], sizes = [48, 1], strides = [1, 1]} : vector<48x32xf32> to vector<48x1xf32>
    %257 = tpu.concatenate %255, %256 in 1 : vector<48x31xf32>, vector<48x1xf32> -> vector<48x32xf32>
    %258 = arith.maximumf %254, %257 : vector<48x32xf32>
    %c0_136 = arith.constant 0 : index
    %c0_137 = arith.constant 0 : index
    %259 = vector.load %arg14[%c0_136, %c0_137] : memref<32x16xf32, #tpu.memory_space<vmem>>, vector<32x16xf32>
    %cst_138 = arith.constant dense<0.000000e+00> : vector<48x16xf32>
    %260 = tpu.matmul %258, %259, %cst_138 {dimension_numbers = #tpu.dot_dimension_numbers<[1], [0], [0], [1], [0, 0, 1, 1], [], []>} : vector<48x32xf32>, vector<32x16xf32>, vector<48x16xf32> -> vector<48x16xf32>
    %261 = vector.extract_strided_slice %260 {offsets = [2, 0], sizes = [1, 16], strides = [1, 1]} : vector<48x16xf32> to vector<1x16xf32>
    %262 = vector.extract_strided_slice %260 {offsets = [26, 0], sizes = [1, 16], strides = [1, 1]} : vector<48x16xf32> to vector<1x16xf32>
    %263 = tpu.concatenate %261, %262 in 0 : vector<1x16xf32>, vector<1x16xf32> -> vector<2x16xf32>
    %c0_139 = arith.constant 0 : index
    %c0_140 = arith.constant 0 : index
    %264 = vector.load %arg22[%c0_139, %c0_140] : memref<2x128xf32, #tpu.memory_space<vmem>>, vector<2x16xf32>
    tpu.vector_store %arg22[%c0_139, %c0_140], %263 {strides = array<i32>} : memref<2x128xf32, #tpu.memory_space<vmem>>, vector<2x16xf32>,
    %265 = vector.extract_strided_slice %260 {offsets = [4, 0], sizes = [1, 16], strides = [1, 1]} : vector<48x16xf32> to vector<1x16xf32>
    %266 = vector.extract_strided_slice %260 {offsets = [28, 0], sizes = [1, 16], strides = [1, 1]} : vector<48x16xf32> to vector<1x16xf32>
    %267 = tpu.concatenate %265, %266 in 0 : vector<1x16xf32>, vector<1x16xf32> -> vector<2x16xf32>
    %c0_141 = arith.constant 0 : index
    %c16 = arith.constant 16 : index
    %268 = vector.load %arg22[%c0_141, %c16] : memref<2x128xf32, #tpu.memory_space<vmem>>, vector<2x16xf32>
    tpu.vector_store %arg22[%c0_141, %c16], %267 {strides = array<i32>} : memref<2x128xf32, #tpu.memory_space<vmem>>, vector<2x16xf32>,
    %269 = vector.extract_strided_slice %260 {offsets = [6, 0], sizes = [1, 16], strides = [1, 1]} : vector<48x16xf32> to vector<1x16xf32>
    %270 = vector.extract_strided_slice %260 {offsets = [30, 0], sizes = [1, 16], strides = [1, 1]} : vector<48x16xf32> to vector<1x16xf32>
    %271 = tpu.concatenate %269, %270 in 0 : vector<1x16xf32>, vector<1x16xf32> -> vector<2x16xf32>
    %c0_142 = arith.constant 0 : index
    %c32 = arith.constant 32 : index
    %272 = vector.load %arg22[%c0_142, %c32] : memref<2x128xf32, #tpu.memory_space<vmem>>, vector<2x16xf32>
    tpu.vector_store %arg22[%c0_142, %c32], %271 {strides = array<i32>} : memref<2x128xf32, #tpu.memory_space<vmem>>, vector<2x16xf32>,
    %273 = vector.extract_strided_slice %260 {offsets = [8, 0], sizes = [1, 16], strides = [1, 1]} : vector<48x16xf32> to vector<1x16xf32>
    %274 = vector.extract_strided_slice %260 {offsets = [32, 0], sizes = [1, 16], strides = [1, 1]} : vector<48x16xf32> to vector<1x16xf32>
    %275 = tpu.concatenate %273, %274 in 0 : vector<1x16xf32>, vector<1x16xf32> -> vector<2x16xf32>
    %c0_143 = arith.constant 0 : index
    %c48 = arith.constant 48 : index
    %276 = vector.load %arg22[%c0_143, %c48] : memref<2x128xf32, #tpu.memory_space<vmem>>, vector<2x16xf32>
    tpu.vector_store %arg22[%c0_143, %c48], %275 {strides = array<i32>} : memref<2x128xf32, #tpu.memory_space<vmem>>, vector<2x16xf32>,
    %277 = vector.extract_strided_slice %260 {offsets = [10, 0], sizes = [1, 16], strides = [1, 1]} : vector<48x16xf32> to vector<1x16xf32>
    %278 = vector.extract_strided_slice %260 {offsets = [34, 0], sizes = [1, 16], strides = [1, 1]} : vector<48x16xf32> to vector<1x16xf32>
    %279 = tpu.concatenate %277, %278 in 0 : vector<1x16xf32>, vector<1x16xf32> -> vector<2x16xf32>
    %c0_144 = arith.constant 0 : index
    %c64 = arith.constant 64 : index
    %280 = vector.load %arg22[%c0_144, %c64] : memref<2x128xf32, #tpu.memory_space<vmem>>, vector<2x16xf32>
    tpu.vector_store %arg22[%c0_144, %c64], %279 {strides = array<i32>} : memref<2x128xf32, #tpu.memory_space<vmem>>, vector<2x16xf32>,
    %281 = vector.extract_strided_slice %260 {offsets = [12, 0], sizes = [1, 16], strides = [1, 1]} : vector<48x16xf32> to vector<1x16xf32>
    %282 = vector.extract_strided_slice %260 {offsets = [36, 0], sizes = [1, 16], strides = [1, 1]} : vector<48x16xf32> to vector<1x16xf32>
    %283 = tpu.concatenate %281, %282 in 0 : vector<1x16xf32>, vector<1x16xf32> -> vector<2x16xf32>
    %c0_145 = arith.constant 0 : index
    %c80 = arith.constant 80 : index
    %284 = vector.load %arg22[%c0_145, %c80] : memref<2x128xf32, #tpu.memory_space<vmem>>, vector<2x16xf32>
    tpu.vector_store %arg22[%c0_145, %c80], %283 {strides = array<i32>} : memref<2x128xf32, #tpu.memory_space<vmem>>, vector<2x16xf32>,
    %285 = vector.extract_strided_slice %260 {offsets = [14, 0], sizes = [1, 16], strides = [1, 1]} : vector<48x16xf32> to vector<1x16xf32>
    %286 = vector.extract_strided_slice %260 {offsets = [38, 0], sizes = [1, 16], strides = [1, 1]} : vector<48x16xf32> to vector<1x16xf32>
    %287 = tpu.concatenate %285, %286 in 0 : vector<1x16xf32>, vector<1x16xf32> -> vector<2x16xf32>
    %c0_146 = arith.constant 0 : index
    %c96 = arith.constant 96 : index
    %288 = vector.load %arg22[%c0_146, %c96] : memref<2x128xf32, #tpu.memory_space<vmem>>, vector<2x16xf32>
    tpu.vector_store %arg22[%c0_146, %c96], %287 {strides = array<i32>} : memref<2x128xf32, #tpu.memory_space<vmem>>, vector<2x16xf32>,
    %289 = vector.extract_strided_slice %260 {offsets = [16, 0], sizes = [1, 16], strides = [1, 1]} : vector<48x16xf32> to vector<1x16xf32>
    %290 = vector.extract_strided_slice %260 {offsets = [40, 0], sizes = [1, 16], strides = [1, 1]} : vector<48x16xf32> to vector<1x16xf32>
    %291 = tpu.concatenate %289, %290 in 0 : vector<1x16xf32>, vector<1x16xf32> -> vector<2x16xf32>
    %c0_147 = arith.constant 0 : index
    %c112 = arith.constant 112 : index
    %292 = vector.load %arg22[%c0_147, %c112] : memref<2x128xf32, #tpu.memory_space<vmem>>, vector<2x16xf32>
    tpu.vector_store %arg22[%c0_147, %c112], %291 {strides = array<i32>} : memref<2x128xf32, #tpu.memory_space<vmem>>, vector<2x16xf32>,
    %c0_148 = arith.constant 0 : index
    %c0_149 = arith.constant 0 : index
    %293 = vector.load %arg22[%c0_148, %c0_149] : memref<2x128xf32, #tpu.memory_space<vmem>>, vector<2x128xf32>
    %294 = arith.truncf %293 : vector<2x128xf32> to vector<2x128xbf16>
    %c0_150 = arith.constant 0 : index
    %c0_151 = arith.constant 0 : index
    %295 = vector.load %arg15[%c0_150, %c0_151] : memref<128x512xbf16, #tpu.memory_space<vmem>>, vector<128x512xbf16>
    %cst_152 = arith.constant dense<0.000000e+00> : vector<2x512xf32>
    %296 = tpu.matmul %294, %295, %cst_152 {dimension_numbers = #tpu.dot_dimension_numbers<[1], [0], [0], [1], [0, 0, 1, 1], [], []>} : vector<2x128xbf16>, vector<128x512xbf16>, vector<2x512xf32> -> vector<2x512xf32>
    %c0_153 = arith.constant 0 : index
    %c0_154 = arith.constant 0 : index
    %297 = vector.load %arg16[%c0_153, %c0_154] : memref<1x512xf32, #tpu.memory_space<vmem>>, vector<1x512xf32>
    %298 = vector.broadcast %297 : vector<1x512xf32> to vector<2x512xf32>
    %299 = arith.addf %296, %298 : vector<2x512xf32>
    %cst_155 = arith.constant 0.000000e+00 : f32
    %300 = vector.broadcast %cst_155 : f32 to vector<2x512xf32>
    %301 = arith.maximumf %299, %300 : vector<2x512xf32>
    %302 = arith.truncf %301 : vector<2x512xf32> to vector<2x512xbf16>
    %c0_156 = arith.constant 0 : index
    %c0_157 = arith.constant 0 : index
    %303 = vector.load %arg17[%c0_156, %c0_157] : memref<512x8xbf16, #tpu.memory_space<vmem>>, vector<512x8xbf16>
    %cst_158 = arith.constant dense<0.000000e+00> : vector<2x8xf32>
    %304 = tpu.matmul %302, %303, %cst_158 {dimension_numbers = #tpu.dot_dimension_numbers<[1], [0], [0], [1], [0, 0, 1, 1], [], []>} : vector<2x512xbf16>, vector<512x8xbf16>, vector<2x8xf32> -> vector<2x8xf32>
    %c0_159 = arith.constant 0 : index
    %c0_160 = arith.constant 0 : index
    %305 = vector.load %arg18[%c0_159, %c0_160] : memref<1x8xf32, #tpu.memory_space<vmem>>, vector<1x8xf32>
    %306 = vector.broadcast %305 : vector<1x8xf32> to vector<2x8xf32>
    %307 = arith.addf %304, %306 : vector<2x8xf32>
    %cst_161 = arith.constant 0.000000e+00 : f32
    %308 = vector.broadcast %cst_161 : f32 to vector<2x8xf32>
    %309 = arith.maximumf %307, %308 : vector<2x8xf32>
    %c0_162 = arith.constant 0 : index
    %c0_163 = arith.constant 0 : index
    %310 = vector.load %arg19[%c0_162, %c0_163] : memref<8x4xf32, #tpu.memory_space<vmem>>, vector<8x4xf32>
    %cst_164 = arith.constant dense<0.000000e+00> : vector<2x4xf32>
    %311 = tpu.matmul %309, %310, %cst_164 {dimension_numbers = #tpu.dot_dimension_numbers<[1], [0], [0], [1], [0, 0, 1, 1], [], []>} : vector<2x8xf32>, vector<8x4xf32>, vector<2x4xf32> -> vector<2x4xf32>
    %c0_165 = arith.constant 0 : index
    %c0_166 = arith.constant 0 : index
    %312 = vector.load %arg20[%c0_165, %c0_166] : memref<1x4xf32, #tpu.memory_space<vmem>>, vector<1x4xf32>
    %313 = vector.broadcast %312 : vector<1x4xf32> to vector<2x4xf32>
    %314 = arith.addf %311, %313 : vector<2x4xf32>
    %315 = arith.mulf %131, %131 : vector<48x16xf32>
    %cst_167 = arith.constant dense<0.000000e+00> : vector<48xf32>
    %316 = vector.multi_reduction <add>, %315, %cst_167 [1] : vector<48x16xf32> to vector<48xf32>
    %317 = vector.shape_cast %316 : vector<48xf32> to vector<48x1xf32>
    %318 = math.sqrt %317 : vector<48x1xf32>
    %cst_168 = arith.constant 9.99999993E-9 : f32
    %319 = vector.broadcast %cst_168 : f32 to vector<48x1xf32>
    %320 = arith.maximumf %318, %319 : vector<48x1xf32>
    %321 = arith.mulf %249, %249 : vector<48x16xf32>
    %cst_169 = arith.constant dense<0.000000e+00> : vector<48xf32>
    %322 = vector.multi_reduction <add>, %321, %cst_169 [1] : vector<48x16xf32> to vector<48xf32>
    %323 = vector.shape_cast %322 : vector<48xf32> to vector<48x1xf32>
    %324 = math.sqrt %323 : vector<48x1xf32>
    %cst_170 = arith.constant 9.99999993E-9 : f32
    %325 = vector.broadcast %cst_170 : f32 to vector<48x1xf32>
    %326 = arith.maximumf %324, %325 : vector<48x1xf32>
    %327 = vector.broadcast %320 : vector<48x1xf32> to vector<48x16xf32>
    %328 = arith.divf %131, %327 : vector<48x16xf32>
    %329 = vector.broadcast %326 : vector<48x1xf32> to vector<48x16xf32>
    %330 = arith.divf %249, %329 : vector<48x16xf32>
    %cst_171 = arith.constant dense<0.000000e+00> : vector<48x48xf32>
    %331 = tpu.matmul %328, %330, %cst_171 {dimension_numbers = #tpu.dot_dimension_numbers<[1], [1], [0], [0], [0, 0, 1, 0], [], []>} : vector<48x16xf32>, vector<48x16xf32>, vector<48x48xf32> -> vector<48x48xf32>
    %332 = tpu.iota {dimensions = array<i32: 1>} : vector<2x48xi32>
    %333 = tpu.iota {dimensions = array<i32: 0>} : vector<2x48xi32>
    %c24_i32 = arith.constant 24 : i32
    %334 = vector.broadcast %c24_i32 : i32 to vector<2x48xi32>
    %335 = arith.muli %333, %334 : vector<2x48xi32>
    %c2_i32_172 = arith.constant 2 : i32
    %336 = vector.broadcast %c2_i32_172 : i32 to vector<2x48xi32>
    %337 = arith.addi %335, %336 : vector<2x48xi32>
    %338 = arith.cmpi sge, %332, %337 : vector<2x48xi32>
    %c24_i32_173 = arith.constant 24 : i32
    %339 = vector.broadcast %c24_i32_173 : i32 to vector<2x48xi32>
    %340 = arith.muli %333, %339 : vector<2x48xi32>
    %c2_i32_174 = arith.constant 2 : i32
    %341 = vector.broadcast %c2_i32_174 : i32 to vector<2x48xi32>
    %342 = arith.addi %340, %341 : vector<2x48xi32>
    %c16_i32 = arith.constant 16 : i32
    %343 = vector.broadcast %c16_i32 : i32 to vector<2x48xi32>
    %344 = arith.addi %342, %343 : vector<2x48xi32>
    %345 = arith.cmpi slt, %332, %344 : vector<2x48xi32>
    %346 = arith.andi %338, %345 : vector<2x48xi1>
    %347 = arith.extui %346 : vector<2x48xi1> to vector<2x48xi32>
    %348 = arith.sitofp %347 : vector<2x48xi32> to vector<2x48xf32>
    %349 = tpu.iota {dimensions = array<i32: 0>} : vector<48x2xi32>
    %350 = tpu.iota {dimensions = array<i32: 1>} : vector<48x2xi32>
    %c24_i32_175 = arith.constant 24 : i32
    %351 = vector.broadcast %c24_i32_175 : i32 to vector<48x2xi32>
    %352 = arith.muli %350, %351 : vector<48x2xi32>
    %c2_i32_176 = arith.constant 2 : i32
    %353 = vector.broadcast %c2_i32_176 : i32 to vector<48x2xi32>
    %354 = arith.addi %352, %353 : vector<48x2xi32>
    %355 = arith.cmpi sge, %349, %354 : vector<48x2xi32>
    %c24_i32_177 = arith.constant 24 : i32
    %356 = vector.broadcast %c24_i32_177 : i32 to vector<48x2xi32>
    %357 = arith.muli %350, %356 : vector<48x2xi32>
    %c2_i32_178 = arith.constant 2 : i32
    %358 = vector.broadcast %c2_i32_178 : i32 to vector<48x2xi32>
    %359 = arith.addi %357, %358 : vector<48x2xi32>
    %c16_i32_179 = arith.constant 16 : i32
    %360 = vector.broadcast %c16_i32_179 : i32 to vector<48x2xi32>
    %361 = arith.addi %359, %360 : vector<48x2xi32>
    %362 = arith.cmpi slt, %349, %361 : vector<48x2xi32>
    %363 = arith.andi %355, %362 : vector<48x2xi1>
    %364 = arith.extui %363 : vector<48x2xi1> to vector<48x2xi32>
    %365 = arith.sitofp %364 : vector<48x2xi32> to vector<48x2xf32>
    %cst_180 = arith.constant dense<0.000000e+00> : vector<2x48xf32>
    %366 = tpu.matmul %348, %331, %cst_180 {dimension_numbers = #tpu.dot_dimension_numbers<[1], [0], [0], [1], [0, 0, 1, 1], [], []>} : vector<2x48xf32>, vector<48x48xf32>, vector<2x48xf32> -> vector<2x48xf32>
    %cst_181 = arith.constant dense<0.000000e+00> : vector<2x2xf32>
    %367 = tpu.matmul %366, %365, %cst_181 {dimension_numbers = #tpu.dot_dimension_numbers<[1], [0], [0], [1], [0, 0, 1, 1], [], []>} : vector<2x48xf32>, vector<48x2xf32>, vector<2x2xf32> -> vector<2x2xf32>
    %cst_182 = arith.constant 3.906250e-03 : f32
    %368 = vector.broadcast %cst_182 : f32 to vector<2x2xf32>
    %369 = arith.mulf %367, %368 : vector<2x2xf32>
    %cst_183 = arith.constant 0.000000e+00 : f32
    %370 = vector.broadcast %cst_183 : f32 to vector<2x122xf32>
    %371 = tpu.concatenate %314, %369, %370 in 1 : vector<2x4xf32>, vector<2x2xf32>, vector<2x122xf32> -> vector<2x128xf32>
    %c0_184 = arith.constant 0 : index
    %c0_185 = arith.constant 0 : index
    %372 = vector.load %arg21[%c0_184, %c0_185] : memref<2x128xf32, #tpu.memory_space<vmem>>, vector<2x128xf32>
    tpu.vector_store %arg21[%c0_184, %c0_185], %371 {strides = array<i32>} : memref<2x128xf32, #tpu.memory_space<vmem>>, vector<2x128xf32>,
    return
  }
}

</mosaic_0001>

<bundles_post_ra>
// kernel: cmc_forward.1
= control target key start
LH: loop header
LB: loop body
LE: loop exit
PB: predicated region body
PF: predicated region fallthrough
CT: control target
= control target key end

     0   :  { %s13645_s0 = inlined_call_operand.vmem [shape: f32[48,20], index: 0, kind: input, shape index: {}]   ;;  %s13646_s1 = inlined_call_operand.vmem [shape: f32[48,20], index: 1, kind: input, shape index: {}]   ;;  %s13647_s2 = inlined_call_operand.hbm [shape: bf16[5,20,160], index: 2, kind: input, shape index: {}]   ;;  %s13648_s3 = inlined_call_operand.vmem [shape: f32[1,160], index: 3, kind: input, shape index: {}]   ;;  %s13649_s4 = inlined_call_operand.vmem [shape: bf16[5,160,160], index: 4, kind: input, shape index: {}]   ;;  %s13650_s5 = inlined_call_operand.vmem [shape: f32[1,160], index: 5, kind: input, shape index: {}]   ;;  %s13651_s6 = inlined_call_operand.vmem [shape: bf16[5,160,16], index: 6, kind: input, shape index: {}]   ;;  %s13652_s7 = inlined_call_operand.vmem [shape: f32[1,16], index: 7, kind: input, shape index: {}]   ;;  %s13653_s8 = inlined_call_operand.hbm [shape: bf16[5,20,160], index: 8, kind: input, shape index: {}]   ;;  %s13654_s9 = inlined_call_operand.vmem [shape: f32[1,160], index: 9, kind: input, shape index: {}]   ;;  %s13655_s10 = inlined_call_operand.hbm [shape: bf16[5,160,160], index: 10, kind: input, shape index: {}]   ;;  %s13656_s11 = inlined_call_operand.vmem [shape: f32[1,160], index: 11, kind: input, shape index: {}]   ;;  %s13657_s12 = inlined_call_operand.vmem [shape: bf16[5,160,16], index: 12, kind: input, shape index: {}]   ;;  %s13658_s13 = inlined_call_operand.vmem [shape: f32[1,16], index: 13, kind: input, shape index: {}]   ;;  %s13659_s14 = inlined_call_operand.vmem [shape: f32[32,16], index: 14, kind: input, shape index: {}]   ;;  %s13660_s15 = inlined_call_operand.vmem [shape: bf16[128,512], index: 15, kind: input, shape index: {}]   ;;  %s13661_s16 = inlined_call_operand.vmem [shape: f32[1,512], index: 16, kind: input, shape index: {}]   ;;  %s13662_s17 = inlined_call_operand.vmem [shape: bf16[512,8], index: 17, kind: input, shape index: {}]   ;;  %s13663_s18 = inlined_call_operand.vmem [shape: f32[1,8], index: 18, kind: input, shape index: {}]   ;;  %s13664_s19 = inlined_call_operand.vmem [shape: f32[8,4], index: 19, kind: input, shape index: {}]   ;;  %s13665_s20 = inlined_call_operand.vmem [shape: f32[1,4], index: 20, kind: input, shape index: {}]   ;;  %s13666_s21 = inlined_call_operand.vmem [shape: f32[2,128], index: 21, kind: output, shape index: {}]  }
   0x1   :  { %13708 = sst [smem:[#allocation23_spill]] %s13645_s0 }
   0x2   :  { %13709 = sst [smem:[#allocation24_spill]] %s13646_s1 }
   0x3   :  { %13710 = sst [smem:[#allocation25_spill]] %s13647_s2 }
   0x4   :  { %13711 = sst [smem:[#allocation26_spill]] %s13648_s3 }
   0x5   :  { %13712 = sst [smem:[#allocation27_spill]] %s13649_s4 }
   0x6   :  { %13713 = sst [smem:[#allocation28_spill]] %s13650_s5 }
   0x7   :  { %13714 = sst [smem:[#allocation29_spill]] %s13666_s21 }
   0x8   :  { %26 = vsyncpa [#allocation4], 0 }
   0x9   :  { %27 = vsyncpa [#allocation6], 0  ;;  %s59_s26 = sshll.u32 %s13653_s8, 4  ;;  %s9836_s27 = smov [#allocation5]   ;;  %s60_s26 = int_to_ptr.hbm [resolvable:$true] %s59_s26 }
   0xa   :  { %s61_s3 = sshll.u32 %s9836_s27, 4  ;;  %s13715_s0 = sld [smem:[#allocation25_spill]]  ;;  %s62_s3 = int_to_ptr.vmem [resolvable:$true] %s61_s3 }
   0xb   :  { %s9837_s30 = smov 128   ;;  %s9838_s5 = smov 8  }
   0xc   :  { %67 = dma.hbm_to_vmem [thread:$0]  %s60_s26, 1920, %s62_s3, [#allocation6], %s9837_s30, %s9837_s30, %s9838_s5  }
   0xd   :  { %s9839_s22 = smov [#allocation3]   ;;  %s74_s21 = sshll.u32 %s13655_s10, 4  ;;  %s75_s21 = int_to_ptr.hbm [resolvable:$true] %s74_s21 }
   0xe   :  { %s38_s23 = sshll.u32 %s9839_s22, 4  ;;  %s9840_s8 = smov [#allocation7]   ;;  %s39_s23 = int_to_ptr.vmem [resolvable:$true] %s38_s23 }
   0xf   :  { %s76_s2 = sshll.u32 %s9840_s8, 4  ;;  %s77_s2 = int_to_ptr.vmem [resolvable:$true] %s76_s2 }
  0x10   :  { %s36_s4 = sshll.u32 %s13715_s0, 4  ;;  %s37_s4 = int_to_ptr.hbm [resolvable:$true] %s36_s4 }
  0x11   :  { %44 = dma.hbm_to_vmem [thread:$0]  %s37_s4, 1920, %s39_s23, [#allocation4], %s9837_s30, %s9837_s30, %s9838_s5  }
  0x12   :  { %82 = dma.hbm_to_vmem [thread:$0]  %s75_s21, 12800, %s77_s2, [#allocation6], %s9837_s30, %s9837_s30, %s9838_s5  }
  0x13   :  { %9832 = dma.done.wait [#allocation4], 1920  }
  0x14   :  { %9833 = vsyncadd [#allocation4], 4294965376 }
  0x15   :  { %9834 = dma.done.wait [#allocation6], 14720  }
  0x16   :  { %9835 = vsyncadd [#allocation6], 4294952576  ;;  %v188_v0 = vld [vmem:[#allocation3 + $0x10] sm:$0x33]  ;;  %vm214_vm0 = vcmask 1041408   ;;  %s13716_s25 = sld [smem:[#allocation23_spill]] }
  0x17   :  { %v322_v1 = vld [vmem:[#allocation3 + $0x28] sm:$0x33]  ;;  %v196_v2 = vunpack.c.l.b16 %v188_v0  ;;  %v197_v3 = vunpack.c.h.b16 %v188_v0  ;;  %v7347_v6 = vld [vmem:[#allocation3] sm:$0xf]  ;;  %v9305_v8 = vld [vmem:[#allocation3 + $0x4] sm:$0xf] }
  0x18   :  { %v330_v4 = vunpack.c.l.b16 %v322_v1  ;;  %v331_v5 = vunpack.c.h.b16 %v322_v1  ;;  %v9306_v7 = vld [vmem:[#allocation3 + $0x4] sm:$0xf0]  ;;  %v7349_v13 = vld [vmem:[#allocation3 + $0x8] sm:$0xf0]  ;;  %v7361_v14 = vld [vmem:[#allocation3 + $0x18] sm:$0xf] }
  0x19   :  { %v200_v9 = vpack.c.b16 %v196_v2, %v196_v2  ;;  %v201_v10 = vpack.c.b16 %v197_v3, %v197_v3  ;;  %v9308_v15 = vld [vmem:[#allocation3 + $0x1c] sm:$0xf0]  ;;  %v9307_v16 = vld [vmem:[#allocation3 + $0x1c] sm:$0xf]  ;;  %v7363_v17 = vld [vmem:[#allocation3 + $0x20] sm:$0xf0]  ;;  %v7348_v24 = vor.u32 %v9306_v7, %v7347_v6  ;;  %v7352_v25 = vor.u32 %v9305_v8, %v7349_v13 }
  0x1a   :  { %v334_v11 = vpack.c.b16 %v330_v4, %v330_v4  ;;  %v335_v12 = vpack.c.b16 %v331_v5, %v331_v5  ;;  %v458_v18 = vld [vmem:[#allocation3 + $0x40] sm:$0x33]  ;;  %v7362_v31 = vor.u32 %v9308_v15, %v7361_v14  ;;  %v7366_v32 = vor.u32 %v9307_v16, %v7363_v17  ;;  %v7375_v33 = vld [vmem:[#allocation3 + $0x30] sm:$0xf]  ;;  %v9310_v34 = vld [vmem:[#allocation3 + $0x34] sm:$0xf0] }
  0x1b   :  { %v216_v19 = vsel %vm214_vm0, %v200_v9, 0  ;;  %v219_v20 = vsel %vm214_vm0, %v201_v10, 0  ;;  %v466_v27 = vunpack.c.l.b16 %v458_v18  ;;  %v467_v28 = vunpack.c.h.b16 %v458_v18  ;;  %v543_v35 = vld [vmem:[#allocation3 + $0x58] sm:$0x33]  ;;  %v9309_v38 = vld [vmem:[#allocation3 + $0x34] sm:$0xf] }
  0x1c   :  { %v339_v21 = vsel %vm214_vm0, %v334_v11, 0  ;;  %v342_v22 = vsel %vm214_vm0, %v335_v12, 0  ;;  %v177_v23 = vld [vmem:[%s13716_s25] sm:$0xff]  ;;  %227 = vmatpush.bf16.msra.mxu0 %v216_v19  ;;  %251 = vmatpush.bf16.msra.mxu1 %v219_v20  ;;  %v178_v26 = vld [vmem:[%s13716_s25 + $0x8] sm:$0xff]  ;;  %v179_v29 = vld [vmem:[%s13716_s25 + $0x10] sm:$0xff]  ;;  %v552_v41 = vunpack.c.h.b16 %v543_v35  ;;  %vm204_vm1 = vcmask 162816  }
  0x1d   :  { %v180_v30 = vld [vmem:[%s13716_s25 + $0x18] sm:$0xff]  ;;  %350 = vmatpush.bf16.msra.mxu2 %v339_v21  ;;  %9689 = vmatpush.bf16.msra.mxu3 %v342_v22  ;;  %v470_v36 = vpack.c.b16 %v466_v27, %v466_v27  ;;  %v471_v37 = vpack.c.b16 %v467_v28, %v467_v28  ;;  %v9988_v39 = vpack.c.bf16 %v178_v26, %v177_v23  ;;  %v9311_v48 = vld [vmem:[#allocation3 + $0x4c] sm:$0xf]  ;;  %v181_v52 = vld [vmem:[%s13716_s25 + $0x20] sm:$0xff]  ;;  %v551_v55 = vunpack.c.l.b16 %v543_v35  ;;  %s13717_s24 = sld [smem:[#allocation27_spill]]  ;;  %s9846_s29 = smov 80  }
  0x1e   :  { %v7377_v40 = vld [vmem:[#allocation3 + $0x38] sm:$0xf0]  ;;  %v9992_v44 = vpack.c.bf16 %v180_v30, %v179_v29  ;;  %v556_v45 = vpack.c.b16 %v552_v41, %v552_v41  ;;  %v7376_v46 = vor.u32 %v9310_v34, %v7375_v33  ;;  %v7391_v49 = vld [vmem:[#allocation3 + $0x50] sm:$0xf0]  ;;  %v182_v53 = vld [vmem:[%s13716_s25 + $0x28] sm:$0xff]  ;;  %vm408_vm2 = vcmask 1040384  }
  0x1f   :  { %v475_v42 = vsel %vm214_vm0, %v470_v36, 0  ;;  %v478_v43 = vsel %vm214_vm0, %v471_v37, 0  ;;  %v7380_v47 = vor.u32 %v9309_v38, %v7377_v40  ;;  %v7394_v51 = vor.u32 %v9311_v48, %v7391_v49  ;;  %v679_v56 = vld [vmem:[#allocation3 + $0x70] sm:$0x33]  ;;  %v7389_v58 = vld [vmem:[#allocation3 + $0x48] sm:$0xf] }
  0x20   :  { %228 = vmatpush.bf16.msra.mxu0 %v7348_v24  ;;  %252 = vmatpush.bf16.msra.mxu1 %v7352_v25  ;;  %v563_v50 = vsel %vm214_vm0, %v556_v45, 0  ;;  %v185_v54 = vpack.c.bf16 %v182_v53, %v181_v52  ;;  %v555_v57 = vpack.c.b16 %v551_v55, %v551_v55  ;;  %v9312_v59 = vld [vmem:[#allocation3 + $0x4c] sm:$0xf0]  ;;  %v687_v60 = vunpack.c.l.b16 %v679_v56  ;;  %v7403_v4 = vld [vmem:[#allocation3 + $0x60] sm:$0xf]  ;;  %s13718_s21 = sld [smem:[#allocation26_spill]] }
  0x21   :  { %351 = vmatpush.bf16.msra.mxu2 %v7362_v31  ;;  %9690 = vmatpush.bf16.msra.mxu3 %v7366_v32  ;;  %v688_v61 = vunpack.c.h.b16 %v679_v56  ;;  %v7390_v1 = vor.u32 %v9312_v59, %v7389_v58  ;;  %v9314_v5 = vld [vmem:[#allocation3 + $0x64] sm:$0xf0]  ;;  %v9313_v6 = vld [vmem:[#allocation3 + $0x64] sm:$0xf]  ;;  %v7405_v8 = vld [vmem:[#allocation3 + $0x68] sm:$0xf0] }
  0x22   :  { %v560_v62 = vsel %vm214_vm0, %v555_v57, 0  ;;  %v691_v63 = vpack.c.b16 %v687_v60, %v687_v60  ;;  %v7404_v7 = vor.u32 %v9314_v5, %v7403_v4  ;;  %v7408_v9 = vor.u32 %v9313_v6, %v7405_v8  ;;  %s13725_s23 = sld [smem:[#allocation28_spill]]  ;;  %s9848_s0 = smov 48  }
  0x23   :  { %7353 = vmatmul.msk.bf16.vlgmr.msra.gmra.mxu0 %vm204_vm1, %v9988_v39  ;;  %7356 = vmatmul.msk.bf16.vlgmr.msra.gmra.mxu1 %vm204_vm1, %v9988_v39  ;;  %v692_v0 = vpack.c.b16 %v688_v61, %v688_v61  ;;  %v7465_v4 = vld [vmem:[%s13717_s24 + $0x60] sm:$0xf]  ;;  %v9328_v5 = vld [vmem:[%s13717_s24 + $0x64] sm:$0xf0]  ;;  %v7475_v8 = vld [vmem:[%s13717_s24 + $0x78] sm:$0xf0] }
  0x24   :  { %486 = vmatpush.bf16.msrb.mxu0 %v475_v42  ;;  %510 = vmatpush.bf16.msrb.mxu1 %v478_v43  ;;  %v696_v2 = vsel %vm214_vm0, %v691_v63, 0  ;;  %v9330_v63 = vld [vmem:[%s13717_s24 + $0x74] sm:$0xf0]  ;;  %vm625_vm3 = vcmask 1046528   ;;  %vm761_vm4 = vcmask 1045504   ;;  %vm980_vm6 = vcmask 261120  }
  0x25   :  { %7367 = vmatmul.msk.bf16.vlgmr.msra.gmra.mxu2 %vm204_vm1, %v9988_v39  ;;  %7371 = vmatmul.msk.bf16.vlgmr.msra.gmra.mxu3 %vm204_vm1, %v9992_v44  ;;  %v699_v3 = vsel %vm214_vm0, %v692_v0, 0  ;;  %v7489_v0 = vld [vmem:[%s13717_s24 + $0x90] sm:$0xf]  ;;  %s13731_s27 = sld [smem:[#allocation24_spill]]  ;;  %vm5939_vm10 = vcmask 130048   ;;  %vm6019_vm11 = vcmask 252928  }
  0x26   :  { %374 = vmatpush.bf16.msrb.mxu2 %v342_v22  ;;  %595 = vmatpush.bf16.msrb.mxu3 %v563_v50  ;;  %vm6096_vm12 = vcmask 123904   ;;  %s9849_s4 = smov 112   ;;  %s9850_s30 = smov 96   ;;  %vm6107_vm13 = vcmask 255104   ;;  %vm6118_vm14 = vcmask 386304   ;;  %vm6128_vm15 = vcmask 517504  }
  0x28   :  { %487 = vmatpush.bf16.msrb.mxu0 %v7376_v46  ;;  %511 = vmatpush.bf16.msrb.mxu1 %v7380_v47 }
  0x2a   :  { %596 = vmatpush.bf16.msrb.mxu3 %v7394_v51  ;;  %375 = vmatpush.bf16.msrb.mxu2 %v7366_v32 }
  0x2c   :  { %707 = vmatpush.bf16.msra.mxu0 %v696_v2  ;;  %731 = vmatpush.bf16.msra.mxu1 %v699_v3  ;;  %v9334_v3 = vld [vmem:[%s13717_s24 + $0x94] sm:$0xf0] }
  0x2d   :  { %v7490_v6 = vor.u32 %v9334_v3, %v7489_v0  ;;  %v9332_v3 = vld [vmem:[%s13717_s24 + $0x84] sm:$0xf0] }
  0x2e   :  { %571 = vmatpush.bf16.msra.mxu2 %v560_v62  ;;  %v7473_v62 = vld [vmem:[%s13717_s24 + $0x70] sm:$0xf] }
  0x2f   :  { %v7474_v2 = vor.u32 %v9330_v63, %v7473_v62  ;;  %1020 = vmatpush.bf16.msra.mxu3 %v7490_v6  ;;  %v7481_v62 = vld [vmem:[%s13717_s24 + $0x80] sm:$0xf]  ;;  %v7443_v6 = vld [vmem:[%s13717_s24 + $0x38] sm:$0xf0] }
  0x30   :  { %708 = vmatpush.bf16.msra.mxu0 %v7404_v7  ;;  %732 = vmatpush.bf16.msra.mxu1 %v7408_v9  ;;  %v9329_v7 = vld [vmem:[%s13717_s24 + $0x74] sm:$0xf] }
  0x31   :  { %v9333_v9 = vld [vmem:[%s13717_s24 + $0x94] sm:$0xf] }
  0x32   :  { %572 = vmatpush.bf16.msra.mxu2 %v7390_v1 }
  0x33   :  { %7354 = vmatmul.msk.bf16.gmra.mxu0 %vm204_vm1, %v9992_v44  ;;  %7357 = vmatmul.msk.bf16.gmra.mxu1 %vm204_vm1, %v9992_v44 }
  0x35   :  { %7368 = vmatmul.msk.bf16.gmra.mxu2 %vm204_vm1, %v9992_v44  ;;  %7372 = vmatmul.msk.bf16.gmra.mxu3 %vm204_vm1, %v185_v54 }
  0x43   :  { %7355 = vmatmul.msk.bf16.gmra.mxu0 %vm204_vm1, %v185_v54  ;;  %7358 = vmatmul.msk.bf16.gmra.mxu1 %vm204_vm1, %v185_v54 }
  0x45   :  { %7369 = vmatmul.msk.bf16.gmra.mxu2 %vm204_vm1, %v185_v54  ;;  %7398 = vmatmul.msk.bf16.vlgmr.msrb.gmra.mxu3 %vm204_vm1, %v9988_v39 }
  0x53   :  { %7381 = vmatmul.msk.bf16.vlgmr.msrb.gmra.mxu0 %vm204_vm1, %v9988_v39  ;;  %7384 = vmatmul.msk.bf16.vlgmr.msrb.gmra.mxu1 %vm204_vm1, %v9988_v39 }
  0x55   :  { %7370 = vmatmul.msk.bf16.vlgmr.msrb.gmra.mxu2 %vm204_vm1, %v9988_v39  ;;  %7399 = vmatmul.msk.bf16.gmra.mxu3 %vm204_vm1, %v9992_v44 }
  0x56   :  { %990 = vmatpush.bf16.msrb.mxu2 %v7474_v2 }
  0x63   :  { %7382 = vmatmul.msk.bf16.gmra.mxu0 %vm204_vm1, %v9992_v44  ;;  %7385 = vmatmul.msk.bf16.gmra.mxu1 %vm204_vm1, %v9992_v44 }
  0x65   :  { %7395 = vmatmul.msk.bf16.vlgmr.msra.gmra.mxu2 %vm204_vm1, %v9988_v39  ;;  %7400 = vmatmul.msk.bf16.gmra.mxu3 %vm204_vm1, %v185_v54 }
  0x73   :  { %7383 = vmatmul.msk.bf16.gmra.mxu0 %vm204_vm1, %v185_v54  ;;  %7386 = vmatmul.msk.bf16.gmra.mxu1 %vm204_vm1, %v185_v54 }
  0x75   :  { %7396 = vmatmul.msk.bf16.gmra.mxu2 %vm204_vm1, %v9992_v44 }
  0x83   :  { %7409 = vmatmul.msk.bf16.vlgmr.msra.gmra.mxu0 %vm204_vm1, %v9988_v39  ;;  %7412 = vmatmul.msk.bf16.vlgmr.msra.gmra.mxu1 %vm204_vm1, %v9988_v39 }
  0x85   :  { %7397 = vmatmul.msk.bf16.gmra.mxu2 %vm204_vm1, %v185_v54 }
  0x93   :  { %7410 = vmatmul.msk.bf16.gmra.mxu0 %vm204_vm1, %v9992_v44  ;;  %7413 = vmatmul.msk.bf16.gmra.mxu1 %vm204_vm1, %v9992_v44 }
  0xa0   :  { %v230_v10 = vpop.f32.mrf.mxu0  ;;  %v10052_v11 = vpop.f32.mrf.mxu1 }
  0xa1   :  { %v285_v18 = vrot.slane %v230_v10, 6  ;;  %v7466_v10 = vor.u32 %v9328_v5, %v7465_v4  ;;  %v7482_v4 = vor.u32 %v9332_v3, %v7481_v62  ;;  %v9321_v5 = vld [vmem:[%s13717_s24 + $0x34] sm:$0xf]  ;;  %v9315_v62 = vld [vmem:[%s13717_s24 + $0x4] sm:$0xf] }
  0xa2   :  { %v7419_v3 = vld [vmem:[%s13717_s24 + $0x8] sm:$0xf0] }
  0xa3   :  { %7411 = vmatmul.msk.bf16.gmra.mxu0 %vm204_vm1, %v185_v54  ;;  %7414 = vmatmul.msk.bf16.gmra.mxu1 %vm204_vm1, %v185_v54 }
  0xa4   :  { %991 = vmatpush.bf16.msrb.mxu2 %v7466_v10  ;;  %1021 = vmatpush.bf16.msra.mxu3 %v7482_v4  ;;  %v7446_v10 = vor.u32 %v9321_v5, %v7443_v6  ;;  %v7422_v5 = vor.u32 %v9315_v62, %v7419_v3 }
  0xa8   :  { %v353_v12 = vpop.f32.mrf.mxu2  ;;  %v232_v13 = vpop.f32.mrf.mxu0 }
  0xa9   :  { %v10056_v14 = vpop.f32.mrf.mxu1  ;;  %v409_v15 = vrot.slane %v353_v12, 7  ;;  %v287_v16 = vrot.slane %v232_v13, 6  ;;  %v10070_v34 = vpop.f32.mrf.mxu3  ;;  %v7478_v12 = vor.u32 %v9329_v7, %v7475_v8  ;;  %v7491_v13 = vld [vmem:[%s13717_s24 + $0x98] sm:$0xf0]  ;;  %v7433_v8 = vld [vmem:[%s13717_s24 + $0x20] sm:$0xf] }
  0xab   :  { %v288_v22 = vsel %vm214_vm0, %v285_v18, %v287_v16  ;;  %1038 = vmatpush.bf16.msrb.mxu0 %v7478_v12 }
  0xb0   :  { %v355_v17 = vpop.f32.mrf.mxu2  ;;  %v235_v20 = vpop.f32.mrf.mxu0 }
  0xb1   :  { %v411_v19 = vrot.slane %v355_v17, 7  ;;  %v10058_v21 = vpop.f32.mrf.mxu1  ;;  %v291_v25 = vrot.slane %v235_v20, 6  ;;  %v10080_v47 = vpop.f32.mrf.mxu3  ;;  %v9326_v20 = vld [vmem:[%s13717_s24 + $0x54] sm:$0xf0] }
  0xb3   :  { %v412_v23 = vsel %vm408_vm2, %v409_v15, %v411_v19  ;;  %v292_v30 = vsel %vm214_vm0, %v287_v16, %v291_v25  ;;  %v7494_v16 = vor.u32 %v9333_v9, %v7491_v13  ;;  %v9320_v9 = vld [vmem:[%s13717_s24 + $0x24] sm:$0xf0] }
  0xb4   :  { %v10062_v24 = vadd.f32 %v412_v23, %v288_v22  ;;  %v9327_v22 = vld [vmem:[%s13717_s24 + $0x64] sm:$0xf] }
  0xb5   :  { %1068 = vmatpush.bf16.msrb.mxu1 %v7494_v16  ;;  %v7434_v16 = vor.u32 %v9320_v9, %v7433_v8  ;;  %v286_v9 = vrot.slane %v10052_v11, 6  ;;  %v289_v11 = vrot.slane %v10056_v14, 6 }
  0xb8   :  { %v358_v26 = vpop.f32.mrf.mxu2  ;;  %v237_v28 = vpop.f32.mrf.mxu0 }
  0xb9   :  { %v415_v27 = vrot.slane %v358_v26, 7  ;;  %v10064_v29 = vpop.f32.mrf.mxu1  ;;  %v295_v33 = vrot.slane %v237_v28, 6  ;;  %v10094_v60 = vpop.f32.mrf.mxu3 }
  0xbb   :  { %v416_v31 = vsel %vm408_vm2, %v411_v19, %v415_v27  ;;  %v296_v39 = vsel %vm214_vm0, %v291_v25, %v295_v33  ;;  %v7457_v19 = vld [vmem:[%s13717_s24 + $0x50] sm:$0xf]  ;;  %v7467_v25 = vld [vmem:[%s13717_s24 + $0x68] sm:$0xf0] }
  0xbc   :  { %v10068_v32 = vadd.f32 %v416_v31, %v292_v30  ;;  %v7458_v23 = vor.u32 %v9326_v20, %v7457_v19  ;;  %v9319_v19 = vld [vmem:[%s13717_s24 + $0x24] sm:$0xf] }
  0xbe   :  { %992 = vmatpush.bf16.msrb.mxu2 %v7458_v23 }
  0xc0   :  { %v360_v35 = vpop.f32.mrf.mxu2  ;;  %v240_v37 = vpop.f32.mrf.mxu0 }
  0xc1   :  { %v419_v36 = vrot.slane %v360_v35, 7  ;;  %v10072_v38 = vpop.f32.mrf.mxu1  ;;  %v299_v42 = vrot.slane %v240_v37, 6  ;;  %v10148_v26 = vpop.f32.mrf.mxu3  ;;  %v9324_v35 = vld [vmem:[%s13717_s24 + $0x44] sm:$0xf0] }
  0xc2   :  { %v395_v6 = vrot.slane %v10148_v26, 7 }
  0xc3   :  { %v420_v40 = vsel %vm408_vm2, %v415_v27, %v419_v36  ;;  %v300_v48 = vsel %vm214_vm0, %v295_v33, %v299_v42  ;;  %v7470_v27 = vor.u32 %v9327_v22, %v7467_v25  ;;  %v7449_v33 = vld [vmem:[%s13717_s24 + $0x40] sm:$0xf]  ;;  %v7435_v25 = vld [vmem:[%s13717_s24 + $0x28] sm:$0xf0] }
  0xc4   :  { %v10076_v41 = vadd.f32 %v420_v40, %v296_v39  ;;  %v7450_v37 = vor.u32 %v9324_v35, %v7449_v33  ;;  %v7459_v39 = vld [vmem:[%s13717_s24 + $0x58] sm:$0xf0]  ;;  %v7483_v33 = vld [vmem:[%s13717_s24 + $0x88] sm:$0xf0]  ;;  %v7438_v35 = vor.u32 %v9319_v19, %v7435_v25 }
  0xc5   :  { %1039 = vmatpush.bf16.msrb.mxu0 %v7470_v27  ;;  %v9331_v27 = vld [vmem:[%s13717_s24 + $0x84] sm:$0xf] }
  0xc6   :  { %993 = vmatpush.bf16.msrb.mxu2 %v7450_v37  ;;  %v9318_v37 = vld [vmem:[%s13717_s24 + $0x14] sm:$0xf0] }
  0xc8   :  { %v363_v43 = vpop.f32.mrf.mxu2  ;;  %v242_v45 = vpop.f32.mrf.mxu0 }
  0xc9   :  { %v423_v44 = vrot.slane %v363_v43, 7  ;;  %v10078_v46 = vpop.f32.mrf.mxu1  ;;  %v271_v51 = vrot.slane %v242_v45, 6  ;;  %v9323_v43 = vld [vmem:[%s13717_s24 + $0x44] sm:$0xf]  ;;  %v425_v45 = vrot.slane %v10094_v60, 7 }
  0xca   :  { %v9347_v60 = vld [vmem:[%s13717_s24 + $0x104] sm:$0xf] }
  0xcb   :  { %v424_v49 = vsel %vm408_vm2, %v419_v36, %v423_v44  ;;  %v317_v56 = vsel %vm214_vm0, %v271_v51, %v285_v18  ;;  %v303_v58 = vsel %vm214_vm0, %v299_v42, %v271_v51  ;;  %v9325_v36 = vld [vmem:[%s13717_s24 + $0x54] sm:$0xf]  ;;  %v10168_v42 = vpop.f32.mrf.mxu3 }
  0xcc   :  { %v10084_v50 = vadd.f32 %v424_v49, %v300_v48  ;;  %v7462_v40 = vor.u32 %v9325_v36, %v7459_v39  ;;  %v301_v48 = vrot.slane %v10072_v38, 6  ;;  %v7486_v36 = vor.u32 %v9331_v27, %v7483_v33  ;;  %v9317_v39 = vld [vmem:[%s13717_s24 + $0x14] sm:$0xf] }
  0xcd   :  { %v629_v27 = vrot.slane %v10168_v42, 1 }
  0xce   :  { %1040 = vmatpush.bf16.msrb.mxu0 %v7462_v40  ;;  %1069 = vmatpush.bf16.msrb.mxu1 %v7486_v36  ;;  %v7595_v36 = vld [vmem:[%s13717_s24 + $0x130] sm:$0xf] }
  0xd0   :  { %v365_v52 = vpop.f32.mrf.mxu2  ;;  %v10086_v54 = vpop.f32.mrf.mxu0 }
  0xd1   :  { %v394_v53 = vrot.slane %v365_v52, 7  ;;  %v10088_v55 = vpop.f32.mrf.mxu1 }
  0xd3   :  { %v441_v57 = vsel %vm408_vm2, %v394_v53, %v409_v15  ;;  %v427_v59 = vsel %vm408_vm2, %v423_v44, %v394_v53  ;;  %v7451_v44 = vld [vmem:[%s13717_s24 + $0x48] sm:$0xf0]  ;;  %v421_v53 = vrot.slane %v10080_v47, 7  ;;  %v10223_v20 = vpop.f32.mrf.mxu3 }
  0xd4   :  { %v10096_v61 = vadd.f32 %v441_v57, %v317_v56  ;;  %v10107_v1 = vadd.f32 %v427_v59, %v303_v58  ;;  %v7454_v52 = vor.u32 %v9323_v43, %v7451_v44  ;;  %v297_v56 = vrot.slane %v10064_v29, 6  ;;  %v7441_v58 = vld [vmem:[%s13717_s24 + $0x30] sm:$0xf]  ;;  %v9322_v59 = vld [vmem:[%s13717_s24 + $0x34] sm:$0xf0] }
  0xd5   :  { %v426_v0 = vsel %vm408_vm2, %v421_v53, %v425_v45  ;;  %v7442_v2 = vor.u32 %v9322_v59, %v7441_v58  ;;  %v7427_v43 = vld [vmem:[%s13717_s24 + $0x18] sm:$0xf0]  ;;  %v7417_v58 = vld [vmem:[%s13717_s24] sm:$0xf]  ;;  %v9316_v59 = vld [vmem:[%s13717_s24 + $0x4] sm:$0xf0] }
  0xd6   :  { %1041 = vmatpush.bf16.msrb.mxu0 %v7454_v52  ;;  %v302_v63 = vsel %vm214_vm0, %v297_v56, %v301_v48  ;;  %v7430_v52 = vor.u32 %v9317_v39, %v7427_v43  ;;  %v630_v33 = vrot.slane %v10223_v20, 1  ;;  %v9354_v20 = vld [vmem:[%s13717_s24 + $0x134] sm:$0xf0]  ;;  %v528_v3 = vadd.f32 %v10086_v54, %v10096_v61 }
  0xd7   :  { %994 = vmatpush.bf16.msrb.mxu2 %v7442_v2  ;;  %v452_v7 = vadd.f32 %v426_v0, %v302_v63  ;;  %v7418_v2 = vor.u32 %v9316_v59, %v7417_v58  ;;  %v7596_v43 = vor.u32 %v9354_v20, %v7595_v36 }
  0xd8   :  { %v10130_v15 = vpop.f32.mrf.mxu2  ;;  %v10132_v17 = vpop.f32.mrf.mxu0  ;;  %v631_v58 = vsel %vm625_vm3, %v629_v27, %v630_v33 }
  0xd9   :  { %v10134_v18 = vpop.f32.mrf.mxu1  ;;  %v410_v4 = vrot.slane %v10130_v15, 7  ;;  %1287 = vmatpush.bf16.msrb.mxu3 %v7596_v43 }
  0xda   :  { %1042 = vmatpush.bf16.msrb.mxu0 %v7446_v10 }
  0xdb   :  { %995 = vmatpush.bf16.msrb.mxu2 %v7434_v16  ;;  %v10272_v8 = vpop.f32.mrf.mxu3  ;;  %v442_v10 = vsel %vm408_vm2, %v395_v6, %v410_v4 }
  0xde   :  { %1043 = vmatpush.bf16.msrb.mxu0 %v7438_v35  ;;  %v7579_v35 = vld [vmem:[%s13717_s24 + $0x110] sm:$0xf] }
  0xe0   :  { %v10150_v28 = vpop.f32.mrf.mxu0  ;;  %v10154_v31 = vpop.f32.mrf.mxu2 }
  0xe1   :  { %v10152_v30 = vpop.f32.mrf.mxu1 }
  0xe2   :  { %1044 = vmatpush.bf16.msrb.mxu0 %v7430_v52  ;;  %v293_v52 = vrot.slane %v10058_v21, 6 }
  0xe3   :  { %v10311_v59 = vpop.f32.mrf.mxu3 }
  0xe4   :  { %v298_v62 = vsel %vm214_vm0, %v293_v52, %v297_v56 }
  0xe6   :  { %1045 = vmatpush.bf16.msrb.mxu0 %v7422_v5 }
  0xe8   :  { %v10178_v49 = vpop.f32.mrf.mxu0  ;;  %v10184_v57 = vpop.f32.mrf.mxu2 }
  0xe9   :  { %v10180_v51 = vpop.f32.mrf.mxu1  ;;  %v626_v14 = vrot.slane %v10184_v57, 1  ;;  %v7523_v57 = vld [vmem:[%s13717_s24 + $0xa0] sm:$0xf] }
  0xf0   :  { %v499_v12 = vpop.f32.mrf.mxu0  ;;  %v10251_v44 = vpop.f32.mrf.mxu2 }
  0xf1   :  { %v523_v13 = vpop.f32.mrf.mxu1  ;;  %v10226_v22 = vadd.f32 %v499_v12, %v10084_v50  ;;  %v7425_v50 = vld [vmem:[%s13717_s24 + $0x10] sm:$0xf] }
  0xf2   :  { %v10228_v23 = vadd.f32 %v523_v13, %v452_v7  ;;  %v7426_v40 = vor.u32 %v9318_v37, %v7425_v50  ;;  %v272_v7 = vrot.slane %v10078_v46, 6  ;;  %v417_v13 = vrot.slane %v10070_v34, 7  ;;  %v9350_v34 = vld [vmem:[%s13717_s24 + $0x114] sm:$0xf0] }
  0xf3   :  { %v413_v50 = vrot.slane %v10154_v31, 7  ;;  %v627_v37 = vrot.slane %v10251_v44, 1  ;;  %v7580_v39 = vor.u32 %v9350_v34, %v7579_v35  ;;  %v290_v31 = vsel %vm214_vm0, %v286_v9, %v289_v11 }
  0xf4   :  { %996 = vmatpush.bf16.msrb.mxu2 %v7426_v40  ;;  %v318_v15 = vsel %vm214_vm0, %v272_v7, %v286_v9  ;;  %v422_v21 = vsel %vm408_vm2, %v417_v13, %v421_v53  ;;  %v13671_v34 = vlaneseq }
  0xf5   :  { %v444_v16 = vadd.f32 %v442_v10, %v318_v15  ;;  %v414_v44 = vsel %vm408_vm2, %v410_v4, %v413_v50  ;;  %v634_v4 = vrot.slane %v10272_v8, 1 }
  0xf7   :  { %v529_v40 = vadd.f32 %v10088_v55, %v444_v16  ;;  %v628_v55 = vsel %vm625_vm3, %v626_v14, %v627_v37  ;;  %v446_v16 = vadd.f32 %v414_v44, %v290_v31  ;;  %v9349_v31 = vld [vmem:[%s13717_s24 + $0x114] sm:$0xf]  ;;  %v294_v44 = vsel %vm214_vm0, %v289_v11, %v293_v52 }
  0xf8   :  { %v10262_v63 = vpop.f32.mrf.mxu0  ;;  %997 = vmatpush.bf16.msrb.mxu2 %v7418_v2  ;;  %v10281_v12 = vpop.f32.mrf.mxu2  ;;  %v812_v2 = vld [vmem:[%s13718_s21] sm:$0x3]  ;;  %v664_v35 = vadd.f32 %v628_v55, %v528_v3  ;;  %v418_v55 = vsel %vm408_vm2, %v413_v50, %v417_v13  ;;  %v10369_v11 = vshrl.u32 %v13671_v34, 7  ;;  %v635_v52 = vsel %vm625_vm3, %v630_v33, %v634_v4 }
  0xf9   :  { %v10264_v0 = vpop.f32.mrf.mxu1  ;;  %v665_v56 = vadd.f32 %v631_v58, %v529_v40  ;;  %v10334_v36 = vperm.slane %v812_v2, 0  ;;  %v632_v54 = vrot.slane %v10281_v12, 1  ;;  %v10343_v20 = vperm.slane %v812_v2, 1  ;;  %v7571_v58 = vld [vmem:[%s13717_s24 + $0x100] sm:$0xf] }
  0xfa   :  { %v9348_v12 = vld [vmem:[%s13717_s24 + $0x104] sm:$0xf0]  ;;  %v10356_v2 = vadd.f32 %v422_v21, %v298_v62  ;;  %13719 = vst [vmem:[#allocation10_spill] sm:$0xff] %v10369_v11  ;;  %v10374_v62 = vpop.f32.mrf.mxu3  ;;  %vm123_vm5 = vcmp.ge.s32.totalorder %v10369_v11, 2 }
  0xfb   :  { %v7572_v3 = vor.u32 %v9348_v12, %v7571_v58  ;;  %v633_v21 = vsel %vm625_vm3, %v627_v37, %v632_v54  ;;  %v448_v12 = vadd.f32 %v418_v55, %v294_v44 }
  0xfc   :  { %1257 = vmatpush.bf16.msra.mxu2 %v7580_v39 }
 0x100   :  { %v10284_v19 = vpop.f32.mrf.mxu0  ;;  %v10330_v47 = vpop.f32.mrf.mxu2  ;;  %1258 = vmatpush.bf16.msra.mxu2 %v7572_v3 }
 0x101   :  { %v10286_v25 = vpop.f32.mrf.mxu1  ;;  %v762_v53 = vrot.slane %v10284_v19, 2 }
 0x102   :  { %v765_v9 = vrot.slane %v10286_v25, 2 }
 0x108   :  { %v712_v29 = vpop.f32.mrf.mxu0 }
 0x109   :  { %v736_v5 = vpop.f32.mrf.mxu1  ;;  %v763_v10 = vrot.slane %v712_v29, 2  ;;  %v7581_v29 = vld [vmem:[%s13717_s24 + $0x118] sm:$0xf0] }
 0x10a   :  { %v766_v15 = vrot.slane %v736_v5, 2  ;;  %v7597_v5 = vld [vmem:[%s13717_s24 + $0x138] sm:$0xf0]  ;;  %v7584_v13 = vor.u32 %v9349_v31, %v7581_v29  ;;  %v10406_v31 = vpop.f32.mrf.mxu2 }
 0x10b   :  { %v764_v61 = vsel %vm761_vm4, %v762_v53, %v763_v10 }
 0x10c   :  { %v767_v39 = vsel %vm761_vm4, %v765_v9, %v766_v15  ;;  %v800_v40 = vadd.f32 %v764_v61, %v664_v35  ;;  %v531_v35 = vadd.f32 %v10134_v18, %v446_v16  ;;  %v636_v61 = vrot.slane %v10330_v47, 1  ;;  %1305 = vmatpush.bf16.msra.mxu0 %v7584_v13 }
 0x10d   :  { %v801_v43 = vadd.f32 %v767_v39, %v665_v56  ;;  %v9353_v56 = vld [vmem:[%s13717_s24 + $0x134] sm:$0xf]  ;;  %v530_v18 = vadd.f32 %v10132_v17, %v10062_v24  ;;  %v10386_v16 = vsel %vm408_vm2, %v425_v45, %v395_v6  ;;  %v7573_v6 = vld [vmem:[%s13717_s24 + $0x108] sm:$0xf0]  ;;  %v532_v13 = vadd.f32 %v10150_v28, %v10068_v32  ;;  %v9346_v32 = vld [vmem:[%s13717_s24 + $0xf4] sm:$0xf0] }
 0x10e   :  { %v7600_v50 = vor.u32 %v9353_v56, %v7597_v5  ;;  %v818_v39 = vadd.f32 %v10334_v36, %v800_v40  ;;  %v638_v40 = vrot.slane %v10311_v59, 1  ;;  %v667_v45 = vadd.f32 %v635_v52, %v531_v35  ;;  %v7563_v52 = vld [vmem:[%s13717_s24 + $0xf0] sm:$0xf] }
 0x10f   :  { %v819_v33 = vadd.f32 %v10343_v20, %v801_v43  ;;  %v666_v26 = vadd.f32 %v633_v21, %v530_v18  ;;  %v637_v43 = vsel %vm625_vm3, %v632_v54, %v636_v61  ;;  %v7576_v35 = vor.u32 %v9347_v60, %v7573_v6  ;;  %v9344_v60 = vld [vmem:[%s13717_s24 + $0xe4] sm:$0xf0] }
 0x110   :  { %v10389_v58 = vpop.f32.mrf.mxu0  ;;  %1335 = vmatpush.bf16.msra.mxu1 %v7600_v50  ;;  %v830_v44 = vmax.f32 %v818_v39, 0.0  ;;  %v642_v54 = vrot.slane %v10374_v62, 1  ;;  %v10422_v50 = vsel %vm214_vm0, %v301_v48, %v272_v7  ;;  %v7564_v28 = vor.u32 %v9346_v32, %v7563_v52  ;;  %v9345_v48 = vld [vmem:[%s13717_s24 + $0xf4] sm:$0xf]  ;;  %v7565_v7 = vld [vmem:[%s13717_s24 + $0xf8] sm:$0xf0] }
 0x111   :  { %v10391_v37 = vpop.f32.mrf.mxu1  ;;  %v768_v24 = vrot.slane %v10389_v58, 2  ;;  %v831_v29 = vmax.f32 %v819_v33, 0.0  ;;  %1306 = vmatpush.bf16.msra.mxu0 %v7576_v35  ;;  %v533_v21 = vadd.f32 %v10152_v30, %v448_v12  ;;  %v639_v39 = vsel %vm625_vm3, %v634_v4, %v638_v40  ;;  %v7555_v33 = vld [vmem:[%s13717_s24 + $0xe0] sm:$0xf] }
 0x112   :  { %v770_v17 = vrot.slane %v10391_v37, 2  ;;  %v668_v18 = vadd.f32 %v637_v43, %v532_v13  ;;  %v7587_v30 = vld [vmem:[%s13717_s24 + $0x120] sm:$0xf]  ;;  %1259 = vmatpush.bf16.msra.mxu2 %v7564_v28  ;;  %v7557_v13 = vld [vmem:[%s13717_s24 + $0xe8] sm:$0xf0]  ;;  %v643_v58 = vsel %vm625_vm3, %v638_v40, %v642_v54  ;;  %v10525_v59 = vadd.s32 24, %v10369_v11 }
 0x113   :  { %v769_v55 = vsel %vm761_vm4, %v763_v10, %v768_v24  ;;  %v13670_v10 = vmov 0.0   ;;  %v9342_v28 = vld [vmem:[%s13717_s24 + $0xd4] sm:$0xf0] }
 0x114   :  { %v771_v3 = vsel %vm761_vm4, %v766_v15, %v770_v17  ;;  %v802_v56 = vadd.f32 %v769_v55, %v666_v26  ;;  %v10427_v15 = vsel %vm123_vm5, 1.0, %v13670_v10  ;;  %v7568_v26 = vor.u32 %v9345_v48, %v7565_v7  ;;  %v9352_v55 = vld [vmem:[%s13717_s24 + $0x124] sm:$0xf0]  ;;  %v9341_v7 = vld [vmem:[%s13717_s24 + $0xd4] sm:$0xf]  ;;  %13721 = vst [vmem:[#allocation12_spill] sm:$0xff] %v10525_v59 }
 0x115   :  { %v803_v5 = vadd.f32 %v771_v3, %v667_v45  ;;  %v842_v12 = vmul.f32 %v10427_v15, %v830_v44  ;;  %v843_v8 = vmul.f32 %v10427_v15, %v831_v29  ;;  %v9343_v3 = vld [vmem:[%s13717_s24 + $0xe4] sm:$0xf]  ;;  %v640_v44 = vrot.slane %v10406_v31, 1 }
 0x116   :  { %v820_v46 = vadd.f32 %v10334_v36, %v802_v56  ;;  %v610_v56 = vpop.f32.mrf.mxu3  ;;  %v7588_v35 = vor.u32 %v9352_v55, %v7587_v30  ;;  %1307 = vmatpush.bf16.msra.mxu0 %v7568_v26  ;;  %v7560_v48 = vor.u32 %v9343_v3, %v7557_v13  ;;  %v669_v30 = vadd.f32 %v639_v39, %v533_v21  ;;  %v7549_v21 = vld [vmem:[%s13717_s24 + $0xd8] sm:$0xf0]  ;;  %v586_v39 = vpop.f32.mrf.mxu2 }
 0x117   :  { %v821_v38 = vadd.f32 %v10343_v20, %v803_v5  ;;  %v646_v37 = vrot.slane %v610_v56, 1  ;;  %v454_v55 = vadd.f32 %v10386_v16, %v10422_v50  ;;  %v641_v3 = vsel %vm625_vm3, %v636_v61, %v640_v44  ;;  %v7539_v56 = vld [vmem:[%s13717_s24 + $0xc0] sm:$0xf] }
 0x118   :  { %v832_v45 = vmax.f32 %v820_v46, 0.0  ;;  %v10460_v6 = vpop.f32.mrf.mxu0  ;;  %v7556_v46 = vor.u32 %v9344_v60, %v7555_v33  ;;  %1288 = vmatpush.bf16.msrb.mxu3 %v7588_v35  ;;  %v9340_v35 = vld [vmem:[%s13717_s24 + $0xc4] sm:$0xf0]  ;;  %v644_v61 = vrot.slane %v586_v39, 1  ;;  %vm144_vm8 = vcmp.ge.s32.totalorder %v10525_v59, 26 }
 0x119   :  { %v833_v4 = vmax.f32 %v821_v38, 0.0  ;;  %v10462_v43 = vpop.f32.mrf.mxu1  ;;  %v772_v29 = vrot.slane %v10460_v6, 2  ;;  %v7547_v38 = vld [vmem:[%s13717_s24 + $0xd0] sm:$0xf]  ;;  %v663_v47 = vsel %vm625_vm3, %v646_v37, %v629_v27  ;;  %v7540_v42 = vor.u32 %v9340_v35, %v7539_v56 }
 0x11a   :  { %v774_v5 = vrot.slane %v10462_v43, 2  ;;  %v10476_v52 = vpack.c.bf16 %v832_v45, %v842_v12  ;;  %v535_v12 = vadd.f32 %v10180_v51, %v10356_v2  ;;  %v9351_v51 = vld [vmem:[%s13717_s24 + $0x124] sm:$0xf]  ;;  %v7589_v2 = vld [vmem:[%s13717_s24 + $0x128] sm:$0xf0]  ;;  %1260 = vmatpush.bf16.msra.mxu2 %v7556_v46  ;;  %v7548_v40 = vor.u32 %v9342_v28, %v7547_v38  ;;  %1308 = vmatpush.bf16.msra.mxu0 %v7560_v48 }
 0x11b   :  { %v10478_v32 = vpack.c.bf16 %v833_v4, %v843_v8  ;;  %v773_v33 = vsel %vm761_vm4, %v768_v24, %v772_v29  ;;  %v10522_v8 = vadd.s32 16, %v10369_v11  ;;  %v534_v45 = vadd.f32 %v10178_v49, %v10076_v41  ;;  %v9339_v41 = vld [vmem:[%s13717_s24 + $0xc4] sm:$0xf]  ;;  %v7541_v46 = vld [vmem:[%s13717_s24 + $0xc8] sm:$0xf0] }
 0x11c   :  { %v775_v60 = vsel %vm761_vm4, %v770_v17, %v774_v5  ;;  %v804_v24 = vadd.f32 %v773_v33, %v668_v18  ;;  %998 = vmatmul.bf16.vlgmr.msrb.gmra.mxu2 %v10476_v52  ;;  %v7592_v17 = vor.u32 %v9351_v51, %v7589_v2  ;;  %1046 = vmatmul.bf16.vlgmr.msrb.gmra.mxu0 %v10476_v52  ;;  %v7531_v27 = vld [vmem:[%s13717_s24 + $0xb0] sm:$0xf]  ;;  %v9337_v33 = vld [vmem:[%s13717_s24 + $0xb4] sm:$0xf] }
 0x11d   :  { %7495 = vmatmul.msk.bf16.vlgmr.msra.gmra.mxu3 %vm980_vm6, %v10478_v32  ;;  %v805_v26 = vadd.f32 %v775_v60, %v669_v30  ;;  %7498 = vmatmul.msk.bf16.vlgmr.msrb.gmra.mxu1 %vm980_vm6, %v10478_v32  ;;  %13720 = vst [vmem:[#allocation11_spill] sm:$0xff] %v10522_v8  ;;  %v7552_v18 = vor.u32 %v9341_v7, %v7549_v21  ;;  %vm131_vm7 = vcmp.lt.s32.totalorder %v10522_v8, 18  ;;  %v9338_v7 = vld [vmem:[%s13717_s24 + $0xb4] sm:$0xf0]  ;;  %v7533_v60 = vld [vmem:[%s13717_s24 + $0xb8] sm:$0xf0] }
 0x11e   :  { %v671_v4 = vadd.f32 %v643_v58, %v535_v12  ;;  %1336 = vmatpush.bf16.msra.mxu1 %v7592_v17  ;;  %v647_v49 = vsel %vm625_vm3, %v642_v54, %v646_v37  ;;  %v822_v16 = vadd.f32 %v10334_v36, %v804_v24  ;;  %v538_v38 = vadd.f32 %v10262_v63, %v10107_v1 }
 0x11f   :  { %v823_v62 = vadd.f32 %v10343_v20, %v805_v26  ;;  %v670_v48 = vadd.f32 %v641_v3, %v534_v45  ;;  %1261 = vmatpush.bf16.msra.mxu2 %v7548_v40  ;;  %1309 = vmatpush.bf16.msra.mxu0 %v7552_v18  ;;  %v7544_v30 = vor.u32 %v9339_v41, %v7541_v46  ;;  %v10606_v26 = vsel %vm144_vm8, 1.0, %v13670_v10  ;;  %v9335_v40 = vld [vmem:[%s13717_s24 + $0xa4] sm:$0xf]  ;;  %v7525_v18 = vld [vmem:[%s13717_s24 + $0xa8] sm:$0xf0] }
 0x120   :  { %v720_v50 = vpop.f32.mrf.mxu0  ;;  %v539_v1 = vadd.f32 %v10264_v0, %v454_v55  ;;  %v645_v0 = vsel %vm625_vm3, %v640_v44, %v644_v61  ;;  %v834_v21 = vmax.f32 %v822_v16, 0.0  ;;  %v662_v43 = vsel %vm625_vm3, %v644_v61, %v626_v14  ;;  %v9336_v14 = vld [vmem:[%s13717_s24 + $0xa4] sm:$0xf0] }
 0x121   :  { %v744_v13 = vpop.f32.mrf.mxu1  ;;  %v776_v28 = vrot.slane %v720_v50, 2  ;;  %v7532_v2 = vor.u32 %v9338_v7, %v7531_v27  ;;  %v10593_v44 = vadd.s32 40, %v10369_v11  ;;  %v7536_v37 = vor.u32 %v9337_v33, %v7533_v60  ;;  %v9374_v33 = vld [vmem:[%s13717_s24 + $0x1d4] sm:$0xf0]  ;;  %v7677_v60 = vld [vmem:[%s13717_s24 + $0x1a0] sm:$0xf] }
 0x122   :  { %v778_v54 = vrot.slane %v744_v13, 2  ;;  %v673_v24 = vadd.f32 %v647_v49, %v10228_v23  ;;  %v675_v17 = vadd.f32 %v663_v47, %v539_v1  ;;  %v672_v39 = vadd.f32 %v645_v0, %v10226_v22  ;;  %v7701_v1 = vld [vmem:[%s13717_s24 + $0x1d0] sm:$0xf] }
 0x123   :  { %v777_v63 = vsel %vm761_vm4, %v772_v29, %v776_v28  ;;  %v10588_v29 = vsel %vm131_vm7, 1.0, %v13670_v10  ;;  %13722 = vst [vmem:[#allocation13_spill] sm:$0xff] %v10593_v44  ;;  %1262 = vmatpush.bf16.msra.mxu2 %v7540_v42  ;;  %1310 = vmatpush.bf16.msra.mxu0 %v7544_v30  ;;  %v674_v45 = vadd.f32 %v662_v43, %v538_v38  ;;  %vm152_vm9 = vcmp.lt.s32.totalorder %v10593_v44, 42  ;;  %v9369_v43 = vld [vmem:[%s13717_s24 + $0x1b4] sm:$0xf] }
 0x124   :  { %v779_v12 = vsel %vm761_vm4, %v774_v5, %v778_v54  ;;  %v806_v6 = vadd.f32 %v777_v63, %v670_v48  ;;  %v835_v5 = vmax.f32 %v823_v62, 0.0  ;;  %v7524_v49 = vor.u32 %v9336_v14, %v7523_v57 }
 0x125   :  { %v807_v51 = vadd.f32 %v779_v12, %v671_v4  ;;  %v846_v4 = vmul.f32 %v10588_v29, %v834_v21  ;;  %v7528_v16 = vor.u32 %v9335_v40, %v7525_v18  ;;  %v9367_v40 = vld [vmem:[%s13717_s24 + $0x1a4] sm:$0xf] }
 0x126   :  { %v824_v58 = vadd.f32 %v10334_v36, %v806_v6  ;;  %v847_v56 = vmul.f32 %v10588_v29, %v835_v5  ;;  %v7702_v6 = vor.u32 %v9374_v33, %v7701_v1 }
 0x127   :  { %v825_v31 = vadd.f32 %v10343_v20, %v807_v51  ;;  %1263 = vmatpush.bf16.msra.mxu2 %v7532_v2  ;;  %1311 = vmatpush.bf16.msra.mxu0 %v7536_v37  ;;  %v9368_v51 = vld [vmem:[%s13717_s24 + $0x1a4] sm:$0xf0]  ;;  %v7703_v37 = vld [vmem:[%s13717_s24 + $0x1d8] sm:$0xf0] }
 0x128   :  { %v836_v23 = vmax.f32 %v824_v58, 0.0  ;;  %v722_v3 = vpop.f32.mrf.mxu0  ;;  %v7678_v2 = vor.u32 %v9368_v51, %v7677_v60  ;;  %v7687_v58 = vld [vmem:[%s13717_s24 + $0x1b8] sm:$0xf0]  ;;  %1566 = vmatpush.bf16.msra.mxu3 %v7702_v6  ;;  %v7647_v60 = vld [vmem:[%s13717_s24 + $0x168] sm:$0xf0] }
 0x129   :  { %v837_v55 = vmax.f32 %v825_v31, 0.0  ;;  %v746_v22 = vpop.f32.mrf.mxu1  ;;  %v780_v35 = vrot.slane %v722_v3, 2  ;;  %v9373_v31 = vld [vmem:[%s13717_s24 + $0x1d4] sm:$0xf]  ;;  %v7690_v14 = vor.u32 %v9369_v43, %v7687_v58  ;;  %v7661_v3 = vld [vmem:[%s13717_s24 + $0x180] sm:$0xf] }
 0x12a   :  { %v782_v41 = vrot.slane %v746_v22, 2  ;;  %v848_v47 = vmul.f32 %v10606_v26, %v836_v23  ;;  %v9364_v22 = vld [vmem:[%s13717_s24 + $0x184] sm:$0xf0]  ;;  %v7629_v51 = vld [vmem:[%s13717_s24 + $0x140] sm:$0xf] }
 0x12b   :  { %v849_v61 = vmul.f32 %v10606_v26, %v837_v55  ;;  %v781_v50 = vsel %vm761_vm4, %v776_v28, %v780_v35  ;;  %v798_v13 = vsel %vm761_vm4, %v780_v35, %v762_v53  ;;  %v10632_v28 = vsel %vm152_vm9, 1.0, %v13670_v10  ;;  %1264 = vmatpush.bf16.msra.mxu2 %v7524_v49  ;;  %1312 = vmatpush.bf16.msra.mxu0 %v7528_v16  ;;  %v7653_v49 = vld [vmem:[%s13717_s24 + $0x170] sm:$0xf]  ;;  %v7693_v16 = vld [vmem:[%s13717_s24 + $0x1c0] sm:$0xf] }
 0x12c   :  { %v783_v46 = vsel %vm761_vm4, %v778_v54, %v782_v41  ;;  %v799_v38 = vsel %vm761_vm4, %v782_v41, %v765_v9  ;;  %v10627_v62 = vpack.c.bf16 %v848_v47, %v846_v4  ;;  %v808_v42 = vadd.f32 %v781_v50, %v672_v39  ;;  %13723 = vst [vmem:[#allocation14_spill] sm:$0xff] %v10632_v28  ;;  %v7685_v54 = vld [vmem:[%s13717_s24 + $0x1b0] sm:$0xf]  ;;  %v9366_v39 = vld [vmem:[%s13717_s24 + $0x194] sm:$0xf0] }
 0x12d   :  { %v10629_v48 = vpack.c.bf16 %v849_v61, %v847_v56  ;;  %v810_v27 = vadd.f32 %v798_v13, %v674_v45  ;;  %v809_v7 = vadd.f32 %v783_v46, %v673_v24  ;;  %v811_v30 = vadd.f32 %v799_v38, %v675_v17  ;;  %v7669_v17 = vld [vmem:[%s13717_s24 + $0x190] sm:$0xf]  ;;  %v7679_v45 = vld [vmem:[%s13717_s24 + $0x1a8] sm:$0xf0]  ;;  %v9365_v56 = vld [vmem:[%s13717_s24 + $0x194] sm:$0xf] }
 0x12e   :  { %v826_v19 = vadd.f32 %v10334_v36, %v808_v42  ;;  %1003 = vmatmul.bf16.gmra.mxu2 %v10627_v62  ;;  %1051 = vmatmul.bf16.gmra.mxu0 %v10627_v62  ;;  %v7706_v24 = vor.u32 %v9373_v31, %v7703_v37  ;;  %v7682_v23 = vor.u32 %v9367_v40, %v7679_v45  ;;  %v7671_v41 = vld [vmem:[%s13717_s24 + $0x198] sm:$0xf0]  ;;  %v9362_v47 = vld [vmem:[%s13717_s24 + $0x174] sm:$0xf0]  ;;  %v9372_v50 = vld [vmem:[%s13717_s24 + $0x1c4] sm:$0xf0] }
 0x12f   :  { %v828_v53 = vadd.f32 %v10334_v36, %v810_v27  ;;  %7496 = vmatmul.msk.bf16.gmra.mxu3 %vm980_vm6, %v10629_v48  ;;  %v827_v25 = vadd.f32 %v10343_v20, %v809_v7  ;;  %v829_v9 = vadd.f32 %v10343_v20, %v811_v30  ;;  %7499 = vmatmul.msk.bf16.gmra.mxu1 %vm980_vm6, %v10629_v48  ;;  %v9370_v36 = vld [vmem:[%s13717_s24 + $0x1b4] sm:$0xf0]  ;;  %v9363_v13 = vld [vmem:[%s13717_s24 + $0x184] sm:$0xf]  ;;  %v7663_v42 = vld [vmem:[%s13717_s24 + $0x188] sm:$0xf0] }
 0x130   :  { %v838_v63 = vmax.f32 %v826_v19, 0.0  ;;  %v7686_v20 = vor.u32 %v9370_v36, %v7685_v54  ;;  %1584 = vmatpush.bf16.msrb.mxu0 %v7690_v14  ;;  %1614 = vmatpush.bf16.msrb.mxu1 %v7706_v24  ;;  %v7670_v55 = vor.u32 %v9366_v39, %v7669_v17  ;;  %v7662_v35 = vor.u32 %v9364_v22, %v7661_v3  ;;  %v7645_v7 = vld [vmem:[%s13717_s24 + $0x160] sm:$0xf]  ;;  %v9360_v30 = vld [vmem:[%s13717_s24 + $0x164] sm:$0xf0] }
 0x131   :  { %v840_v12 = vmax.f32 %v828_v53, 0.0  ;;  %v839_v0 = vmax.f32 %v827_v25, 0.0  ;;  %v841_v21 = vmax.f32 %v829_v9, 0.0  ;;  %v7674_v61 = vor.u32 %v9365_v56, %v7671_v41  ;;  %v9371_v19 = vld [vmem:[%s13717_s24 + $0x1c4] sm:$0xf] }
 0x132   :  { %1536 = vmatpush.bf16.msrb.mxu2 %v7686_v20  ;;  %v7654_v46 = vor.u32 %v9362_v47, %v7653_v49  ;;  %v7694_v38 = vor.u32 %v9372_v50, %v7693_v16  ;;  %v7666_v27 = vor.u32 %v9363_v13, %v7663_v42  ;;  %v9361_v53 = vld [vmem:[%s13717_s24 + $0x174] sm:$0xf]  ;;  %v7655_v25 = vld [vmem:[%s13717_s24 + $0x178] sm:$0xf0]  ;;  %v7695_v9 = vld [vmem:[%s13717_s24 + $0x1c8] sm:$0xf0]  ;;  %v7646_v36 = vor.u32 %v9360_v30, %v7645_v7 }
 0x133   :  { %v852_v5 = vmul.f32 %v10632_v28, %v840_v12  ;;  %v853_v57 = vmul.f32 %v10632_v28, %v841_v21  ;;  %v7698_v54 = vor.u32 %v9371_v19, %v7695_v9  ;;  %v7658_v1 = vor.u32 %v9361_v53, %v7655_v25  ;;  %v9358_v12 = vld [vmem:[%s13717_s24 + $0x154] sm:$0xf0]  ;;  %v9359_v20 = vld [vmem:[%s13717_s24 + $0x164] sm:$0xf]  ;;  %v7639_v21 = vld [vmem:[%s13717_s24 + $0x158] sm:$0xf0] }
 0x134   :  { %1585 = vmatpush.bf16.msrb.mxu0 %v7682_v23  ;;  %1567 = vmatpush.bf16.msra.mxu3 %v7694_v38  ;;  %v7650_v6 = vor.u32 %v9359_v20, %v7647_v60  ;;  %v9356_v43 = vld [vmem:[%s13717_s24 + $0x144] sm:$0xf0]  ;;  %v9355_v58 = vld [vmem:[%s13717_s24 + $0x144] sm:$0xf]  ;;  %v7631_v31 = vld [vmem:[%s13717_s24 + $0x148] sm:$0xf0] }
 0x135   :  { %v10685_v18 = vpack.c.bf16 %v852_v5, %v838_v63  ;;  %v10690_v4 = vpack.c.bf16 %v853_v57, %v839_v0  ;;  %1615 = vmatpush.bf16.msrb.mxu1 %v7698_v54  ;;  %v7637_v63 = vld [vmem:[%s13717_s24 + $0x150] sm:$0xf]  ;;  %v9357_v0 = vld [vmem:[%s13717_s24 + $0x154] sm:$0xf]  ;;  %v7630_v5 = vor.u32 %v9356_v43, %v7629_v51  ;;  %v7634_v37 = vor.u32 %v9355_v58, %v7631_v31  ;;  %v9390_v14 = vld [vmem:[%s13717_s24 + $0x254] sm:$0xf0] }
 0x136   :  { %1537 = vmatpush.bf16.msrb.mxu2 %v7678_v2  ;;  %v7638_v33 = vor.u32 %v9358_v12, %v7637_v63  ;;  %v7642_v2 = vor.u32 %v9357_v0, %v7639_v21  ;;  %v7791_v57 = vld [vmem:[%s13717_s24 + $0x250] sm:$0xf]  ;;  %v9394_v39 = vld [vmem:[%s13717_s24 + $0x274] sm:$0xf0]  ;;  %v7783_v40 = vld [vmem:[%s13717_s24 + $0x240] sm:$0xf] }
 0x137   :  { %v7807_v24 = vld [vmem:[%s13717_s24 + $0x270] sm:$0xf]  ;;  %v7792_v17 = vor.u32 %v9390_v14, %v7791_v57  ;;  %v9388_v45 = vld [vmem:[%s13717_s24 + $0x244] sm:$0xf0]  ;;  %v7793_v3 = vld [vmem:[%s13717_s24 + $0x258] sm:$0xf0] }
 0x138   :  { %1586 = vmatpush.bf16.msrb.mxu0 %v7674_v61  ;;  %v7808_v23 = vor.u32 %v9394_v39, %v7807_v24  ;;  %v9393_v22 = vld [vmem:[%s13717_s24 + $0x274] sm:$0xf]  ;;  %v7784_v56 = vor.u32 %v9388_v45, %v7783_v40  ;;  %v7809_v41 = vld [vmem:[%s13717_s24 + $0x278] sm:$0xf0]  ;;  %v7775_v49 = vld [vmem:[%s13717_s24 + $0x230] sm:$0xf] }
 0x139   :  { %v7812_v47 = vor.u32 %v9393_v22, %v7809_v41  ;;  %v9386_v61 = vld [vmem:[%s13717_s24 + $0x234] sm:$0xf0]  ;;  %v9387_v16 = vld [vmem:[%s13717_s24 + $0x244] sm:$0xf]  ;;  %v7785_v50 = vld [vmem:[%s13717_s24 + $0x248] sm:$0xf0] }
 0x13a   :  { %1538 = vmatpush.bf16.msrb.mxu2 %v7670_v55  ;;  %v9389_v55 = vld [vmem:[%s13717_s24 + $0x254] sm:$0xf]  ;;  %v7788_v13 = vor.u32 %v9387_v16, %v7785_v50  ;;  %v7767_v38 = vld [vmem:[%s13717_s24 + $0x220] sm:$0xf]  ;;  %v9384_v42 = vld [vmem:[%s13717_s24 + $0x224] sm:$0xf0] }
 0x13b   :  { %v7768_v7 = vor.u32 %v9384_v42, %v7767_v38  ;;  %v7777_v30 = vld [vmem:[%s13717_s24 + $0x238] sm:$0xf0]  ;;  %v7759_v19 = vld [vmem:[%s13717_s24 + $0x210] sm:$0xf]  ;;  %v9382_v53 = vld [vmem:[%s13717_s24 + $0x214] sm:$0xf0] }
 0x13c   :  { %1587 = vmatpush.bf16.msrb.mxu0 %v7666_v27  ;;  %v9385_v27 = vld [vmem:[%s13717_s24 + $0x234] sm:$0xf]  ;;  %v7799_v9 = vld [vmem:[%s13717_s24 + $0x260] sm:$0xf]  ;;  %v9392_v54 = vld [vmem:[%s13717_s24 + $0x264] sm:$0xf0] }
 0x13d   :  { %v7780_v25 = vor.u32 %v9385_v27, %v7777_v30  ;;  %v7800_v63 = vor.u32 %v9392_v54, %v7799_v9  ;;  %v7769_v12 = vld [vmem:[%s13717_s24 + $0x228] sm:$0xf0]  ;;  %v9380_v60 = vld [vmem:[%s13717_s24 + $0x204] sm:$0xf0]  ;;  %v9381_v0 = vld [vmem:[%s13717_s24 + $0x214] sm:$0xf] }
 0x13e   :  { %1008 = vmatmul.bf16.gmra.mxu2 %v10685_v18  ;;  %1056 = vmatmul.bf16.gmra.mxu0 %v10685_v18  ;;  %v9391_v51 = vld [vmem:[%s13717_s24 + $0x264] sm:$0xf]  ;;  %v7801_v43 = vld [vmem:[%s13717_s24 + $0x268] sm:$0xf0]  ;;  %v7743_v57 = vld [vmem:[%s13717_s24 + $0x1f0] sm:$0xf] }
 0x13f   :  { %7497 = vmatmul.msk.bf16.gmra.mxu3 %vm980_vm6, %v10690_v4  ;;  %7500 = vmatmul.msk.bf16.gmra.mxu1 %vm980_vm6, %v10690_v4  ;;  %v9379_v58 = vld [vmem:[%s13717_s24 + $0x204] sm:$0xf]  ;;  %v7753_v31 = vld [vmem:[%s13717_s24 + $0x208] sm:$0xf0]  ;;  %v9378_v14 = vld [vmem:[%s13717_s24 + $0x1f4] sm:$0xf0] }
 0x140   :  { %1539 = vmatpush.bf16.msrb.mxu2 %v7662_v35  ;;  %1588 = vmatpush.bf16.msrb.mxu0 %v7658_v1  ;;  %v7796_v35 = vor.u32 %v9389_v55, %v7793_v3  ;;  %v7760_v1 = vor.u32 %v9382_v53, %v7759_v19  ;;  %v9377_v24 = vld [vmem:[%s13717_s24 + $0x1f4] sm:$0xf]  ;;  %v7745_v39 = vld [vmem:[%s13717_s24 + $0x1f8] sm:$0xf0]  ;;  %v7735_v45 = vld [vmem:[%s13717_s24 + $0x1e0] sm:$0xf] }
 0x141   :  { %v7748_v40 = vor.u32 %v9377_v24, %v7745_v39  ;;  %v9375_v55 = vld [vmem:[%s13717_s24 + $0x1e4] sm:$0xf]  ;;  %v7737_v22 = vld [vmem:[%s13717_s24 + $0x1e8] sm:$0xf0]  ;;  %v9410_v41 = vld [vmem:[%s13717_s24 + $0x2f4] sm:$0xf0] }
 0x142   :  { %v7889_v50 = vld [vmem:[%s13717_s24 + $0x2e0] sm:$0xf]  ;;  %v7899_v42 = vld [vmem:[%s13717_s24 + $0x2f8] sm:$0xf0]  ;;  %v9413_v27 = vld [vmem:[%s13717_s24 + $0x314] sm:$0xf] }
 0x143   :  { %v7881_v54 = vld [vmem:[%s13717_s24 + $0x2d0] sm:$0xf] }
 0x144   :  { %1540 = vmatpush.bf16.msrb.mxu2 %v7654_v46  ;;  %1589 = vmatpush.bf16.msrb.mxu0 %v7650_v6  ;;  %v7776_v46 = vor.u32 %v9386_v61, %v7775_v49  ;;  %v7761_v6 = vld [vmem:[%s13717_s24 + $0x218] sm:$0xf0]  ;;  %v7913_v49 = vld [vmem:[%s13717_s24 + $0x310] sm:$0xf]  ;;  %v9414_v61 = vld [vmem:[%s13717_s24 + $0x314] sm:$0xf0] }
 0x145   :  { %v7914_v16 = vor.u32 %v9414_v61, %v7913_v49  ;;  %v7865_v39 = vld [vmem:[%s13717_s24 + $0x2b0] sm:$0xf] }
 0x148   :  { %1541 = vmatpush.bf16.msrb.mxu2 %v7646_v36  ;;  %1590 = vmatpush.bf16.msrb.mxu0 %v7642_v2  ;;  %v9383_v36 = vld [vmem:[%s13717_s24 + $0x224] sm:$0xf]  ;;  %v7804_v2 = vor.u32 %v9391_v51, %v7801_v43 }
 0x149   :  { %v7772_v20 = vor.u32 %v9383_v36, %v7769_v12  ;;  %v9406_v36 = vld [vmem:[%s13717_s24 + $0x2d4] sm:$0xf0]  ;;  %v7891_v12 = vld [vmem:[%s13717_s24 + $0x2e8] sm:$0xf0] }
 0x14c   :  { %1542 = vmatpush.bf16.msrb.mxu2 %v7638_v33  ;;  %1591 = vmatpush.bf16.msrb.mxu0 %v7634_v37  ;;  %v7751_v33 = vld [vmem:[%s13717_s24 + $0x200] sm:$0xf]  ;;  %v7756_v37 = vor.u32 %v9379_v58, %v7753_v31 }
 0x14d   :  { %v7752_v21 = vor.u32 %v9380_v60, %v7751_v33 }
 0x14e   :  { %1265 = vmatmul.bf16.vlgmr.msra.gmra.mxu2 %v10476_v52  ;;  %1313 = vmatmul.bf16.vlgmr.msra.gmra.mxu0 %v10476_v52 }
 0x14f   :  { %7601 = vmatmul.msk.bf16.vlgmr.msrb.gmra.mxu3 %vm980_vm6, %v10478_v32  ;;  %7604 = vmatmul.msk.bf16.vlgmr.msra.gmra.mxu1 %vm980_vm6, %v10478_v32 }
 0x150   :  { %1543 = vmatpush.bf16.msrb.mxu2 %v7630_v5  ;;  %1795 = vmatpush.bf16.msrb.mxu3 %v7808_v23  ;;  %v7764_v5 = vor.u32 %v9381_v0, %v7761_v6  ;;  %v9376_v23 = vld [vmem:[%s13717_s24 + $0x1e4] sm:$0xf0]  ;;  %v7873_v0 = vld [vmem:[%s13717_s24 + $0x2c0] sm:$0xf]  ;;  %v9405_v6 = vld [vmem:[%s13717_s24 + $0x2d4] sm:$0xf] }
 0x151   :  { %1813 = vmatpush.bf16.msra.mxu0 %v7796_v35  ;;  %1843 = vmatpush.bf16.msra.mxu1 %v7812_v47  ;;  %v7736_v3 = vor.u32 %v9376_v23, %v7735_v45  ;;  %v7897_v35 = vld [vmem:[%s13717_s24 + $0x2f0] sm:$0xf]  ;;  %v7905_v45 = vld [vmem:[%s13717_s24 + $0x300] sm:$0xf] }
 0x152   :  { %v7898_v47 = vor.u32 %v9410_v41, %v7897_v35  ;;  %v7875_v35 = vld [vmem:[%s13717_s24 + $0x2c8] sm:$0xf0] }
 0x154   :  { %1765 = vmatpush.bf16.msra.mxu2 %v7792_v17  ;;  %1796 = vmatpush.bf16.msrb.mxu3 %v7800_v63  ;;  %v7744_v17 = vor.u32 %v9378_v14, %v7743_v57  ;;  %v7882_v63 = vor.u32 %v9406_v36, %v7881_v54  ;;  %v7907_v54 = vld [vmem:[%s13717_s24 + $0x308] sm:$0xf0] }
 0x155   :  { %1814 = vmatpush.bf16.msra.mxu0 %v7788_v13  ;;  %1844 = vmatpush.bf16.msra.mxu1 %v7804_v2  ;;  %v9408_v13 = vld [vmem:[%s13717_s24 + $0x2e4] sm:$0xf0] }
 0x156   :  { %v7890_v38 = vor.u32 %v9408_v13, %v7889_v50 }
 0x158   :  { %1766 = vmatpush.bf16.msra.mxu2 %v7784_v56  ;;  %v7740_v56 = vor.u32 %v9375_v55, %v7737_v22  ;;  %v9412_v22 = vld [vmem:[%s13717_s24 + $0x304] sm:$0xf0] }
 0x159   :  { %1815 = vmatpush.bf16.msra.mxu0 %v7780_v25  ;;  %v7906_v41 = vor.u32 %v9412_v22, %v7905_v45  ;;  %v9396_v45 = vld [vmem:[%s13717_s24 + $0x284] sm:$0xf0] }
 0x15c   :  { %1767 = vmatpush.bf16.msra.mxu2 %v7776_v46  ;;  %v9409_v46 = vld [vmem:[%s13717_s24 + $0x2f4] sm:$0xf] }
 0x15d   :  { %1816 = vmatpush.bf16.msra.mxu0 %v7772_v20  ;;  %v7902_v30 = vor.u32 %v9409_v46, %v7899_v42  ;;  %v7867_v42 = vld [vmem:[%s13717_s24 + $0x2b8] sm:$0xf0] }
 0x15e   :  { %1270 = vmatmul.bf16.gmra.mxu2 %v10627_v62  ;;  %1318 = vmatmul.bf16.gmra.mxu0 %v10627_v62 }
 0x15f   :  { %7602 = vmatmul.msk.bf16.gmra.mxu3 %vm980_vm6, %v10629_v48  ;;  %7605 = vmatmul.msk.bf16.gmra.mxu1 %vm980_vm6, %v10629_v48 }
 0x160   :  { %1768 = vmatpush.bf16.msra.mxu2 %v7768_v7  ;;  %v7915_v7 = vld [vmem:[%s13717_s24 + $0x318] sm:$0xf0] }
 0x161   :  { %1817 = vmatpush.bf16.msra.mxu0 %v7764_v5  ;;  %v7918_v19 = vor.u32 %v9413_v27, %v7915_v7  ;;  %v7883_v5 = vld [vmem:[%s13717_s24 + $0x2d8] sm:$0xf0] }
 0x162   :  { %v7886_v2 = vor.u32 %v9405_v6, %v7883_v5  ;;  %v7849_v5 = vld [vmem:[%s13717_s24 + $0x290] sm:$0xf] }
 0x164   :  { %1769 = vmatpush.bf16.msra.mxu2 %v7760_v1  ;;  %v9407_v1 = vld [vmem:[%s13717_s24 + $0x2e4] sm:$0xf] }
 0x165   :  { %1818 = vmatpush.bf16.msra.mxu0 %v7756_v37  ;;  %v7894_v20 = vor.u32 %v9407_v1, %v7891_v12  ;;  %v9399_v12 = vld [vmem:[%s13717_s24 + $0x2a4] sm:$0xf] }
 0x168   :  { %1770 = vmatpush.bf16.msra.mxu2 %v7752_v21  ;;  %v9404_v21 = vld [vmem:[%s13717_s24 + $0x2c4] sm:$0xf0] }
 0x169   :  { %1819 = vmatpush.bf16.msra.mxu0 %v7748_v40  ;;  %v7874_v43 = vor.u32 %v9404_v21, %v7873_v0  ;;  %v9402_v40 = vld [vmem:[%s13717_s24 + $0x2b4] sm:$0xf0] }
 0x16c   :  { %1771 = vmatpush.bf16.msra.mxu2 %v7744_v17 }
 0x16d   :  { %1820 = vmatpush.bf16.msra.mxu0 %v7740_v56  ;;  %v9403_v56 = vld [vmem:[%s13717_s24 + $0x2c4] sm:$0xf] }
 0x16e   :  { %1275 = vmatmul.bf16.gmra.mxu2 %v10685_v18  ;;  %1323 = vmatmul.bf16.gmra.mxu0 %v10685_v18  ;;  %v7878_v49 = vor.u32 %v9403_v56, %v7875_v35  ;;  %v9395_v56 = vld [vmem:[%s13717_s24 + $0x284] sm:$0xf]  ;;  %v7843_v35 = vld [vmem:[%s13717_s24 + $0x288] sm:$0xf0] }
 0x16f   :  { %7603 = vmatmul.msk.bf16.gmra.mxu3 %vm980_vm6, %v10690_v4  ;;  %7606 = vmatmul.msk.bf16.gmra.mxu1 %vm980_vm6, %v10690_v4 }
 0x170   :  { %1772 = vmatpush.bf16.msra.mxu2 %v7736_v3  ;;  %v7866_v3 = vor.u32 %v9402_v40, %v7865_v39  ;;  %v7841_v40 = vld [vmem:[%s13717_s24 + $0x280] sm:$0xf] }
 0x17e   :  { %1544 = vmatmul.bf16.vlgmr.msrb.gmra.mxu2 %v10476_v52  ;;  %1592 = vmatmul.bf16.vlgmr.msrb.gmra.mxu0 %v10476_v52 }
 0x17f   :  { %7707 = vmatmul.msk.bf16.vlgmr.msra.gmra.mxu3 %vm980_vm6, %v10478_v32  ;;  %7710 = vmatmul.msk.bf16.vlgmr.msrb.gmra.mxu1 %vm980_vm6, %v10478_v32 }
 0x180   :  { %2044 = vmatpush.bf16.msrb.mxu2 %v7898_v47  ;;  %2074 = vmatpush.bf16.msra.mxu3 %v7914_v16 }
 0x181   :  { %2092 = vmatpush.bf16.msrb.mxu0 %v7902_v30  ;;  %2122 = vmatpush.bf16.msrb.mxu1 %v7918_v19  ;;  %v7857_v30 = vld [vmem:[%s13717_s24 + $0x2a0] sm:$0xf]  ;;  %v9400_v19 = vld [vmem:[%s13717_s24 + $0x2a4] sm:$0xf0] }
 0x184   :  { %2045 = vmatpush.bf16.msrb.mxu2 %v7890_v38  ;;  %2075 = vmatpush.bf16.msra.mxu3 %v7906_v41  ;;  %v9401_v38 = vld [vmem:[%s13717_s24 + $0x2b4] sm:$0xf] }
 0x185   :  { %2093 = vmatpush.bf16.msrb.mxu0 %v7894_v20  ;;  %v7870_v27 = vor.u32 %v9401_v38, %v7867_v42  ;;  %v7859_v20 = vld [vmem:[%s13717_s24 + $0x2a8] sm:$0xf0] }
 0x186   :  { %v7862_v0 = vor.u32 %v9399_v12, %v7859_v20 }
 0x188   :  { %2046 = vmatpush.bf16.msrb.mxu2 %v7882_v63 }
 0x189   :  { %2094 = vmatpush.bf16.msrb.mxu0 %v7886_v2  ;;  %v9398_v2 = vld [vmem:[%s13717_s24 + $0x294] sm:$0xf0] }
 0x18c   :  { %2047 = vmatpush.bf16.msrb.mxu2 %v7874_v43 }
 0x18d   :  { %2095 = vmatpush.bf16.msrb.mxu0 %v7878_v49 }
 0x18e   :  { %1549 = vmatmul.bf16.gmra.mxu2 %v10627_v62  ;;  %1597 = vmatmul.bf16.gmra.mxu0 %v10627_v62 }
 0x18f   :  { %7708 = vmatmul.msk.bf16.gmra.mxu3 %vm980_vm6, %v10629_v48  ;;  %7711 = vmatmul.msk.bf16.gmra.mxu1 %vm980_vm6, %v10629_v48 }
 0x190   :  { %2048 = vmatpush.bf16.msrb.mxu2 %v7866_v3 }
 0x191   :  { %2096 = vmatpush.bf16.msrb.mxu0 %v7870_v27 }
 0x195   :  { %2097 = vmatpush.bf16.msrb.mxu0 %v7862_v0 }
 0x199   :  { %v1047_v53 = vpop.f32.mrf.mxu0 }
 0x19a   :  { %v1071_v25 = vpop.f32.mrf.mxu1 }
 0x19b   :  { %v10956_v9 = vadd.f32 %v1071_v25, %v1047_v53  ;;  %v7858_v53 = vor.u32 %v9400_v19, %v7857_v30  ;;  %v9411_v25 = vld [vmem:[%s13717_s24 + $0x304] sm:$0xf] }
 0x19c   :  { %v7910_v63 = vor.u32 %v9411_v25, %v7907_v54 }
 0x19d   :  { %v1103_v57 = vrot.slane %v10956_v9, 6  ;;  %2049 = vmatpush.bf16.msrb.mxu2 %v7858_v53 }
 0x19e   :  { %1554 = vmatmul.bf16.gmra.mxu2 %v10685_v18  ;;  %1602 = vmatmul.bf16.gmra.mxu0 %v10685_v18 }
 0x19f   :  { %7709 = vmatmul.msk.bf16.gmra.mxu3 %vm980_vm6, %v10690_v4  ;;  %7712 = vmatmul.msk.bf16.gmra.mxu1 %vm980_vm6, %v10690_v4  ;;  %v999_v33 = vpop.f32.mrf.mxu2 }
 0x1a0   :  { %v1023_v60 = vpop.f32.mrf.mxu3  ;;  %2123 = vmatpush.bf16.msrb.mxu1 %v7910_v63 }
 0x1a1   :  { %v10985_v51 = vadd.f32 %v1023_v60, %v999_v33  ;;  %v1049_v58 = vpop.f32.mrf.mxu0 }
 0x1a2   :  { %v1073_v31 = vpop.f32.mrf.mxu1 }
 0x1a3   :  { %v1074_v37 = vadd.f32 %v1073_v31, %v1049_v58  ;;  %v1102_v47 = vrot.slane %v10985_v51, 6  ;;  %v7850_v31 = vor.u32 %v9398_v2, %v7849_v5 }
 0x1a5   :  { %v1106_v14 = vrot.slane %v1074_v37, 6  ;;  %v9397_v37 = vld [vmem:[%s13717_s24 + $0x294] sm:$0xf]  ;;  %2050 = vmatpush.bf16.msrb.mxu2 %v7850_v31 }
 0x1a7   :  { %v1001_v24 = vpop.f32.mrf.mxu2  ;;  %v11003_v23 = vsel %vm214_vm0, %v1103_v57, %v1106_v14 }
 0x1a8   :  { %v1025_v17 = vpop.f32.mrf.mxu3 }
 0x1a9   :  { %v1026_v55 = vadd.f32 %v1025_v17, %v1001_v24 }
 0x1ab   :  { %v1104_v61 = vrot.slane %v1026_v55, 6  ;;  %v1052_v16 = vpop.f32.mrf.mxu0  ;;  %v7842_v55 = vor.u32 %v9396_v45, %v7841_v40 }
 0x1ac   :  { %v1076_v50 = vpop.f32.mrf.mxu1 }
 0x1ad   :  { %v11018_v13 = vsel %vm214_vm0, %v1102_v47, %v1104_v61  ;;  %v1077_v46 = vadd.f32 %v1076_v50, %v1052_v16  ;;  %2051 = vmatpush.bf16.msrb.mxu2 %v7842_v55 }
 0x1ae   :  { %1773 = vmatmul.bf16.vlgmr.msra.gmra.mxu2 %v10476_v52  ;;  %1821 = vmatmul.bf16.vlgmr.msra.gmra.mxu0 %v10476_v52 }
 0x1af   :  { %7813 = vmatmul.msk.bf16.vlgmr.msrb.gmra.mxu3 %vm980_vm6, %v10478_v32  ;;  %v1110_v7 = vrot.slane %v1077_v46, 6  ;;  %7816 = vmatmul.msk.bf16.vlgmr.msra.gmra.mxu1 %vm980_vm6, %v10478_v32 }
 0x1b1   :  { %v1004_v36 = vpop.f32.mrf.mxu2  ;;  %v11051_v33 = vsel %vm214_vm0, %v1106_v14, %v1110_v7  ;;  %v7851_v14 = vld [vmem:[%s13717_s24 + $0x298] sm:$0xf0]  ;;  %s9847_s24 = smov 64  }
 0x1b2   :  { %v1028_v1 = vpop.f32.mrf.mxu3  ;;  %v7854_v24 = vor.u32 %v9397_v37, %v7851_v14 }
 0x1b3   :  { %v1029_v60 = vadd.f32 %v1028_v1, %v1004_v36  ;;  %v1054_v6 = vpop.f32.mrf.mxu0 }
 0x1b4   :  { %v1078_v43 = vpop.f32.mrf.mxu1  ;;  %2098 = vmatpush.bf16.msrb.mxu0 %v7854_v24 }
 0x1b5   :  { %v1108_v21 = vrot.slane %v1029_v60, 6  ;;  %v1079_v58 = vadd.f32 %v1078_v43, %v1054_v6 }
 0x1b7   :  { %v11066_v17 = vsel %vm214_vm0, %v1104_v61, %v1108_v21  ;;  %v1114_v39 = vrot.slane %v1079_v58, 6  ;;  %v7846_v61 = vor.u32 %v9395_v56, %v7843_v35 }
 0x1b9   :  { %v1006_v3 = vpop.f32.mrf.mxu2  ;;  %v11081_v41 = vsel %vm214_vm0, %v1110_v7, %v1114_v39  ;;  %2099 = vmatpush.bf16.msrb.mxu0 %v7846_v61 }
 0x1ba   :  { %v1030_v22 = vpop.f32.mrf.mxu3 }
 0x1bb   :  { %v1031_v49 = vadd.f32 %v1030_v22, %v1006_v3  ;;  %v1057_v50 = vpop.f32.mrf.mxu0 }
 0x1bc   :  { %v1081_v46 = vpop.f32.mrf.mxu1 }
 0x1bd   :  { %v1112_v16 = vrot.slane %v1031_v49, 6  ;;  %v1082_v38 = vadd.f32 %v1081_v46, %v1057_v50 }
 0x1be   :  { %1778 = vmatmul.bf16.gmra.mxu2 %v10627_v62  ;;  %1826 = vmatmul.bf16.gmra.mxu0 %v10627_v62 }
 0x1bf   :  { %7814 = vmatmul.msk.bf16.gmra.mxu3 %vm980_vm6, %v10629_v48  ;;  %v11087_v42 = vsel %vm214_vm0, %v1108_v21, %v1112_v16  ;;  %v1118_v27 = vrot.slane %v1082_v38, 6  ;;  %7817 = vmatmul.msk.bf16.gmra.mxu1 %vm980_vm6, %v10629_v48 }
 0x1c1   :  { %v1009_v7 = vpop.f32.mrf.mxu2  ;;  %v11093_v19 = vsel %vm214_vm0, %v1114_v39, %v1118_v27 }
 0x1c2   :  { %v1033_v30 = vpop.f32.mrf.mxu3 }
 0x1c3   :  { %v1034_v53 = vadd.f32 %v1033_v30, %v1009_v7  ;;  %v1059_v54 = vpop.f32.mrf.mxu0 }
 0x1c4   :  { %v1083_v36 = vpop.f32.mrf.mxu1 }
 0x1c5   :  { %v1116_v25 = vrot.slane %v1034_v53, 6  ;;  %v1084_v1 = vadd.f32 %v1083_v36, %v1059_v54 }
 0x1c7   :  { %v11096_v63 = vsel %vm214_vm0, %v1112_v16, %v1116_v25  ;;  %v1089_v12 = vrot.slane %v1084_v1, 6 }
 0x1c9   :  { %v1011_v20 = vpop.f32.mrf.mxu2  ;;  %v11101_v0 = vsel %vm214_vm0, %v1089_v12, %v1103_v57  ;;  %v11104_v21 = vsel %vm214_vm0, %v1118_v27, %v1089_v12 }
 0x1ca   :  { %v1035_v60 = vpop.f32.mrf.mxu3 }
 0x1cb   :  { %v1036_v6 = vadd.f32 %v1035_v60, %v1011_v20  ;;  %v1314_v5 = vpop.f32.mrf.mxu0 }
 0x1cc   :  { %v1338_v2 = vpop.f32.mrf.mxu1 }
 0x1cd   :  { %v1088_v43 = vrot.slane %v1036_v6, 6  ;;  %v11106_v58 = vadd.f32 %v1338_v2, %v1314_v5 }
 0x1ce   :  { %1783 = vmatmul.bf16.gmra.mxu2 %v10685_v18  ;;  %1831 = vmatmul.bf16.gmra.mxu0 %v10685_v18 }
 0x1cf   :  { %7815 = vmatmul.msk.bf16.gmra.mxu3 %vm980_vm6, %v10690_v4  ;;  %v11114_v9 = vsel %vm214_vm0, %v1088_v43, %v1102_v47  ;;  %v11117_v57 = vsel %vm214_vm0, %v1116_v25, %v1088_v43  ;;  %7818 = vmatmul.msk.bf16.gmra.mxu1 %vm980_vm6, %v10690_v4  ;;  %v1370_v51 = vrot.slane %v11106_v58, 7 }
 0x1d1   :  { %v1266_v31 = vpop.f32.mrf.mxu2 }
 0x1d2   :  { %v1290_v37 = vpop.f32.mrf.mxu3 }
 0x1d3   :  { %v11122_v14 = vadd.f32 %v1290_v37, %v1266_v31  ;;  %v1316_v24 = vpop.f32.mrf.mxu0 }
 0x1d4   :  { %v1340_v39 = vpop.f32.mrf.mxu1 }
 0x1d5   :  { %v1341_v40 = vadd.f32 %v1340_v39, %v1316_v24  ;;  %v1369_v35 = vrot.slane %v11122_v14, 7 }
 0x1d7   :  { %v1373_v45 = vrot.slane %v1341_v40, 7 }
 0x1d9   :  { %v1268_v47 = vpop.f32.mrf.mxu2  ;;  %v1374_v3 = vsel %vm408_vm2, %v1370_v51, %v1373_v45 }
 0x1da   :  { %v1292_v55 = vpop.f32.mrf.mxu3  ;;  %v11127_v56 = vadd.f32 %v1374_v3, %v11003_v23 }
 0x1db   :  { %v1293_v22 = vadd.f32 %v1292_v55, %v1268_v47  ;;  %v1319_v61 = vpop.f32.mrf.mxu0 }
 0x1dc   :  { %v1343_v16 = vpop.f32.mrf.mxu1 }
 0x1dd   :  { %v1371_v49 = vrot.slane %v1293_v22, 7  ;;  %v1344_v50 = vadd.f32 %v1343_v16, %v1319_v61 }
 0x1de   :  { %2052 = vmatmul.bf16.vlgmr.msrb.gmra.mxu2 %v10476_v52  ;;  %2100 = vmatmul.bf16.vlgmr.msrb.gmra.mxu0 %v10476_v52 }
 0x1df   :  { %7919 = vmatmul.msk.bf16.vlgmr.msra.gmra.mxu3 %vm980_vm6, %v10478_v32  ;;  %v1372_v46 = vsel %vm408_vm2, %v1369_v35, %v1371_v49  ;;  %v1377_v38 = vrot.slane %v1344_v50, 7  ;;  %7922 = vmatmul.msk.bf16.vlgmr.msrb.gmra.mxu1 %vm980_vm6, %v10478_v32 }
 0x1e0   :  { %v11140_v23 = vadd.f32 %v1372_v46, %v11018_v13 }
 0x1e1   :  { %v1271_v27 = vpop.f32.mrf.mxu2  ;;  %v1378_v30 = vsel %vm408_vm2, %v1373_v45, %v1377_v38 }
 0x1e2   :  { %v1295_v7 = vpop.f32.mrf.mxu3  ;;  %v11144_v25 = vadd.f32 %v1378_v30, %v11051_v33 }
 0x1e3   :  { %v1296_v53 = vadd.f32 %v1295_v7, %v1271_v27  ;;  %v1321_v36 = vpop.f32.mrf.mxu0 }
 0x1e4   :  { %v1345_v1 = vpop.f32.mrf.mxu1 }
 0x1e5   :  { %v1375_v54 = vrot.slane %v1296_v53, 7  ;;  %v1346_v12 = vadd.f32 %v1345_v1, %v1321_v36 }
 0x1e7   :  { %v1376_v52 = vsel %vm408_vm2, %v1371_v49, %v1375_v54  ;;  %v1381_v20 = vrot.slane %v1346_v12, 7 }
 0x1e8   :  { %v11148_v32 = vadd.f32 %v1376_v52, %v11066_v17 }
 0x1e9   :  { %v1273_v13 = vpop.f32.mrf.mxu2  ;;  %v1382_v6 = vsel %vm408_vm2, %v1377_v38, %v1381_v20 }
 0x1ea   :  { %v1297_v60 = vpop.f32.mrf.mxu3  ;;  %v11152_v5 = vadd.f32 %v1382_v6, %v11081_v41 }
 0x1eb   :  { %v1298_v43 = vadd.f32 %v1297_v60, %v1273_v13  ;;  %v1324_v2 = vpop.f32.mrf.mxu0 }
 0x1ec   :  { %v1348_v58 = vpop.f32.mrf.mxu1 }
 0x1ed   :  { %v1379_v33 = vrot.slane %v1298_v43, 7  ;;  %v1349_v31 = vadd.f32 %v1348_v58, %v1324_v2 }
 0x1ee   :  { %2057 = vmatmul.bf16.gmra.mxu2 %v10627_v62  ;;  %2105 = vmatmul.bf16.gmra.mxu0 %v10627_v62 }
 0x1ef   :  { %7920 = vmatmul.msk.bf16.gmra.mxu3 %vm980_vm6, %v10629_v48  ;;  %v1380_v17 = vsel %vm408_vm2, %v1375_v54, %v1379_v33  ;;  %v1385_v37 = vrot.slane %v1349_v31, 7  ;;  %7923 = vmatmul.msk.bf16.gmra.mxu1 %vm980_vm6, %v10629_v48 }
 0x1f0   :  { %v11162_v41 = vadd.f32 %v1380_v17, %v11087_v42 }
 0x1f1   :  { %v1276_v24 = vpop.f32.mrf.mxu2  ;;  %v1386_v40 = vsel %vm408_vm2, %v1381_v20, %v1385_v37 }
 0x1f2   :  { %v1300_v39 = vpop.f32.mrf.mxu3  ;;  %v1412_v47 = vadd.f32 %v1386_v40, %v11093_v19 }
 0x1f3   :  { %v1301_v45 = vadd.f32 %v1300_v39, %v1276_v24  ;;  %v1326_v3 = vpop.f32.mrf.mxu0 }
 0x1f4   :  { %v1350_v22 = vpop.f32.mrf.mxu1 }
 0x1f5   :  { %v1383_v55 = vrot.slane %v1301_v45, 7  ;;  %v1351_v49 = vadd.f32 %v1350_v22, %v1326_v3 }
 0x1f7   :  { %v1384_v61 = vsel %vm408_vm2, %v1379_v33, %v1383_v55  ;;  %v1356_v62 = vrot.slane %v1351_v49, 7 }
 0x1f8   :  { %v1411_v16 = vadd.f32 %v1384_v61, %v11096_v63 }
 0x1f9   :  { %v1278_v48 = vpop.f32.mrf.mxu2  ;;  %v1402_v42 = vsel %vm408_vm2, %v1356_v62, %v1370_v51  ;;  %v1388_v46 = vsel %vm408_vm2, %v1385_v37, %v1356_v62 }
 0x1fa   :  { %v1302_v50 = vpop.f32.mrf.mxu3  ;;  %v1404_v27 = vadd.f32 %v1402_v42, %v11101_v0  ;;  %v11172_v19 = vadd.f32 %v1388_v46, %v11104_v21 }
 0x1fb   :  { %v1303_v38 = vadd.f32 %v1302_v50, %v1278_v48  ;;  %v1593_v30 = vpop.f32.mrf.mxu0 }
 0x1fc   :  { %v1617_v53 = vpop.f32.mrf.mxu1 }
 0x1fd   :  { %v1355_v7 = vrot.slane %v1303_v38, 7  ;;  %v1618_v54 = vadd.f32 %v1617_v53, %v1593_v30  ;;  %v9421_v53 = vld [vmem:[%s13651_s6 + $0x30] sm:$0xff] }
 0x1fe   :  { %2062 = vmatmul.bf16.gmra.mxu2 %v10685_v18  ;;  %2110 = vmatmul.bf16.gmra.mxu0 %v10685_v18 }
 0x1ff   :  { %7921 = vmatmul.msk.bf16.gmra.mxu3 %vm980_vm6, %v10690_v4  ;;  %v1401_v63 = vsel %vm408_vm2, %v1355_v7, %v1369_v35  ;;  %v1387_v51 = vsel %vm408_vm2, %v1383_v55, %v1355_v7  ;;  %v11181_v36 = vadd.f32 %v1618_v54, %v1404_v27  ;;  %7924 = vmatmul.msk.bf16.gmra.mxu1 %vm980_vm6, %v10690_v4  ;;  %v9424_v27 = vld [vmem:[%s13651_s6 + $0x48] sm:$0xff] }
 0x200   :  { %v1403_v0 = vadd.f32 %v1401_v63, %v11114_v9  ;;  %v11188_v21 = vadd.f32 %v1387_v51, %v11117_v57  ;;  %2369 = vmatpush.bf16.msrb.mxu3 %v9424_v27  ;;  %v9432_v51 = vld [vmem:[%s13651_s6 + $0x88] sm:$0xff] }
 0x201   :  { %v1545_v1 = vpop.f32.mrf.mxu2  ;;  %2493 = vmatpush.bf16.msra.mxu0 %v9432_v51  ;;  %v9427_v51 = vld [vmem:[%s13651_s6 + $0x60] sm:$0xff] }
 0x202   :  { %v1569_v12 = vpop.f32.mrf.mxu3 }
 0x203   :  { %v1570_v52 = vadd.f32 %v1569_v12, %v1545_v1  ;;  %v11192_v35 = vpop.f32.mrf.mxu0  ;;  %v9420_v1 = vld [vmem:[%s13651_s6 + $0x28] sm:$0xff] }
 0x204   :  { %v11194_v20 = vpop.f32.mrf.mxu1 }
 0x205   :  { %v11190_v14 = vadd.f32 %v1570_v52, %v1403_v0  ;;  %v9434_v0 = vld [vmem:[%s13651_s6 + $0x98] sm:$0xff] }
 0x206   :  { %2523 = vmatpush.bf16.msra.mxu1 %v9434_v0 }
 0x209   :  { %v11196_v13 = vpop.f32.mrf.mxu2 }
 0x20a   :  { %v11198_v18 = vpop.f32.mrf.mxu3 }
 0x20b   :  { %v1598_v60 = vpop.f32.mrf.mxu0 }
 0x20c   :  { %v1622_v4 = vpop.f32.mrf.mxu1 }
 0x20d   :  { %v1623_v6 = vadd.f32 %v1622_v4, %v1598_v60  ;;  %v9431_v60 = vld [vmem:[%s13651_s6 + $0x80] sm:$0xff] }
 0x20e   :  { %2494 = vmatpush.bf16.msra.mxu0 %v9431_v60  ;;  %v9423_v60 = vld [vmem:[%s13651_s6 + $0x40] sm:$0xff] }
 0x20f   :  { %v11201_v9 = vadd.f32 %v1623_v6, %v11144_v25  ;;  %2370 = vmatpush.bf16.msrb.mxu3 %v9423_v60 }
 0x211   :  { %v1550_v57 = vpop.f32.mrf.mxu2 }
 0x212   :  { %v1574_v43 = vpop.f32.mrf.mxu3 }
 0x213   :  { %v1575_v33 = vadd.f32 %v1574_v43, %v1550_v57  ;;  %v11206_v58 = vpop.f32.mrf.mxu0  ;;  %v9430_v57 = vld [vmem:[%s13651_s6 + $0x78] sm:$0xff] }
 0x214   :  { %v11208_v31 = vpop.f32.mrf.mxu1  ;;  %2495 = vmatpush.bf16.msra.mxu0 %v9430_v57  ;;  %v9433_v57 = vld [vmem:[%s13651_s6 + $0x90] sm:$0xff] }
 0x215   :  { %v11204_v2 = vadd.f32 %v1575_v33, %v11148_v32  ;;  %2524 = vmatpush.bf16.msra.mxu1 %v9433_v57 }
 0x219   :  { %v11210_v17 = vpop.f32.mrf.mxu2 }
 0x21a   :  { %v11212_v37 = vpop.f32.mrf.mxu3 }
 0x21b   :  { %v1603_v24 = vpop.f32.mrf.mxu0 }
 0x21c   :  { %v1627_v39 = vpop.f32.mrf.mxu1 }
 0x21d   :  { %v1628_v40 = vadd.f32 %v1627_v39, %v1603_v24  ;;  %v9419_v24 = vld [vmem:[%s13651_s6 + $0x20] sm:$0xff]  ;;  %v9429_v39 = vld [vmem:[%s13651_s6 + $0x70] sm:$0xff] }
 0x21e   :  { %2496 = vmatpush.bf16.msra.mxu0 %v9429_v39  ;;  %v9426_v39 = vld [vmem:[%s13651_s6 + $0x58] sm:$0xff] }
 0x21f   :  { %v11214_v45 = vadd.f32 %v1628_v40, %v1412_v47 }
 0x221   :  { %v1555_v25 = vpop.f32.mrf.mxu2 }
 0x222   :  { %v1579_v55 = vpop.f32.mrf.mxu3 }
 0x223   :  { %v1580_v3 = vadd.f32 %v1579_v55, %v1555_v25  ;;  %v11218_v32 = vpop.f32.mrf.mxu0  ;;  %v9418_v55 = vld [vmem:[%s13651_s6 + $0x18] sm:$0xff] }
 0x224   :  { %v11220_v49 = vpop.f32.mrf.mxu1 }
 0x225   :  { %v11216_v22 = vadd.f32 %v1580_v3, %v1411_v16  ;;  %v9422_v16 = vld [vmem:[%s13651_s6 + $0x38] sm:$0xff]  ;;  %v9428_v3 = vld [vmem:[%s13651_s6 + $0x68] sm:$0xff] }
 0x226   :  { %2339 = vmatpush.bf16.msra.mxu2 %v9422_v16  ;;  %2497 = vmatpush.bf16.msra.mxu0 %v9428_v3 }
 0x227   :  { %13724 = vst [vmem:[#allocation15_spill] sm:$0xff] %v11216_v22 }
 0x229   :  { %v11222_v61 = vpop.f32.mrf.mxu2 }
 0x22a   :  { %v11224_v62 = vpop.f32.mrf.mxu3  ;;  %2340 = vmatpush.bf16.msra.mxu2 %v9421_v53  ;;  %v9417_v53 = vld [vmem:[%s13651_s6 + $0x10] sm:$0xff]  ;;  %2498 = vmatpush.bf16.msra.mxu0 %v9427_v51 }
 0x22b   :  { %v11226_v48 = vpop.f32.mrf.mxu0  ;;  %v9425_v51 = vld [vmem:[%s13651_s6 + $0x50] sm:$0xff] }
 0x22c   :  { %v11228_v50 = vpop.f32.mrf.mxu1 }
 0x22d   :  { %v11328_v34 = vadd.f32 %v11228_v50, %v11226_v48 }
 0x22e   :  { %2341 = vmatpush.bf16.msra.mxu2 %v9420_v1  ;;  %2499 = vmatpush.bf16.msra.mxu0 %v9426_v39 }
 0x22f   :  { %v13684_v44 = vrot.slane %v11328_v34, 1 }
 0x231   :  { %v11230_v42 = vpop.f32.mrf.mxu2 }
 0x232   :  { %v11232_v47 = vpop.f32.mrf.mxu3  ;;  %2342 = vmatpush.bf16.msra.mxu2 %v9419_v24  ;;  %v9416_v24 = vld [vmem:[%s13651_s6 + $0x8] sm:$0xff]  ;;  %2500 = vmatpush.bf16.msra.mxu0 %v9425_v51 }
 0x233   :  { %v1824_v46 = vpop.f32.mrf.mxu0  ;;  %v11333_v11 = vadd.f32 %v11232_v47, %v11230_v42  ;;  %v2202_v47 = vld [vmem:[%s13725_s23] sm:$0x3] }
 0x234   :  { %v1848_v38 = vpop.f32.mrf.mxu1 }
 0x235   :  { %v1849_v10 = vadd.f32 %v1848_v38, %v1824_v46 }
 0x236   :  { %2343 = vmatpush.bf16.msra.mxu2 %v9418_v55 }
 0x237   :  { %v1877_v8 = vrot.slane %v1849_v10, 1 }
 0x239   :  { %v1776_v7 = vpop.f32.mrf.mxu2  ;;  %v1878_v38 = vsel %vm625_vm3, %v13684_v44, %v1877_v8 }
 0x23a   :  { %v1800_v30 = vpop.f32.mrf.mxu3  ;;  %2344 = vmatpush.bf16.msra.mxu2 %v9417_v53  ;;  %v9415_v53 = vld [vmem:[%s13651_s6] sm:$0xff] }
 0x23b   :  { %v11243_v54 = vpop.f32.mrf.mxu0 }
 0x23c   :  { %v11245_v63 = vpop.f32.mrf.mxu1 }
 0x23d   :  { %v11342_v10 = vadd.f32 %v11245_v63, %v11243_v54 }
 0x23e   :  { %2345 = vmatpush.bf16.msra.mxu2 %v9416_v24  ;;  %v1801_v24 = vadd.f32 %v1800_v30, %v1776_v7  ;;  %v13682_v7 = vrot.slane %v11333_v11, 1 }
 0x23f   :  { %v1881_v54 = vrot.slane %v11342_v10, 1 }
 0x240   :  { %v1874_v48 = vrot.slane %v1801_v24, 1 }
 0x241   :  { %v11256_v12 = vpop.f32.mrf.mxu2 }
 0x242   :  { %v11258_v52 = vpop.f32.mrf.mxu3  ;;  %2346 = vmatpush.bf16.msra.mxu2 %v9415_v53  ;;  %v1912_v53 = vadd.f32 %v1878_v38, %v11181_v36 }
 0x243   :  { %v11263_v4 = vpop.f32.mrf.mxu0  ;;  %v11363_v36 = vadd.f32 %v11258_v52, %v11256_v12  ;;  %v9442_v12 = vld [vmem:[%s13651_s6 + $0xd8] sm:$0xff]  ;;  %v9444_v52 = vld [vmem:[%s13651_s6 + $0xe8] sm:$0xff] }
 0x244   :  { %v11265_v6 = vpop.f32.mrf.mxu1  ;;  %2683 = vmatpush.bf16.msra.mxu3 %v9444_v52 }
 0x246   :  { %2653 = vmatpush.bf16.msrb.mxu2 %v9442_v12 }
 0x249   :  { %v11270_v43 = vpop.f32.mrf.mxu2 }
 0x24a   :  { %v11272_v33 = vpop.f32.mrf.mxu3 }
 0x24b   :  { %v11280_v40 = vpop.f32.mrf.mxu0 }
 0x24c   :  { %v11282_v25 = vpop.f32.mrf.mxu1 }
 0x251   :  { %v11290_v16 = vpop.f32.mrf.mxu2 }
 0x252   :  { %v11292_v27 = vpop.f32.mrf.mxu3 }
 0x253   :  { %v11300_v0 = vpop.f32.mrf.mxu0 }
 0x254   :  { %v11302_v1 = vpop.f32.mrf.mxu1 }
 0x259   :  { %v11316_v55 = vpop.f32.mrf.mxu2 }
 0x25a   :  { %v11318_v3 = vpop.f32.mrf.mxu3 }
 0x25b   :  { %v2101_v60 = vpop.f32.mrf.mxu0 }
 0x25c   :  { %v2125_v57 = vpop.f32.mrf.mxu1 }
 0x25d   :  { %v11335_v28 = vadd.f32 %v2125_v57, %v2101_v60  ;;  %v1620_v60 = vadd.f32 %v11194_v20, %v11192_v35 }
 0x25f   :  { %v13683_v30 = vrot.slane %v11335_v28, 2  ;;  %v1635_v10 = vadd.f32 %v1620_v60, %v11127_v56 }
 0x261   :  { %v2053_v39 = vpop.f32.mrf.mxu2 }
 0x262   :  { %v2077_v59 = vpop.f32.mrf.mxu3 }
 0x263   :  { %v2103_v22 = vpop.f32.mrf.mxu0  ;;  %v11350_v51 = vadd.f32 %v2077_v59, %v2053_v39  ;;  %v11365_v39 = vperm.slane %v2202_v47, 1 }
 0x264   :  { %v2127_v46 = vpop.f32.mrf.mxu1 }
 0x265   :  { %v2128_v50 = vadd.f32 %v2127_v46, %v2103_v22  ;;  %v1875_v22 = vsel %vm625_vm3, %v13682_v7, %v1874_v48  ;;  %v2152_v20 = vrot.slane %v11350_v51, 2  ;;  %v9462_v51 = vld [vmem:[%s13651_s6 + $0x178] sm:$0xff] }
 0x266   :  { %v1911_v7 = vadd.f32 %v1875_v22, %v11190_v14  ;;  %v11386_v14 = vadd.f32 %v11265_v6, %v11263_v4  ;;  %v11388_v22 = vperm.slane %v2202_v47, 0  ;;  %v9452_v4 = vld [vmem:[%s13651_s6 + $0x128] sm:$0xff] }
 0x267   :  { %v2156_v42 = vrot.slane %v2128_v50, 2  ;;  %2788 = vmatpush.bf16.msrb.mxu0 %v9452_v4 }
 0x269   :  { %v2157_v63 = vsel %vm761_vm4, %v13683_v30, %v2156_v42  ;;  %v2055_v57 = vpop.f32.mrf.mxu2  ;;  %v1882_v30 = vsel %vm625_vm3, %v1877_v8, %v1881_v54 }
 0x26a   :  { %v2079_v24 = vpop.f32.mrf.mxu3  ;;  %v2191_v59 = vadd.f32 %v2157_v63, %v1912_v53  ;;  %v1572_v53 = vadd.f32 %v11198_v18, %v11196_v13  ;;  %v1879_v63 = vrot.slane %v11363_v36, 1  ;;  %v9441_v13 = vld [vmem:[%s13651_s6 + $0xd0] sm:$0xff] }
 0x26b   :  { %v2080_v35 = vadd.f32 %v2079_v24, %v2055_v57  ;;  %v2106_v38 = vpop.f32.mrf.mxu0  ;;  %v1914_v24 = vadd.f32 %v1882_v30, %v1635_v10  ;;  %2654 = vmatpush.bf16.msrb.mxu2 %v9441_v13 }
 0x26c   :  { %v2130_v50 = vpop.f32.mrf.mxu1  ;;  %v2209_v56 = vadd.f32 %v11365_v39, %v2191_v59  ;;  %v1880_v6 = vsel %vm625_vm3, %v1874_v48, %v1879_v63  ;;  %v1634_v30 = vadd.f32 %v1572_v53, %v11140_v23  ;;  %v11413_v23 = vadd.f32 %v11282_v25, %v11280_v40 }
 0x26d   :  { %v2153_v46 = vrot.slane %v2080_v35, 2  ;;  %v2131_v44 = vadd.f32 %v2130_v50, %v2106_v38  ;;  %v1885_v38 = vrot.slane %v11386_v14, 1  ;;  %v11407_v50 = vadd.f32 %v11272_v33, %v11270_v43  ;;  %v9440_v43 = vld [vmem:[%s13651_s6 + $0xc8] sm:$0xff]  ;;  %v9451_v33 = vld [vmem:[%s13651_s6 + $0x120] sm:$0xff] }
 0x26e   :  { %2789 = vmatpush.bf16.msrb.mxu0 %v9451_v33 }
 0x26f   :  { %v2154_v8 = vsel %vm761_vm4, %v2152_v20, %v2153_v46  ;;  %v2160_v57 = vrot.slane %v2131_v44, 2  ;;  %v2221_v44 = vmax.f32 %v2209_v56, 0.0  ;;  %v1913_v56 = vadd.f32 %v1880_v6, %v1634_v30  ;;  %2655 = vmatpush.bf16.msrb.mxu2 %v9440_v43 }
 0x270   :  { %v2190_v60 = vadd.f32 %v2154_v8, %v1911_v7  ;;  %v9454_v8 = vld [vmem:[%s13651_s6 + $0x138] sm:$0xff]  ;;  %v1886_v25 = vsel %vm625_vm3, %v1881_v54, %v1885_v38  ;;  %v1883_v4 = vrot.slane %v11407_v50, 1 }
 0x271   :  { %v2161_v18 = vsel %vm761_vm4, %v2156_v42, %v2160_v57  ;;  %v2058_v59 = vpop.f32.mrf.mxu2  ;;  %v2233_v14 = vmul.f32 %v10427_v15, %v2221_v44  ;;  %2818 = vmatpush.bf16.msrb.mxu1 %v9454_v8  ;;  %v9450_v54 = vld [vmem:[%s13651_s6 + $0x118] sm:$0xff]  ;;  %v1889_v44 = vrot.slane %v11413_v23, 1  ;;  %v1916_v50 = vadd.f32 %v1886_v25, %v11201_v9 }
 0x272   :  { %v2082_v35 = vpop.f32.mrf.mxu3  ;;  %v2193_v7 = vadd.f32 %v2161_v18, %v1914_v24  ;;  %v2208_v42 = vadd.f32 %v11388_v22, %v2190_v60  ;;  %v1884_v9 = vsel %vm625_vm3, %v1879_v63, %v1883_v4  ;;  %2790 = vmatpush.bf16.msrb.mxu0 %v9450_v54  ;;  %v9438_v23 = vld [vmem:[%s13651_s6 + $0xb8] sm:$0xff]  ;;  %v1577_v8 = vadd.f32 %v11212_v37, %v11210_v17  ;;  %v9437_v17 = vld [vmem:[%s13651_s6 + $0xb0] sm:$0xff] }
 0x273   :  { %v11400_v47 = vadd.f32 %v2082_v35, %v2058_v59  ;;  %v2108_v12 = vpop.f32.mrf.mxu0  ;;  %v9439_v59 = vld [vmem:[%s13651_s6 + $0xc0] sm:$0xff] }
 0x274   :  { %v2211_v10 = vadd.f32 %v11365_v39, %v2193_v7  ;;  %v2132_v52 = vpop.f32.mrf.mxu1  ;;  %v2220_v24 = vmax.f32 %v2208_v42, 0.0  ;;  %v9443_v35 = vld [vmem:[%s13651_s6 + $0xe0] sm:$0xff]  ;;  %2656 = vmatpush.bf16.msrb.mxu2 %v9439_v59 }
 0x275   :  { %v2158_v48 = vrot.slane %v11400_v47, 2  ;;  %v11415_v53 = vadd.f32 %v2132_v52, %v2108_v12  ;;  %2684 = vmatpush.bf16.msra.mxu3 %v9443_v35 }
 0x276   :  { %v2223_v60 = vmax.f32 %v2211_v10, 0.0  ;;  %v11450_v10 = vadd.f32 %v11292_v27, %v11290_v16 }
 0x277   :  { %v2159_v40 = vsel %vm761_vm4, %v2153_v46, %v2158_v48  ;;  %v2164_v18 = vrot.slane %v11415_v53, 2  ;;  %v1625_v46 = vadd.f32 %v11208_v31, %v11206_v58  ;;  %v1859_v58 = vadd.f32 %v11302_v1, %v11300_v0  ;;  %v9449_v0 = vld [vmem:[%s13651_s6 + $0x110] sm:$0xff] }
 0x278   :  { %v2192_v13 = vadd.f32 %v2159_v40, %v1913_v56  ;;  %v11437_v6 = vpack.c.bf16 %v2223_v60, %v2233_v14  ;;  %v2232_v31 = vmul.f32 %v10427_v15, %v2220_v24  ;;  %v1890_v1 = vsel %vm625_vm3, %v1885_v38, %v1889_v44  ;;  %2657 = vmatpush.bf16.msrb.mxu2 %v9438_v23  ;;  %v9448_v24 = vld [vmem:[%s13651_s6 + $0x108] sm:$0xff] }
 0x279   :  { %v2165_v47 = vsel %vm761_vm4, %v2160_v57, %v2164_v18  ;;  %v2060_v30 = vpop.f32.mrf.mxu2  ;;  %v1639_v63 = vadd.f32 %v1625_v46, %v11152_v5  ;;  %v1887_v43 = vrot.slane %v11450_v10, 1  ;;  %v1915_v14 = vadd.f32 %v1884_v9, %v11204_v2  ;;  %2791 = vmatpush.bf16.msrb.mxu0 %v9449_v0 }
 0x27a   :  { %v2210_v7 = vadd.f32 %v11388_v22, %v2192_v13  ;;  %v2084_v42 = vpop.f32.mrf.mxu3  ;;  %7965 = vmatmul.msk.bf16.vlgmr.msrb.gmra.mxu3 %vm980_vm6, %v11437_v6  ;;  %8028 = vmatmul.msk.bf16.vlgmr.msra.gmra.mxu1 %vm980_vm6, %v11437_v6  ;;  %v2195_v16 = vadd.f32 %v2165_v47, %v1916_v50  ;;  %v1893_v60 = vrot.slane %v1859_v58, 1  ;;  %v1811_v40 = vadd.f32 %v11318_v3, %v11316_v55  ;;  %v9453_v13 = vld [vmem:[%s13651_s6 + $0x130] sm:$0xff] }
 0x27b   :  { %v11452_v12 = vadd.f32 %v2084_v42, %v2060_v30  ;;  %v2111_v52 = vpop.f32.mrf.mxu0  ;;  %v1918_v38 = vadd.f32 %v1890_v1, %v1639_v63  ;;  %v1630_v2 = vadd.f32 %v11220_v49, %v11218_v32  ;;  %v1888_v59 = vsel %vm625_vm3, %v1883_v4, %v1887_v43  ;;  %2819 = vmatpush.bf16.msrb.mxu1 %v9453_v13  ;;  %v9447_v4 = vld [vmem:[%s13651_s6 + $0x100] sm:$0xff] }
 0x27c   :  { %v2222_v57 = vmax.f32 %v2210_v7, 0.0  ;;  %v2135_v56 = vpop.f32.mrf.mxu1  ;;  %v2213_v5 = vadd.f32 %v11365_v39, %v2195_v16  ;;  %v1638_v46 = vadd.f32 %v1577_v8, %v11162_v41  ;;  %v1894_v32 = vsel %vm625_vm3, %v1889_v44, %v1893_v60  ;;  %2658 = vmatpush.bf16.msrb.mxu2 %v9437_v17  ;;  %v9436_v41 = vld [vmem:[%s13651_s6 + $0xa8] sm:$0xff]  ;;  %v13729_v17 = vld [vmem:[#allocation15_spill] sm:$0xff] }
 0x27d   :  { %v2162_v27 = vrot.slane %v11452_v12, 2  ;;  %v2136_v36 = vadd.f32 %v2135_v56, %v2111_v52  ;;  %v1891_v49 = vrot.slane %v1811_v40, 1  ;;  %2792 = vmatpush.bf16.msrb.mxu0 %v9448_v24  ;;  %v13727_v1 = vrot.slane %v11333_v11, 1  ;;  %v9446_v11 = vld [vmem:[%s13651_s6 + $0xf8] sm:$0xff] }
 0x27e   :  { %v11472_v53 = vpack.c.bf16 %v2222_v57, %v2232_v31  ;;  %v2225_v47 = vmax.f32 %v2213_v5, 0.0  ;;  %v1917_v44 = vadd.f32 %v1888_v59, %v1638_v46  ;;  %v1582_v31 = vadd.f32 %v11224_v62, %v11222_v61 }
 0x27f   :  { %v2163_v33 = vsel %vm761_vm4, %v2158_v48, %v2162_v27  ;;  %v2168_v25 = vrot.slane %v2136_v36, 2  ;;  %v1920_v57 = vadd.f32 %v1894_v32, %v11214_v45  ;;  %v1892_v56 = vsel %vm625_vm3, %v1887_v43, %v1891_v49 }
 0x280   :  { %2347 = vmatmul.bf16.vlgmr.msra.gmra.mxu2 %v11472_v53  ;;  %2501 = vmatmul.bf16.vlgmr.msra.gmra.mxu0 %v11472_v53  ;;  %v2194_v37 = vadd.f32 %v2163_v33, %v1915_v14  ;;  %v2237_v36 = vmul.f32 %v10588_v29, %v2225_v47  ;;  %v9435_v14 = vld [vmem:[%s13651_s6 + $0xa0] sm:$0xff] }
 0x281   :  { %v2169_v55 = vsel %vm761_vm4, %v2164_v18, %v2168_v25  ;;  %v2063_v3 = vpop.f32.mrf.mxu2  ;;  %v13726_v18 = vrot.slane %v11328_v34, 1  ;;  %v1643_v34 = vadd.f32 %v1630_v2, %v11172_v19  ;;  %v1909_v19 = vsel %vm625_vm3, %v1891_v49, %v13727_v1  ;;  %2659 = vmatpush.bf16.msrb.mxu2 %v9436_v41  ;;  %2793 = vmatpush.bf16.msrb.mxu0 %v9447_v4  ;;  %v8222_v1 = vld [vmem:[#allocation5] sm:$0xf] }
 0x282   :  { %v2087_v48 = vpop.f32.mrf.mxu3  ;;  %v2197_v35 = vadd.f32 %v2169_v55, %v1918_v38  ;;  %v2212_v12 = vadd.f32 %v11388_v22, %v2194_v37  ;;  %v1919_v2 = vadd.f32 %v1892_v56, %v13729_v17  ;;  %v9463_v56 = vld [vmem:[%s13651_s6 + $0x180] sm:$0xff] }
 0x283   :  { %v2088_v54 = vadd.f32 %v2087_v48, %v2063_v3  ;;  %v1910_v7 = vsel %vm625_vm3, %v1893_v60, %v13726_v18  ;;  %v2113_v50 = vpop.f32.mrf.mxu0  ;;  %v13730_v18 = vld [vmem:[#allocation14_spill] sm:$0xff] }
 0x284   :  { %v2215_v30 = vadd.f32 %v11365_v39, %v2197_v35  ;;  %v2137_v10 = vpop.f32.mrf.mxu1  ;;  %v1922_v52 = vadd.f32 %v1910_v7, %v1643_v34  ;;  %v2224_v61 = vmax.f32 %v2212_v12, 0.0  ;;  %v9445_v35 = vld [vmem:[%s13651_s6 + $0xf0] sm:$0xff] }
 0x285   :  { %v2166_v42 = vrot.slane %v2088_v54, 2  ;;  %v2138_v58 = vadd.f32 %v2137_v10, %v2113_v50  ;;  %2794 = vmatpush.bf16.msrb.mxu0 %v9446_v11  ;;  %2660 = vmatpush.bf16.msrb.mxu2 %v9435_v14  ;;  %v3060_v50 = vld [vmem:[#allocation5 + $0x10] sm:$0x33] }
 0x286   :  { %v2227_v9 = vmax.f32 %v2215_v30, 0.0  ;;  %v2236_v24 = vmul.f32 %v10588_v29, %v2224_v61  ;;  %v3068_v41 = vunpack.c.l.b16 %v3060_v50  ;;  %v3069_v4 = vunpack.c.h.b16 %v3060_v50  ;;  %v8224_v61 = vld [vmem:[#allocation5 + $0x8] sm:$0xf0]  ;;  %v3412_v50 = vld [vmem:[#allocation5 + $0x58] sm:$0x33] }
 0x287   :  { %v2167_v16 = vsel %vm761_vm4, %v2162_v27, %v2166_v42  ;;  %v2172_v0 = vrot.slane %v2138_v58, 2  ;;  %v13728_v27 = vrot.slane %v11335_v28, 2 }
 0x288   :  { %v2196_v23 = vadd.f32 %v2167_v16, %v1917_v44  ;;  %v2239_v63 = vmul.f32 %v10606_v26, %v2227_v9  ;;  %v3072_v12 = vpack.c.b16 %v3068_v41, %v3068_v41  ;;  %v3073_v58 = vpack.c.b16 %v3069_v4, %v3069_v4  ;;  %v9460_v16 = vld [vmem:[%s13651_s6 + $0x168] sm:$0xff] }
 0x289   :  { %v2173_v62 = vsel %vm761_vm4, %v2168_v25, %v2172_v0  ;;  %v2189_v8 = vsel %vm761_vm4, %v2172_v0, %v13728_v27  ;;  %v2065_v43 = vpop.f32.mrf.mxu2  ;;  %v1642_v25 = vadd.f32 %v1582_v31, %v11188_v21  ;;  %2795 = vmatpush.bf16.msrb.mxu0 %v9445_v35  ;;  %2948 = vmatpush.bf16.msra.mxu2 %v9462_v51  ;;  %v9457_v0 = vld [vmem:[%s13651_s6 + $0x150] sm:$0xff]  ;;  %v9455_v27 = vld [vmem:[%s13651_s6 + $0x140] sm:$0xff] }
 0x28a   :  { %v2214_v45 = vadd.f32 %v11388_v22, %v2196_v23  ;;  %v2089_v33 = vpop.f32.mrf.mxu3  ;;  %v2199_v60 = vadd.f32 %v2173_v62, %v1920_v57  ;;  %v2201_v40 = vadd.f32 %v2189_v8, %v1922_v52  ;;  %v11533_v5 = vpack.c.bf16 %v2239_v63, %v2237_v36  ;;  %v9459_v52 = vld [vmem:[%s13651_s6 + $0x160] sm:$0xff]  ;;  %v9458_v23 = vld [vmem:[%s13651_s6 + $0x158] sm:$0xff] }
 0x28b   :  { %v2090_v38 = vadd.f32 %v2089_v33, %v2065_v43  ;;  %v1921_v48 = vadd.f32 %v1909_v19, %v1642_v25  ;;  %v3086_v57 = vsel %vm214_vm0, %v3072_v12, 0  ;;  %v3089_v9 = vsel %vm214_vm0, %v3073_v58, 0  ;;  %v9466_v19 = vld [vmem:[#allocation5 + $0x4] sm:$0xf0]  ;;  %v9465_v36 = vld [vmem:[#allocation5 + $0x4] sm:$0xf] }
 0x28c   :  { %v2226_v28 = vmax.f32 %v2214_v45, 0.0  ;;  %v2217_v37 = vadd.f32 %v11365_v39, %v2199_v60  ;;  %v2219_v55 = vadd.f32 %v11365_v39, %v2201_v40  ;;  %7966 = vmatmul.msk.bf16.gmra.mxu3 %vm980_vm6, %v11533_v5  ;;  %8029 = vmatmul.msk.bf16.gmra.mxu1 %vm980_vm6, %v11533_v5  ;;  %v8223_v63 = vor.u32 %v9466_v19, %v8222_v1  ;;  %v9456_v45 = vld [vmem:[%s13651_s6 + $0x148] sm:$0xff]  ;;  %v3192_v8 = vld [vmem:[#allocation5 + $0x28] sm:$0x33]  ;;  %v3327_v43 = vld [vmem:[#allocation5 + $0x40] sm:$0x33] }
 0x28d   :  { %v2170_v3 = vrot.slane %v2090_v38, 2  ;;  %3097 = vmatpush.bf16.msra.mxu0 %v3086_v57  ;;  %3121 = vmatpush.bf16.msra.mxu1 %v3089_v9  ;;  %v8227_v62 = vor.u32 %v9465_v36, %v8224_v61  ;;  %v3200_v33 = vunpack.c.l.b16 %v3192_v8  ;;  %v3201_v11 = vunpack.c.h.b16 %v3192_v8  ;;  %v8238_v35 = vld [vmem:[#allocation5 + $0x20] sm:$0xf0]  ;;  %v3547_v57 = vld [vmem:[#allocation5 + $0x70] sm:$0x33] }
 0x28e   :  { %v2238_v13 = vmul.f32 %v10606_v26, %v2226_v28  ;;  %v2231_v21 = vmax.f32 %v2219_v55, 0.0  ;;  %v2229_v49 = vmax.f32 %v2217_v37, 0.0  ;;  %v3335_v14 = vunpack.c.l.b16 %v3327_v43 }
 0x28f   :  { %v2171_v59 = vsel %vm761_vm4, %v2166_v42, %v2170_v3  ;;  %v2188_v39 = vsel %vm761_vm4, %v2170_v3, %v2152_v20  ;;  %v9464_v20 = vld [vmem:[%s13651_s6 + $0x188] sm:$0xff]  ;;  %v3336_v60 = vunpack.c.h.b16 %v3327_v43  ;;  %v3204_v40 = vpack.c.b16 %v3200_v33, %v3200_v33  ;;  %v3049_v3 = vld [vmem:[%s13731_s27] sm:$0xff] }
 0x290   :  { %v2198_v54 = vadd.f32 %v2171_v59, %v1919_v2  ;;  %v2200_v46 = vadd.f32 %v2188_v39, %v1921_v48  ;;  %v11552_v32 = vpack.c.bf16 %v2238_v13, %v2236_v24  ;;  %v2243_v7 = vmul.f32 %v13730_v18, %v2231_v21  ;;  %2978 = vmatpush.bf16.msrb.mxu3 %v9464_v20  ;;  %v3050_v48 = vld [vmem:[%s13731_s27 + $0x8] sm:$0xff]  ;;  %v8236_v24 = vld [vmem:[#allocation5 + $0x18] sm:$0xf]  ;;  %v9468_v13 = vld [vmem:[#allocation5 + $0x1c] sm:$0xf0] }
 0x291   :  { %3098 = vmatpush.bf16.msra.mxu0 %v8223_v63  ;;  %3122 = vmatpush.bf16.msra.mxu1 %v8227_v62  ;;  %v3205_v38 = vpack.c.b16 %v3201_v11, %v3201_v11  ;;  %v3339_v25 = vpack.c.b16 %v3335_v14, %v3335_v14  ;;  %v3340_v28 = vpack.c.b16 %v3336_v60, %v3336_v60  ;;  %v3209_v17 = vsel %vm214_vm0, %v3204_v40, 0  ;;  %v9467_v21 = vld [vmem:[#allocation5 + $0x1c] sm:$0xf]  ;;  %v8264_v11 = vld [vmem:[#allocation5 + $0x48] sm:$0xf] }
 0x292   :  { %v2216_v47 = vadd.f32 %v11388_v22, %v2198_v54  ;;  %v2218_v30 = vadd.f32 %v11388_v22, %v2200_v46  ;;  %2352 = vmatmul.bf16.gmra.mxu2 %v11552_v32  ;;  %2506 = vmatmul.bf16.gmra.mxu0 %v11552_v32  ;;  %v11565_v42 = vpack.c.bf16 %v2243_v7, %v2229_v49  ;;  %v9461_v22 = vld [vmem:[%s13651_s6 + $0x170] sm:$0xff]  ;;  %v8250_v46 = vld [vmem:[#allocation5 + $0x30] sm:$0xf]  ;;  %v3555_v9 = vunpack.c.l.b16 %v3547_v57  ;;  %v9471_v60 = vld [vmem:[#allocation5 + $0x4c] sm:$0xf] }
 0x293   :  { %2949 = vmatpush.bf16.msra.mxu2 %v9461_v22  ;;  %v3212_v2 = vsel %vm214_vm0, %v3205_v38, 0  ;;  %v3344_v37 = vsel %vm214_vm0, %v3339_v25, 0  ;;  %v3347_v55 = vsel %vm214_vm0, %v3340_v28, 0  ;;  %v11630_v59 = vpack.c.bf16 %v3050_v48, %v3049_v3  ;;  %v9470_v49 = vld [vmem:[#allocation5 + $0x34] sm:$0xf0] }
 0x294   :  { %v2230_v10 = vmax.f32 %v2218_v30, 0.0  ;;  %v2228_v34 = vmax.f32 %v2216_v47, 0.0  ;;  %2979 = vmatpush.bf16.msrb.mxu3 %v9463_v56  ;;  %v8237_v39 = vor.u32 %v9468_v13, %v8236_v24  ;;  %v8241_v54 = vor.u32 %v9467_v21, %v8238_v35  ;;  %v9469_v7 = vld [vmem:[#allocation5 + $0x34] sm:$0xf]  ;;  %v8252_v30 = vld [vmem:[#allocation5 + $0x38] sm:$0xf0] }
 0x295   :  { %v8251_v47 = vor.u32 %v9470_v49, %v8250_v46  ;;  %v8255_v51 = vor.u32 %v9469_v7, %v8252_v30  ;;  %v3051_v20 = vld [vmem:[%s13731_s27 + $0x10] sm:$0xff]  ;;  %v3421_v22 = vunpack.c.h.b16 %v3412_v50  ;;  %v3559_v56 = vpack.c.b16 %v3555_v9, %v3555_v9  ;;  %v9472_v14 = vld [vmem:[#allocation5 + $0x4c] sm:$0xf0]  ;;  %v8278_v35 = vld [vmem:[#allocation5 + $0x60] sm:$0xf] }
 0x296   :  { %v2242_v44 = vmul.f32 %v13730_v18, %v2230_v10  ;;  %v3420_v10 = vunpack.c.l.b16 %v3412_v50  ;;  %v8265_v38 = vor.u32 %v9472_v14, %v8264_v11  ;;  %v8266_v25 = vld [vmem:[#allocation5 + $0x50] sm:$0xf0]  ;;  %v9473_v49 = vld [vmem:[#allocation5 + $0x64] sm:$0xf]  ;;  %v8280_v7 = vld [vmem:[#allocation5 + $0x68] sm:$0xf0] }
 0x297   :  { %2950 = vmatpush.bf16.msra.mxu2 %v9460_v16  ;;  %v3425_v4 = vpack.c.b16 %v3421_v22, %v3421_v22  ;;  %v3556_v16 = vunpack.c.h.b16 %v3547_v57  ;;  %v3564_v19 = vsel %vm214_vm0, %v3559_v56, 0 }
 0x298   :  { %v11571_v31 = vpack.c.bf16 %v2242_v44, %v2228_v34  ;;  %v3424_v41 = vpack.c.b16 %v3420_v10, %v3420_v10  ;;  %v3053_v34 = vld [vmem:[%s13731_s27 + $0x20] sm:$0xff] }
 0x29a   :  { %v3429_v44 = vsel %vm214_vm0, %v3424_v41, 0 }
 0x29b   :  { %2951 = vmatpush.bf16.msra.mxu2 %v9459_v52 }
 0x29c   :  { %7967 = vmatmul.msk.bf16.gmra.mxu3 %vm980_vm6, %v11565_v42  ;;  %8030 = vmatmul.msk.bf16.gmra.mxu1 %vm980_vm6, %v11565_v42 }
 0x29f   :  { %2952 = vmatpush.bf16.msra.mxu2 %v9458_v23  ;;  %v3560_v23 = vpack.c.b16 %v3556_v16, %v3556_v16 }
 0x2a1   :  { %v3567_v36 = vsel %vm214_vm0, %v3560_v23, 0 }
 0x2a2   :  { %2357 = vmatmul.bf16.gmra.mxu2 %v11571_v31  ;;  %2511 = vmatmul.bf16.gmra.mxu0 %v11571_v31 }
 0x2a3   :  { %2953 = vmatpush.bf16.msra.mxu2 %v9457_v0 }
 0x2a7   :  { %2954 = vmatpush.bf16.msra.mxu2 %v9456_v45 }
 0x2ab   :  { %2955 = vmatpush.bf16.msra.mxu2 %v9455_v27 }
 0x2ac   :  { %8091 = vmatmul.msk.bf16.vlgmr.msra.gmra.mxu3 %vm980_vm6, %v11437_v6  ;;  %8154 = vmatmul.msk.bf16.vlgmr.msrb.gmra.mxu1 %vm980_vm6, %v11437_v6 }
 0x2ad   :  { %3244 = vmatpush.bf16.msra.mxu3 %v3212_v2  ;;  %3379 = vmatpush.bf16.msrb.mxu1 %v3347_v55 }
 0x2b1   :  { %3245 = vmatpush.bf16.msra.mxu3 %v8241_v54  ;;  %3380 = vmatpush.bf16.msrb.mxu1 %v8255_v51  ;;  %v9474_v54 = vld [vmem:[#allocation5 + $0x64] sm:$0xf0] }
 0x2b2   :  { %2661 = vmatmul.bf16.vlgmr.msrb.gmra.mxu2 %v11472_v53  ;;  %2796 = vmatmul.bf16.vlgmr.msrb.gmra.mxu0 %v11472_v53  ;;  %v8279_v46 = vor.u32 %v9474_v54, %v8278_v35 }
 0x2b3   :  { %3220 = vmatpush.bf16.msrb.mxu2 %v3209_v17  ;;  %3355 = vmatpush.bf16.msrb.mxu0 %v3344_v37  ;;  %v8269_v17 = vor.u32 %v9471_v60, %v8266_v25 }
 0x2b7   :  { %3221 = vmatpush.bf16.msrb.mxu2 %v8237_v39  ;;  %3356 = vmatpush.bf16.msrb.mxu0 %v8251_v47  ;;  %v8283_v47 = vor.u32 %v9473_v49, %v8280_v7 }
 0x2bc   :  { %8092 = vmatmul.msk.bf16.gmra.mxu3 %vm980_vm6, %v11533_v5  ;;  %8155 = vmatmul.msk.bf16.gmra.mxu1 %vm980_vm6, %v11533_v5 }
 0x2c2   :  { %2666 = vmatmul.bf16.gmra.mxu2 %v11552_v32  ;;  %2801 = vmatmul.bf16.gmra.mxu0 %v11552_v32 }
 0x2cc   :  { %8093 = vmatmul.msk.bf16.gmra.mxu3 %vm980_vm6, %v11565_v42  ;;  %8156 = vmatmul.msk.bf16.gmra.mxu1 %vm980_vm6, %v11565_v42 }
 0x2d2   :  { %2671 = vmatmul.bf16.gmra.mxu2 %v11571_v31  ;;  %2806 = vmatmul.bf16.gmra.mxu0 %v11571_v31 }
 0x2dc   :  { %8217 = vmatmul.msk.bf16.vlgmr.msrb.gmra.mxu3 %vm980_vm6, %v11437_v6  ;;  %8231 = vmatmul.msk.bf16.vlgmr.msra.gmra.mxu1 %vm204_vm1, %v11630_v59  ;;  %v3052_v6 = vld [vmem:[%s13731_s27 + $0x18] sm:$0xff] }
 0x2dd   :  { %3599 = vmatpush.bf16.msra.mxu1 %v3567_v36 }
 0x2e1   :  { %3600 = vmatpush.bf16.msra.mxu1 %v8283_v47 }
 0x2e2   :  { %2956 = vmatmul.bf16.vlgmr.msra.gmra.mxu2 %v11472_v53  ;;  %8228 = vmatmul.msk.bf16.vlgmr.msra.gmra.mxu0 %vm204_vm1, %v11630_v59  ;;  %v11645_v53 = vpack.c.bf16 %v3052_v6, %v3051_v20 }
 0x2e3   :  { %3440 = vmatpush.bf16.msra.mxu2 %v3429_v44  ;;  %3575 = vmatpush.bf16.msra.mxu0 %v3564_v19 }
 0x2e7   :  { %3441 = vmatpush.bf16.msra.mxu2 %v8265_v38  ;;  %3576 = vmatpush.bf16.msra.mxu0 %v8279_v46 }
 0x2ec   :  { %8218 = vmatmul.msk.bf16.gmra.mxu3 %vm980_vm6, %v11533_v5  ;;  %8232 = vmatmul.msk.bf16.gmra.mxu1 %vm204_vm1, %v11645_v53  ;;  %v3054_v5 = vld [vmem:[%s13731_s27 + $0x28] sm:$0xff] }
 0x2ed   :  { %v11662_v58 = vpack.c.bf16 %v3054_v5, %v3053_v34 }
 0x2f2   :  { %2961 = vmatmul.bf16.gmra.mxu2 %v11552_v32  ;;  %8229 = vmatmul.msk.bf16.gmra.mxu0 %vm204_vm1, %v11645_v53  ;;  %v3432_v32 = vsel %vm214_vm0, %v3425_v4, 0 }
 0x2f3   :  { %3464 = vmatpush.bf16.msrb.mxu3 %v3432_v32 }
 0x2f7   :  { %v2526_v12 = vpop.f32.mrf.mxu1  ;;  %3465 = vmatpush.bf16.msrb.mxu3 %v8269_v17 }
 0x2fc   :  { %8219 = vmatmul.msk.bf16.gmra.mxu3 %vm980_vm6, %v11565_v42  ;;  %8233 = vmatmul.msk.bf16.gmra.mxu1 %vm204_vm1, %v11662_v58 }
 0x2fd   :  { %v2502_v52 = vpop.f32.mrf.mxu0  ;;  %v2372_v0 = vpop.f32.mrf.mxu3 }
 0x2fe   :  { %v11668_v1 = vadd.f32 %v2526_v12, %v2502_v52 }
 0x2ff   :  { %v2528_v63 = vpop.f32.mrf.mxu1 }
 0x300   :  { %v2549_v27 = vrot.slane %v11668_v1, 7 }
 0x302   :  { %2966 = vmatmul.bf16.gmra.mxu2 %v11571_v31  ;;  %8230 = vmatmul.msk.bf16.gmra.mxu0 %vm204_vm1, %v11662_v58 }
 0x303   :  { %v2348_v42 = vpop.f32.mrf.mxu2 }
 0x304   :  { %v11675_v61 = vadd.f32 %v2372_v0, %v2348_v42 }
 0x305   :  { %v2504_v45 = vpop.f32.mrf.mxu0  ;;  %v2374_v8 = vpop.f32.mrf.mxu3 }
 0x306   :  { %v2529_v62 = vadd.f32 %v2528_v63, %v2504_v45  ;;  %v2395_v2 = vrot.slane %v11675_v61, 6 }
 0x308   :  { %v2550_v43 = vrot.slane %v2529_v62, 7 }
 0x309   :  { %v2531_v33 = vpop.f32.mrf.mxu1 }
 0x30a   :  { %v2551_v31 = vsel %vm408_vm2, %v2549_v27, %v2550_v43 }
 0x30b   :  { %v2350_v40 = vpop.f32.mrf.mxu2 }
 0x30c   :  { %v2375_v28 = vadd.f32 %v2374_v8, %v2350_v40  ;;  %8245 = vmatmul.msk.bf16.vlgmr.msra.gmra.mxu3 %vm204_vm1, %v11630_v59  ;;  %8259 = vmatmul.msk.bf16.vlgmr.msrb.gmra.mxu1 %vm204_vm1, %v11630_v59 }
 0x30e   :  { %v2396_v37 = vrot.slane %v2375_v28, 6 }
 0x30f   :  { %v2507_v55 = vpop.f32.mrf.mxu0  ;;  %v2377_v3 = vpop.f32.mrf.mxu3 }
 0x310   :  { %v2532_v48 = vadd.f32 %v2531_v33, %v2507_v55  ;;  %v2397_v24 = vsel %vm214_vm0, %v2395_v2, %v2396_v37 }
 0x311   :  { %v11689_v13 = vadd.f32 %v2551_v31, %v2397_v24  ;;  %v2533_v39 = vpop.f32.mrf.mxu1 }
 0x312   :  { %v2552_v21 = vrot.slane %v2532_v48, 7  ;;  %8242 = vmatmul.msk.bf16.vlgmr.msrb.gmra.mxu2 %vm204_vm1, %v11630_v59  ;;  %8256 = vmatmul.msk.bf16.vlgmr.msrb.gmra.mxu0 %vm204_vm1, %v11630_v59 }
 0x314   :  { %v2553_v30 = vsel %vm408_vm2, %v2550_v43, %v2552_v21 }
 0x315   :  { %v2353_v51 = vpop.f32.mrf.mxu2 }
 0x316   :  { %v2378_v20 = vadd.f32 %v2377_v3, %v2353_v51 }
 0x317   :  { %v2509_v6 = vpop.f32.mrf.mxu0  ;;  %v2379_v10 = vpop.f32.mrf.mxu3 }
 0x318   :  { %v2398_v50 = vrot.slane %v2378_v20, 6  ;;  %v2534_v22 = vadd.f32 %v2533_v39, %v2509_v6 }
 0x319   :  { %v2536_v4 = vpop.f32.mrf.mxu1 }
 0x31a   :  { %v2554_v41 = vrot.slane %v2534_v22, 7  ;;  %v2399_v34 = vsel %vm214_vm0, %v2396_v37, %v2398_v50 }
 0x31b   :  { %v11697_v5 = vadd.f32 %v2553_v30, %v2399_v34 }
 0x31c   :  { %v2555_v44 = vsel %vm408_vm2, %v2552_v21, %v2554_v41  ;;  %8246 = vmatmul.msk.bf16.gmra.mxu3 %vm204_vm1, %v11645_v53  ;;  %8260 = vmatmul.msk.bf16.gmra.mxu1 %vm204_vm1, %v11645_v53 }
 0x31d   :  { %v2355_v32 = vpop.f32.mrf.mxu2 }
 0x31e   :  { %v2380_v12 = vadd.f32 %v2379_v10, %v2355_v32 }
 0x31f   :  { %v2512_v57 = vpop.f32.mrf.mxu0  ;;  %v2382_v16 = vpop.f32.mrf.mxu3 }
 0x320   :  { %v2400_v9 = vrot.slane %v2380_v12, 6  ;;  %v2537_v52 = vadd.f32 %v2536_v4, %v2512_v57 }
 0x321   :  { %v2538_v23 = vpop.f32.mrf.mxu1 }
 0x322   :  { %v2556_v56 = vrot.slane %v2537_v52, 7  ;;  %8243 = vmatmul.msk.bf16.gmra.mxu2 %vm204_vm1, %v11645_v53  ;;  %8257 = vmatmul.msk.bf16.gmra.mxu0 %vm204_vm1, %v11645_v53  ;;  %v2401_v0 = vsel %vm214_vm0, %v2398_v50, %v2400_v9 }
 0x323   :  { %v11709_v19 = vadd.f32 %v2555_v44, %v2401_v0 }
 0x324   :  { %v2557_v36 = vsel %vm408_vm2, %v2554_v41, %v2556_v56 }
 0x325   :  { %v2358_v63 = vpop.f32.mrf.mxu2 }
 0x326   :  { %v2383_v42 = vadd.f32 %v2382_v16, %v2358_v63 }
 0x327   :  { %v2514_v45 = vpop.f32.mrf.mxu0  ;;  %v2384_v8 = vpop.f32.mrf.mxu3 }
 0x328   :  { %v2402_v62 = vrot.slane %v2383_v42, 6  ;;  %v2539_v43 = vadd.f32 %v2538_v23, %v2514_v45 }
 0x329   :  { %v2821_v11 = vpop.f32.mrf.mxu1 }
 0x32a   :  { %v2542_v33 = vrot.slane %v2539_v43, 7  ;;  %v2403_v14 = vsel %vm214_vm0, %v2400_v9, %v2402_v62 }
 0x32b   :  { %v11713_v60 = vadd.f32 %v2557_v36, %v2403_v14 }
 0x32c   :  { %v2565_v31 = vsel %vm408_vm2, %v2542_v33, %v2549_v27  ;;  %v2558_v40 = vsel %vm408_vm2, %v2556_v56, %v2542_v33  ;;  %8247 = vmatmul.msk.bf16.gmra.mxu3 %vm204_vm1, %v11662_v58  ;;  %8261 = vmatmul.msk.bf16.gmra.mxu1 %vm204_vm1, %v11662_v58 }
 0x32d   :  { %v2360_v38 = vpop.f32.mrf.mxu2 }
 0x32e   :  { %v2385_v25 = vadd.f32 %v2384_v8, %v2360_v38 }
 0x32f   :  { %v2797_v28 = vpop.f32.mrf.mxu0  ;;  %v2686_v37 = vpop.f32.mrf.mxu3 }
 0x330   :  { %v2388_v17 = vrot.slane %v2385_v25, 6  ;;  %v11723_v55 = vadd.f32 %v2821_v11, %v2797_v28 }
 0x331   :  { %v2823_v3 = vpop.f32.mrf.mxu1 }
 0x332   :  { %8244 = vmatmul.msk.bf16.gmra.mxu2 %vm204_vm1, %v11662_v58  ;;  %8258 = vmatmul.msk.bf16.gmra.mxu0 %vm204_vm1, %v11662_v58  ;;  %v2411_v1 = vsel %vm214_vm0, %v2388_v17, %v2395_v2  ;;  %v2404_v27 = vsel %vm214_vm0, %v2402_v62, %v2388_v17  ;;  %v2842_v7 = vrot.slane %v11723_v55, 1 }
 0x333   :  { %v2566_v48 = vadd.f32 %v2565_v31, %v2411_v1  ;;  %v11733_v24 = vadd.f32 %v2558_v40, %v2404_v27 }
 0x335   :  { %v2662_v21 = vpop.f32.mrf.mxu2 }
 0x336   :  { %v2687_v39 = vadd.f32 %v2686_v37, %v2662_v21 }
 0x337   :  { %v2799_v35 = vpop.f32.mrf.mxu0  ;;  %v2688_v46 = vpop.f32.mrf.mxu3 }
 0x338   :  { %v2701_v54 = vadd.f32 %v2687_v39, %v2566_v48  ;;  %v2824_v49 = vadd.f32 %v2823_v3, %v2799_v35 }
 0x339   :  { %v2826_v30 = vpop.f32.mrf.mxu1 }
 0x33a   :  { %v2843_v47 = vrot.slane %v2824_v49, 1 }
 0x33c   :  { %v2844_v51 = vsel %vm625_vm3, %v2842_v7, %v2843_v47  ;;  %8273 = vmatmul.msk.bf16.vlgmr.msrb.gmra.mxu3 %vm204_vm1, %v11630_v59  ;;  %8287 = vmatmul.msk.bf16.vlgmr.msra.gmra.mxu1 %vm204_vm1, %v11630_v59 }
 0x33d   :  { %v11737_v61 = vadd.f32 %v2844_v51, %v2701_v54  ;;  %v2664_v2 = vpop.f32.mrf.mxu2 }
 0x33e   :  { %v2689_v20 = vadd.f32 %v2688_v46, %v2664_v2 }
 0x33f   :  { %v2802_v6 = vpop.f32.mrf.mxu0  ;;  %v2691_v50 = vpop.f32.mrf.mxu3 }
 0x340   :  { %v2827_v10 = vadd.f32 %v2826_v30, %v2802_v6  ;;  %v2702_v4 = vadd.f32 %v2689_v20, %v11689_v13 }
 0x341   :  { %v2828_v41 = vpop.f32.mrf.mxu1 }
 0x342   :  { %v2845_v22 = vrot.slane %v2827_v10, 1  ;;  %8270 = vmatmul.msk.bf16.vlgmr.msra.gmra.mxu2 %vm204_vm1, %v11630_v59  ;;  %8284 = vmatmul.msk.bf16.vlgmr.msra.gmra.mxu0 %vm204_vm1, %v11630_v59 }
 0x344   :  { %v2846_v34 = vsel %vm625_vm3, %v2843_v47, %v2845_v22 }
 0x345   :  { %v11749_v44 = vadd.f32 %v2846_v34, %v2702_v4  ;;  %v2667_v32 = vpop.f32.mrf.mxu2 }
 0x346   :  { %v2692_v12 = vadd.f32 %v2691_v50, %v2667_v32 }
 0x347   :  { %v2804_v57 = vpop.f32.mrf.mxu0  ;;  %v2693_v16 = vpop.f32.mrf.mxu3 }
 0x348   :  { %v2703_v9 = vadd.f32 %v2692_v12, %v11697_v5  ;;  %v2829_v52 = vadd.f32 %v2828_v41, %v2804_v57 }
 0x349   :  { %v2831_v23 = vpop.f32.mrf.mxu1 }
 0x34a   :  { %v2847_v56 = vrot.slane %v2829_v52, 1 }
 0x34c   :  { %v2848_v0 = vsel %vm625_vm3, %v2845_v22, %v2847_v56  ;;  %8274 = vmatmul.msk.bf16.gmra.mxu3 %vm204_vm1, %v11645_v53  ;;  %8288 = vmatmul.msk.bf16.gmra.mxu1 %vm204_vm1, %v11645_v53 }
 0x34d   :  { %v11753_v36 = vadd.f32 %v2848_v0, %v2703_v9  ;;  %v2669_v59 = vpop.f32.mrf.mxu2 }
 0x34e   :  { %v2694_v13 = vadd.f32 %v2693_v16, %v2669_v59 }
 0x34f   :  { %v2807_v63 = vpop.f32.mrf.mxu0  ;;  %v2696_v42 = vpop.f32.mrf.mxu3 }
 0x350   :  { %v2832_v45 = vadd.f32 %v2831_v23, %v2807_v63  ;;  %v2704_v8 = vadd.f32 %v2694_v13, %v11709_v19 }
 0x351   :  { %v2833_v62 = vpop.f32.mrf.mxu1 }
 0x352   :  { %v2849_v5 = vrot.slane %v2832_v45, 1  ;;  %8271 = vmatmul.msk.bf16.gmra.mxu2 %vm204_vm1, %v11645_v53  ;;  %8285 = vmatmul.msk.bf16.gmra.mxu0 %vm204_vm1, %v11645_v53 }
 0x354   :  { %v2850_v43 = vsel %vm625_vm3, %v2847_v56, %v2849_v5 }
 0x355   :  { %v2864_v33 = vadd.f32 %v2850_v43, %v2704_v8  ;;  %v2672_v11 = vpop.f32.mrf.mxu2 }
 0x356   :  { %v2697_v14 = vadd.f32 %v2696_v42, %v2672_v11 }
 0x357   :  { %v2809_v31 = vpop.f32.mrf.mxu0  ;;  %v2698_v38 = vpop.f32.mrf.mxu3 }
 0x358   :  { %v2705_v40 = vadd.f32 %v2697_v14, %v11713_v60  ;;  %v2834_v25 = vadd.f32 %v2833_v62, %v2809_v31 }
 0x359   :  { %v11766_v17 = vpop.f32.mrf.mxu1 }
 0x35a   :  { %v2851_v28 = vrot.slane %v2834_v25, 1 }
 0x35c   :  { %v2852_v37 = vsel %vm625_vm3, %v2849_v5, %v2851_v28  ;;  %8275 = vmatmul.msk.bf16.gmra.mxu3 %vm204_vm1, %v11662_v58  ;;  %8289 = vmatmul.msk.bf16.gmra.mxu1 %vm204_vm1, %v11662_v58  ;;  %v2860_v27 = vsel %vm625_vm3, %v2851_v28, %v2842_v7 }
 0x35d   :  { %v2865_v55 = vadd.f32 %v2852_v37, %v2705_v40  ;;  %v2674_v53 = vpop.f32.mrf.mxu2 }
 0x35e   :  { %v2699_v19 = vadd.f32 %v2698_v38, %v2674_v53 }
 0x35f   :  { %v11773_v3 = vpop.f32.mrf.mxu0  ;;  %v2981_v1 = vpop.f32.mrf.mxu3 }
 0x360   :  { %v2706_v60 = vadd.f32 %v2699_v19, %v11733_v24 }
 0x361   :  { %v11777_v21 = vpop.f32.mrf.mxu1 }
 0x362   :  { %v2866_v48 = vadd.f32 %v2860_v27, %v2706_v60  ;;  %8272 = vmatmul.msk.bf16.gmra.mxu2 %vm204_vm1, %v11662_v58  ;;  %8286 = vmatmul.msk.bf16.gmra.mxu0 %vm204_vm1, %v11662_v58  ;;  %v8348_v60 = vld [vmem:[#allocation7 + $0x70] sm:$0xf]  ;;  %vm6151_vm1 = vcmask 779904  }
 0x363   :  { %v8364_v27 = vld [vmem:[#allocation7 + $0x90] sm:$0xf] }
 0x365   :  { %v2957_v39 = vpop.f32.mrf.mxu2 }
 0x366   :  { %v2982_v35 = vadd.f32 %v2981_v1, %v2957_v39  ;;  %v9490_v1 = vld [vmem:[#allocation7 + $0x74] sm:$0xf0] }
 0x367   :  { %v11783_v54 = vpop.f32.mrf.mxu0  ;;  %v2983_v46 = vpop.f32.mrf.mxu3  ;;  %v8349_v39 = vor.u32 %v9490_v1, %v8348_v60  ;;  %v9484_v60 = vld [vmem:[#allocation7 + $0x44] sm:$0xf0] }
 0x368   :  { %v3002_v7 = vrot.slane %v2982_v35, 2  ;;  %v9494_v35 = vld [vmem:[#allocation7 + $0x94] sm:$0xf0] }
 0x369   :  { %v11785_v49 = vpop.f32.mrf.mxu1  ;;  %3856 = vmatpush.bf16.msrb.mxu2 %v8349_v39 }
 0x36d   :  { %v2959_v24 = vpop.f32.mrf.mxu2 }
 0x36e   :  { %v2984_v47 = vadd.f32 %v2983_v46, %v2959_v24  ;;  %v8340_v46 = vld [vmem:[#allocation7 + $0x60] sm:$0xf]  ;;  %v9488_v24 = vld [vmem:[#allocation7 + $0x64] sm:$0xf0] }
 0x36f   :  { %v11787_v30 = vpop.f32.mrf.mxu0  ;;  %v2986_v2 = vpop.f32.mrf.mxu3 }
 0x370   :  { %v3003_v51 = vrot.slane %v2984_v47, 2 }
 0x371   :  { %v11790_v6 = vpop.f32.mrf.mxu1 }
 0x372   :  { %v3004_v20 = vsel %vm761_vm4, %v3002_v7, %v3003_v51 }
 0x373   :  { %v11793_v58 = vadd.f32 %v3004_v20, %v11737_v61 }
 0x375   :  { %13732 = vst [vmem:[#allocation15_spill] sm:$0xff] %v11793_v58  ;;  %v2962_v50 = vpop.f32.mrf.mxu2 }
 0x376   :  { %v2987_v10 = vadd.f32 %v2986_v2, %v2962_v50  ;;  %v8341_v2 = vor.u32 %v9488_v24, %v8340_v46  ;;  %v8366_v50 = vld [vmem:[#allocation7 + $0x98] sm:$0xf0]  ;;  %v8326_v46 = vld [vmem:[#allocation7 + $0x48] sm:$0xf0] }
 0x377   :  { %v11795_v22 = vpop.f32.mrf.mxu0  ;;  %v2988_v4 = vpop.f32.mrf.mxu3 }
 0x378   :  { %v3005_v41 = vrot.slane %v2987_v10, 2  ;;  %3857 = vmatpush.bf16.msrb.mxu2 %v8341_v2 }
 0x379   :  { %v11798_v32 = vpop.f32.mrf.mxu1 }
 0x37a   :  { %v3006_v34 = vsel %vm761_vm4, %v3003_v51, %v3005_v41  ;;  %v9493_v51 = vld [vmem:[#allocation7 + $0x94] sm:$0xf]  ;;  %v13686_v1 = vrot.slane %v11798_v32, 6 }
 0x37b   :  { %v11801_v12 = vadd.f32 %v3006_v34, %v11749_v44 }
 0x37d   :  { %13733 = vst [vmem:[#allocation16_spill] sm:$0xff] %v11801_v12  ;;  %v2964_v57 = vpop.f32.mrf.mxu2 }
 0x37e   :  { %v2989_v9 = vadd.f32 %v2988_v4, %v2964_v57 }
 0x37f   :  { %v11803_v16 = vpop.f32.mrf.mxu0  ;;  %v2991_v61 = vpop.f32.mrf.mxu3 }
 0x380   :  { %v3007_v52 = vrot.slane %v2989_v9, 2  ;;  %v8332_v9 = vld [vmem:[#allocation7 + $0x50] sm:$0xf] }
 0x381   :  { %v11806_v23 = vpop.f32.mrf.mxu1 }
 0x382   :  { %v3008_v56 = vsel %vm761_vm4, %v3005_v41, %v3007_v52  ;;  %v8369_v41 = vor.u32 %v9493_v51, %v8366_v50  ;;  %v9482_v50 = vld [vmem:[#allocation7 + $0x34] sm:$0xf0] }
 0x383   :  { %v11809_v0 = vadd.f32 %v3008_v56, %v11753_v36 }
 0x384   :  { %3934 = vmatpush.bf16.msrb.mxu1 %v8369_v41  ;;  %v9481_v41 = vld [vmem:[#allocation7 + $0x34] sm:$0xf] }
 0x385   :  { %13734 = vst [vmem:[#allocation17_spill] sm:$0xff] %v11809_v0  ;;  %v2967_v59 = vpop.f32.mrf.mxu2 }
 0x386   :  { %v2992_v13 = vadd.f32 %v2991_v61, %v2967_v59  ;;  %v9487_v61 = vld [vmem:[#allocation7 + $0x64] sm:$0xf]  ;;  %v8342_v59 = vld [vmem:[#allocation7 + $0x68] sm:$0xf0] }
 0x387   :  { %v11811_v63 = vpop.f32.mrf.mxu0  ;;  %v2993_v44 = vpop.f32.mrf.mxu3 }
 0x388   :  { %v3009_v42 = vrot.slane %v2992_v13, 2 }
 0x389   :  { %v11814_v5 = vpop.f32.mrf.mxu1 }
 0x38a   :  { %v3010_v45 = vsel %vm761_vm4, %v3007_v52, %v3009_v42  ;;  %v9486_v52 = vld [vmem:[#allocation7 + $0x54] sm:$0xf0] }
 0x38b   :  { %v11816_v62 = vadd.f32 %v3010_v45, %v2864_v33  ;;  %v8333_v56 = vor.u32 %v9486_v52, %v8332_v9 }
 0x38d   :  { %13735 = vst [vmem:[#allocation18_spill] sm:$0xff] %v11816_v62  ;;  %v2969_v8 = vpop.f32.mrf.mxu2  ;;  %3858 = vmatpush.bf16.msrb.mxu2 %v8333_v56  ;;  %v8318_v56 = vld [vmem:[#allocation7 + $0x38] sm:$0xf0] }
 0x38e   :  { %v2994_v43 = vadd.f32 %v2993_v44, %v2969_v8  ;;  %v9485_v8 = vld [vmem:[#allocation7 + $0x54] sm:$0xf] }
 0x38f   :  { %v11818_v11 = vpop.f32.mrf.mxu0  ;;  %v11820_v31 = vpop.f32.mrf.mxu3 }
 0x390   :  { %v3011_v14 = vrot.slane %v2994_v43, 2  ;;  %v8334_v43 = vld [vmem:[#allocation7 + $0x58] sm:$0xf0] }
 0x391   :  { %v11824_v38 = vpop.f32.mrf.mxu1 }
 0x392   :  { %v3012_v36 = vsel %vm761_vm4, %v3009_v42, %v3011_v14  ;;  %v3020_v40 = vsel %vm761_vm4, %v3011_v14, %v3002_v7  ;;  %v8350_v7 = vld [vmem:[#allocation7 + $0x78] sm:$0xf0]  ;;  %v8345_v42 = vor.u32 %v9487_v61, %v8342_v59  ;;  %v8337_v14 = vor.u32 %v9485_v8, %v8334_v43 }
 0x393   :  { %v11826_v25 = vadd.f32 %v3012_v36, %v2865_v55  ;;  %v11828_v28 = vadd.f32 %v3020_v40, %v2866_v48  ;;  %v8365_v55 = vor.u32 %v9494_v35, %v8364_v27  ;;  %v9489_v48 = vld [vmem:[#allocation7 + $0x74] sm:$0xf]  ;;  %v8324_v40 = vld [vmem:[#allocation7 + $0x40] sm:$0xf]  ;;  %v9483_v35 = vld [vmem:[#allocation7 + $0x44] sm:$0xf]  ;;  %v8321_v8 = vor.u32 %v9481_v41, %v8318_v56 }
 0x394   :  { %v8353_v20 = vor.u32 %v9489_v48, %v8350_v7  ;;  %v8325_v39 = vor.u32 %v9484_v60, %v8324_v40  ;;  %v13690_v48 = vrot.slane %v11790_v6, 6  ;;  %v13688_v59 = vrot.slane %v11803_v16, 6  ;;  %v9492_v56 = vld [vmem:[#allocation7 + $0x84] sm:$0xf0] }
 0x395   :  { %13736 = vst [vmem:[#allocation19_spill] sm:$0xff] %v11826_v25  ;;  %v11830_v37 = vpop.f32.mrf.mxu2  ;;  %3886 = vmatpush.bf16.msra.mxu3 %v8365_v55  ;;  %v8329_v55 = vor.u32 %v9483_v35, %v8326_v46  ;;  %v13689_v43 = vrot.slane %v11795_v22, 6  ;;  %v8308_v35 = vld [vmem:[#allocation7 + $0x20] sm:$0xf]  ;;  %v9480_v46 = vld [vmem:[#allocation7 + $0x24] sm:$0xf0] }
 0x396   :  { %13737 = vst [vmem:[#allocation20_spill] sm:$0xff] %v11828_v28  ;;  %3904 = vmatpush.bf16.msrb.mxu0 %v8353_v20  ;;  %3859 = vmatpush.bf16.msrb.mxu2 %v8325_v39  ;;  %v8316_v20 = vld [vmem:[#allocation7 + $0x30] sm:$0xf]  ;;  %v3172_v9 = vsel %vm214_vm0, %v13690_v48, %v13686_v1  ;;  %v9477_v48 = vld [vmem:[#allocation7 + $0x14] sm:$0xf] }
 0x397   :  { %v11832_v33 = vpop.f32.mrf.mxu0  ;;  %v11834_v53 = vpop.f32.mrf.mxu3  ;;  %v8317_v61 = vor.u32 %v9482_v50, %v8316_v20  ;;  %v8309_v20 = vor.u32 %v9480_v46, %v8308_v35  ;;  %v9479_v50 = vld [vmem:[#allocation7 + $0x24] sm:$0xf]  ;;  %v3170_v41 = vsel %vm214_vm0, %v13689_v43, %v13688_v59  ;;  %v8300_v59 = vld [vmem:[#allocation7 + $0x10] sm:$0xf]  ;;  %v9478_v43 = vld [vmem:[#allocation7 + $0x14] sm:$0xf0] }
 0x399   :  { %v11836_v19 = vpop.f32.mrf.mxu1 }
 0x39a   :  { %3905 = vmatpush.bf16.msrb.mxu0 %v8345_v42  ;;  %3860 = vmatpush.bf16.msrb.mxu2 %v8317_v61  ;;  %v8356_v61 = vld [vmem:[#allocation7 + $0x80] sm:$0xf] }
 0x39b   :  { %v8357_v46 = vor.u32 %v9492_v56, %v8356_v61  ;;  %v8294_v61 = vld [vmem:[#allocation7 + $0x8] sm:$0xf0] }
 0x39d   :  { %v11838_v47 = vpop.f32.mrf.mxu2  ;;  %3887 = vmatpush.bf16.msra.mxu3 %v8357_v46 }
 0x39e   :  { %3906 = vmatpush.bf16.msrb.mxu0 %v8337_v14  ;;  %3861 = vmatpush.bf16.msrb.mxu2 %v8309_v20  ;;  %v8292_v20 = vld [vmem:[#allocation7] sm:$0xf] }
 0x39f   :  { %v11840_v10 = vpop.f32.mrf.mxu0  ;;  %v11842_v4 = vpop.f32.mrf.mxu3 }
 0x3a1   :  { %v11844_v34 = vpop.f32.mrf.mxu1 }
 0x3a2   :  { %3907 = vmatpush.bf16.msrb.mxu0 %v8329_v55 }
 0x3a5   :  { %v11846_v57 = vpop.f32.mrf.mxu2 }
 0x3a6   :  { %3908 = vmatpush.bf16.msrb.mxu0 %v8321_v8 }
 0x3a7   :  { %v11848_v13 = vpop.f32.mrf.mxu0  ;;  %v11850_v44 = vpop.f32.mrf.mxu3 }
 0x3a8   :  { %v13687_v7 = vrot.slane %v11850_v44, 7 }
 0x3a9   :  { %v3392_v45 = vpop.f32.mrf.mxu1 }
 0x3ad   :  { %v11852_v36 = vpop.f32.mrf.mxu2 }
 0x3ae   :  { %v13692_v40 = vrot.slane %v11852_v36, 7 }
 0x3af   :  { %v3368_v27 = vpop.f32.mrf.mxu0  ;;  %v11855_v24 = vpop.f32.mrf.mxu3 }
 0x3b0   :  { %v13685_v51 = vrot.slane %v11855_v24, 7 }
 0x3b1   :  { %v11860_v2 = vpop.f32.mrf.mxu1 }
 0x3b2   :  { %v3295_v52 = vsel %vm408_vm2, %v13687_v7, %v13685_v51  ;;  %v8358_v51 = vld [vmem:[#allocation7 + $0x88] sm:$0xf0] }
 0x3b3   :  { %v3321_v42 = vadd.f32 %v3295_v52, %v3172_v9  ;;  %v8310_v9 = vld [vmem:[#allocation7 + $0x28] sm:$0xf0] }
 0x3b4   :  { %v8313_v8 = vor.u32 %v9479_v50, %v8310_v9  ;;  %v9476_v50 = vld [vmem:[#allocation7 + $0x4] sm:$0xf0] }
 0x3b5   :  { %v11874_v14 = vpop.f32.mrf.mxu2  ;;  %v11877_v60 = vadd.f32 %v3392_v45, %v3321_v42  ;;  %v9491_v42 = vld [vmem:[#allocation7 + $0x84] sm:$0xf] }
 0x3b6   :  { %v13691_v39 = vrot.slane %v11874_v14, 7  ;;  %v8361_v7 = vor.u32 %v9491_v42, %v8358_v51  ;;  %3909 = vmatpush.bf16.msrb.mxu0 %v8313_v8 }
 0x3b7   :  { %v11880_v55 = vpop.f32.mrf.mxu0  ;;  %v11892_v52 = vpop.f32.mrf.mxu3 }
 0x3b8   :  { %v3293_v45 = vsel %vm408_vm2, %v13692_v40, %v13691_v39  ;;  %v8302_v39 = vld [vmem:[#allocation7 + $0x18] sm:$0xf0]  ;;  %3935 = vmatpush.bf16.msrb.mxu1 %v8361_v7  ;;  %v8301_v40 = vor.u32 %v9478_v43, %v8300_v59  ;;  %v13693_v9 = vrot.slane %v11892_v52, 7  ;;  %v13695_v7 = vrot.slane %v11806_v23, 6 }
 0x3b9   :  { %v3320_v35 = vadd.f32 %v3293_v45, %v3170_v41  ;;  %v11894_v1 = vpop.f32.mrf.mxu1  ;;  %v8305_v25 = vor.u32 %v9477_v48, %v8302_v39  ;;  %v8293_v41 = vor.u32 %v9476_v50, %v8292_v20  ;;  %v9475_v45 = vld [vmem:[#allocation7 + $0x4] sm:$0xf]  ;;  %v3279_v48 = vrot.slane %v11820_v31, 7 }
 0x3ba   :  { %3862 = vmatpush.bf16.msrb.mxu2 %v8301_v40  ;;  %v8297_v56 = vor.u32 %v9475_v45, %v8294_v61  ;;  %v3159_v39 = vrot.slane %v11777_v21, 6  ;;  %v13696_v31 = vrot.slane %v11811_v63, 6  ;;  %v3155_v50 = vrot.slane %v11773_v3, 6 }
 0x3bb   :  { %v11896_v28 = vadd.f32 %v3368_v27, %v3320_v35  ;;  %3910 = vmatpush.bf16.msrb.mxu0 %v8305_v25  ;;  %v3156_v25 = vrot.slane %v11766_v17, 6  ;;  %v3311_v43 = vsel %vm408_vm2, %v13693_v9, %v3279_v48  ;;  %v3278_v35 = vrot.slane %v11830_v37, 7 }
 0x3bc   :  { %v3282_v17 = vrot.slane %v11834_v53, 7  ;;  %v3187_v53 = vsel %vm214_vm0, %v13696_v31, %v3155_v50  ;;  %v3163_v31 = vrot.slane %v11785_v49, 6  ;;  %v13739_v12 = vrot.slane %v11894_v1, 2 }
 0x3bd   :  { %13738 = vst [vmem:[#allocation21_spill] sm:$0xff] %v11896_v28  ;;  %v11898_v62 = vpop.f32.mrf.mxu2  ;;  %v3188_v42 = vsel %vm214_vm0, %v13695_v7, %v3156_v25  ;;  %v3160_v37 = vsel %vm214_vm0, %v3156_v25, %v3159_v39  ;;  %v3157_v7 = vrot.slane %v11783_v54, 6 }
 0x3be   :  { %3863 = vmatpush.bf16.msrb.mxu2 %v8293_v41  ;;  %v13694_v40 = vrot.slane %v11898_v62, 7  ;;  %v3313_v46 = vadd.f32 %v3311_v43, %v3188_v42  ;;  %v3283_v3 = vsel %vm408_vm2, %v3279_v48, %v3282_v17  ;;  %v3679_v42 = vld [vmem:[%s13654_s9] sm:$0x3]  ;;  %v3161_v48 = vrot.slane %v11787_v30, 6 }
 0x3bf   :  { %v11901_v51 = vpop.f32.mrf.mxu0  ;;  %v11903_v27 = vpop.f32.mrf.mxu3  ;;  %3911 = vmatpush.bf16.msrb.mxu0 %v8297_v56  ;;  %v3315_v45 = vadd.f32 %v3283_v3, %v3160_v37  ;;  %v3158_v30 = vsel %vm214_vm0, %v3155_v50, %v3157_v7  ;;  %v11986_v28 = vperm.slane %v3679_v42, 0 }
 0x3c0   :  { %v3310_v21 = vsel %vm408_vm2, %v13694_v40, %v3278_v35  ;;  %v13697_v61 = vrot.slane %v11903_v27, 1  ;;  %v3398_v43 = vadd.f32 %v11814_v5, %v3313_v46  ;;  %v13699_v5 = vrot.slane %v11842_v4, 7 }
 0x3c1   :  { %v11907_v59 = vpop.f32.mrf.mxu1 }
 0x3c2   :  { %v3633_v56 = vrot.slane %v11907_v59, 2  ;;  %v3280_v59 = vrot.slane %v11838_v47, 7  ;;  %v11955_v47 = vperm.slane %v3679_v42, 1  ;;  %v3287_v0 = vsel %vm408_vm2, %v3282_v17, %v13699_v5  ;;  %v9514_v42 = vld [vmem:[#allocation7 + $0x134] sm:$0xf0] }
 0x3c3   :  { %v13740_v17 = vrot.slane %v11901_v51, 2 }
 0x3c4   :  { %v3634_v54 = vsel %vm761_vm4, %v13739_v12, %v3633_v56  ;;  %v3162_v12 = vsel %vm214_vm0, %v3157_v7, %v3161_v48 }
 0x3c5   :  { %v11918_v8 = vpop.f32.mrf.mxu2 }
 0x3c7   :  { %v11923_v20 = vpop.f32.mrf.mxu0  ;;  %v3469_v41 = vpop.f32.mrf.mxu3 }
 0x3c8   :  { %v3498_v9 = vrot.slane %v3469_v41, 1  ;;  %v3312_v41 = vadd.f32 %v3310_v21, %v3187_v53  ;;  %v13698_v53 = vrot.slane %v11918_v8, 1  ;;  %v13703_v49 = vrot.slane %v11923_v20, 2 }
 0x3c9   :  { %v11941_v40 = vpop.f32.mrf.mxu1 }
 0x3ca   :  { %v3499_v25 = vsel %vm625_vm3, %v13697_v61, %v3498_v9  ;;  %v3397_v37 = vadd.f32 %v11818_v11, %v3312_v41  ;;  %v13702_v11 = vrot.slane %v11941_v40, 2 }
 0x3cb   :  { %v3533_v46 = vadd.f32 %v3499_v25, %v3398_v43  ;;  %v3281_v43 = vsel %vm408_vm2, %v3278_v35, %v3280_v59  ;;  %v3164_v25 = vsel %vm214_vm0, %v3159_v39, %v3163_v31 }
 0x3cc   :  { %v3314_v39 = vadd.f32 %v3281_v43, %v3158_v30  ;;  %v3317_v18 = vadd.f32 %v3287_v0, %v3164_v25  ;;  %v8434_v43 = vld [vmem:[#allocation7 + $0x110] sm:$0xf] }
 0x3cd   :  { %v3445_v21 = vpop.f32.mrf.mxu2  ;;  %v3668_v61 = vadd.f32 %v3634_v54, %v3533_v46  ;;  %v8450_v25 = vld [vmem:[#allocation7 + $0x130] sm:$0xf] }
 0x3ce   :  { %v3495_v58 = vrot.slane %v3445_v21, 1  ;;  %v3631_v21 = vsel %vm761_vm4, %v13740_v17, %v13703_v49  ;;  %v13742_v17 = vrot.slane %v11795_v22, 6  ;;  %v8451_v22 = vor.u32 %v9514_v42, %v8450_v25  ;;  %v9513_v25 = vld [vmem:[#allocation7 + $0x134] sm:$0xf]  ;;  %v8452_v42 = vld [vmem:[#allocation7 + $0x138] sm:$0xf0] }
 0x3cf   :  { %v11962_v3 = vpop.f32.mrf.mxu0  ;;  %v11972_v54 = vpop.f32.mrf.mxu3  ;;  %v3686_v7 = vadd.f32 %v11955_v47, %v3668_v61  ;;  %v9510_v61 = vld [vmem:[#allocation7 + $0x114] sm:$0xf0] }
 0x3d0   :  { %v3496_v46 = vsel %vm625_vm3, %v13698_v53, %v3495_v58  ;;  %v13701_v41 = vrot.slane %v11972_v54, 1  ;;  %v3400_v53 = vadd.f32 %v11824_v38, %v3315_v45  ;;  %v11997_v38 = vsel %vm214_vm0, %v3161_v48, %v13742_v17  ;;  %v8436_v48 = vld [vmem:[#allocation7 + $0x118] sm:$0xf0]  ;;  %4153 = vmatpush.bf16.msrb.mxu3 %v8451_v22  ;;  %v8428_v22 = vld [vmem:[#allocation7 + $0x108] sm:$0xf0] }
 0x3d1   :  { %v3532_v50 = vadd.f32 %v3496_v46, %v3397_v37  ;;  %v11984_v5 = vpop.f32.mrf.mxu1  ;;  %v13741_v37 = vrot.slane %v11790_v6, 6  ;;  %v8435_v0 = vor.u32 %v9510_v61, %v8434_v43  ;;  %v3638_v6 = vsel %vm761_vm4, %v3633_v56, %v13702_v11  ;;  %v8426_v43 = vld [vmem:[#allocation7 + $0x100] sm:$0xf]  ;;  %v9508_v61 = vld [vmem:[#allocation7 + $0x104] sm:$0xf0] }
 0x3d2   :  { %v3503_v30 = vsel %vm625_vm3, %v3498_v9, %v13701_v41  ;;  %v3698_v17 = vmax.f32 %v3686_v7, 0.0  ;;  %v3399_v56 = vadd.f32 %v11832_v33, %v3314_v39  ;;  %v8427_v49 = vor.u32 %v9508_v61, %v8426_v43 }
 0x3d3   :  { %v3667_v35 = vadd.f32 %v3631_v21, %v3532_v50  ;;  %v3168_v46 = vsel %vm214_vm0, %v3163_v31, %v13741_v37  ;;  %v3535_v45 = vadd.f32 %v3503_v30, %v3400_v53  ;;  %v9509_v50 = vld [vmem:[#allocation7 + $0x114] sm:$0xf]  ;;  %v13743_v21 = vrot.slane %v11846_v57, 7  ;;  %4123 = vmatpush.bf16.msra.mxu2 %v8435_v0 }
 0x3d4   :  { %v3635_v31 = vrot.slane %v11962_v3, 2  ;;  %v8439_v41 = vor.u32 %v9509_v50, %v8436_v48  ;;  %v13745_v33 = vrot.slane %v11842_v4, 7  ;;  %v3641_v39 = vrot.slane %v11984_v5, 2  ;;  %v8394_v3 = vld [vmem:[#allocation7 + $0xc0] sm:$0xf] }
 0x3d5   :  { %v3285_v9 = vsel %vm408_vm2, %v3280_v59, %v13743_v21  ;;  %v12006_v37 = vpop.f32.mrf.mxu2  ;;  %v3670_v53 = vadd.f32 %v3638_v6, %v3535_v45  ;;  %v3402_v59 = vadd.f32 %v11836_v19, %v3317_v18  ;;  %v3685_v21 = vadd.f32 %v11986_v28, %v3667_v35 }
 0x3d6   :  { %v3500_v30 = vrot.slane %v12006_v37, 1  ;;  %v3316_v7 = vadd.f32 %v3285_v9, %v3162_v12  ;;  %4171 = vmatpush.bf16.msra.mxu0 %v8439_v41  ;;  %v8455_v18 = vor.u32 %v9513_v25, %v8452_v42  ;;  %v13744_v19 = vrot.slane %v11850_v44, 7  ;;  %v9507_v9 = vld [vmem:[#allocation7 + $0x104] sm:$0xf] }
 0x3d7   :  { %v12012_v11 = vpop.f32.mrf.mxu0  ;;  %v3688_v45 = vadd.f32 %v11955_v47, %v3670_v53  ;;  %v12018_v50 = vpop.f32.mrf.mxu3  ;;  %v3710_v48 = vmul.f32 %v10427_v15, %v3698_v17  ;;  %v13746_v41 = vrot.slane %v11923_v20, 2  ;;  %4124 = vmatpush.bf16.msra.mxu2 %v8427_v49  ;;  %v8431_v4 = vor.u32 %v9507_v9, %v8428_v22  ;;  %v8410_v22 = vld [vmem:[#allocation7 + $0xe0] sm:$0xf] }
 0x3d8   :  { %v3501_v0 = vsel %vm625_vm3, %v3495_v58, %v3500_v30  ;;  %v3291_v35 = vsel %vm408_vm2, %v13745_v33, %v13744_v19  ;;  %v3506_v12 = vrot.slane %v12018_v50, 1  ;;  %4201 = vmatpush.bf16.msra.mxu1 %v8455_v18  ;;  %v13747_v43 = vrot.slane %v11806_v23, 6  ;;  %v9505_v23 = vld [vmem:[#allocation7 + $0xf4] sm:$0xf] }
 0x3d9   :  { %v3534_v6 = vadd.f32 %v3501_v0, %v3399_v56  ;;  %v3700_v58 = vmax.f32 %v3688_v45, 0.0  ;;  %v3636_v44 = vsel %vm761_vm4, %v13746_v41, %v3635_v31  ;;  %v12033_v53 = vpop.f32.mrf.mxu1  ;;  %v13748_v61 = vrot.slane %v11798_v32, 6  ;;  %v8418_v45 = vld [vmem:[#allocation7 + $0xf0] sm:$0xf]  ;;  %v9506_v0 = vld [vmem:[#allocation7 + $0xf4] sm:$0xf0] }
 0x3da   :  { %v3697_v25 = vmax.f32 %v3685_v21, 0.0  ;;  %v13749_v42 = vrot.slane %v11972_v54, 1  ;;  %v3319_v19 = vadd.f32 %v3291_v35, %v3168_v46  ;;  %v8419_v33 = vor.u32 %v9506_v0, %v8418_v45  ;;  %4172 = vmatpush.bf16.msra.mxu0 %v8431_v4  ;;  %v9512_v41 = vld [vmem:[#allocation7 + $0x124] sm:$0xf0]  ;;  %v8412_v45 = vld [vmem:[#allocation7 + $0xe8] sm:$0xf0] }
 0x3db   :  { %v3174_v56 = vsel %vm214_vm0, %v13748_v61, %v13747_v43  ;;  %v3669_v17 = vadd.f32 %v3636_v44, %v3534_v6  ;;  %v12045_v49 = vpack.c.bf16 %v3700_v58, %v3710_v48  ;;  %v3401_v32 = vadd.f32 %v11840_v10, %v3316_v7  ;;  %v9504_v48 = vld [vmem:[#allocation7 + $0xe4] sm:$0xf0]  ;;  %v8420_v58 = vld [vmem:[#allocation7 + $0xf8] sm:$0xf0]  ;;  %v8442_v7 = vld [vmem:[#allocation7 + $0x120] sm:$0xf] }
 0x3dc   :  { %v3507_v20 = vsel %vm625_vm3, %v13749_v42, %v3506_v12  ;;  %v13750_v21 = vrot.slane %v11852_v36, 7  ;;  %v13751_v6 = vrot.slane %v11846_v57, 7  ;;  %v13752_v54 = vrot.slane %v11941_v40, 2  ;;  %4125 = vmatpush.bf16.msra.mxu2 %v8419_v33 }
 0x3dd   :  { %v3537_v18 = vadd.f32 %v3507_v20, %v3402_v59  ;;  %v3687_v35 = vadd.f32 %v11986_v28, %v3669_v17  ;;  %v12059_v59 = vpop.f32.mrf.mxu2  ;;  %v3639_v36 = vrot.slane %v12012_v11, 2  ;;  %8370 = vmatmul.msk.bf16.vlgmr.msra.gmra.mxu3 %vm980_vm6, %v12045_v49  ;;  %8373 = vmatmul.msk.bf16.vlgmr.msrb.gmra.mxu1 %vm980_vm6, %v12045_v49  ;;  %v8423_v40 = vor.u32 %v9505_v23, %v8420_v58  ;;  %v9503_v20 = vld [vmem:[#allocation7 + $0xe4] sm:$0xf] }
 0x3de   :  { %v3289_v9 = vsel %vm408_vm2, %v13751_v6, %v13750_v21  ;;  %v3642_v46 = vsel %vm761_vm4, %v13752_v54, %v3641_v39  ;;  %v3504_v57 = vrot.slane %v12059_v59, 1  ;;  %v13753_v44 = vrot.slane %v11892_v52, 7  ;;  %v9502_v21 = vld [vmem:[#allocation7 + $0xd4] sm:$0xf0] }
 0x3df   :  { %v3672_v10 = vadd.f32 %v3642_v46, %v3537_v18  ;;  %v13754_v4 = vrot.slane %v11855_v24, 7  ;;  %v3709_v61 = vmul.f32 %v10427_v15, %v3697_v25  ;;  %v3699_v17 = vmax.f32 %v3687_v35, 0.0  ;;  %v12079_v52 = vpop.f32.mrf.mxu3  ;;  %v12081_v24 = vpop.f32.mrf.mxu0  ;;  %4173 = vmatpush.bf16.msra.mxu0 %v8423_v40  ;;  %v8402_v25 = vld [vmem:[#allocation7 + $0xd0] sm:$0xf] }
 0x3e0   :  { %v8443_v42 = vor.u32 %v9512_v41, %v8442_v7  ;;  %v3505_v0 = vsel %vm625_vm3, %v3500_v30, %v3504_v57  ;;  %v3404_v18 = vadd.f32 %v11844_v34, %v3319_v19  ;;  %v8411_v23 = vor.u32 %v9504_v48, %v8410_v22  ;;  %v9501_v22 = vld [vmem:[#allocation7 + $0xd4] sm:$0xf]  ;;  %v8404_v48 = vld [vmem:[#allocation7 + $0xd8] sm:$0xf0] }
 0x3e1   :  { %v3297_v43 = vsel %vm408_vm2, %v13754_v4, %v13753_v44  ;;  %v8415_v33 = vor.u32 %v9503_v20, %v8412_v45  ;;  %v12083_v6 = vpack.c.bf16 %v3699_v17, %v3709_v61  ;;  %v3645_v54 = vrot.slane %v12033_v53, 2  ;;  %v9499_v20 = vld [vmem:[#allocation7 + $0xc4] sm:$0xf] }
 0x3e2   :  { %v3536_v46 = vadd.f32 %v3505_v0, %v3401_v32  ;;  %v3510_v37 = vrot.slane %v12079_v52, 1  ;;  %4154 = vmatpush.bf16.msrb.mxu3 %v8443_v42  ;;  %v3318_v30 = vadd.f32 %v3289_v9, %v11997_v38  ;;  %v3323_v34 = vadd.f32 %v3297_v43, %v3174_v56  ;;  %v3614_v32 = vpop.f32.mrf.mxu1  ;;  %v9511_v56 = vld [vmem:[#allocation7 + $0x124] sm:$0xf]  ;;  %v8444_v9 = vld [vmem:[#allocation7 + $0x128] sm:$0xf0]  ;;  %4126 = vmatpush.bf16.msra.mxu2 %v8411_v23 }
 0x3e3   :  { %v3690_v19 = vadd.f32 %v11955_v47, %v3672_v10  ;;  %v3640_v35 = vsel %vm761_vm4, %v3635_v31, %v3639_v36  ;;  %3864 = vmatmul.bf16.vlgmr.msrb.gmra.mxu2 %v12083_v6  ;;  %3912 = vmatmul.bf16.vlgmr.msrb.gmra.mxu0 %v12083_v6  ;;  %v8403_v38 = vor.u32 %v9502_v21, %v8402_v25  ;;  %v9500_v31 = vld [vmem:[#allocation7 + $0xc4] sm:$0xf0]  ;;  %v13755_v41 = vrot.slane %v11811_v63, 6 }
 0x3e4   :  { %v3671_v58 = vadd.f32 %v3640_v35, %v3536_v46  ;;  %v3511_v53 = vsel %vm625_vm3, %v3506_v12, %v3510_v37  ;;  %4174 = vmatpush.bf16.msra.mxu0 %v8415_v33  ;;  %v8407_v40 = vor.u32 %v9501_v22, %v8404_v48  ;;  %v8447_v7 = vor.u32 %v9511_v56, %v8444_v9 }
 0x3e5   :  { %v3539_v10 = vadd.f32 %v3511_v53, %v3404_v18  ;;  %v13756_v50 = vrot.slane %v11803_v16, 6  ;;  %v13757_v44 = vrot.slane %v11898_v62, 7  ;;  %v13758_v4 = vrot.slane %v11874_v14, 7  ;;  %v3453_v42 = vpop.f32.mrf.mxu2  ;;  %v8396_v18 = vld [vmem:[#allocation7 + $0xc8] sm:$0xf0] }
 0x3e6   :  { %v3646_v61 = vsel %vm761_vm4, %v3641_v39, %v3645_v54  ;;  %v3643_v17 = vrot.slane %v12081_v24, 2  ;;  %v3702_v45 = vmax.f32 %v3690_v19, 0.0  ;;  %v3649_v0 = vrot.slane %v3614_v32, 2  ;;  %4202 = vmatpush.bf16.msra.mxu1 %v8447_v7  ;;  %4127 = vmatpush.bf16.msra.mxu2 %v8403_v38  ;;  %v8388_v53 = vld [vmem:[#allocation7 + $0xb8] sm:$0xf0] }
 0x3e7   :  { %v3173_v12 = vsel %vm214_vm0, %v13756_v50, %v13755_v41  ;;  %v3296_v43 = vsel %vm408_vm2, %v13758_v4, %v13757_v44  ;;  %v3674_v63 = vadd.f32 %v3646_v61, %v3539_v10  ;;  %v3508_v16 = vrot.slane %v3453_v42, 1  ;;  %v3479_v25 = vpop.f32.mrf.mxu3  ;;  %v3590_v48 = vpop.f32.mrf.mxu0  ;;  %v9530_v24 = vld [vmem:[#allocation7 + $0x1b4] sm:$0xf0] }
 0x3e8   :  { %v3689_v62 = vadd.f32 %v11986_v28, %v3671_v58  ;;  %v3403_v14 = vadd.f32 %v11848_v13, %v3318_v30  ;;  %v3408_v52 = vadd.f32 %v11860_v2, %v3323_v34  ;;  %v8395_v23 = vor.u32 %v9500_v31, %v8394_v3  ;;  %4175 = vmatpush.bf16.msra.mxu0 %v8407_v40  ;;  %v8386_v30 = vld [vmem:[#allocation7 + $0xb0] sm:$0xf]  ;;  %v9498_v34 = vld [vmem:[#allocation7 + $0xb4] sm:$0xf0]  ;;  %v9497_v58 = vld [vmem:[#allocation7 + $0xb4] sm:$0xf] }
 0x3e9   :  { %v3692_v5 = vadd.f32 %v11955_v47, %v3674_v63  ;;  %v3509_v39 = vsel %vm625_vm3, %v3504_v57, %v3508_v16  ;;  %v8399_v21 = vor.u32 %v9499_v20, %v8396_v18  ;;  %v3322_v33 = vadd.f32 %v3296_v43, %v3173_v12  ;;  %v9496_v3 = vld [vmem:[#allocation7 + $0xa4] sm:$0xf0] }
 0x3ea   :  { %v3644_v13 = vsel %vm761_vm4, %v3639_v36, %v3643_v17  ;;  %v3538_v46 = vadd.f32 %v3509_v39, %v3403_v14  ;;  %v3514_v2 = vrot.slane %v3479_v25, 1  ;;  %v3714_v19 = vmul.f32 %v10588_v29, %v3702_v45  ;;  %4128 = vmatpush.bf16.msra.mxu2 %v8395_v23 }
 0x3eb   :  { %v3704_v59 = vmax.f32 %v3692_v5, 0.0  ;;  %v3650_v57 = vsel %vm761_vm4, %v3645_v54, %v3649_v0  ;;  %v13759_v35 = vrot.slane %v11894_v1, 2  ;;  %v3701_v32 = vmax.f32 %v3689_v62, 0.0  ;;  %v8378_v1 = vld [vmem:[#allocation7 + $0xa0] sm:$0xf]  ;;  %v13762_v62 = vld [vmem:[#allocation21_spill] sm:$0xff] }
 0x3ec   :  { %v3673_v11 = vadd.f32 %v3644_v13, %v3538_v46  ;;  %v3515_v36 = vsel %vm625_vm3, %v3510_v37, %v3514_v2  ;;  %v13760_v38 = vrot.slane %v11903_v27, 1  ;;  %4176 = vmatpush.bf16.msra.mxu0 %v8399_v21  ;;  %v3647_v40 = vrot.slane %v3590_v48, 2  ;;  %v13764_v46 = vld [vmem:[#allocation14_spill] sm:$0xff] }
 0x3ed   :  { %v3666_v22 = vsel %vm761_vm4, %v3649_v0, %v13759_v35  ;;  %v3716_v9 = vmul.f32 %v10606_v26, %v3704_v59  ;;  %v3541_v10 = vadd.f32 %v3515_v36, %v11877_v60  ;;  %v3455_v7 = vpop.f32.mrf.mxu2  ;;  %v8387_v41 = vor.u32 %v9498_v34, %v8386_v30  ;;  %v8512_v35 = vld [vmem:[#allocation7 + $0x1a0] sm:$0xf]  ;;  %v9533_v36 = vld [vmem:[#allocation7 + $0x1d4] sm:$0xf] }
 0x3ee   :  { %v3531_v56 = vsel %vm625_vm3, %v3514_v2, %v13760_v38  ;;  %v3691_v31 = vadd.f32 %v11986_v28, %v3673_v11  ;;  %v8391_v50 = vor.u32 %v9497_v58, %v8388_v53  ;;  %v3512_v44 = vrot.slane %v3455_v7, 1  ;;  %v9529_v53 = vld [vmem:[#allocation7 + $0x1b4] sm:$0xf]  ;;  %v8538_v38 = vld [vmem:[#allocation7 + $0x1d8] sm:$0xf0] }
 0x3ef   :  { %v3543_v54 = vadd.f32 %v3531_v56, %v3408_v52  ;;  %v12137_v37 = vpack.c.bf16 %v3716_v9, %v3714_v19  ;;  %v3676_v27 = vadd.f32 %v3650_v57, %v3541_v10  ;;  %v3713_v4 = vmul.f32 %v10588_v29, %v3701_v32  ;;  %4129 = vmatpush.bf16.msra.mxu2 %v8387_v41  ;;  %v9534_v57 = vld [vmem:[#allocation7 + $0x1d4] sm:$0xf0]  ;;  %v8522_v32 = vld [vmem:[#allocation7 + $0x1b8] sm:$0xf0]  ;;  %v8514_v7 = vld [vmem:[#allocation7 + $0x1a8] sm:$0xf0] }
 0x3f0   :  { %v3703_v43 = vmax.f32 %v3691_v31, 0.0  ;;  %v3407_v60 = vadd.f32 %v11880_v55, %v3322_v33  ;;  %v8379_v61 = vor.u32 %v9496_v3, %v8378_v1  ;;  %v3513_v45 = vsel %vm625_vm3, %v3508_v16, %v3512_v44  ;;  %v9495_v55 = vld [vmem:[#allocation7 + $0xa4] sm:$0xf]  ;;  %4177 = vmatpush.bf16.msra.mxu0 %v8391_v50  ;;  %v8504_v1 = vld [vmem:[#allocation7 + $0x190] sm:$0xf] }
 0x3f1   :  { %v3678_v12 = vadd.f32 %v3666_v22, %v3543_v54  ;;  %v3694_v42 = vadd.f32 %v11955_v47, %v3676_v27  ;;  %v13761_v63 = vrot.slane %v11918_v8, 1  ;;  %8371 = vmatmul.msk.bf16.gmra.mxu3 %vm980_vm6, %v12137_v37  ;;  %v3540_v14 = vadd.f32 %v3513_v45, %v13762_v62  ;;  %8374 = vmatmul.msk.bf16.gmra.mxu1 %vm980_vm6, %v12137_v37  ;;  %v9528_v22 = vld [vmem:[#allocation7 + $0x1a4] sm:$0xf0]  ;;  %v9526_v3 = vld [vmem:[#allocation7 + $0x194] sm:$0xf0] }
 0x3f2   :  { %v3715_v18 = vmul.f32 %v10606_v26, %v3703_v43  ;;  %v3648_v8 = vsel %vm761_vm4, %v3643_v17, %v3647_v40  ;;  %v13763_v16 = vrot.slane %v11901_v51, 2  ;;  %v8520_v51 = vld [vmem:[#allocation7 + $0x1b0] sm:$0xf]  ;;  %v8525_v11 = vor.u32 %v9529_v53, %v8522_v32  ;;  %v9527_v31 = vld [vmem:[#allocation7 + $0x1a4] sm:$0xf] }
 0x3f3   :  { %v3696_v20 = vadd.f32 %v11955_v47, %v3678_v12  ;;  %v3530_v0 = vsel %vm625_vm3, %v3512_v44, %v13761_v63  ;;  %v8380_v47 = vld [vmem:[#allocation7 + $0xa8] sm:$0xf0]  ;;  %v3675_v21 = vadd.f32 %v3648_v8, %v3540_v14  ;;  %v3706_v13 = vmax.f32 %v3694_v42, 0.0  ;;  %v8536_v17 = vld [vmem:[#allocation7 + $0x1d0] sm:$0xf]  ;;  %4130 = vmatpush.bf16.msra.mxu2 %v8379_v61 }
 0x3f4   :  { %v3542_v52 = vadd.f32 %v3530_v0, %v3407_v60  ;;  %v3665_v5 = vsel %vm761_vm4, %v3647_v40, %v13763_v16  ;;  %v8383_v39 = vor.u32 %v9495_v55, %v8380_v47  ;;  %v12159_v25 = vpack.c.bf16 %v3715_v18, %v3713_v4  ;;  %v8496_v50 = vld [vmem:[#allocation7 + $0x180] sm:$0xf]  ;;  %v9524_v27 = vld [vmem:[#allocation7 + $0x184] sm:$0xf0]  ;;  %v9525_v12 = vld [vmem:[#allocation7 + $0x194] sm:$0xf] }
 0x3f5   :  { %v3708_v23 = vmax.f32 %v3696_v20, 0.0  ;;  %v3693_v30 = vadd.f32 %v11986_v28, %v3675_v21  ;;  %v8521_v59 = vor.u32 %v9530_v24, %v8520_v51  ;;  %v8537_v58 = vor.u32 %v9534_v57, %v8536_v17  ;;  %v8506_v4 = vld [vmem:[#allocation7 + $0x198] sm:$0xf0]  ;;  %v8488_v43 = vld [vmem:[#allocation7 + $0x170] sm:$0xf] }
 0x3f6   :  { %v3677_v33 = vadd.f32 %v3665_v5, %v3542_v52  ;;  %3869 = vmatmul.bf16.gmra.mxu2 %v12159_v25  ;;  %3917 = vmatmul.bf16.gmra.mxu0 %v12159_v25  ;;  %v8541_v10 = vor.u32 %v9533_v36, %v8538_v38  ;;  %v8505_v40 = vor.u32 %v9526_v3, %v8504_v1  ;;  %v9522_v60 = vld [vmem:[#allocation7 + $0x174] sm:$0xf0]  ;;  %v8528_v42 = vld [vmem:[#allocation7 + $0x1c0] sm:$0xf]  ;;  %v9532_v20 = vld [vmem:[#allocation7 + $0x1c4] sm:$0xf0] }
 0x3f7   :  { %v3720_v2 = vmul.f32 %v13764_v46, %v3708_v23  ;;  %4178 = vmatpush.bf16.msra.mxu0 %v8383_v39  ;;  %4402 = vmatpush.bf16.msrb.mxu2 %v8521_v59  ;;  %v3705_v56 = vmax.f32 %v3693_v30, 0.0  ;;  %v8517_v41 = vor.u32 %v9527_v31, %v8514_v7  ;;  %v8497_v44 = vor.u32 %v9524_v27, %v8496_v50  ;;  %v9523_v45 = vld [vmem:[#allocation7 + $0x184] sm:$0xf]  ;;  %v8498_v18 = vld [vmem:[#allocation7 + $0x188] sm:$0xf0] }
 0x3f8   :  { %v3695_v34 = vadd.f32 %v11986_v28, %v3677_v33  ;;  %v8513_v28 = vor.u32 %v9528_v22, %v8512_v35  ;;  %4432 = vmatpush.bf16.msra.mxu3 %v8537_v58  ;;  %4480 = vmatpush.bf16.msrb.mxu1 %v8541_v10  ;;  %v8509_v61 = vor.u32 %v9525_v12, %v8506_v4  ;;  %v8480_v14 = vld [vmem:[#allocation7 + $0x160] sm:$0xf]  ;;  %v9520_v52 = vld [vmem:[#allocation7 + $0x164] sm:$0xf0]  ;;  %v9521_v55 = vld [vmem:[#allocation7 + $0x174] sm:$0xf] }
 0x3f9   :  { %v12166_v19 = vpack.c.bf16 %v3720_v2, %v3706_v13  ;;  %v8489_v63 = vor.u32 %v9522_v60, %v8488_v43  ;;  %v8529_v0 = vor.u32 %v9532_v20, %v8528_v42  ;;  %v8501_v62 = vor.u32 %v9523_v45, %v8498_v18  ;;  %v8490_v23 = vld [vmem:[#allocation7 + $0x178] sm:$0xf0]  ;;  %v9531_v8 = vld [vmem:[#allocation7 + $0x1c4] sm:$0xf]  ;;  %v8530_v16 = vld [vmem:[#allocation7 + $0x1c8] sm:$0xf0] }
 0x3fa   :  { %v3707_v48 = vmax.f32 %v3695_v34, 0.0  ;;  %v8481_v47 = vor.u32 %v9520_v52, %v8480_v14  ;;  %v8493_v5 = vor.u32 %v9521_v55, %v8490_v23  ;;  %v8533_v39 = vor.u32 %v9531_v8, %v8530_v16  ;;  %v8472_v21 = vld [vmem:[#allocation7 + $0x150] sm:$0xf]  ;;  %v9518_v33 = vld [vmem:[#allocation7 + $0x154] sm:$0xf0] }
 0x3fb   :  { %4450 = vmatpush.bf16.msrb.mxu0 %v8525_v11  ;;  %4403 = vmatpush.bf16.msrb.mxu2 %v8513_v28  ;;  %v9519_v13 = vld [vmem:[#allocation7 + $0x164] sm:$0xf]  ;;  %v8473_v2 = vor.u32 %v9518_v33, %v8472_v21  ;;  %v8482_v30 = vld [vmem:[#allocation7 + $0x168] sm:$0xf0]  ;;  %v9517_v34 = vld [vmem:[#allocation7 + $0x154] sm:$0xf] }
 0x3fc   :  { %v3719_v9 = vmul.f32 %v13764_v46, %v3707_v48  ;;  %4433 = vmatpush.bf16.msra.mxu3 %v8529_v0  ;;  %4481 = vmatpush.bf16.msrb.mxu1 %v8533_v39  ;;  %v8485_v51 = vor.u32 %v9519_v13, %v8482_v30  ;;  %v8474_v24 = vld [vmem:[#allocation7 + $0x158] sm:$0xf0]  ;;  %v8464_v17 = vld [vmem:[#allocation7 + $0x140] sm:$0xf]  ;;  %v9516_v59 = vld [vmem:[#allocation7 + $0x144] sm:$0xf0] }
 0x3fd   :  { %v8465_v57 = vor.u32 %v9516_v59, %v8464_v17  ;;  %v8477_v35 = vor.u32 %v9517_v34, %v8474_v24  ;;  %v9515_v22 = vld [vmem:[#allocation7 + $0x144] sm:$0xf]  ;;  %v8466_v48 = vld [vmem:[#allocation7 + $0x148] sm:$0xf0]  ;;  %v8606_v53 = vld [vmem:[#allocation7 + $0x250] sm:$0xf] }
 0x3fe   :  { %v12169_v54 = vpack.c.bf16 %v3719_v9, %v3705_v56  ;;  %v8469_v58 = vor.u32 %v9515_v22, %v8466_v48  ;;  %v9550_v32 = vld [vmem:[#allocation7 + $0x254] sm:$0xf0]  ;;  %v8622_v28 = vld [vmem:[#allocation7 + $0x270] sm:$0xf]  ;;  %v8598_v38 = vld [vmem:[#allocation7 + $0x240] sm:$0xf] }
 0x3ff   :  { %4404 = vmatpush.bf16.msrb.mxu2 %v8505_v40  ;;  %4451 = vmatpush.bf16.msrb.mxu0 %v8517_v41  ;;  %v8607_v11 = vor.u32 %v9550_v32, %v8606_v53  ;;  %v9554_v36 = vld [vmem:[#allocation7 + $0x274] sm:$0xf0]  ;;  %v9548_v56 = vld [vmem:[#allocation7 + $0x244] sm:$0xf0]  ;;  %v9549_v10 = vld [vmem:[#allocation7 + $0x254] sm:$0xf] }
 0x400   :  { %v8623_v9 = vor.u32 %v9554_v36, %v8622_v28  ;;  %v8608_v1 = vld [vmem:[#allocation7 + $0x258] sm:$0xf0]  ;;  %v9553_v3 = vld [vmem:[#allocation7 + $0x274] sm:$0xf]  ;;  %v8599_v31 = vor.u32 %v9548_v56, %v8598_v38  ;;  %v8590_v50 = vld [vmem:[#allocation7 + $0x230] sm:$0xf] }
 0x401   :  { %8372 = vmatmul.msk.bf16.gmra.mxu3 %vm980_vm6, %v12166_v19  ;;  %8375 = vmatmul.msk.bf16.gmra.mxu1 %vm980_vm6, %v12166_v19  ;;  %v8611_v40 = vor.u32 %v9549_v10, %v8608_v1  ;;  %v8624_v7 = vld [vmem:[#allocation7 + $0x278] sm:$0xf0]  ;;  %v9546_v27 = vld [vmem:[#allocation7 + $0x234] sm:$0xf0]  ;;  %v9547_v12 = vld [vmem:[#allocation7 + $0x244] sm:$0xf] }
 0x402   :  { %v8627_v41 = vor.u32 %v9553_v3, %v8624_v7  ;;  %v8600_v4 = vld [vmem:[#allocation7 + $0x248] sm:$0xf0]  ;;  %v8582_v60 = vld [vmem:[#allocation7 + $0x220] sm:$0xf]  ;;  %v9545_v42 = vld [vmem:[#allocation7 + $0x234] sm:$0xf] }
 0x403   :  { %4405 = vmatpush.bf16.msrb.mxu2 %v8497_v44  ;;  %4452 = vmatpush.bf16.msrb.mxu0 %v8509_v61  ;;  %v8591_v44 = vor.u32 %v9546_v27, %v8590_v50  ;;  %v8603_v43 = vor.u32 %v9547_v12, %v8600_v4  ;;  %v9544_v61 = vld [vmem:[#allocation7 + $0x224] sm:$0xf0]  ;;  %v8592_v45 = vld [vmem:[#allocation7 + $0x238] sm:$0xf0]  ;;  %v8574_v0 = vld [vmem:[#allocation7 + $0x210] sm:$0xf] }
 0x404   :  { %v8583_v20 = vor.u32 %v9544_v61, %v8582_v60  ;;  %v9542_v18 = vld [vmem:[#allocation7 + $0x214] sm:$0xf0]  ;;  %v9552_v52 = vld [vmem:[#allocation7 + $0x264] sm:$0xf0]  ;;  %v9543_v55 = vld [vmem:[#allocation7 + $0x224] sm:$0xf] }
 0x405   :  { %v8575_v14 = vor.u32 %v9542_v18, %v8574_v0  ;;  %v8566_v16 = vld [vmem:[#allocation7 + $0x200] sm:$0xf]  ;;  %v9541_v39 = vld [vmem:[#allocation7 + $0x214] sm:$0xf]  ;;  %v8576_v33 = vld [vmem:[#allocation7 + $0x218] sm:$0xf0] }
 0x406   :  { %3874 = vmatmul.bf16.gmra.mxu2 %v12169_v54  ;;  %3922 = vmatmul.bf16.gmra.mxu0 %v12169_v54  ;;  %v9551_v13 = vld [vmem:[#allocation7 + $0x264] sm:$0xf]  ;;  %v8579_v30 = vor.u32 %v9541_v39, %v8576_v33  ;;  %v8568_v24 = vld [vmem:[#allocation7 + $0x208] sm:$0xf0]  ;;  %v8558_v59 = vld [vmem:[#allocation7 + $0x1f0] sm:$0xf] }
 0x407   :  { %4406 = vmatpush.bf16.msrb.mxu2 %v8489_v63  ;;  %4453 = vmatpush.bf16.msrb.mxu0 %v8501_v62  ;;  %v8595_v63 = vor.u32 %v9545_v42, %v8592_v45  ;;  %v8614_v62 = vld [vmem:[#allocation7 + $0x260] sm:$0xf]  ;;  %v9537_v22 = vld [vmem:[#allocation7 + $0x1f4] sm:$0xf]  ;;  %v8560_v48 = vld [vmem:[#allocation7 + $0x1f8] sm:$0xf0] }
 0x408   :  { %v8615_v23 = vor.u32 %v9552_v52, %v8614_v62  ;;  %v8550_v53 = vld [vmem:[#allocation7 + $0x1e0] sm:$0xf]  ;;  %v9536_v32 = vld [vmem:[#allocation7 + $0x1e4] sm:$0xf0]  ;;  %v9535_v28 = vld [vmem:[#allocation7 + $0x1e4] sm:$0xf] }
 0x409   :  { %v8552_v36 = vld [vmem:[#allocation7 + $0x1e8] sm:$0xf0]  ;;  %v8692_v56 = vld [vmem:[#allocation7 + $0x2f0] sm:$0xf]  ;;  %v9574_v3 = vld [vmem:[#allocation7 + $0x314] sm:$0xf0] }
 0x40a   :  { %v8555_v38 = vor.u32 %v9535_v28, %v8552_v36  ;;  %v8708_v10 = vld [vmem:[#allocation7 + $0x310] sm:$0xf]  ;;  %v8684_v7 = vld [vmem:[#allocation7 + $0x2e0] sm:$0xf]  ;;  %v9569_v50 = vld [vmem:[#allocation7 + $0x2f4] sm:$0xf] }
 0x40b   :  { %4407 = vmatpush.bf16.msrb.mxu2 %v8481_v47  ;;  %4454 = vmatpush.bf16.msrb.mxu0 %v8493_v5  ;;  %v8584_v47 = vld [vmem:[#allocation7 + $0x228] sm:$0xf0]  ;;  %v9540_v5 = vld [vmem:[#allocation7 + $0x204] sm:$0xf0]  ;;  %v8694_v12 = vld [vmem:[#allocation7 + $0x2f8] sm:$0xf0] }
 0x40c   :  { %v8587_v8 = vor.u32 %v9543_v55, %v8584_v47  ;;  %v8567_v21 = vor.u32 %v9540_v5, %v8566_v16  ;;  %v8710_v4 = vld [vmem:[#allocation7 + $0x318] sm:$0xf0]  ;;  %v8676_v45 = vld [vmem:[#allocation7 + $0x2d0] sm:$0xf]  ;;  %v9567_v18 = vld [vmem:[#allocation7 + $0x2e4] sm:$0xf] }
 0x40d   :  { %v8686_v62 = vld [vmem:[#allocation7 + $0x2e8] sm:$0xf0]  ;;  %v8668_v47 = vld [vmem:[#allocation7 + $0x2c0] sm:$0xf]  ;;  %v8678_v39 = vld [vmem:[#allocation7 + $0x2d8] sm:$0xf0] }
 0x40f   :  { %4408 = vmatpush.bf16.msrb.mxu2 %v8473_v2  ;;  %4455 = vmatpush.bf16.msrb.mxu0 %v8485_v51  ;;  %v8616_v2 = vld [vmem:[#allocation7 + $0x268] sm:$0xf0]  ;;  %v9539_v51 = vld [vmem:[#allocation7 + $0x204] sm:$0xf] }
 0x410   :  { %v8619_v34 = vor.u32 %v9551_v13, %v8616_v2  ;;  %v8571_v17 = vor.u32 %v9539_v51, %v8568_v24 }
 0x411   :  { %8456 = vmatmul.msk.bf16.vlgmr.msrb.gmra.mxu3 %vm980_vm6, %v12045_v49  ;;  %8459 = vmatmul.msk.bf16.vlgmr.msra.gmra.mxu1 %vm980_vm6, %v12045_v49 }
 0x412   :  { %4661 = vmatpush.bf16.msrb.mxu3 %v8623_v9  ;;  %4709 = vmatpush.bf16.msra.mxu1 %v8627_v41  ;;  %v9570_v9 = vld [vmem:[#allocation7 + $0x2f4] sm:$0xf0]  ;;  %v9568_v41 = vld [vmem:[#allocation7 + $0x2e4] sm:$0xf0] }
 0x413   :  { %4409 = vmatpush.bf16.msrb.mxu2 %v8465_v57  ;;  %4456 = vmatpush.bf16.msrb.mxu0 %v8477_v35  ;;  %v9538_v57 = vld [vmem:[#allocation7 + $0x1f4] sm:$0xf0]  ;;  %v8693_v1 = vor.u32 %v9570_v9, %v8692_v56  ;;  %v8685_v27 = vor.u32 %v9568_v41, %v8684_v7 }
 0x414   :  { %v8559_v35 = vor.u32 %v9538_v57, %v8558_v59  ;;  %v8660_v59 = vld [vmem:[#allocation7 + $0x2b0] sm:$0xf]  ;;  %v9562_v57 = vld [vmem:[#allocation7 + $0x2b4] sm:$0xf0] }
 0x416   :  { %4131 = vmatmul.bf16.vlgmr.msra.gmra.mxu2 %v12083_v6  ;;  %4179 = vmatmul.bf16.vlgmr.msra.gmra.mxu0 %v12083_v6 }
 0x417   :  { %4457 = vmatpush.bf16.msrb.mxu0 %v8469_v58  ;;  %4631 = vmatpush.bf16.msra.mxu2 %v8607_v11  ;;  %v8563_v58 = vor.u32 %v9537_v22, %v8560_v48  ;;  %v8551_v11 = vor.u32 %v9536_v32, %v8550_v53  ;;  %v8661_v48 = vor.u32 %v9562_v57, %v8660_v59  ;;  %v9563_v53 = vld [vmem:[#allocation7 + $0x2c4] sm:$0xf]  ;;  %v8670_v32 = vld [vmem:[#allocation7 + $0x2c8] sm:$0xf0] }
 0x418   :  { %4662 = vmatpush.bf16.msrb.mxu3 %v8615_v23  ;;  %4710 = vmatpush.bf16.msra.mxu1 %v8619_v34  ;;  %v9564_v23 = vld [vmem:[#allocation7 + $0x2c4] sm:$0xf0] }
 0x419   :  { %v8669_v5 = vor.u32 %v9564_v23, %v8668_v47  ;;  %v9558_v47 = vld [vmem:[#allocation7 + $0x294] sm:$0xf0] }
 0x41b   :  { %4679 = vmatpush.bf16.msra.mxu0 %v8611_v40  ;;  %4632 = vmatpush.bf16.msra.mxu2 %v8599_v31  ;;  %v8709_v31 = vor.u32 %v9574_v3, %v8708_v10 }
 0x41f   :  { %4633 = vmatpush.bf16.msra.mxu2 %v8591_v44  ;;  %4680 = vmatpush.bf16.msra.mxu0 %v8603_v43  ;;  %v9573_v44 = vld [vmem:[#allocation7 + $0x314] sm:$0xf]  ;;  %v8697_v43 = vor.u32 %v9569_v50, %v8694_v12  ;;  %v9571_v12 = vld [vmem:[#allocation7 + $0x304] sm:$0xf] }
 0x420   :  { %v8713_v60 = vor.u32 %v9573_v44, %v8710_v4  ;;  %v9561_v50 = vld [vmem:[#allocation7 + $0x2b4] sm:$0xf]  ;;  %v8702_v4 = vld [vmem:[#allocation7 + $0x308] sm:$0xf0] }
 0x421   :  { %8457 = vmatmul.msk.bf16.gmra.mxu3 %vm980_vm6, %v12137_v37  ;;  %8460 = vmatmul.msk.bf16.gmra.mxu1 %vm980_vm6, %v12137_v37 }
 0x423   :  { %4634 = vmatpush.bf16.msra.mxu2 %v8583_v20  ;;  %4681 = vmatpush.bf16.msra.mxu0 %v8595_v63  ;;  %v9566_v63 = vld [vmem:[#allocation7 + $0x2d4] sm:$0xf0] }
 0x424   :  { %v8677_v0 = vor.u32 %v9566_v63, %v8676_v45  ;;  %v9559_v45 = vld [vmem:[#allocation7 + $0x2a4] sm:$0xf]  ;;  %v8654_v63 = vld [vmem:[#allocation7 + $0x2a8] sm:$0xf0] }
 0x426   :  { %4136 = vmatmul.bf16.gmra.mxu2 %v12159_v25  ;;  %4184 = vmatmul.bf16.gmra.mxu0 %v12159_v25 }
 0x427   :  { %4635 = vmatpush.bf16.msra.mxu2 %v8575_v14  ;;  %4682 = vmatpush.bf16.msra.mxu0 %v8587_v8  ;;  %v8689_v14 = vor.u32 %v9567_v18, %v8686_v62  ;;  %v9565_v8 = vld [vmem:[#allocation7 + $0x2d4] sm:$0xf]  ;;  %v8657_v18 = vor.u32 %v9559_v45, %v8654_v63 }
 0x428   :  { %v8681_v33 = vor.u32 %v9565_v8, %v8678_v39  ;;  %v8646_v39 = vld [vmem:[#allocation7 + $0x298] sm:$0xf0] }
 0x42b   :  { %4636 = vmatpush.bf16.msra.mxu2 %v8567_v21  ;;  %4683 = vmatpush.bf16.msra.mxu0 %v8579_v30 }
 0x42f   :  { %4684 = vmatpush.bf16.msra.mxu0 %v8571_v17  ;;  %4637 = vmatpush.bf16.msra.mxu2 %v8559_v35  ;;  %v8700_v35 = vld [vmem:[#allocation7 + $0x300] sm:$0xf] }
 0x431   :  { %8458 = vmatmul.msk.bf16.gmra.mxu3 %vm980_vm6, %v12166_v19  ;;  %8461 = vmatmul.msk.bf16.gmra.mxu1 %vm980_vm6, %v12166_v19 }
 0x433   :  { %4685 = vmatpush.bf16.msra.mxu0 %v8563_v58  ;;  %4638 = vmatpush.bf16.msra.mxu2 %v8551_v11  ;;  %v9572_v58 = vld [vmem:[#allocation7 + $0x304] sm:$0xf0]  ;;  %v8673_v11 = vor.u32 %v9563_v53, %v8670_v32 }
 0x434   :  { %v8701_v28 = vor.u32 %v9572_v58, %v8700_v35  ;;  %v9555_v35 = vld [vmem:[#allocation7 + $0x284] sm:$0xf] }
 0x436   :  { %4141 = vmatmul.bf16.gmra.mxu2 %v12169_v54  ;;  %4189 = vmatmul.bf16.gmra.mxu0 %v12169_v54 }
 0x437   :  { %4686 = vmatpush.bf16.msra.mxu0 %v8555_v38 }
 0x441   :  { %8542 = vmatmul.msk.bf16.vlgmr.msra.gmra.mxu3 %vm980_vm6, %v12045_v49  ;;  %8545 = vmatmul.msk.bf16.vlgmr.msrb.gmra.mxu1 %vm980_vm6, %v12045_v49 }
 0x442   :  { %4940 = vmatpush.bf16.msra.mxu3 %v8709_v31  ;;  %4988 = vmatpush.bf16.msrb.mxu1 %v8713_v60  ;;  %v8652_v31 = vld [vmem:[#allocation7 + $0x2a0] sm:$0xf] }
 0x446   :  { %4410 = vmatmul.bf16.vlgmr.msrb.gmra.mxu2 %v12083_v6  ;;  %4458 = vmatmul.bf16.vlgmr.msrb.gmra.mxu0 %v12083_v6 }
 0x447   :  { %4910 = vmatpush.bf16.msrb.mxu2 %v8693_v1  ;;  %4958 = vmatpush.bf16.msrb.mxu0 %v8697_v43 }
 0x448   :  { %4941 = vmatpush.bf16.msra.mxu3 %v8701_v28 }
 0x44b   :  { %4911 = vmatpush.bf16.msrb.mxu2 %v8685_v27  ;;  %4959 = vmatpush.bf16.msrb.mxu0 %v8689_v14  ;;  %v8662_v27 = vld [vmem:[#allocation7 + $0x2b8] sm:$0xf0] }
 0x44c   :  { %v8665_v44 = vor.u32 %v9561_v50, %v8662_v27 }
 0x44f   :  { %4912 = vmatpush.bf16.msrb.mxu2 %v8677_v0  ;;  %4960 = vmatpush.bf16.msrb.mxu0 %v8681_v33 }
 0x451   :  { %8543 = vmatmul.msk.bf16.gmra.mxu3 %vm980_vm6, %v12137_v37  ;;  %8546 = vmatmul.msk.bf16.gmra.mxu1 %vm980_vm6, %v12137_v37 }
 0x453   :  { %4913 = vmatpush.bf16.msrb.mxu2 %v8669_v5  ;;  %4961 = vmatpush.bf16.msrb.mxu0 %v8673_v11  ;;  %v9557_v5 = vld [vmem:[#allocation7 + $0x294] sm:$0xf] }
 0x456   :  { %4415 = vmatmul.bf16.gmra.mxu2 %v12159_v25  ;;  %4463 = vmatmul.bf16.gmra.mxu0 %v12159_v25 }
 0x457   :  { %4914 = vmatpush.bf16.msrb.mxu2 %v8661_v48  ;;  %4962 = vmatpush.bf16.msrb.mxu0 %v8665_v44 }
 0x45a   :  { %v3937_v40 = vpop.f32.mrf.mxu1 }
 0x45b   :  { %4963 = vmatpush.bf16.msrb.mxu0 %v8657_v18 }
 0x460   :  { %v3913_v61 = vpop.f32.mrf.mxu0  ;;  %v3889_v42 = vpop.f32.mrf.mxu3 }
 0x461   :  { %8544 = vmatmul.msk.bf16.gmra.mxu3 %vm980_vm6, %v12166_v19  ;;  %8547 = vmatmul.msk.bf16.gmra.mxu1 %vm980_vm6, %v12166_v19  ;;  %v12211_v20 = vadd.f32 %v3937_v40, %v3913_v61  ;;  %v9560_v40 = vld [vmem:[#allocation7 + $0x2a4] sm:$0xf0]  ;;  %v8705_v61 = vor.u32 %v9571_v12, %v8702_v4 }
 0x462   :  { %v3939_v52 = vpop.f32.mrf.mxu1  ;;  %v8653_v41 = vor.u32 %v9560_v40, %v8652_v31 }
 0x463   :  { %v3969_v2 = vrot.slane %v12211_v20, 6  ;;  %4989 = vmatpush.bf16.msrb.mxu1 %v8705_v61 }
 0x464   :  { %4915 = vmatpush.bf16.msrb.mxu2 %v8653_v41 }
 0x466   :  { %4420 = vmatmul.bf16.gmra.mxu2 %v12169_v54  ;;  %4468 = vmatmul.bf16.gmra.mxu0 %v12169_v54  ;;  %v3865_v55 = vpop.f32.mrf.mxu2 }
 0x467   :  { %v12215_v16 = vadd.f32 %v3889_v42, %v3865_v55  ;;  %v8644_v55 = vld [vmem:[#allocation7 + $0x290] sm:$0xf] }
 0x468   :  { %v3915_v21 = vpop.f32.mrf.mxu0  ;;  %v3891_v30 = vpop.f32.mrf.mxu3  ;;  %v8645_v23 = vor.u32 %v9558_v47, %v8644_v55 }
 0x469   :  { %v3940_v13 = vadd.f32 %v3939_v52, %v3915_v21  ;;  %v3968_v36 = vrot.slane %v12215_v16, 6 }
 0x46a   :  { %4916 = vmatpush.bf16.msrb.mxu2 %v8645_v23 }
 0x46b   :  { %v3972_v34 = vrot.slane %v3940_v13, 6  ;;  %v8649_v13 = vor.u32 %v9557_v5, %v8646_v39 }
 0x46d   :  { %v12221_v51 = vsel %vm214_vm0, %v3969_v2, %v3972_v34  ;;  %4964 = vmatpush.bf16.msrb.mxu0 %v8649_v13 }
 0x46e   :  { %v3942_v24 = vpop.f32.mrf.mxu1  ;;  %v3867_v17 = vpop.f32.mrf.mxu2 }
 0x46f   :  { %v3892_v22 = vadd.f32 %v3891_v30, %v3867_v17  ;;  %v8636_v30 = vld [vmem:[#allocation7 + $0x280] sm:$0xf] }
 0x471   :  { %8628 = vmatmul.msk.bf16.vlgmr.msrb.gmra.mxu3 %vm980_vm6, %v12045_v49  ;;  %v3970_v38 = vrot.slane %v3892_v22, 6  ;;  %8631 = vmatmul.msk.bf16.vlgmr.msra.gmra.mxu1 %vm980_vm6, %v12045_v49  ;;  %v8638_v22 = vld [vmem:[#allocation7 + $0x288] sm:$0xf0] }
 0x472   :  { %v8641_v58 = vor.u32 %v9555_v35, %v8638_v22 }
 0x473   :  { %v3918_v56 = vpop.f32.mrf.mxu0  ;;  %v12231_v1 = vsel %vm214_vm0, %v3968_v36, %v3970_v38 }
 0x474   :  { %v3894_v9 = vpop.f32.mrf.mxu3  ;;  %v3943_v10 = vadd.f32 %v3942_v24, %v3918_v56  ;;  %4965 = vmatpush.bf16.msrb.mxu0 %v8641_v58 }
 0x476   :  { %v3976_v3 = vrot.slane %v3943_v10, 6  ;;  %4639 = vmatmul.bf16.vlgmr.msra.gmra.mxu2 %v12083_v6  ;;  %4687 = vmatmul.bf16.vlgmr.msra.gmra.mxu0 %v12083_v6  ;;  %v3944_v7 = vpop.f32.mrf.mxu1 }
 0x478   :  { %v12236_v43 = vsel %vm214_vm0, %v3972_v34, %v3976_v3  ;;  %v9556_v34 = vld [vmem:[#allocation7 + $0x284] sm:$0xf0] }
 0x479   :  { %v3870_v60 = vpop.f32.mrf.mxu2  ;;  %v8637_v24 = vor.u32 %v9556_v34, %v8636_v30 }
 0x47a   :  { %v3895_v42 = vadd.f32 %v3894_v9, %v3870_v60 }
 0x47b   :  { %v3920_v0 = vpop.f32.mrf.mxu0  ;;  %4917 = vmatpush.bf16.msrb.mxu2 %v8637_v24 }
 0x47c   :  { %v3974_v62 = vrot.slane %v3895_v42, 6  ;;  %v3896_v14 = vpop.f32.mrf.mxu3  ;;  %v3945_v52 = vadd.f32 %v3944_v7, %v3920_v0 }
 0x47e   :  { %v3980_v8 = vrot.slane %v3945_v52, 6  ;;  %v12239_v21 = vsel %vm214_vm0, %v3970_v38, %v3974_v62  ;;  %v3947_v33 = vpop.f32.mrf.mxu1 }
 0x480   :  { %v12242_v17 = vsel %vm214_vm0, %v3976_v3, %v3980_v8 }
 0x481   :  { %8629 = vmatmul.msk.bf16.gmra.mxu3 %vm980_vm6, %v12137_v37  ;;  %v3872_v59 = vpop.f32.mrf.mxu2  ;;  %8632 = vmatmul.msk.bf16.gmra.mxu1 %vm980_vm6, %v12137_v37 }
 0x482   :  { %v3897_v57 = vadd.f32 %v3896_v14, %v3872_v59 }
 0x483   :  { %v3923_v48 = vpop.f32.mrf.mxu0 }
 0x484   :  { %v3978_v53 = vrot.slane %v3897_v57, 6  ;;  %v3899_v32 = vpop.f32.mrf.mxu3  ;;  %v3948_v28 = vadd.f32 %v3947_v33, %v3923_v48 }
 0x486   :  { %v3984_v11 = vrot.slane %v3948_v28, 6  ;;  %4644 = vmatmul.bf16.gmra.mxu2 %v12159_v25  ;;  %4692 = vmatmul.bf16.gmra.mxu0 %v12159_v25  ;;  %v12251_v38 = vsel %vm214_vm0, %v3974_v62, %v3978_v53  ;;  %v3949_v56 = vpop.f32.mrf.mxu1 }
 0x488   :  { %v12254_v9 = vsel %vm214_vm0, %v3980_v8, %v3984_v11 }
 0x489   :  { %v3875_v10 = vpop.f32.mrf.mxu2 }
 0x48a   :  { %v3900_v3 = vadd.f32 %v3899_v32, %v3875_v10 }
 0x48b   :  { %v3925_v31 = vpop.f32.mrf.mxu0 }
 0x48c   :  { %v3982_v40 = vrot.slane %v3900_v3, 6  ;;  %v3901_v7 = vpop.f32.mrf.mxu3  ;;  %v3950_v41 = vadd.f32 %v3949_v56, %v3925_v31 }
 0x48e   :  { %v3955_v50 = vrot.slane %v3950_v41, 6  ;;  %v12257_v27 = vsel %vm214_vm0, %v3978_v53, %v3982_v40  ;;  %v4204_v12 = vpop.f32.mrf.mxu1 }
 0x490   :  { %v12262_v44 = vsel %vm214_vm0, %v3955_v50, %v3969_v2  ;;  %v12265_v4 = vsel %vm214_vm0, %v3984_v11, %v3955_v50 }
 0x491   :  { %8630 = vmatmul.msk.bf16.gmra.mxu3 %vm980_vm6, %v12166_v19  ;;  %v3877_v60 = vpop.f32.mrf.mxu2  ;;  %8633 = vmatmul.msk.bf16.gmra.mxu1 %vm980_vm6, %v12166_v19 }
 0x492   :  { %v3902_v61 = vadd.f32 %v3901_v7, %v3877_v60 }
 0x493   :  { %v4180_v42 = vpop.f32.mrf.mxu0 }
 0x494   :  { %v3954_v45 = vrot.slane %v3902_v61, 6  ;;  %v4156_v63 = vpop.f32.mrf.mxu3  ;;  %v12271_v0 = vadd.f32 %v4204_v12, %v4180_v42 }
 0x496   :  { %4649 = vmatmul.bf16.gmra.mxu2 %v12169_v54  ;;  %4697 = vmatmul.bf16.gmra.mxu0 %v12169_v54  ;;  %v12278_v20 = vsel %vm214_vm0, %v3954_v45, %v3968_v36  ;;  %v12281_v2 = vsel %vm214_vm0, %v3982_v40, %v3954_v45  ;;  %v4206_v18 = vpop.f32.mrf.mxu1  ;;  %v4236_v23 = vrot.slane %v12271_v0, 7 }
 0x499   :  { %v4132_v62 = vpop.f32.mrf.mxu2 }
 0x49a   :  { %v12283_v14 = vadd.f32 %v4156_v63, %v4132_v62 }
 0x49b   :  { %v4182_v52 = vpop.f32.mrf.mxu0 }
 0x49c   :  { %v4158_v55 = vpop.f32.mrf.mxu3  ;;  %v4207_v47 = vadd.f32 %v4206_v18, %v4182_v52  ;;  %v4235_v30 = vrot.slane %v12283_v14, 7 }
 0x49e   :  { %v4239_v8 = vrot.slane %v4207_v47, 7  ;;  %v4209_v5 = vpop.f32.mrf.mxu1 }
 0x4a0   :  { %v4240_v39 = vsel %vm408_vm2, %v4236_v23, %v4239_v8 }
 0x4a1   :  { %8714 = vmatmul.msk.bf16.vlgmr.msra.gmra.mxu3 %vm980_vm6, %v12045_v49  ;;  %v4134_v16 = vpop.f32.mrf.mxu2  ;;  %v12290_v36 = vadd.f32 %v4240_v39, %v12221_v51  ;;  %8717 = vmatmul.msk.bf16.vlgmr.msrb.gmra.mxu1 %vm980_vm6, %v12045_v49 }
 0x4a2   :  { %v4159_v33 = vadd.f32 %v4158_v55, %v4134_v16 }
 0x4a3   :  { %v4185_v13 = vpop.f32.mrf.mxu0 }
 0x4a4   :  { %v4237_v34 = vrot.slane %v4159_v33, 7  ;;  %v4161_v24 = vpop.f32.mrf.mxu3  ;;  %v4210_v59 = vadd.f32 %v4209_v5, %v4185_v13 }
 0x4a6   :  { %v4243_v57 = vrot.slane %v4210_v59, 7  ;;  %4918 = vmatmul.bf16.vlgmr.msrb.gmra.mxu2 %v12083_v6  ;;  %4966 = vmatmul.bf16.vlgmr.msrb.gmra.mxu0 %v12083_v6  ;;  %v4238_v51 = vsel %vm408_vm2, %v4235_v30, %v4237_v34  ;;  %v4211_v35 = vpop.f32.mrf.mxu1 }
 0x4a7   :  { %v12301_v22 = vadd.f32 %v4238_v51, %v12231_v1 }
 0x4a8   :  { %v4244_v49 = vsel %vm408_vm2, %v4239_v8, %v4243_v57 }
 0x4a9   :  { %v4137_v48 = vpop.f32.mrf.mxu2  ;;  %v12305_v58 = vadd.f32 %v4244_v49, %v12236_v43 }
 0x4aa   :  { %v4162_v53 = vadd.f32 %v4161_v24, %v4137_v48 }
 0x4ab   :  { %v4187_v32 = vpop.f32.mrf.mxu0 }
 0x4ac   :  { %v4241_v28 = vrot.slane %v4162_v53, 7  ;;  %v4163_v11 = vpop.f32.mrf.mxu3  ;;  %v4212_v56 = vadd.f32 %v4211_v35, %v4187_v32 }
 0x4ae   :  { %v4247_v6 = vrot.slane %v4212_v56, 7  ;;  %v4242_v10 = vsel %vm408_vm2, %v4237_v34, %v4241_v28  ;;  %v4214_v3 = vpop.f32.mrf.mxu1 }
 0x4af   :  { %v12309_v31 = vadd.f32 %v4242_v10, %v12239_v21 }
 0x4b0   :  { %v4248_v1 = vsel %vm408_vm2, %v4243_v57, %v4247_v6 }
 0x4b1   :  { %8715 = vmatmul.msk.bf16.gmra.mxu3 %vm980_vm6, %v12137_v37  ;;  %v4139_v40 = vpop.f32.mrf.mxu2  ;;  %v12315_v43 = vadd.f32 %v4248_v1, %v12242_v17  ;;  %8718 = vmatmul.msk.bf16.gmra.mxu1 %vm980_vm6, %v12137_v37 }
 0x4b2   :  { %v4164_v7 = vadd.f32 %v4163_v11, %v4139_v40 }
 0x4b3   :  { %v4190_v41 = vpop.f32.mrf.mxu0 }
 0x4b4   :  { %v4245_v50 = vrot.slane %v4164_v7, 7  ;;  %v4166_v12 = vpop.f32.mrf.mxu3  ;;  %v4215_v60 = vadd.f32 %v4214_v3, %v4190_v41 }
 0x4b6   :  { %v4251_v61 = vrot.slane %v4215_v60, 7  ;;  %4923 = vmatmul.bf16.gmra.mxu2 %v12159_v25  ;;  %4971 = vmatmul.bf16.gmra.mxu0 %v12159_v25  ;;  %v4246_v21 = vsel %vm408_vm2, %v4241_v28, %v4245_v50  ;;  %v4216_v42 = vpop.f32.mrf.mxu1 }
 0x4b7   :  { %v12323_v45 = vadd.f32 %v4246_v21, %v12251_v38 }
 0x4b8   :  { %v4252_v17 = vsel %vm408_vm2, %v4247_v6, %v4251_v61 }
 0x4b9   :  { %v4142_v63 = vpop.f32.mrf.mxu2  ;;  %v4278_v37 = vadd.f32 %v4252_v17, %v12254_v9 }
 0x4ba   :  { %v4167_v0 = vadd.f32 %v4166_v12, %v4142_v63 }
 0x4bb   :  { %v4192_v18 = vpop.f32.mrf.mxu0 }
 0x4bc   :  { %v4249_v62 = vrot.slane %v4167_v0, 7  ;;  %v4168_v52 = vpop.f32.mrf.mxu3  ;;  %v4217_v55 = vadd.f32 %v4216_v42, %v4192_v18 }
 0x4be   :  { %v4222_v47 = vrot.slane %v4217_v55, 7  ;;  %v4250_v8 = vsel %vm408_vm2, %v4245_v50, %v4249_v62  ;;  %v4483_v25 = vpop.f32.mrf.mxu1 }
 0x4bf   :  { %v4277_v5 = vadd.f32 %v4250_v8, %v12257_v27 }
 0x4c0   :  { %v4268_v39 = vsel %vm408_vm2, %v4222_v47, %v4236_v23  ;;  %v4254_v38 = vsel %vm408_vm2, %v4251_v61, %v4222_v47 }
 0x4c1   :  { %8716 = vmatmul.msk.bf16.gmra.mxu3 %vm980_vm6, %v12166_v19  ;;  %v4144_v16 = vpop.f32.mrf.mxu2  ;;  %v4270_v9 = vadd.f32 %v4268_v39, %v12262_v44  ;;  %v12335_v33 = vadd.f32 %v4254_v38, %v12265_v4  ;;  %8719 = vmatmul.msk.bf16.gmra.mxu1 %vm980_vm6, %v12166_v19  ;;  %v9581_v38 = vld [vmem:[%s13657_s12 + $0x30] sm:$0xff] }
 0x4c2   :  { %v4169_v13 = vadd.f32 %v4168_v52, %v4144_v16 }
 0x4c3   :  { %v4459_v34 = vpop.f32.mrf.mxu0 }
 0x4c4   :  { %v4221_v24 = vrot.slane %v4169_v13, 7  ;;  %v4435_v27 = vpop.f32.mrf.mxu3  ;;  %v4484_v59 = vadd.f32 %v4483_v25, %v4459_v34  ;;  %v9582_v25 = vld [vmem:[%s13657_s12 + $0x38] sm:$0xff]  ;;  %v9580_v34 = vld [vmem:[%s13657_s12 + $0x28] sm:$0xff] }
 0x4c5   :  { %5205 = vmatpush.bf16.msra.mxu2 %v9582_v25  ;;  %v9587_v25 = vld [vmem:[%s13657_s12 + $0x60] sm:$0xff] }
 0x4c6   :  { %v12339_v23 = vadd.f32 %v4484_v59, %v4270_v9  ;;  %4928 = vmatmul.bf16.gmra.mxu2 %v12169_v54  ;;  %4976 = vmatmul.bf16.gmra.mxu0 %v12169_v54  ;;  %v4267_v44 = vsel %vm408_vm2, %v4221_v24, %v4235_v30  ;;  %v4253_v4 = vsel %vm408_vm2, %v4249_v62, %v4221_v24  ;;  %v12347_v57 = vpop.f32.mrf.mxu1  ;;  %v9592_v24 = vld [vmem:[%s13657_s12 + $0x88] sm:$0xff] }
 0x4c7   :  { %v4269_v19 = vadd.f32 %v4267_v44, %v12278_v20  ;;  %v12351_v51 = vadd.f32 %v4253_v4, %v12281_v2  ;;  %5359 = vmatpush.bf16.msra.mxu0 %v9592_v24  ;;  %v9591_v4 = vld [vmem:[%s13657_s12 + $0x80] sm:$0xff]  ;;  %v9576_v24 = vld [vmem:[%s13657_s12 + $0x8] sm:$0xff] }
 0x4c9   :  { %13765 = vst [vmem:[#allocation21_spill] sm:$0xff] %v12351_v51  ;;  %v4411_v35 = vpop.f32.mrf.mxu2  ;;  %5206 = vmatpush.bf16.msra.mxu2 %v9581_v38  ;;  %v9593_v38 = vld [vmem:[%s13657_s12 + $0x90] sm:$0xff] }
 0x4ca   :  { %v4436_v49 = vadd.f32 %v4435_v27, %v4411_v35  ;;  %v9590_v35 = vld [vmem:[%s13657_s12 + $0x78] sm:$0xff] }
 0x4cb   :  { %v12353_v48 = vpop.f32.mrf.mxu0  ;;  %5360 = vmatpush.bf16.msra.mxu0 %v9591_v4  ;;  %v9586_v4 = vld [vmem:[%s13657_s12 + $0x58] sm:$0xff] }
 0x4cc   :  { %v12355_v53 = vadd.f32 %v4436_v49, %v4269_v19  ;;  %v12357_v54 = vpop.f32.mrf.mxu3 }
 0x4cd   :  { %5207 = vmatpush.bf16.msra.mxu2 %v9580_v34 }
 0x4ce   :  { %v4488_v14 = vpop.f32.mrf.mxu1 }
 0x4cf   :  { %5361 = vmatpush.bf16.msra.mxu0 %v9590_v35 }
 0x4d1   :  { %v12359_v32 = vpop.f32.mrf.mxu2 }
 0x4d3   :  { %v4464_v30 = vpop.f32.mrf.mxu0 }
 0x4d4   :  { %v4440_v28 = vpop.f32.mrf.mxu3  ;;  %v4489_v11 = vadd.f32 %v4488_v14, %v4464_v30 }
 0x4d6   :  { %v12362_v56 = vadd.f32 %v4489_v11, %v12305_v58  ;;  %v12364_v20 = vpop.f32.mrf.mxu1  ;;  %v9589_v11 = vld [vmem:[%s13657_s12 + $0x70] sm:$0xff] }
 0x4d7   :  { %5362 = vmatpush.bf16.msra.mxu0 %v9589_v11 }
 0x4d9   :  { %v4416_v2 = vpop.f32.mrf.mxu2 }
 0x4da   :  { %v4441_v6 = vadd.f32 %v4440_v28, %v4416_v2  ;;  %v9579_v28 = vld [vmem:[%s13657_s12 + $0x20] sm:$0xff] }
 0x4db   :  { %v12366_v10 = vpop.f32.mrf.mxu0  ;;  %5208 = vmatpush.bf16.msra.mxu2 %v9579_v28 }
 0x4dc   :  { %v12369_v3 = vadd.f32 %v4441_v6, %v12309_v31  ;;  %v12371_v1 = vpop.f32.mrf.mxu3  ;;  %v9578_v6 = vld [vmem:[%s13657_s12 + $0x18] sm:$0xff] }
 0x4de   :  { %v4493_v40 = vpop.f32.mrf.mxu1 }
 0x4df   :  { %5209 = vmatpush.bf16.msra.mxu2 %v9578_v6 }
 0x4e1   :  { %v12373_v7 = vpop.f32.mrf.mxu2 }
 0x4e3   :  { %v4469_v41 = vpop.f32.mrf.mxu0 }
 0x4e4   :  { %v4445_v50 = vpop.f32.mrf.mxu3  ;;  %v4494_v12 = vadd.f32 %v4493_v40, %v4469_v41  ;;  %v9588_v40 = vld [vmem:[%s13657_s12 + $0x68] sm:$0xff] }
 0x4e5   :  { %5363 = vmatpush.bf16.msra.mxu0 %v9588_v40  ;;  %v9575_v40 = vld [vmem:[%s13657_s12] sm:$0xff] }
 0x4e6   :  { %v12375_v60 = vadd.f32 %v4494_v12, %v4278_v37  ;;  %v12377_v58 = vpop.f32.mrf.mxu1 }
 0x4e9   :  { %v4421_v61 = vpop.f32.mrf.mxu2  ;;  %5364 = vmatpush.bf16.msra.mxu0 %v9587_v25 }
 0x4ea   :  { %v4446_v21 = vadd.f32 %v4445_v50, %v4421_v61  ;;  %v9594_v50 = vld [vmem:[%s13657_s12 + $0x98] sm:$0xff] }
 0x4eb   :  { %v12379_v42 = vpop.f32.mrf.mxu0  ;;  %5389 = vmatpush.bf16.msra.mxu1 %v9594_v50  ;;  %v9585_v50 = vld [vmem:[%s13657_s12 + $0x50] sm:$0xff] }
 0x4ec   :  { %v12381_v17 = vadd.f32 %v4446_v21, %v4277_v5  ;;  %v12383_v31 = vpop.f32.mrf.mxu3  ;;  %v9584_v5 = vld [vmem:[%s13657_s12 + $0x48] sm:$0xff]  ;;  %v9577_v21 = vld [vmem:[%s13657_s12 + $0x10] sm:$0xff] }
 0x4ed   :  { %5235 = vmatpush.bf16.msrb.mxu3 %v9584_v5  ;;  %v9583_v5 = vld [vmem:[%s13657_s12 + $0x40] sm:$0xff]  ;;  %5210 = vmatpush.bf16.msra.mxu2 %v9577_v21 }
 0x4ee   :  { %13766 = vst [vmem:[#allocation22_spill] sm:$0xff] %v12381_v17  ;;  %v12385_v63 = vpop.f32.mrf.mxu1  ;;  %5365 = vmatpush.bf16.msra.mxu0 %v9586_v4 }
 0x4ef   :  { %5390 = vmatpush.bf16.msra.mxu1 %v9593_v38 }
 0x4f1   :  { %v12387_v0 = vpop.f32.mrf.mxu2  ;;  %5236 = vmatpush.bf16.msrb.mxu3 %v9583_v5  ;;  %5211 = vmatpush.bf16.msra.mxu2 %v9576_v24 }
 0x4f2   :  { %5366 = vmatpush.bf16.msra.mxu0 %v9585_v50 }
 0x4f3   :  { %v12389_v18 = vpop.f32.mrf.mxu0 }
 0x4f4   :  { %v12391_v62 = vpop.f32.mrf.mxu3  ;;  %v12493_v21 = vadd.f32 %v12385_v63, %v12389_v18 }
 0x4f5   :  { %5212 = vmatpush.bf16.msra.mxu2 %v9575_v40 }
 0x4f6   :  { %v4714_v37 = vpop.f32.mrf.mxu1 }
 0x4f9   :  { %v12393_v52 = vpop.f32.mrf.mxu2 }
 0x4fa   :  { %v12502_v46 = vadd.f32 %v12391_v62, %v12393_v52 }
 0x4fb   :  { %v4690_v55 = vpop.f32.mrf.mxu0 }
 0x4fc   :  { %v12395_v47 = vpop.f32.mrf.mxu3  ;;  %v4715_v11 = vadd.f32 %v4714_v37, %v4690_v55  ;;  %v13705_v37 = vrot.slane %v12493_v21, 1 }
 0x4fe   :  { %v12397_v8 = vpop.f32.mrf.mxu1  ;;  %v4743_v5 = vrot.slane %v4715_v11, 1 }
 0x500   :  { %v4744_v63 = vsel %vm625_vm3, %v13705_v37, %v4743_v5 }
 0x501   :  { %v12405_v39 = vpop.f32.mrf.mxu2  ;;  %v4778_v62 = vadd.f32 %v4744_v63, %v12339_v23 }
 0x502   :  { %v4667_v55 = vadd.f32 %v12395_v47, %v12405_v39 }
 0x503   :  { %v12410_v16 = vpop.f32.mrf.mxu0 }
 0x504   :  { %v12412_v9 = vpop.f32.mrf.mxu3  ;;  %v12509_v18 = vadd.f32 %v12397_v8, %v12410_v16  ;;  %v4740_v50 = vrot.slane %v4667_v55, 1  ;;  %v4486_v16 = vadd.f32 %v12347_v57, %v12353_v48 }
 0x506   :  { %v12414_v13 = vpop.f32.mrf.mxu1  ;;  %v4747_v37 = vrot.slane %v12509_v18, 1 }
 0x508   :  { %v4748_v18 = vsel %vm625_vm3, %v4743_v5, %v4747_v37 }
 0x509   :  { %v12422_v27 = vpop.f32.mrf.mxu2 }
 0x50a   :  { %v12532_v63 = vadd.f32 %v12412_v9, %v12422_v27  ;;  %v9602_v9 = vld [vmem:[%s13657_s12 + $0xd8] sm:$0xff]  ;;  %v9604_v27 = vld [vmem:[%s13657_s12 + $0xe8] sm:$0xff] }
 0x50b   :  { %v12424_v59 = vpop.f32.mrf.mxu0  ;;  %5519 = vmatpush.bf16.msrb.mxu2 %v9602_v9  ;;  %5549 = vmatpush.bf16.msra.mxu3 %v9604_v27 }
 0x50c   :  { %v12426_v44 = vpop.f32.mrf.mxu3  ;;  %v4745_v5 = vrot.slane %v12532_v63, 1 }
 0x50e   :  { %v12431_v19 = vpop.f32.mrf.mxu1 }
 0x511   :  { %v12436_v49 = vpop.f32.mrf.mxu2 }
 0x513   :  { %v12438_v14 = vpop.f32.mrf.mxu0 }
 0x514   :  { %v12440_v30 = vpop.f32.mrf.mxu3 }
 0x516   :  { %v12448_v2 = vpop.f32.mrf.mxu1 }
 0x519   :  { %v12456_v41 = vpop.f32.mrf.mxu2 }
 0x51b   :  { %v12461_v12 = vpop.f32.mrf.mxu0 }
 0x51c   :  { %v12463_v61 = vpop.f32.mrf.mxu3 }
 0x51e   :  { %v4991_v34 = vpop.f32.mrf.mxu1 }
 0x521   :  { %v12483_v35 = vpop.f32.mrf.mxu2 }
 0x523   :  { %v4967_v28 = vpop.f32.mrf.mxu0 }
 0x524   :  { %v4943_v6 = vpop.f32.mrf.mxu3  ;;  %v12498_v24 = vadd.f32 %v4991_v34, %v4967_v28  ;;  %v5068_v34 = vld [vmem:[%s13656_s11] sm:$0x3]  ;;  %v4739_v28 = vrot.slane %v12502_v46, 1  ;;  %v9605_v46 = vld [vmem:[%s13657_s12 + $0xf0] sm:$0xff]  ;;  %s9844_s11 = smov 127  }
 0x525   :  { %v12525_v55 = vperm.slane %v5068_v34, 1 }
 0x526   :  { %v4993_v25 = vpop.f32.mrf.mxu1  ;;  %v13706_v47 = vrot.slane %v12498_v24, 2  ;;  %v4741_v23 = vsel %vm625_vm3, %v4739_v28, %v4740_v50 }
 0x529   :  { %v4919_v38 = vpop.f32.mrf.mxu2 }
 0x52a   :  { %v12518_v17 = vadd.f32 %v4943_v6, %v4919_v38 }
 0x52b   :  { %v4969_v4 = vpop.f32.mrf.mxu0 }
 0x52c   :  { %v4945_v11 = vpop.f32.mrf.mxu3  ;;  %v4994_v40 = vadd.f32 %v4993_v25, %v4969_v4 }
 0x52e   :  { %v5022_v39 = vrot.slane %v4994_v40, 2  ;;  %v4996_v52 = vpop.f32.mrf.mxu1  ;;  %v5018_v40 = vrot.slane %v12518_v17, 2  ;;  %v9624_v17 = vld [vmem:[%s13657_s12 + $0x188] sm:$0xff] }
 0x530   :  { %v5023_v8 = vsel %vm761_vm4, %v13706_v47, %v5022_v39 }
 0x531   :  { %v5057_v25 = vadd.f32 %v5023_v8, %v4778_v62  ;;  %v4921_v4 = vpop.f32.mrf.mxu2  ;;  %v4501_v62 = vadd.f32 %v4486_v16, %v12290_v36  ;;  %v4777_v8 = vadd.f32 %v4741_v23, %v12355_v53 }
 0x532   :  { %v4946_v6 = vadd.f32 %v4945_v11, %v4921_v4  ;;  %v12548_v11 = vadd.f32 %v12414_v13, %v12424_v59  ;;  %v12555_v4 = vperm.slane %v5068_v34, 0 }
 0x533   :  { %v4972_v38 = vpop.f32.mrf.mxu0  ;;  %v5075_v51 = vadd.f32 %v12525_v55, %v5057_v25  ;;  %v4780_v16 = vadd.f32 %v4748_v18, %v4501_v62 }
 0x534   :  { %v5019_v47 = vrot.slane %v4946_v6, 2  ;;  %v4948_v57 = vpop.f32.mrf.mxu3  ;;  %v4997_v48 = vadd.f32 %v4996_v52, %v4972_v38  ;;  %v4438_v52 = vadd.f32 %v12357_v54, %v12359_v32  ;;  %v9601_v38 = vld [vmem:[%s13657_s12 + $0xd0] sm:$0xff]  ;;  %v4751_v54 = vrot.slane %v12548_v11, 1 }
 0x535   :  { %v5087_v6 = vmax.f32 %v5075_v51, 0.0  ;;  %v12565_v32 = vadd.f32 %v12426_v44, %v12436_v49  ;;  %5520 = vmatpush.bf16.msrb.mxu2 %v9601_v38  ;;  %v4491_v38 = vadd.f32 %v12364_v20, %v12366_v10 }
 0x536   :  { %v5020_v36 = vsel %vm761_vm4, %v5018_v40, %v5019_v47  ;;  %v5026_v53 = vrot.slane %v4997_v48, 2  ;;  %v4998_v23 = vpop.f32.mrf.mxu1  ;;  %v4746_v48 = vsel %vm625_vm3, %v4740_v50, %v4745_v5  ;;  %v4500_v51 = vadd.f32 %v4438_v52, %v12301_v22  ;;  %v9600_v22 = vld [vmem:[%s13657_s12 + $0xc8] sm:$0xff] }
 0x537   :  { %v5056_v25 = vadd.f32 %v5020_v36, %v4777_v8  ;;  %v12575_v50 = vadd.f32 %v12431_v19, %v12438_v14  ;;  %v9611_v36 = vld [vmem:[%s13657_s12 + $0x120] sm:$0xff]  ;;  %v4752_v52 = vsel %vm625_vm3, %v4747_v37, %v4751_v54  ;;  %v4749_v19 = vrot.slane %v12565_v32, 1 }
 0x538   :  { %v5027_v63 = vsel %vm761_vm4, %v5022_v39, %v5026_v53  ;;  %v9612_v39 = vld [vmem:[%s13657_s12 + $0x128] sm:$0xff]  ;;  %v4779_v49 = vadd.f32 %v4746_v48, %v4500_v51  ;;  %v4782_v48 = vadd.f32 %v4752_v52, %v12362_v56  ;;  %v12611_v51 = vadd.f32 %v12440_v30, %v12456_v41  ;;  %v9598_v30 = vld [vmem:[%s13657_s12 + $0xb8] sm:$0xff] }
 0x539   :  { %v5059_v13 = vadd.f32 %v5027_v63, %v4780_v16  ;;  %v4924_v59 = vpop.f32.mrf.mxu2  ;;  %v5074_v18 = vadd.f32 %v12555_v4, %v5056_v25  ;;  %5654 = vmatpush.bf16.msrb.mxu0 %v9612_v39  ;;  %v9603_v25 = vld [vmem:[%s13657_s12 + $0xe0] sm:$0xff]  ;;  %5521 = vmatpush.bf16.msrb.mxu2 %v9600_v22  ;;  %v4755_v37 = vrot.slane %v12575_v50, 1  ;;  %v4725_v56 = vadd.f32 %v12448_v2, %v12461_v12  ;;  %v9609_v2 = vld [vmem:[%s13657_s12 + $0x110] sm:$0xff] }
 0x53a   :  { %v4949_v34 = vadd.f32 %v4948_v57, %v4924_v59  ;;  %v5099_v57 = vmul.f32 %v10427_v15, %v5087_v6  ;;  %5550 = vmatpush.bf16.msra.mxu3 %v9603_v25  ;;  %v4505_v41 = vadd.f32 %v4491_v38, %v12315_v43  ;;  %v4443_v12 = vadd.f32 %v12371_v1, %v12373_v7  ;;  %v9597_v7 = vld [vmem:[%s13657_s12 + $0xb0] sm:$0xff] }
 0x53b   :  { %v5077_v62 = vadd.f32 %v12525_v55, %v5059_v13  ;;  %v4974_v8 = vpop.f32.mrf.mxu0  ;;  %v9599_v13 = vld [vmem:[%s13657_s12 + $0xc0] sm:$0xff]  ;;  %v4756_v50 = vsel %vm625_vm3, %v4751_v54, %v4755_v37  ;;  %v4677_v43 = vadd.f32 %v12463_v61, %v12483_v35  ;;  %v9614_v61 = vld [vmem:[%s13657_s12 + $0x138] sm:$0xff] }
 0x53c   :  { %v5024_v9 = vrot.slane %v4949_v34, 2  ;;  %v4999_v44 = vadd.f32 %v4998_v23, %v4974_v8  ;;  %v4950_v11 = vpop.f32.mrf.mxu3  ;;  %v5086_v23 = vmax.f32 %v5074_v18, 0.0  ;;  %v4784_v22 = vadd.f32 %v4756_v50, %v4505_v41  ;;  %5684 = vmatpush.bf16.msrb.mxu1 %v9614_v61 }
 0x53d   :  { %v5089_v27 = vmax.f32 %v5077_v62, 0.0  ;;  %5655 = vmatpush.bf16.msrb.mxu0 %v9611_v36  ;;  %5522 = vmatpush.bf16.msrb.mxu2 %v9599_v13  ;;  %v4759_v36 = vrot.slane %v4725_v56, 1  ;;  %v4504_v35 = vadd.f32 %v4443_v12, %v12323_v45  ;;  %v9613_v45 = vld [vmem:[%s13657_s12 + $0x130] sm:$0xff] }
 0x53e   :  { %v5025_v14 = vsel %vm761_vm4, %v5019_v47, %v5024_v9  ;;  %v5030_v16 = vrot.slane %v4999_v44, 2  ;;  %v9610_v47 = vld [vmem:[%s13657_s12 + $0x118] sm:$0xff]  ;;  %v5001_v34 = vpop.f32.mrf.mxu1  ;;  %v5098_v20 = vmul.f32 %v10427_v15, %v5086_v23 }
 0x53f   :  { %v12590_v63 = vpack.c.bf16 %v5089_v27, %v5099_v57  ;;  %v5058_v6 = vadd.f32 %v5025_v14, %v4779_v49  ;;  %v4753_v57 = vrot.slane %v12611_v51, 1 }
 0x540   :  { %v5031_v59 = vsel %vm761_vm4, %v5026_v53, %v5030_v16  ;;  %v4750_v53 = vsel %vm625_vm3, %v4745_v5, %v4749_v19  ;;  %5685 = vmatpush.bf16.msrb.mxu1 %v9613_v45 }
 0x541   :  { %v5076_v32 = vadd.f32 %v12555_v4, %v5058_v6  ;;  %v4926_v39 = vpop.f32.mrf.mxu2  ;;  %8760 = vmatmul.msk.bf16.vlgmr.msrb.gmra.mxu3 %vm980_vm6, %v12590_v63  ;;  %8823 = vmatmul.msk.bf16.vlgmr.msra.gmra.mxu1 %vm980_vm6, %v12590_v63  ;;  %v5061_v62 = vadd.f32 %v5031_v59, %v4782_v48  ;;  %v4781_v54 = vadd.f32 %v4750_v53, %v12369_v3  ;;  %v9608_v6 = vld [vmem:[%s13657_s12 + $0x108] sm:$0xff]  ;;  %v9607_v53 = vld [vmem:[%s13657_s12 + $0x100] sm:$0xff] }
 0x542   :  { %v12613_v18 = vadd.f32 %v4950_v11, %v4926_v39  ;;  %5656 = vmatpush.bf16.msrb.mxu0 %v9610_v47  ;;  %5523 = vmatpush.bf16.msrb.mxu2 %v9598_v30  ;;  %v4760_v59 = vsel %vm625_vm3, %v4755_v37, %v4759_v36 }
 0x543   :  { %v5088_v10 = vmax.f32 %v5076_v32, 0.0  ;;  %v4977_v8 = vpop.f32.mrf.mxu0  ;;  %v5079_v52 = vadd.f32 %v12525_v55, %v5061_v62  ;;  %5844 = vmatpush.bf16.msrb.mxu3 %v9624_v17 }
 0x544   :  { %v5028_v44 = vrot.slane %v12613_v18, 2  ;;  %v12620_v5 = vadd.f32 %v5001_v34, %v4977_v8  ;;  %v4953_v14 = vpop.f32.mrf.mxu3  ;;  %v4757_v34 = vrot.slane %v4677_v43, 1 }
 0x545   :  { %v12631_v49 = vpack.c.bf16 %v5088_v10, %v5098_v20  ;;  %v5091_v47 = vmax.f32 %v5079_v52, 0.0  ;;  %v4448_v20 = vadd.f32 %v12383_v31, %v12387_v0  ;;  %v4786_v10 = vadd.f32 %v4760_v59, %v12375_v60  ;;  %v9606_v60 = vld [vmem:[%s13657_s12 + $0xf8] sm:$0xff]  ;;  %v9595_v0 = vld [vmem:[%s13657_s12 + $0xa0] sm:$0xff] }
 0x546   :  { %v5029_v27 = vsel %vm761_vm4, %v5024_v9, %v5028_v44  ;;  %v5034_v11 = vrot.slane %v12620_v5, 2  ;;  %5657 = vmatpush.bf16.msrb.mxu0 %v9609_v2  ;;  %v4496_v9 = vadd.f32 %v12377_v58, %v12379_v42  ;;  %v13767_v58 = vrot.slane %v12493_v21, 1  ;;  %v5003_v48 = vpop.f32.mrf.mxu1  ;;  %5524 = vmatpush.bf16.msrb.mxu2 %v9597_v7  ;;  %v9596_v21 = vld [vmem:[%s13657_s12 + $0xa8] sm:$0xff]  ;;  %v13771_v59 = vld [vmem:[#allocation14_spill] sm:$0xff] }
 0x547   :  { %5213 = vmatmul.bf16.vlgmr.msra.gmra.mxu2 %v12631_v49  ;;  %5367 = vmatmul.bf16.vlgmr.msra.gmra.mxu0 %v12631_v49  ;;  %v5060_v1 = vadd.f32 %v5029_v27, %v4781_v54  ;;  %v5103_v5 = vmul.f32 %v10588_v29, %v5091_v47  ;;  %v4758_v41 = vsel %vm625_vm3, %v4753_v57, %v4757_v34  ;;  %v13768_v54 = vrot.slane %v12498_v24, 2 }
 0x548   :  { %v5035_v3 = vsel %vm761_vm4, %v5030_v16, %v5034_v11  ;;  %v4754_v16 = vsel %vm625_vm3, %v4749_v19, %v4753_v57  ;;  %v4776_v42 = vsel %vm625_vm3, %v4759_v36, %v13767_v58  ;;  %v4509_v51 = vadd.f32 %v4496_v9, %v12335_v33  ;;  %v13770_v9 = vld [vmem:[#allocation22_spill] sm:$0xff] }
 0x549   :  { %v5063_v25 = vadd.f32 %v5035_v3, %v4784_v22  ;;  %v4929_v23 = vpop.f32.mrf.mxu2  ;;  %v5078_v19 = vadd.f32 %v12555_v4, %v5060_v1  ;;  %v4783_v18 = vadd.f32 %v4754_v16, %v4504_v35  ;;  %v4775_v24 = vsel %vm625_vm3, %v4757_v34, %v4739_v28  ;;  %v9622_v34 = vld [vmem:[%s13657_s12 + $0x178] sm:$0xff] }
 0x54a   :  { %v12656_v13 = vadd.f32 %v4953_v14, %v4929_v23  ;;  %5658 = vmatpush.bf16.msrb.mxu0 %v9608_v6  ;;  %v4788_v50 = vadd.f32 %v4776_v42, %v4509_v51  ;;  %5525 = vmatpush.bf16.msrb.mxu2 %v9596_v21  ;;  %v13769_v14 = vld [vmem:[#allocation21_spill] sm:$0xff]  ;;  %v9623_v51 = vld [vmem:[%s13657_s12 + $0x180] sm:$0xff] }
 0x54b   :  { %v5081_v38 = vadd.f32 %v12525_v55, %v5063_v25  ;;  %v4979_v32 = vpop.f32.mrf.mxu0  ;;  %v5090_v33 = vmax.f32 %v5078_v19, 0.0  ;;  %v4508_v43 = vadd.f32 %v4448_v20, %v13769_v14  ;;  %v4785_v25 = vadd.f32 %v4758_v41, %v13770_v9  ;;  %v9621_v19 = vld [vmem:[%s13657_s12 + $0x170] sm:$0xff]  ;;  %v9620_v21 = vld [vmem:[%s13657_s12 + $0x168] sm:$0xff]  ;;  %5845 = vmatpush.bf16.msrb.mxu3 %v9623_v51 }
 0x54c   :  { %v5032_v39 = vrot.slane %v12656_v13, 2  ;;  %v5004_v37 = vadd.f32 %v5003_v48, %v4979_v32  ;;  %v4955_v57 = vpop.f32.mrf.mxu3  ;;  %v9616_v20 = vld [vmem:[%s13657_s12 + $0x148] sm:$0xff] }
 0x54d   :  { %v5093_v56 = vmax.f32 %v5081_v38, 0.0  ;;  %v4787_v28 = vadd.f32 %v4775_v24, %v4508_v43  ;;  %v5102_v6 = vmul.f32 %v10588_v29, %v5090_v33 }
 0x54e   :  { %v5033_v62 = vsel %vm761_vm4, %v5028_v44, %v5032_v39  ;;  %v5038_v8 = vrot.slane %v5004_v37, 2  ;;  %5659 = vmatpush.bf16.msrb.mxu0 %v9607_v53  ;;  %5526 = vmatpush.bf16.msrb.mxu2 %v9595_v0  ;;  %v9619_v53 = vld [vmem:[%s13657_s12 + $0x160] sm:$0xff] }
 0x54f   :  { %v5105_v30 = vmul.f32 %v10606_v26, %v5093_v56  ;;  %v5062_v2 = vadd.f32 %v5033_v62, %v4783_v18  ;;  %v9618_v18 = vld [vmem:[%s13657_s12 + $0x158] sm:$0xff]  ;;  %v9617_v56 = vld [vmem:[%s13657_s12 + $0x150] sm:$0xff] }
 0x550   :  { %v5039_v12 = vsel %vm761_vm4, %v5034_v11, %v5038_v8  ;;  %v5055_v31 = vsel %vm761_vm4, %v5038_v8, %v13768_v54 }
 0x551   :  { %v5080_v44 = vadd.f32 %v12555_v4, %v5062_v2  ;;  %v5065_v27 = vadd.f32 %v5039_v12, %v4786_v10  ;;  %v5067_v22 = vadd.f32 %v5055_v31, %v4788_v50  ;;  %v4931_v11 = vpop.f32.mrf.mxu2  ;;  %v12693_v36 = vpack.c.bf16 %v5105_v30, %v5103_v5  ;;  %v9615_v10 = vld [vmem:[%s13657_s12 + $0x140] sm:$0xff] }
 0x552   :  { %v4956_v52 = vadd.f32 %v4955_v57, %v4931_v11  ;;  %5660 = vmatpush.bf16.msrb.mxu0 %v9606_v60  ;;  %5814 = vmatpush.bf16.msra.mxu2 %v9622_v34 }
 0x553   :  { %v5092_v1 = vmax.f32 %v5080_v44, 0.0  ;;  %v5083_v3 = vadd.f32 %v12525_v55, %v5065_v27  ;;  %v5085_v7 = vadd.f32 %v12525_v55, %v5067_v22  ;;  %8761 = vmatmul.msk.bf16.gmra.mxu3 %vm980_vm6, %v12693_v36  ;;  %8824 = vmatmul.msk.bf16.gmra.mxu1 %vm980_vm6, %v12693_v36 }
 0x554   :  { %v5036_v23 = vrot.slane %v4956_v52, 2 }
 0x555   :  { %v5104_v55 = vmul.f32 %v10606_v26, %v5092_v1  ;;  %v5097_v61 = vmax.f32 %v5085_v7, 0.0  ;;  %v5095_v35 = vmax.f32 %v5083_v3, 0.0 }
 0x556   :  { %v5037_v16 = vsel %vm761_vm4, %v5032_v39, %v5036_v23  ;;  %v5054_v13 = vsel %vm761_vm4, %v5036_v23, %v5018_v40  ;;  %5661 = vmatpush.bf16.msrb.mxu0 %v9605_v46  ;;  %5815 = vmatpush.bf16.msra.mxu2 %v9621_v19 }
 0x557   :  { %v5109_v58 = vmul.f32 %v13771_v59, %v5097_v61  ;;  %v5064_v42 = vadd.f32 %v5037_v16, %v4785_v25  ;;  %v5066_v47 = vadd.f32 %v5054_v13, %v4787_v28  ;;  %v5112_v38 = vpack.c.bf16 %v5104_v55, %v5102_v6 }
 0x559   :  { %v5115_v48 = vpack.c.bf16 %v5109_v58, %v5095_v35  ;;  %v5082_v32 = vadd.f32 %v12555_v4, %v5064_v42  ;;  %v5084_v45 = vadd.f32 %v12555_v4, %v5066_v47  ;;  %5218 = vmatmul.bf16.gmra.mxu2 %v5112_v38  ;;  %5372 = vmatmul.bf16.gmra.mxu0 %v5112_v38 }
 0x55a   :  { %5816 = vmatpush.bf16.msra.mxu2 %v9620_v21 }
 0x55b   :  { %v5096_v40 = vmax.f32 %v5084_v45, 0.0  ;;  %v5094_v39 = vmax.f32 %v5082_v32, 0.0 }
 0x55d   :  { %v5108_v4 = vmul.f32 %v13771_v59, %v5096_v40 }
 0x55e   :  { %5817 = vmatpush.bf16.msra.mxu2 %v9619_v53 }
 0x55f   :  { %v5114_v37 = vpack.c.bf16 %v5108_v4, %v5094_v39 }
 0x562   :  { %5818 = vmatpush.bf16.msra.mxu2 %v9618_v18 }
 0x563   :  { %8762 = vmatmul.msk.bf16.gmra.mxu3 %vm980_vm6, %v5115_v48  ;;  %8825 = vmatmul.msk.bf16.gmra.mxu1 %vm980_vm6, %v5115_v48 }
 0x566   :  { %5819 = vmatpush.bf16.msra.mxu2 %v9617_v56 }
 0x569   :  { %5223 = vmatmul.bf16.gmra.mxu2 %v5114_v37  ;;  %5377 = vmatmul.bf16.gmra.mxu0 %v5114_v37 }
 0x56a   :  { %5820 = vmatpush.bf16.msra.mxu2 %v9616_v20 }
 0x56e   :  { %5821 = vmatpush.bf16.msra.mxu2 %v9615_v10 }
 0x573   :  { %8886 = vmatmul.msk.bf16.vlgmr.msra.gmra.mxu3 %vm980_vm6, %v12590_v63  ;;  %8949 = vmatmul.msk.bf16.vlgmr.msrb.gmra.mxu1 %vm980_vm6, %v12590_v63 }
 0x579   :  { %5527 = vmatmul.bf16.vlgmr.msrb.gmra.mxu2 %v12631_v49  ;;  %5662 = vmatmul.bf16.vlgmr.msrb.gmra.mxu0 %v12631_v49 }
 0x583   :  { %8887 = vmatmul.msk.bf16.gmra.mxu3 %vm980_vm6, %v12693_v36  ;;  %8950 = vmatmul.msk.bf16.gmra.mxu1 %vm980_vm6, %v12693_v36 }
 0x589   :  { %5532 = vmatmul.bf16.gmra.mxu2 %v5112_v38  ;;  %5667 = vmatmul.bf16.gmra.mxu0 %v5112_v38 }
 0x593   :  { %8888 = vmatmul.msk.bf16.gmra.mxu3 %vm980_vm6, %v5115_v48  ;;  %8951 = vmatmul.msk.bf16.gmra.mxu1 %vm980_vm6, %v5115_v48 }
 0x599   :  { %5537 = vmatmul.bf16.gmra.mxu2 %v5114_v37  ;;  %5672 = vmatmul.bf16.gmra.mxu0 %v5114_v37 }
 0x5a3   :  { %9012 = vmatmul.msk.bf16.vlgmr.msrb.gmra.mxu3 %vm980_vm6, %v12590_v63 }
 0x5a9   :  { %5822 = vmatmul.bf16.vlgmr.msra.gmra.mxu2 %v12631_v49 }
 0x5b3   :  { %9013 = vmatmul.msk.bf16.gmra.mxu3 %vm980_vm6, %v12693_v36 }
 0x5b9   :  { %5827 = vmatmul.bf16.gmra.mxu2 %v5112_v38 }
 0x5be   :  { %v5392_v44 = vpop.f32.mrf.mxu1 }
 0x5c3   :  { %9014 = vmatmul.msk.bf16.gmra.mxu3 %vm980_vm6, %v5115_v48 }
 0x5c4   :  { %v5238_v62 = vpop.f32.mrf.mxu3  ;;  %v5368_v31 = vpop.f32.mrf.mxu0 }
 0x5c5   :  { %v5393_v10 = vadd.f32 %v5392_v44, %v5368_v31 }
 0x5c6   :  { %v5394_v14 = vpop.f32.mrf.mxu1 }
 0x5c9   :  { %5832 = vmatmul.bf16.gmra.mxu2 %v5114_v37 }
 0x5ca   :  { %v5214_v8 = vpop.f32.mrf.mxu2 }
 0x5cb   :  { %v12769_v5 = vadd.f32 %v5238_v62, %v5214_v8 }
 0x5cc   :  { %v5240_v50 = vpop.f32.mrf.mxu3  ;;  %v5370_v24 = vpop.f32.mrf.mxu0 }
 0x5cd   :  { %v5261_v41 = vrot.slane %v12769_v5, 6 }
 0x5d0   :  { %v5397_v23 = vpop.f32.mrf.mxu1 }
 0x5d2   :  { %v5216_v30 = vpop.f32.mrf.mxu2 }
 0x5d3   :  { %v5241_v2 = vadd.f32 %v5240_v50, %v5216_v30 }
 0x5d5   :  { %v5262_v33 = vrot.slane %v5241_v2, 6 }
 0x5d6   :  { %v5243_v63 = vpop.f32.mrf.mxu3  ;;  %v12784_v9 = vpop.f32.mrf.mxu0 }
 0x5d7   :  { %v12773_v49 = vsel %vm214_vm0, %v5261_v41, %v5262_v33 }
 0x5d8   :  { %v12793_v55 = vpop.f32.mrf.mxu1 }
 0x5dc   :  { %v5219_v12 = vpop.f32.mrf.mxu2 }
 0x5dd   :  { %v5244_v54 = vadd.f32 %v5243_v63, %v5219_v12 }
 0x5de   :  { %v5245_v60 = vpop.f32.mrf.mxu3  ;;  %v12791_v6 = vpop.f32.mrf.mxu0 }
 0x5df   :  { %v5264_v0 = vrot.slane %v5244_v54, 6 }
 0x5e0   :  { %v12797_v58 = vpop.f32.mrf.mxu1 }
 0x5e1   :  { %v12776_v57 = vsel %vm214_vm0, %v5262_v33, %v5264_v0  ;;  %v5415_v33 = vrot.slane %v5393_v10, 7 }
 0x5e4   :  { %v5221_v27 = vpop.f32.mrf.mxu2 }
 0x5e5   :  { %v5246_v22 = vadd.f32 %v5245_v60, %v5221_v27  ;;  %v5395_v60 = vadd.f32 %v5394_v14, %v5370_v24 }
 0x5e6   :  { %v5248_v11 = vpop.f32.mrf.mxu3  ;;  %v12795_v16 = vpop.f32.mrf.mxu0 }
 0x5e7   :  { %v5266_v36 = vrot.slane %v5246_v22, 6  ;;  %v5416_v24 = vrot.slane %v5395_v60, 7 }
 0x5e8   :  { %v5404_v32 = vpop.f32.mrf.mxu1 }
 0x5e9   :  { %v12779_v52 = vsel %vm214_vm0, %v5264_v0, %v5266_v36 }
 0x5ec   :  { %v5224_v43 = vpop.f32.mrf.mxu2 }
 0x5ed   :  { %v12781_v1 = vadd.f32 %v5248_v11, %v5224_v43 }
 0x5ee   :  { %v5250_v3 = vpop.f32.mrf.mxu3  ;;  %v5380_v38 = vpop.f32.mrf.mxu0 }
 0x5ef   :  { %v5268_v7 = vrot.slane %v12781_v1, 6  ;;  %v12817_v18 = vadd.f32 %v5404_v32, %v5380_v38  ;;  %v12839_v32 = vld [vmem:[%s13658_s13] ss:$0 sm:$0xff]  ;;  %s9842_s13 = smov 16  }
 0x5f0   :  { %v5687_v40 = vpop.f32.mrf.mxu1 }
 0x5f1   :  { %v12789_v25 = vsel %vm214_vm0, %v5266_v36, %v5268_v7  ;;  %v5408_v30 = vrot.slane %v12817_v18, 7 }
 0x5f3   :  { %v5431_v31 = vsel %vm408_vm2, %v5408_v30, %v5415_v33 }
 0x5f4   :  { %v5226_v46 = vpop.f32.mrf.mxu2 }
 0x5f5   :  { %v12815_v51 = vadd.f32 %v5250_v3, %v5226_v46 }
 0x5f6   :  { %v5552_v28 = vpop.f32.mrf.mxu3  ;;  %v5663_v17 = vpop.f32.mrf.mxu0 }
 0x5f7   :  { %v5254_v62 = vrot.slane %v12815_v51, 6  ;;  %v12821_v2 = vadd.f32 %v5687_v40, %v5663_v17 }
 0x5f8   :  { %v5689_v37 = vpop.f32.mrf.mxu1 }
 0x5f9   :  { %v5277_v63 = vsel %vm214_vm0, %v5254_v62, %v5261_v41  ;;  %v5708_v0 = vrot.slane %v12821_v2, 1 }
 0x5fa   :  { %v5432_v27 = vadd.f32 %v5431_v31, %v5277_v63 }
 0x5fc   :  { %v5528_v61 = vpop.f32.mrf.mxu2 }
 0x5fd   :  { %v5553_v54 = vadd.f32 %v5552_v28, %v5528_v61 }
 0x5fe   :  { %v5554_v35 = vpop.f32.mrf.mxu3  ;;  %v5665_v4 = vpop.f32.mrf.mxu0 }
 0x5ff   :  { %v5690_v8 = vadd.f32 %v5689_v37, %v5665_v4  ;;  %v5567_v41 = vadd.f32 %v5553_v54, %v5432_v27 }
 0x600   :  { %v5692_v50 = vpop.f32.mrf.mxu1 }
 0x601   :  { %v5709_v12 = vrot.slane %v5690_v8, 1 }
 0x603   :  { %v5710_v11 = vsel %vm625_vm3, %v5708_v0, %v5709_v12 }
 0x604   :  { %v5530_v13 = vpop.f32.mrf.mxu2  ;;  %v5727_v61 = vadd.f32 %v5710_v11, %v5567_v41 }
 0x605   :  { %v5555_v4 = vadd.f32 %v5554_v35, %v5530_v13 }
 0x606   :  { %v12799_v42 = vpop.f32.mrf.mxu3  ;;  %v5668_v56 = vpop.f32.mrf.mxu0 }
 0x607   :  { %v5693_v36 = vadd.f32 %v5692_v50, %v5668_v56  ;;  %v5417_v56 = vsel %vm408_vm2, %v5415_v33, %v5416_v24 }
 0x608   :  { %v5694_v38 = vpop.f32.mrf.mxu1 }
 0x609   :  { %v5711_v17 = vrot.slane %v5693_v36, 1  ;;  %v5400_v36 = vadd.f32 %v12793_v55, %v12791_v6 }
 0x60b   :  { %v5712_v50 = vsel %vm625_vm3, %v5709_v12, %v5711_v17 }
 0x60c   :  { %v12801_v47 = vpop.f32.mrf.mxu2 }
 0x60d   :  { %v5558_v33 = vadd.f32 %v12799_v42, %v12801_v47 }
 0x60e   :  { %v12803_v48 = vpop.f32.mrf.mxu3  ;;  %v5670_v3 = vpop.f32.mrf.mxu0 }
 0x610   :  { %v5697_v11 = vpop.f32.mrf.mxu1 }
 0x614   :  { %v12805_v45 = vpop.f32.mrf.mxu2 }
 0x615   :  { %v5560_v55 = vadd.f32 %v12803_v48, %v12805_v45 }
 0x616   :  { %v12807_v34 = vpop.f32.mrf.mxu3  ;;  %v5673_v35 = vpop.f32.mrf.mxu0 }
 0x61c   :  { %v12809_v19 = vpop.f32.mrf.mxu2 }
 0x61d   :  { %v5563_v1 = vadd.f32 %v12807_v34, %v12809_v19 }
 0x61e   :  { %v12811_v39 = vpop.f32.mrf.mxu3 }
 0x624   :  { %v12813_v21 = vpop.f32.mrf.mxu2 }
 0x626   :  { %v5847_v53 = vpop.f32.mrf.mxu3 }
 0x62c   :  { %v5823_v20 = vpop.f32.mrf.mxu2 }
 0x62d   :  { %v12830_v44 = vadd.f32 %v5847_v53, %v5823_v20  ;;  %v5398_v53 = vadd.f32 %v5397_v23, %v12784_v9  ;;  %v5433_v20 = vadd.f32 %v5417_v56, %v12773_v49 }
 0x62e   :  { %v5849_v5 = vpop.f32.mrf.mxu3 }
 0x62f   :  { %v5868_v14 = vrot.slane %v12830_v44, 2  ;;  %v5568_v54 = vadd.f32 %v5555_v4, %v5433_v20  ;;  %v5418_v31 = vrot.slane %v5398_v53, 7  ;;  %v9708_v44 = vld [vmem:[%s13652_s7] ss:$0 sm:$0xff]  ;;  %s9843_s7 = smov 31  }
 0x634   :  { %v5825_v22 = vpop.f32.mrf.mxu2 }
 0x635   :  { %v5850_v43 = vadd.f32 %v5849_v5, %v5825_v22  ;;  %v5695_v5 = vadd.f32 %v5694_v38, %v5670_v3  ;;  %v5728_v22 = vadd.f32 %v5712_v50, %v5568_v54  ;;  %v5420_v38 = vrot.slane %v5400_v36, 7 }
 0x636   :  { %v5852_v46 = vpop.f32.mrf.mxu3 }
 0x637   :  { %v5869_v28 = vrot.slane %v5850_v43, 2  ;;  %v5713_v23 = vrot.slane %v5695_v5, 1  ;;  %v5419_v43 = vsel %vm408_vm2, %v5416_v24, %v5418_v31  ;;  %v5421_v20 = vsel %vm408_vm2, %v5418_v31, %v5420_v38 }
 0x638   :  { %v5434_v41 = vadd.f32 %v5419_v43, %v12776_v57  ;;  %v5675_v57 = vpop.f32.mrf.mxu0 }
 0x639   :  { %v5870_v40 = vsel %vm761_vm4, %v5868_v14, %v5869_v28 }
 0x63a   :  { %v5887_v37 = vadd.f32 %v5870_v40, %v5727_v61  ;;  %v5698_v61 = vadd.f32 %v5697_v11, %v5673_v35  ;;  %v5569_v47 = vadd.f32 %v5558_v33, %v5434_v41 }
 0x63c   :  { %v5828_v10 = vpop.f32.mrf.mxu2  ;;  %v5897_v8 = vadd.f32 %v12839_v32, %v5887_v37  ;;  %v5715_v53 = vrot.slane %v5698_v61, 1 }
 0x63d   :  { %v5853_v63 = vadd.f32 %v5852_v46, %v5828_v10  ;;  %v5435_v10 = vadd.f32 %v5421_v20, %v12779_v52  ;;  %v5565_v52 = vadd.f32 %v12811_v39, %v12813_v21 }
 0x63e   :  { %v5903_v60 = vmax.f32 %v5897_v8, 0.0  ;;  %v5854_v13 = vpop.f32.mrf.mxu3  ;;  %v5699_v8 = vpop.f32.mrf.mxu1 }
 0x63f   :  { %v5871_v27 = vrot.slane %v5853_v63, 2  ;;  %v5716_v63 = vsel %vm625_vm3, %v5713_v23, %v5715_v53  ;;  %v5700_v48 = vadd.f32 %v5699_v8, %v5675_v57  ;;  %v5570_v54 = vadd.f32 %v5560_v55, %v5435_v10 }
 0x640   :  { %v12850_v9 = vmul.f32 %v10427_v15, %v5903_v60 }
 0x641   :  { %v5872_v49 = vsel %vm761_vm4, %v5869_v28, %v5871_v27  ;;  %v5714_v28 = vsel %vm625_vm3, %v5711_v17, %v5713_v23  ;;  %v5403_v17 = vadd.f32 %v12797_v58, %v12795_v16  ;;  %v5270_v16 = vsel %vm214_vm0, %v5268_v7, %v5254_v62 }
 0x642   :  { %5921 = vrot.lane.b32.xlu0 %v12850_v9, %s9842_s13  ;;  %v5888_v12 = vadd.f32 %v5872_v49, %v5728_v22  ;;  %v5729_v4 = vadd.f32 %v5714_v28, %v5569_v47  ;;  %v5730_v31 = vadd.f32 %v5716_v63, %v5570_v54  ;;  %v5717_v35 = vrot.slane %v5700_v48, 1 }
 0x643   :  { %vm6140_vm0 = vcmask 648704  }
 0x644   :  { %v5830_v3 = vpop.f32.mrf.mxu2  ;;  %v5898_v46 = vadd.f32 %v12839_v32, %v5888_v12  ;;  %v5726_v34 = vsel %vm625_vm3, %v5717_v35, %v5708_v0 }
 0x645   :  { %v5855_v42 = vadd.f32 %v5854_v13, %v5830_v3 }
 0x646   :  { %v12863_v37 = vmax.f32 %v5898_v46, 0.0  ;;  %v5857_v56 = vpop.f32.mrf.mxu3 }
 0x647   :  { %v5873_v40 = vrot.slane %v5855_v42, 2 }
 0x649   :  { %v5874_v6 = vsel %vm761_vm4, %v5871_v27, %v5873_v40  ;;  %v5422_v27 = vrot.slane %v5403_v17, 7 }
 0x64a   :  { %v5889_v24 = vadd.f32 %v5874_v6, %v5729_v4  ;;  %5923 = vrot.lane.b32.xlu0 %v12863_v37, %s9842_s13  ;;  %v13773_v6 = vld [vmem:[#allocation16_spill] sm:$0xff] }
 0x64b   :  { %v5424_v13 = vsel %vm408_vm2, %v5422_v27, %v5408_v30  ;;  %v5423_v39 = vsel %vm408_vm2, %v5420_v38, %v5422_v27  ;;  %v5718_v30 = vsel %vm625_vm3, %v5715_v53, %v5717_v35  ;;  %v6035_v27 = vld [vmem:[%s13659_s14 + $0x18] sm:$0xff]  ;;  %v13777_v35 = vld [vmem:[#allocation20_spill] sm:$0xff] }
 0x64c   :  { %v5833_v50 = vpop.f32.mrf.mxu2  ;;  %v5899_v5 = vadd.f32 %v12839_v32, %v5889_v24  ;;  %v5437_v51 = vadd.f32 %v5424_v13, %v5270_v16  ;;  %v5436_v21 = vadd.f32 %v5423_v39, %v12789_v25  ;;  %v6034_v16 = vld [vmem:[%s13659_s14 + $0x10] sm:$0xff]  ;;  %6066 = vmatpush.msra.mxu0 %v6035_v27  ;;  %v3036_v13 = vadd.f32 %v9708_v44, %v13777_v35 }
 0x64d   :  { %v5858_v45 = vadd.f32 %v5857_v56, %v5833_v50  ;;  %v13774_v56 = vld [vmem:[#allocation17_spill] sm:$0xff] }
 0x64e   :  { %v5905_v60 = vmax.f32 %v5899_v5, 0.0  ;;  %v5572_v62 = vadd.f32 %v5565_v52, %v5437_v51  ;;  %v5859_v49 = vpop.f32.mrf.mxu3  ;;  %v5571_v12 = vadd.f32 %v5563_v1, %v5436_v21  ;;  %v3033_v17 = vadd.f32 %v9708_v44, %v13774_v56  ;;  %6067 = vmatpush.msra.mxu0 %v6034_v16 }
 0x64f   :  { %v5875_v58 = vrot.slane %v5858_v45, 2  ;;  %v13775_v45 = vld [vmem:[#allocation18_spill] sm:$0xff]  ;;  %v3042_v21 = vmax.f32 %v3036_v13, 0.0 }
 0x650   :  { %v12884_v22 = vmul.f32 %v10588_v29, %v5905_v60  ;;  %v5731_v43 = vadd.f32 %v5718_v30, %v5571_v12  ;;  %v5732_v41 = vadd.f32 %v5726_v34, %v5572_v62  ;;  %v3039_v5 = vmax.f32 %v3033_v17, 0.0 }
 0x651   :  { %v5876_v23 = vsel %vm761_vm4, %v5873_v40, %v5875_v58  ;;  %v3034_v54 = vadd.f32 %v9708_v44, %v13775_v45 }
 0x652   :  { %v5890_v7 = vadd.f32 %v5876_v23, %v5730_v31  ;;  %5925 = vrot.lane.b32.xlu1 %v12884_v22, %s9842_s13  ;;  %v12941_v60 = vmul.f32 %v10588_v29, %v3039_v5  ;;  %v13776_v31 = vld [vmem:[#allocation19_spill] sm:$0xff]  ;;  %v6033_v29 = vld [vmem:[%s13659_s14 + $0x8] sm:$0xff] }
 0x653   :  { %v3035_v52 = vadd.f32 %v9708_v44, %v13776_v31  ;;  %v3040_v51 = vmax.f32 %v3034_v54, 0.0  ;;  %6068 = vmatpush.msra.mxu0 %v6033_v29 }
 0x654   :  { %v5835_v33 = vpop.f32.mrf.mxu2  ;;  %v5900_v18 = vadd.f32 %v12839_v32, %v5890_v7 }
 0x655   :  { %v5860_v11 = vadd.f32 %v5859_v49, %v5835_v33  ;;  %v12957_v39 = vmax.f32 %v3035_v52, 0.0  ;;  %v12964_v33 = vmul.f32 %v10606_v26, %v3040_v51 }
 0x656   :  { %v5906_v36 = vmax.f32 %v5900_v18, 0.0 }
 0x657   :  { %v5877_v19 = vrot.slane %v5860_v11, 2  ;;  %v12967_v11 = vmul.f32 %v13771_v59, %v3042_v21 }
 0x658   :  { %v12902_v3 = vmul.f32 %v10606_v26, %v5906_v36 }
 0x659   :  { %v5878_v25 = vsel %vm761_vm4, %v5875_v58, %v5877_v19  ;;  %v5886_v46 = vsel %vm761_vm4, %v5877_v19, %v5868_v14  ;;  %v13772_v14 = vld [vmem:[#allocation15_spill] sm:$0xff] }
 0x65a   :  { %v5892_v28 = vadd.f32 %v5886_v46, %v5732_v41  ;;  %5927 = vrot.lane.b32.xlu1 %v12902_v3, %s9842_s13  ;;  %v5891_v61 = vadd.f32 %v5878_v25, %v5731_v43  ;;  %v3031_v40 = vadd.f32 %v9708_v44, %v13772_v14 }
 0x65c   :  { %v5901_v2 = vadd.f32 %v12839_v32, %v5891_v61  ;;  %v5902_v42 = vadd.f32 %v12839_v32, %v5892_v28  ;;  %v3037_v53 = vmax.f32 %v3031_v40, 0.0  ;;  %v3032_v32 = vadd.f32 %v9708_v44, %v13773_v6 }
 0x65e   :  { %v12911_v0 = vmax.f32 %v5901_v2, 0.0  ;;  %v5908_v47 = vmax.f32 %v5902_v42, 0.0  ;;  %v12927_v55 = vmul.f32 %v10427_v15, %v3037_v53  ;;  %v12931_v24 = vmax.f32 %v3032_v32, 0.0  ;;  %v6032_v42 = vld [vmem:[%s13659_s14] sm:$0xff]  ;;  %s9845_s14 = smov 32  }
 0x65f   :  { %6069 = vmatpush.msra.mxu0 %v6032_v42 }
 0x660   :  { %5929 = vrot.lane.b32.xlu2 %v12911_v0, %s9842_s13  ;;  %v12917_v38 = vmul.f32 %v13771_v59, %v5908_v47 }
 0x668   :  { %5931 = vrot.lane.b32.xlu2 %v12917_v38, %s9842_s13 }
 0x6b4   :  { %v5922_v4 = vpop.permute.xlu0 %5921 }
 0x6b5   :  { %v5940_v57 = vsel %vm5939_vm10, %v12927_v55, %v5922_v4 }
 0x6b6   :  { %v5952_v8 = vrot.slane %v5940_v57, 1 }
 0x6ba   :  { %v5930_v15 = vpop.permute.xlu2 %5929 }
 0x6bb   :  { %v5944_v49 = vsel %vm5939_vm10, %v12957_v39, %v5930_v15 }
 0x6bc   :  { %v5924_v20 = vpop.permute.xlu0 %5923  ;;  %v5959_v36 = vrot.slane %v5944_v49, 1 }
 0x6bd   :  { %v5941_v10 = vsel %vm5939_vm10, %v12931_v24, %v5924_v20 }
 0x6be   :  { %v5953_v50 = vrot.slane %v5941_v10, 1 }
 0x6c0   :  { %v5954_v63 = vsel %vm625_vm3, %v5952_v8, %v5953_v50 }
 0x6c1   :  { %v5971_v48 = vmax.f32 %v5940_v57, %v5954_v63 }
 0x6c2   :  { %v5932_v18 = vpop.permute.xlu2 %5931 }
 0x6c3   :  { %6001 = vrot.lane.b32.xlu1 %v5971_v48, %s9843_s7  ;;  %5983 = vrot.lane.b32.xlu0 %v5971_v48, %s9844_s11  ;;  %v5945_v19 = vsel %vm5939_vm10, %v12967_v11, %v5932_v18 }
 0x6c4   :  { %v5926_v58 = vpop.permute.xlu1 %5925  ;;  %v5961_v46 = vrot.slane %v5945_v19, 1 }
 0x6c5   :  { %v5942_v23 = vsel %vm5939_vm10, %v12941_v60, %v5926_v58 }
 0x6c6   :  { %v5955_v1 = vrot.slane %v5942_v23, 1  ;;  %v5962_v59 = vsel %vm625_vm3, %v5959_v36, %v5961_v46  ;;  %v5970_v61 = vsel %vm625_vm3, %v5961_v46, %v5952_v8 }
 0x6c7   :  { %v5975_v28 = vmax.f32 %v5944_v49, %v5962_v59  ;;  %v5976_v2 = vmax.f32 %v5945_v19, %v5970_v61 }
 0x6c8   :  { %v5956_v7 = vsel %vm625_vm3, %v5953_v50, %v5955_v1 }
 0x6c9   :  { %v5972_v62 = vmax.f32 %v5941_v10, %v5956_v7 }
 0x6cb   :  { %5985 = vrot.lane.b32.xlu2 %v5972_v62, %s9844_s11  ;;  %6003 = vrot.lane.b32.xlu0 %v5972_v62, %s9843_s7 }
 0x6cc   :  { %v5928_v30 = vpop.permute.xlu1 %5927 }
 0x6cd   :  { %v5943_v12 = vsel %vm5939_vm10, %v12964_v33, %v5928_v30 }
 0x6ce   :  { %v5957_v34 = vrot.slane %v5943_v12, 1 }
 0x6d0   :  { %v5960_v43 = vsel %vm625_vm3, %v5957_v34, %v5959_v36  ;;  %v5958_v41 = vsel %vm625_vm3, %v5955_v1, %v5957_v34  ;;  %vm6172_vm3 = vcmask 1042304  }
 0x6d1   :  { %v5974_v25 = vmax.f32 %v5943_v12, %v5960_v43  ;;  %v5973_v26 = vmax.f32 %v5942_v23, %v5958_v41 }
 0x6d3   :  { %6005 = vrot.lane.b32.xlu2 %v5973_v26, %s9843_s7  ;;  %5987 = vrot.lane.b32.xlu1 %v5973_v26, %s9844_s11 }
 0x6d4   :  { %5989 = vrot.lane.b32.xlu0 %v5974_v25, %s9844_s11 }
 0x6db   :  { %6007 = vrot.lane.b32.xlu1 %v5974_v25, %s9843_s7  ;;  %5991 = vrot.lane.b32.xlu2 %v5975_v28, %s9844_s11 }
 0x6dc   :  { %6009 = vrot.lane.b32.xlu0 %v5975_v28, %s9843_s7 }
 0x6e3   :  { %5993 = vrot.lane.b32.xlu1 %v5976_v2, %s9844_s11  ;;  %6011 = vrot.lane.b32.xlu2 %v5976_v2, %s9843_s7 }
 0x725   :  { %v5986_v4 = vpop.permute.xlu2 %5985 }
 0x72d   :  { %v6006_v57 = vpop.permute.xlu2 %6005 }
 0x735   :  { %v6002_v47 = vpop.permute.xlu1 %6001  ;;  %v5984_v44 = vpop.permute.xlu0 %5983 }
 0x736   :  { %v6020_v14 = vsel %vm6019_vm11, %v5984_v44, %v6002_v47  ;;  %v5992_v63 = vpop.permute.xlu2 %5991  ;;  %v6887_v47 = vmul.f32 %v12917_v38, %v12917_v38 }
 0x737   :  { %v6026_v40 = vmax.f32 %v5971_v48, %v6020_v14  ;;  %v6886_v14 = vmul.f32 %v12911_v0, %v12911_v0 }
 0x738   :  { %v6903_v44 = vsel %vm5939_vm10, %v6887_v47, 0.0 }
 0x739   :  { %9015 = vmatmul.msk.f32.vlgmr.msra.gmra.mxu0 %vm980_vm6, %v6026_v40  ;;  %v6883_v40 = vmul.f32 %v12863_v37, %v12863_v37 }
 0x73d   :  { %v6004_v53 = vpop.permute.xlu0 %6003 }
 0x73e   :  { %v6021_v6 = vsel %vm6019_vm11, %v5986_v4, %v6004_v53  ;;  %v6012_v27 = vpop.permute.xlu2 %6011  ;;  %v6885_v4 = vmul.f32 %v12902_v3, %v12902_v3  ;;  %v6900_v53 = vsel %vm5939_vm10, %v6886_v14, 0.0 }
 0x73f   :  { %v6027_v32 = vmax.f32 %v5972_v62, %v6021_v6  ;;  %v6891_v6 = vsel %vm5939_vm10, %v6883_v40, 0.0  ;;  %v9055_v40 = vld [vmem:[%s13660_s15 + $0x40] sm:$0xf] }
 0x741   :  { %9016 = vmatmul.msk.f32.gmra.mxu0 %vm980_vm6, %v6027_v32  ;;  %v6897_v32 = vsel %vm5939_vm10, %v6885_v4, 0.0  ;;  %v9635_v4 = vld [vmem:[%s13660_s15 + $0x4c] sm:$0xf0] }
 0x745   :  { %v5988_v56 = vpop.permute.xlu1 %5987 }
 0x746   :  { %v6022_v17 = vsel %vm6019_vm11, %v5988_v56, %v6006_v57  ;;  %v5990_v10 = vpop.permute.xlu0 %5989  ;;  %v9653_v57 = vld [vmem:[%s13660_s15 + $0xe4] sm:$0xf]  ;;  %v9137_v56 = vld [vmem:[%s13660_s15 + $0xf0] sm:$0xf0] }
 0x747   :  { %v6028_v20 = vmax.f32 %v5973_v26, %v6022_v17  ;;  %v9135_v17 = vld [vmem:[%s13660_s15 + $0xe0] sm:$0xf] }
 0x749   :  { %9017 = vmatmul.msk.f32.gmra.mxu0 %vm980_vm6, %v6028_v20  ;;  %v9140_v20 = vor.u32 %v9653_v57, %v9137_v56  ;;  %v9073_v57 = vld [vmem:[%s13660_s15 + $0x70] sm:$0xf0]  ;;  %v9111_v56 = vld [vmem:[%s13660_s15 + $0xa8] sm:$0xf] }
 0x74b   :  { %6391 = vmatpush.bf16.msrb.mxu2 %v9140_v20 }
 0x74d   :  { %v6008_v8 = vpop.permute.xlu1 %6007 }
 0x74e   :  { %v6023_v50 = vsel %vm6019_vm11, %v5990_v10, %v6008_v8  ;;  %v6010_v48 = vpop.permute.xlu0 %6009  ;;  %v9655_v10 = vld [vmem:[%s13660_s15 + $0xec] sm:$0xf0] }
 0x74f   :  { %v6029_v5 = vmax.f32 %v5974_v25, %v6023_v50  ;;  %v6024_v15 = vsel %vm6019_vm11, %v5992_v63, %v6010_v48  ;;  %v9136_v8 = vor.u32 %v9655_v10, %v9135_v17  ;;  %v6884_v50 = vmul.f32 %v12884_v22, %v12884_v22  ;;  %v9648_v17 = vld [vmem:[%s13660_s15 + $0xb4] sm:$0xf0] }
 0x750   :  { %v6030_v45 = vmax.f32 %v5975_v28, %v6024_v15  ;;  %v6780_v63 = vmul.f32 %v12927_v55, %v12927_v55  ;;  %v9112_v10 = vor.u32 %v9648_v17, %v9111_v56 }
 0x751   :  { %9018 = vmatmul.msk.f32.gmra.mxu0 %vm980_vm6, %v6029_v5  ;;  %v6781_v5 = vmul.f32 %v12931_v24, %v12931_v24  ;;  %6378 = vmatpush.bf16.msra.mxu1 %v9136_v8  ;;  %v6894_v48 = vsel %vm5939_vm10, %v6884_v50, 0.0  ;;  %v9039_v8 = vld [vmem:[%s13660_s15 + $0x20] sm:$0xf]  ;;  %v9631_v50 = vld [vmem:[%s13660_s15 + $0x2c] sm:$0xf0] }
 0x753   :  { %v6789_v15 = vsel %vm5939_vm10, %v6781_v5, 0.0  ;;  %v9095_v5 = vld [vmem:[%s13660_s15 + $0x88] sm:$0xf] }
 0x755   :  { %v5994_v54 = vpop.permute.xlu1 %5993 }
 0x756   :  { %v6025_v16 = vsel %vm6019_vm11, %v5994_v54, %v6012_v27  ;;  %v9649_v54 = vld [vmem:[%s13660_s15 + $0xc4] sm:$0xf]  ;;  %v9121_v27 = vld [vmem:[%s13660_s15 + $0xd0] sm:$0xf0] }
 0x757   :  { %v6031_v58 = vmax.f32 %v5976_v2, %v6025_v16  ;;  %v9119_v16 = vld [vmem:[%s13660_s15 + $0xc0] sm:$0xf] }
 0x759   :  { %9019 = vmatmul.msk.f32.gmra.mxu0 %vm980_vm6, %v6030_v45  ;;  %v6786_v45 = vsel %vm5939_vm10, %v6780_v63, 0.0  ;;  %v9040_v63 = vor.u32 %v9631_v50, %v9039_v8  ;;  %v9630_v8 = vld [vmem:[%s13660_s15 + $0x2c] sm:$0xf]  ;;  %v9049_v50 = vld [vmem:[%s13660_s15 + $0x38] sm:$0xf0] }
 0x761   :  { %9020 = vmatmul.msk.f32.gmra.mxu0 %vm980_vm6, %v6031_v58  ;;  %v9124_v58 = vor.u32 %v9649_v54, %v9121_v27  ;;  %v9633_v54 = vld [vmem:[%s13660_s15 + $0x44] sm:$0xf]  ;;  %v9057_v27 = vld [vmem:[%s13660_s15 + $0x50] sm:$0xf0] }
 0x763   :  { %6392 = vmatpush.bf16.msrb.mxu2 %v9124_v58  ;;  %v9060_v58 = vor.u32 %v9633_v54, %v9057_v27 }
 0x7b6   :  { %v6071_v31 = vpop.f32.mrf.mxu0 }
 0x7b7   :  { %v6090_v13 = vrot.slane %v6071_v31, 2  ;;  %v6098_v23 = vrot.slane %v6071_v31, 4  ;;  %v6109_v1 = vrot.slane %v6071_v31, 6  ;;  %v9651_v31 = vld [vmem:[%s13660_s15 + $0xcc] sm:$0xf0] }
 0x7be   :  { %v6074_v52 = vpop.f32.mrf.mxu0 }
 0x7bf   :  { %v6131_v30 = vrot.slane %v6074_v52, 2  ;;  %v6142_v36 = vrot.slane %v6074_v52, 4  ;;  %v6153_v61 = vrot.slane %v6074_v52, 6 }
 0x7c6   :  { %v6077_v35 = vpop.f32.mrf.mxu0 }
 0x7ce   :  { %v6080_v29 = vpop.f32.mrf.mxu0 }
 0x7cf   :  { %v6093_v51 = vrot.slane %v6080_v29, 1  ;;  %v6100_v7 = vrot.slane %v6080_v29, 3  ;;  %v6111_v21 = vrot.slane %v6080_v29, 5  ;;  %v9120_v29 = vor.u32 %v9651_v31, %v9119_v16  ;;  %v9023_v16 = vld [vmem:[%s13660_s15] sm:$0xf] }
 0x7d0   :  { %v9627_v31 = vld [vmem:[%s13660_s15 + $0xc] sm:$0xf0] }
 0x7d1   :  { %v6095_v62 = vsel %vm408_vm2, %v6090_v13, %v6093_v51  ;;  %v6113_v49 = vsel %vm408_vm2, %v6109_v1, %v6111_v21  ;;  %v6102_v18 = vsel %vm408_vm2, %v6098_v23, %v6100_v7  ;;  %v6882_v13 = vmul.f32 %v12850_v9, %v12850_v9  ;;  %v9645_v1 = vld [vmem:[%s13660_s15 + $0xa4] sm:$0xf]  ;;  %v9105_v51 = vld [vmem:[%s13660_s15 + $0xb0] sm:$0xf0]  ;;  %6379 = vmatpush.bf16.msra.mxu1 %v9120_v29  ;;  %v9654_v29 = vld [vmem:[%s13660_s15 + $0xec] sm:$0xf] }
 0x7d2   :  { %6115 = vrot.lane.b32.xlu1 %v6113_v49, %s9845_s14  ;;  %6104 = vrot.lane.b32.xlu0 %v6102_v18, %s9842_s13  ;;  %6097 = vst.msk [vmem:[#allocation2] sm:$0x3] %vm6096_vm12, %v6095_v62  ;;  %v6784_v23 = vmul.f32 %v12957_v39, %v12957_v39  ;;  %v6783_v7 = vmul.f32 %v12964_v33, %v12964_v33 }
 0x7d3   :  { %v9108_v62 = vor.u32 %v9645_v1, %v9105_v51  ;;  %v6888_v49 = vsel %vm5939_vm10, %v6882_v13, 0.0  ;;  %v9024_v13 = vor.u32 %v9627_v31, %v9023_v16  ;;  %v9145_v1 = vld [vmem:[%s13660_s15 + $0xf8] sm:$0xf0]  ;;  %v9629_v51 = vld [vmem:[%s13660_s15 + $0x24] sm:$0xf] }
 0x7d4   :  { %v6798_v18 = vsel %vm5939_vm10, %v6784_v23, 0.0 }
 0x7d5   :  { %6393 = vmatpush.bf16.msrb.mxu2 %v9108_v62  ;;  %v9063_v62 = vld [vmem:[%s13660_s15 + $0x48] sm:$0xf] }
 0x7d6   :  { %v6083_v12 = vpop.f32.mrf.mxu0 }
 0x7d7   :  { %v6121_v34 = vrot.slane %v6083_v12, 7  ;;  %v6133_v19 = vrot.slane %v6083_v12, 1  ;;  %v6144_v43 = vrot.slane %v6083_v12, 3  ;;  %v6155_v46 = vrot.slane %v6083_v12, 5  ;;  %v9087_v12 = vld [vmem:[%s13660_s15 + $0x80] sm:$0xf] }
 0x7d9   :  { %v6146_v41 = vsel %vm408_vm2, %v6142_v36, %v6144_v43  ;;  %v6135_v25 = vsel %vm408_vm2, %v6131_v30, %v6133_v19  ;;  %v6123_v26 = vsel %vm408_vm2, %v6074_v52, %v6121_v34  ;;  %v6157_v42 = vsel %vm408_vm2, %v6153_v61, %v6155_v46  ;;  %v9103_v52 = vld [vmem:[%s13660_s15 + $0xa0] sm:$0xf]  ;;  %v9643_v36 = vld [vmem:[%s13660_s15 + $0x8c] sm:$0xf0]  ;;  %v9143_v34 = vld [vmem:[%s13660_s15 + $0xe8] sm:$0xf] }
 0x7da   :  { %6148 = vrot.lane.b32.xlu1 %v6146_v41, %s9846_s29  ;;  %6137 = vrot.lane.b32.xlu0 %v6135_v25, %s9847_s24  ;;  %v6795_v30 = vsel %vm5939_vm10, %v6783_v7, 0.0  ;;  %v9088_v19 = vor.u32 %v9643_v36, %v9087_v12  ;;  %v9656_v43 = vld [vmem:[%s13660_s15 + $0xf4] sm:$0xf0]  ;;  %v9641_v41 = vld [vmem:[%s13660_s15 + $0x84] sm:$0xf]  ;;  %v9148_v7 = vor.u32 %v9654_v29, %v9145_v1  ;;  %s13787_s24 = sld [smem:[#allocation29_spill]] }
 0x7db   :  { %6125 = vrot.lane.b32.xlu2 %v6123_v26, %s9848_s0  ;;  %v9089_v25 = vld [vmem:[%s13660_s15 + $0x90] sm:$0xf0]  ;;  %v6782_v26 = vmul.f32 %v12941_v60, %v12941_v60  ;;  %v9144_v46 = vor.u32 %v9656_v43, %v9143_v34  ;;  %v9639_v61 = vld [vmem:[%s13660_s15 + $0x6c] sm:$0xf0]  ;;  %v9650_v12 = vld [vmem:[%s13660_s15 + $0xcc] sm:$0xf] }
 0x7dc   :  { %v9129_v36 = vld [vmem:[%s13660_s15 + $0xd8] sm:$0xf0]  ;;  %v9632_v43 = vld [vmem:[%s13660_s15 + $0x34] sm:$0xf0]  ;;  %v9669_v29 = vld [vmem:[%s13662_s17 + $0x60] sm:$0xff] }
 0x7dd   :  { %6404 = vmatpush.bf16.msra.mxu3 %v9144_v46  ;;  %v6792_v14 = vsel %vm5939_vm10, %v6782_v26, 0.0  ;;  %v9132_v34 = vor.u32 %v9650_v12, %v9129_v36  ;;  %v9113_v26 = vld [vmem:[%s13660_s15 + $0xb8] sm:$0xf0]  ;;  %v9625_v46 = vld [vmem:[%s13660_s15 + $0x4] sm:$0xf]  ;;  %v9667_v12 = vld [vmem:[%s13662_s17 + $0x50] sm:$0xff] }
 0x7de   :  { %v6086_v59 = vpop.f32.mrf.mxu0 }
 0x7df   :  { %v6165_v28 = vrot.slane %v6086_v59, 7  ;;  %v9092_v59 = vor.u32 %v9641_v41, %v9089_v25  ;;  %v9646_v41 = vld [vmem:[%s13660_s15 + $0xac] sm:$0xf] }
 0x7e1   :  { %v6167_v2 = vsel %vm408_vm2, %v6077_v35, %v6165_v28  ;;  %v9647_v35 = vld [vmem:[%s13660_s15 + $0xac] sm:$0xf0]  ;;  %v9071_v28 = vld [vmem:[%s13660_s15 + $0x60] sm:$0xf]  ;;  %6394 = vmatpush.bf16.msrb.mxu2 %v9092_v59  ;;  %v9025_v59 = vld [vmem:[%s13660_s15 + $0x10] sm:$0xf0] }
 0x7e2   :  { %6169 = vrot.lane.b32.xlu0 %v6167_v2, %s9849_s4  ;;  %v9104_v21 = vor.u32 %v9647_v35, %v9103_v52  ;;  %v9127_v2 = vld [vmem:[%s13660_s15 + $0xc8] sm:$0xf]  ;;  %v9072_v47 = vor.u32 %v9639_v61, %v9071_v28  ;;  %v9640_v35 = vld [vmem:[%s13660_s15 + $0x74] sm:$0xf0]  ;;  %v9116_v28 = vor.u32 %v9646_v41, %v9113_v26  ;;  %v9028_v61 = vor.u32 %v9625_v46, %v9025_v59 }
 0x7e3   :  { %6159 = vrot.lane.b32.xlu2 %v6157_v42, %s9850_s30  ;;  %v9652_v42 = vld [vmem:[%s13660_s15 + $0xd4] sm:$0xf0]  ;;  %v9079_v52 = vld [vmem:[%s13660_s15 + $0x68] sm:$0xf]  ;;  %vm6162_vm2 = vcmask 911104  }
 0x7e4   :  { %6380 = vmatpush.bf16.msra.mxu1 %v9104_v21  ;;  %v9080_v23 = vor.u32 %v9640_v35, %v9079_v52  ;;  %v9041_v21 = vld [vmem:[%s13660_s15 + $0x30] sm:$0xf0]  ;;  %v9672_v52 = vld [vmem:[%s13662_s17 + $0x78] sm:$0xff] }
 0x7e5   :  { %v9671_v35 = vld [vmem:[%s13662_s17 + $0x70] sm:$0xff] }
 0x7e8   :  { %6381 = vmatpush.bf16.msra.mxu1 %v9088_v19  ;;  %v9047_v19 = vld [vmem:[%s13660_s15 + $0x28] sm:$0xf] }
 0x7e9   :  { %v9048_v25 = vor.u32 %v9632_v43, %v9047_v19 }
 0x7ec   :  { %6382 = vmatpush.bf16.msra.mxu1 %v9072_v47  ;;  %v9642_v47 = vld [vmem:[%s13660_s15 + $0x8c] sm:$0xf] }
 0x804   :  { %6904 = vadd.xlane.f32.xlu1 %v6903_v44  ;;  %v9128_v44 = vor.u32 %v9652_v42, %v9127_v2  ;;  %v9031_v2 = vld [vmem:[%s13660_s15 + $0x8] sm:$0xf]  ;;  %v9628_v42 = vld [vmem:[%s13660_s15 + $0x14] sm:$0xf0] }
 0x806   :  { %6405 = vmatpush.bf16.msra.mxu3 %v9128_v44  ;;  %v9097_v44 = vld [vmem:[%s13660_s15 + $0x98] sm:$0xf0] }
 0x80a   :  { %6406 = vmatpush.bf16.msra.mxu3 %v9112_v10 }
 0x80c   :  { %6901 = vadd.xlane.f32.xlu2 %v6900_v53  ;;  %6892 = vadd.xlane.f32.xlu1 %v6891_v6  ;;  %v9637_v53 = vld [vmem:[%s13660_s15 + $0x64] sm:$0xf]  ;;  %v6785_v6 = vmul.f32 %v12967_v11, %v12967_v11 }
 0x80d   :  { %6898 = vadd.xlane.f32.xlu0 %v6897_v32  ;;  %v9056_v32 = vor.u32 %v9635_v4, %v9055_v40  ;;  %v9076_v20 = vor.u32 %v9637_v53, %v9073_v57  ;;  %v9100_v40 = vor.u32 %v9642_v47, %v9097_v44  ;;  %v9638_v4 = vld [vmem:[%s13660_s15 + $0x6c] sm:$0xf]  ;;  %v9081_v53 = vld [vmem:[%s13660_s15 + $0x78] sm:$0xf0]  ;;  %v9665_v47 = vld [vmem:[%s13662_s17 + $0x40] sm:$0xff] }
 0x80e   :  { %v9065_v57 = vld [vmem:[%s13660_s15 + $0x58] sm:$0xf0] }
 0x80f   :  { %6383 = vmatpush.bf16.msra.mxu1 %v9056_v32  ;;  %6395 = vmatpush.bf16.msrb.mxu2 %v9076_v20  ;;  %v9084_v32 = vor.u32 %v9638_v4, %v9081_v53 }
 0x813   :  { %6384 = vmatpush.bf16.msra.mxu1 %v9040_v63  ;;  %6396 = vmatpush.bf16.msrb.mxu2 %v9060_v58  ;;  %v9626_v63 = vld [vmem:[%s13660_s15 + $0xc] sm:$0xf] }
 0x814   :  { %6895 = vadd.xlane.f32.xlu2 %v6894_v48  ;;  %6790 = vadd.xlane.f32.xlu1 %v6789_v15  ;;  %v9644_v48 = vld [vmem:[%s13660_s15 + $0x94] sm:$0xf0] }
 0x815   :  { %6787 = vadd.xlane.f32.xlu0 %v6786_v45  ;;  %v9096_v15 = vor.u32 %v9644_v48, %v9095_v5  ;;  %v6801_v45 = vsel %vm5939_vm10, %v6785_v6, 0.0  ;;  %v9634_v6 = vld [vmem:[%s13660_s15 + $0x4c] sm:$0xf]  ;;  %v9052_v5 = vor.u32 %v9630_v8, %v9049_v50  ;;  %v9033_v48 = vld [vmem:[%s13660_s15 + $0x18] sm:$0xf0] }
 0x816   :  { %v9068_v17 = vor.u32 %v9634_v6, %v9065_v57 }
 0x817   :  { %6407 = vmatpush.bf16.msra.mxu3 %v9096_v15  ;;  %6385 = vmatpush.bf16.msra.mxu1 %v9024_v13  ;;  %v9036_v15 = vor.u32 %v9626_v63, %v9033_v48  ;;  %v9670_v13 = vld [vmem:[%s13662_s17 + $0x68] sm:$0xff] }
 0x81b   :  { %6408 = vmatpush.bf16.msra.mxu3 %v9080_v23  ;;  %6417 = vmatpush.bf16.msrb.mxu1 %v9148_v7 }
 0x81c   :  { %6889 = vadd.xlane.f32.xlu2 %v6888_v49  ;;  %6799 = vadd.xlane.f32.xlu1 %v6798_v18  ;;  %v9636_v49 = vld [vmem:[%s13660_s15 + $0x54] sm:$0xf0]  ;;  %v9044_v18 = vor.u32 %v9629_v51, %v9041_v21 }
 0x81d   :  { %6796 = vadd.xlane.f32.xlu0 %v6795_v30  ;;  %v9064_v30 = vor.u32 %v9636_v49, %v9063_v62  ;;  %v9668_v62 = vld [vmem:[%s13662_s17 + $0x58] sm:$0xff] }
 0x81e   :  { %6397 = vmatpush.bf16.msrb.mxu2 %v9044_v18 }
 0x81f   :  { %6409 = vmatpush.bf16.msra.mxu3 %v9064_v30  ;;  %6418 = vmatpush.bf16.msrb.mxu1 %v9132_v34 }
 0x822   :  { %6398 = vmatpush.bf16.msrb.mxu2 %v9028_v61 }
 0x823   :  { %6410 = vmatpush.bf16.msra.mxu3 %v9048_v25  ;;  %6419 = vmatpush.bf16.msrb.mxu1 %v9116_v28  ;;  %v9666_v25 = vld [vmem:[%s13662_s17 + $0x48] sm:$0xff] }
 0x824   :  { %6793 = vadd.xlane.f32.xlu2 %v6792_v14  ;;  %v9032_v14 = vor.u32 %v9628_v42, %v9031_v2 }
 0x827   :  { %6411 = vmatpush.bf16.msra.mxu3 %v9032_v14  ;;  %6420 = vmatpush.bf16.msrb.mxu1 %v9100_v40 }
 0x82b   :  { %6421 = vmatpush.bf16.msrb.mxu1 %v9084_v32  ;;  %6711 = vmatpush.bf16.msrb.mxu3 %v9672_v52 }
 0x82c   :  { %6802 = vadd.xlane.f32.xlu2 %v6801_v45 }
 0x82f   :  { %6422 = vmatpush.bf16.msrb.mxu1 %v9068_v17  ;;  %6712 = vmatpush.bf16.msrb.mxu3 %v9671_v35 }
 0x833   :  { %6423 = vmatpush.bf16.msrb.mxu1 %v9052_v5  ;;  %6713 = vmatpush.bf16.msrb.mxu3 %v9670_v13 }
 0x835   :  { %v6126_v56 = vpop.permute.xlu2 %6125 }
 0x837   :  { %6424 = vmatpush.bf16.msrb.mxu1 %v9036_v15  ;;  %6714 = vmatpush.bf16.msrb.mxu3 %v9669_v29 }
 0x83b   :  { %6715 = vmatpush.bf16.msrb.mxu3 %v9668_v62 }
 0x83d   :  { %v6160_v27 = vpop.permute.xlu2 %6159 }
 0x83f   :  { %6716 = vmatpush.bf16.msrb.mxu3 %v9667_v12 }
 0x843   :  { %6717 = vmatpush.bf16.msrb.mxu3 %v9666_v25 }
 0x844   :  { %v6116_v20 = vpop.permute.xlu1 %6115  ;;  %v6105_v10 = vpop.permute.xlu0 %6104 }
 0x845   :  { %6108 = vst.msk [vmem:[#allocation2] sm:$0x3] %vm6107_vm13, %v6105_v10 }
 0x846   :  { %6119 = vst.msk [vmem:[#allocation2] sm:$0x3] %vm6118_vm14, %v6116_v20 }
 0x847   :  { %6129 = vst.msk [vmem:[#allocation2] sm:$0x3] %vm6128_vm15, %v6126_v56  ;;  %6718 = vmatpush.bf16.msrb.mxu3 %v9665_v47 }
 0x84c   :  { %v6149_v45 = vpop.permute.xlu1 %6148  ;;  %v6138_v54 = vpop.permute.xlu0 %6137 }
 0x84d   :  { %6141 = vst.msk [vmem:[#allocation2] sm:$0x3] %vm6140_vm0, %v6138_v54 }
 0x84e   :  { %6152 = vst.msk [vmem:[#allocation2] sm:$0x3] %vm6151_vm1, %v6149_v45 }
 0x84f   :  { %6163 = vst.msk [vmem:[#allocation2] sm:$0x3] %vm6162_vm2, %v6160_v27 }
 0x854   :  { %v6170_v16 = vpop.permute.xlu0 %6169 }
 0x855   :  { %6173 = vst.msk [vmem:[#allocation2] sm:$0x3] %vm6172_vm3, %v6170_v16 }
 0x85c   :  { %v6174_v58 = vld [vmem:[#allocation2] sm:$0x3] }
 0x85d   :  { %v6175_v31 = vpack.c.bf16 %v6174_v58, %v6174_v58 }
 0x85f   :  { %6386 = vmatmul.bf16.vlgmr.msra.gmra.mxu1 %v6175_v31  ;;  %6399 = vmatmul.bf16.vlgmr.msrb.gmra.mxu2 %v6175_v31 }
 0x860   :  { %6412 = vmatmul.bf16.vlgmr.msra.gmra.mxu3 %v6175_v31 }
 0x86f   :  { %6425 = vmatmul.bf16.vlgmr.msrb.gmra.mxu1 %v6175_v31 }
 0x877   :  { %v6905_v23 = vpop.xlane.xlu1 %6904 }
 0x878   :  { %9712 = vrsqrt.f32 %v6905_v23  ;;  %vm6973_vm4 = vcmp.eq.f32.partialorder %v6905_v23, inf  ;;  %v6976_v10 = vand.u32 2147483648, %v6905_v23  ;;  %vm6975_vm5 = vcmp.eq.f32.partialorder %v6905_v23, 0.0 }
 0x87e   :  { %v9713_v1 = vpop.eup %9712 }
 0x87f   :  { %v6967_v51 = vmul.f32 %v9713_v1, %v6905_v23  ;;  %v6902_v7 = vpop.xlane.xlu2 %6901  ;;  %v13249_v21 = vpop.xlane.xlu1 %6892 }
 0x880   :  { %9714 = vrsqrt.f32 %v6902_v7  ;;  %v13254_v49 = vpop.xlane.xlu0 %6898  ;;  %vm6961_vm6 = vcmp.eq.f32.partialorder %v6902_v7, inf  ;;  %v6964_v16 = vand.u32 2147483648, %v6902_v7  ;;  %vm6963_vm7 = vcmp.eq.f32.partialorder %v6902_v7, 0.0 }
 0x881   :  { %v6968_v18 = vmul.f32 %v9713_v1, %v6967_v51  ;;  %9716 = vrsqrt.f32 %v13249_v21  ;;  %vm6949_vm8 = vcmp.eq.f32.partialorder %v13254_v49, inf  ;;  %vm6951_vm9 = vcmp.eq.f32.partialorder %v13254_v49, 0.0 }
 0x882   :  { %9718 = vrsqrt.f32 %v13254_v49  ;;  %vm6925_vm12 = vcmp.eq.f32.partialorder %v13249_v21, inf  ;;  %vm6927_vm14 = vcmp.eq.f32.partialorder %v13249_v21, 0.0 }
 0x883   :  { %v6969_v30 = vmul.f32 0.5, %v6968_v18 }
 0x885   :  { %v6970_v36 = vsub.f32 1.5, %v6969_v30 }
 0x886   :  { %v9715_v34 = vpop.eup %9714 }
 0x887   :  { %v9717_v19 = vpop.eup %9716  ;;  %v6955_v43 = vmul.f32 %v9715_v34, %v6902_v7  ;;  %v13261_v41 = vpop.xlane.xlu2 %6895  ;;  %v6971_v46 = vmul.f32 %v9713_v1, %v6970_v36 }
 0x888   :  { %v9719_v26 = vpop.eup %9718  ;;  %9720 = vrsqrt.f32 %v13261_v41  ;;  %v6919_v2 = vmul.f32 %v9717_v19, %v13249_v21  ;;  %vm6937_vm11 = vcmp.eq.f32.partialorder %v13261_v41, inf  ;;  %v6940_v25 = vand.u32 2147483648, %v13261_v41 }
 0x889   :  { %v6956_v59 = vmul.f32 %v9715_v34, %v6955_v43  ;;  %v6943_v28 = vmul.f32 %v9719_v26, %v13254_v49  ;;  %v6972_v44 = vmul.f32 %v6971_v46, %v6905_v23  ;;  %vm6939_vm13 = vcmp.eq.f32.partialorder %v13261_v41, 0.0 }
 0x88a   :  { %v6920_v6 = vmul.f32 %v9717_v19, %v6919_v2 }
 0x88b   :  { %v6957_v61 = vmul.f32 0.5, %v6956_v59  ;;  %v6944_v42 = vmul.f32 %v9719_v26, %v6943_v28  ;;  %v6974_v56 = vsel %vm6973_vm4, %v6905_v23, %v6972_v44 }
 0x88c   :  { %v6921_v50 = vmul.f32 0.5, %v6920_v6  ;;  %v6977_v63 = vsel %vm6975_vm5, %v6976_v10, %v6974_v56  ;;  %v9664_v6 = vld [vmem:[%s13662_s17 + $0x38] sm:$0xff]  ;;  %v13320_v56 = vpop.xlane.xlu1 %6790 }
 0x88d   :  { %v6958_v14 = vsub.f32 1.5, %v6957_v61  ;;  %v6945_v40 = vmul.f32 0.5, %v6944_v42  ;;  %v13276_v27 = vmax.f32 %v6977_v63, 1e-08  ;;  %v6928_v61 = vand.u32 2147483648, %v13249_v21  ;;  %6698 = vmatpush.bf16.msra.mxu2 %v9664_v6 }
 0x88e   :  { %v9721_v4 = vpop.eup %9720  ;;  %v6922_v58 = vsub.f32 1.5, %v6921_v50  ;;  %v9663_v50 = vld [vmem:[%s13662_s17 + $0x30] sm:$0xff] }
 0x88f   :  { %v6959_v53 = vmul.f32 %v9715_v34, %v6958_v14  ;;  %v6931_v32 = vmul.f32 %v9721_v4, %v13261_v41  ;;  %v13273_v57 = vpop.xlane.xlu2 %6889  ;;  %v6946_v17 = vsub.f32 1.5, %v6945_v40  ;;  %vm7154_vm2 = vweird.f32 %v13276_v27 }
 0x890   :  { %9722 = vrsqrt.f32 %v13273_v57  ;;  %v6923_v29 = vmul.f32 %v9717_v19, %v6922_v58  ;;  %vm6913_vm15 = vcmp.eq.f32.partialorder %v13273_v57, inf  ;;  %v6916_v40 = vand.u32 2147483648, %v13273_v57 }
 0x891   :  { %v6932_v20 = vmul.f32 %v9721_v4, %v6931_v32  ;;  %v6960_v8 = vmul.f32 %v6959_v53, %v6902_v7  ;;  %v6947_v48 = vmul.f32 %v9719_v26, %v6946_v17  ;;  %9724 = vrcp.f32 %v13276_v27  ;;  %v13295_v26 = vpop.xlane.xlu0 %6787  ;;  %6699 = vmatpush.bf16.msra.mxu2 %v9663_v50 }
 0x892   :  { %v6924_v12 = vmul.f32 %v6923_v29, %v13249_v21  ;;  %v7160_v53 = vand.u32 2147483648, %v13276_v27  ;;  %vm6915_vm1 = vcmp.eq.f32.partialorder %v13273_v57, 0.0 }
 0x893   :  { %v6933_v5 = vmul.f32 0.5, %v6932_v20  ;;  %v6962_v54 = vsel %vm6961_vm6, %v6902_v7, %v6960_v8  ;;  %v6948_v13 = vmul.f32 %v6947_v48, %v13254_v49  ;;  %v6952_v7 = vand.u32 2147483648, %v13254_v49  ;;  %v9680_v20 = vld [vmem:[%s13662_s17 + $0xb8] sm:$0xff]  ;;  %v9679_v48 = vld [vmem:[%s13662_s17 + $0xb0] sm:$0xff] }
 0x894   :  { %v6965_v35 = vsel %vm6963_vm7, %v6964_v16, %v6962_v54  ;;  %v6926_v46 = vsel %vm6925_vm12, %v13249_v21, %v6924_v12  ;;  %v7158_v21 = vand.u32 2147483647, %v13276_v27  ;;  %6724 = vmatpush.bf16.msrb.mxu0 %v9680_v20 }
 0x895   :  { %v6934_v15 = vsub.f32 1.5, %v6933_v5  ;;  %v13281_v51 = vmax.f32 %v6965_v35, 1e-08  ;;  %v6950_v18 = vsel %vm6949_vm8, %v13254_v49, %v6948_v13  ;;  %v9662_v13 = vld [vmem:[%s13662_s17 + $0x28] sm:$0xff] }
 0x896   :  { %v9723_v45 = vpop.eup %9722  ;;  %v6953_v34 = vsel %vm6951_vm9, %v6952_v7, %v6950_v18  ;;  %vm7159_vm4 = vcmp.eq.f32.partialorder %v7158_v21, 8.507059e+37  ;;  %6700 = vmatpush.bf16.msra.mxu2 %v9662_v13  ;;  %v9660_v21 = vld [vmem:[%s13662_s17 + $0x18] sm:$0xff] }
 0x897   :  { %v6907_v31 = vmul.f32 %v9723_v45, %v13273_v57  ;;  %v6935_v52 = vmul.f32 %v9721_v4, %v6934_v15  ;;  %9726 = vrcp.f32 %v13281_v51  ;;  %v9725_v43 = vpop.eup %9724  ;;  %v13298_v49 = vmax.f32 %v6953_v34, 1e-08  ;;  %v9688_v15 = vld [vmem:[%s13662_s17 + $0xf8] sm:$0xff] }
 0x898   :  { %v7150_v2 = vmul.f32 %v9725_v43, %v13276_v27  ;;  %9728 = vrsqrt.f32 %v13295_v26  ;;  %vm7155_vm0 = vweird.f32 %v9725_v43  ;;  %6737 = vmatpush.bf16.msra.mxu1 %v9688_v15  ;;  %vm7139_vm6 = vweird.f32 %v13281_v51  ;;  %6725 = vmatpush.bf16.msrb.mxu0 %v9679_v48 }
 0x899   :  { %v6908_v23 = vmul.f32 %v9723_v45, %v6907_v31  ;;  %v6936_v62 = vmul.f32 %v6935_v52, %v13261_v41  ;;  %9730 = vrcp.f32 %v13298_v49  ;;  %vm7156_vm3 = vmor %vm7154_vm2, %vm7155_vm0  ;;  %v9687_v31 = vld [vmem:[%s13662_s17 + $0xf0] sm:$0xff]  ;;  %v7143_v29 = vand.u32 2147483647, %v13281_v51 }
 0x89a   :  { %v7151_v44 = vsub.f32 1.0, %v7150_v2 }
 0x89b   :  { %v6909_v1 = vmul.f32 0.5, %v6908_v23  ;;  %v6938_v19 = vsel %vm6937_vm11, %v13261_v41, %v6936_v62  ;;  %v6929_v41 = vsel %vm6927_vm14, %v6928_v61, %v6926_v46  ;;  %v9678_v62 = vld [vmem:[%s13662_s17 + $0xa8] sm:$0xff]  ;;  %vm7144_vm8 = vcmp.eq.f32.partialorder %v7143_v29, 8.507059e+37 }
 0x89c   :  { %v6941_v59 = vsel %vm6939_vm13, %v6940_v25, %v6938_v19  ;;  %v7152_v4 = vmul.f32 %v9725_v43, %v7151_v44  ;;  %v13318_v32 = vmax.f32 %v6929_v41, 1e-08  ;;  %6738 = vmatpush.bf16.msra.mxu1 %v9687_v31  ;;  %v9661_v19 = vld [vmem:[%s13662_s17 + $0x20] sm:$0xff]  ;;  %v7130_v25 = vand.u32 2147483648, %v13298_v49  ;;  %6726 = vmatpush.bf16.msrb.mxu0 %v9678_v62 }
 0x89d   :  { %v6910_v30 = vsub.f32 1.5, %v6909_v1  ;;  %v13305_v42 = vpop.eup %9726  ;;  %v13307_v47 = vmax.f32 %v6941_v59, 1e-08  ;;  %v7145_v1 = vand.u32 2147483648, %v13281_v51  ;;  %v9677_v59 = vld [vmem:[%s13662_s17 + $0xa0] sm:$0xff]  ;;  %vm7124_vm11 = vweird.f32 %v13298_v49  ;;  %6701 = vmatpush.bf16.msra.mxu2 %v9661_v19  ;;  %v13464_v19 = vpop.xlane.xlu0 %6796 }
 0x89e   :  { %v7135_v17 = vmul.f32 %v13305_v42, %v13281_v51  ;;  %v7153_v8 = vadd.f32 %v9725_v43, %v7152_v4  ;;  %v13333_v5 = vpop.eup %9728  ;;  %vm7140_vm5 = vweird.f32 %v13305_v42  ;;  %v7100_v15 = vand.u32 2147483648, %v13318_v32 }
 0x89f   :  { %v6911_v36 = vmul.f32 %v9723_v45, %v6910_v30  ;;  %9732 = vrcp.f32 %v13307_v47  ;;  %v13343_v54 = vpop.eup %9730  ;;  %v6805_v52 = vmul.f32 %v13333_v5, %v13295_v26  ;;  %vm13371_vm7 = vmor %vm7139_vm6, %vm7140_vm5  ;;  %v7115_v6 = vand.u32 2147483648, %v13307_v47 }
 0x8a0   :  { %v7136_v63 = vsub.f32 1.0, %v7135_v17  ;;  %9734 = vrsqrt.f32 %v13320_v56  ;;  %v7157_v45 = vsel %vm7156_vm3, %v9725_v43, %v7153_v8  ;;  %v7120_v30 = vmul.f32 %v13343_v54, %v13298_v49  ;;  %6727 = vmatpush.bf16.msrb.mxu0 %v9677_v59  ;;  %v9657_v59 = vld [vmem:[%s13662_s17] sm:$0xff] }
 0x8a1   :  { %v6912_v28 = vmul.f32 %v6911_v36, %v13273_v57  ;;  %9736 = vrcp.f32 %v13318_v32  ;;  %v6806_v12 = vmul.f32 %v13333_v5, %v6805_v52  ;;  %v7146_v36 = vor.u32 1.1754944e-38, %v7145_v1  ;;  %6702 = vmatpush.bf16.msra.mxu2 %v9660_v21  ;;  %v9673_v21 = vld [vmem:[%s13662_s17 + $0x80] sm:$0xff] }
 0x8a2   :  { %v7137_v58 = vmul.f32 %v13305_v42, %v7136_v63  ;;  %v7121_v34 = vsub.f32 1.0, %v7120_v30  ;;  %v7128_v43 = vand.u32 2147483647, %v13298_v49  ;;  %vm7125_vm9 = vweird.f32 %v13343_v54  ;;  %v9676_v49 = vld [vmem:[%s13662_s17 + $0x98] sm:$0xff] }
 0x8a3   :  { %v6914_v14 = vsel %vm6913_vm15, %v13273_v57, %v6912_v28  ;;  %v7161_v57 = vor.u32 1.1754944e-38, %v7160_v53  ;;  %v13401_v44 = vmul.f32 0.5, %v6806_v12  ;;  %vm7126_vm12 = vmor %vm7124_vm11, %vm7125_vm9  ;;  %v7113_v8 = vand.u32 2147483647, %v13307_v47  ;;  %v9658_v12 = vld [vmem:[%s13662_s17 + $0x8] sm:$0xff] }
 0x8a4   :  { %v6917_v10 = vsel %vm6915_vm1, %v6916_v40, %v6914_v14  ;;  %v7138_v23 = vadd.f32 %v13305_v42, %v7137_v58  ;;  %v7122_v2 = vmul.f32 %v13343_v54, %v7121_v34  ;;  %v13403_v14 = vpop.xlane.xlu2 %6793  ;;  %vm7129_vm13 = vcmp.eq.f32.partialorder %v7128_v43, 8.507059e+37  ;;  %6728 = vmatpush.bf16.msrb.mxu0 %v9676_v49 }
 0x8a5   :  { %v13345_v27 = vmax.f32 %v6917_v10, 1e-08  ;;  %v7162_v16 = vsel %vm7159_vm4, %v7161_v57, %v7157_v45  ;;  %v13366_v18 = vpop.eup %9732  ;;  %vm7109_vm15 = vweird.f32 %v13307_v47  ;;  %vm7114_vm2 = vcmp.eq.f32.partialorder %v7113_v8, 8.507059e+37 }
 0x8a6   :  { %v7163_v35 = vmul.f32 %v7162_v16, %v12917_v38  ;;  %v7142_v51 = vsel %vm13371_vm7, %v13305_v42, %v7138_v23  ;;  %v13381_v7 = vpop.eup %9734  ;;  %v7105_v46 = vmul.f32 %v13366_v18, %v13307_v47  ;;  %v7123_v40 = vadd.f32 %v13343_v54, %v7122_v2 }
 0x8a7   :  { %9738 = vrcp.f32 %v13345_v27  ;;  %v13394_v28 = vpop.eup %9736  ;;  %v7147_v61 = vsel %vm7144_vm8, %v7146_v36, %v7142_v51  ;;  %v6817_v42 = vmul.f32 %v13381_v7, %v13320_v56  ;;  %vm7110_vm14 = vweird.f32 %v13366_v18  ;;  %v9686_v36 = vld [vmem:[%s13662_s17 + $0xe8] sm:$0xff] }
 0x8a8   :  { %9278 = vmatpush.xpose.msk.msra.mxu3 %vm5939_vm10, %v7163_v35  ;;  %v7148_v41 = vmul.f32 %v7147_v61, %v12911_v0  ;;  %v7106_v4 = vsub.f32 1.0, %v7105_v46  ;;  %v7131_v0 = vor.u32 1.1754944e-38, %v7130_v25  ;;  %v7090_v17 = vmul.f32 %v13394_v28, %v13318_v32  ;;  %vm7111_vm0 = vmor %vm7109_vm15, %vm7110_vm14  ;;  %6739 = vmatpush.bf16.msra.mxu1 %v9686_v36 }
 0x8a9   :  { %v7127_v20 = vsel %vm7126_vm12, %v13343_v54, %v7123_v40  ;;  %9740 = vrsqrt.f32 %v13403_v14  ;;  %v9659_v54 = vld [vmem:[%s13662_s17 + $0x10] sm:$0xff]  ;;  %v7116_v16 = vor.u32 1.1754944e-38, %v7115_v6  ;;  %vm7095_vm1 = vweird.f32 %v13394_v28 }
 0x8aa   :  { %v7107_v10 = vmul.f32 %v13366_v18, %v7106_v4  ;;  %v7132_v50 = vsel %vm7129_vm13, %v7131_v0, %v7127_v20  ;;  %v7091_v57 = vsub.f32 1.0, %v7090_v17  ;;  %vm7094_vm3 = vweird.f32 %v13318_v32  ;;  %6703 = vmatpush.bf16.msra.mxu2 %v9659_v54  ;;  %v9683_v0 = vld [vmem:[%s13662_s17 + $0xd0] sm:$0xff] }
 0x8ab   :  { %v7133_v63 = vmul.f32 %v7132_v50, %v12902_v3  ;;  %v7098_v3 = vand.u32 2147483647, %v13318_v32  ;;  %v7085_v13 = vand.u32 2147483648, %v13345_v27  ;;  %vm7096_vm5 = vmor %vm7094_vm3, %vm7095_vm1  ;;  %v7101_v29 = vor.u32 1.1754944e-38, %v7100_v15 }
 0x8ac   :  { %9279 = vmatpush.xpose.msk.msra.mxu3 %vm5939_vm10, %v7148_v41  ;;  %v7108_v48 = vadd.f32 %v13366_v18, %v7107_v10  ;;  %v7092_v58 = vmul.f32 %v13394_v28, %v7091_v57  ;;  %v7083_v62 = vand.u32 2147483647, %v13345_v27  ;;  %vm7079_vm7 = vweird.f32 %v13345_v27  ;;  %v13480_v41 = vpop.xlane.xlu1 %6799  ;;  %v9682_v57 = vld [vmem:[%s13662_s17 + $0xc8] sm:$0xff]  ;;  %v13508_v15 = vpop.xlane.xlu2 %6802 }
 0x8ad   :  { %v13410_v53 = vpop.eup %9738  ;;  %vm7099_vm6 = vcmp.eq.f32.partialorder %v7098_v3, 8.507059e+37  ;;  %v7086_v51 = vor.u32 1.1754944e-38, %v7085_v13  ;;  %v6808_v34 = vsub.f32 1.5, %v13401_v44  ;;  %9742 = vrsqrt.f32 %v13464_v19  ;;  %v9674_v44 = vld [vmem:[%s13662_s17 + $0x88] sm:$0xff] }
 0x8ae   :  { %v7075_v45 = vmul.f32 %v13410_v53, %v13345_v27  ;;  %v7112_v47 = vsel %vm7111_vm0, %v13366_v18, %v7108_v48  ;;  %v7093_v35 = vadd.f32 %v13394_v28, %v7092_v58  ;;  %vm7080_vm4 = vweird.f32 %v13410_v53  ;;  %v9675_v27 = vld [vmem:[%s13662_s17 + $0x90] sm:$0xff]  ;;  %6704 = vmatpush.bf16.msra.mxu2 %v9658_v12 }
 0x8af   :  { %v7117_v52 = vsel %vm7114_vm2, %v7116_v16, %v7112_v47  ;;  %v13445_v18 = vpop.eup %9740  ;;  %vm7081_vm8 = vmor %vm7079_vm7, %vm7080_vm4  ;;  %vm7084_vm9 = vcmp.eq.f32.partialorder %v7083_v62, 8.507059e+37  ;;  %6729 = vmatpush.bf16.msrb.mxu0 %v9675_v27  ;;  %v6809_v2 = vmul.f32 %v13333_v5, %v6808_v34  ;;  %9744 = vrsqrt.f32 %v13480_v41  ;;  %v13523_v47 = vld [vmem:[%s13661_s16] sm:$0xf] }
 0x8b0   :  { %9280 = vmatpush.xpose.msk.msra.mxu3 %vm5939_vm10, %v7133_v63  ;;  %v7076_v31 = vsub.f32 1.0, %v7075_v45  ;;  %v7118_v23 = vmul.f32 %v7117_v52, %v12884_v22  ;;  %v7097_v32 = vsel %vm7096_vm5, %v13394_v28, %v7093_v35  ;;  %v6818_v22 = vmul.f32 %v13381_v7, %v6817_v42  ;;  %v9685_v28 = vld [vmem:[%s13662_s17 + $0xe0] sm:$0xff] }
 0x8b1   :  { %v7102_v38 = vsel %vm7099_vm6, %v7101_v29, %v7097_v32  ;;  %v6829_v42 = vmul.f32 %v13445_v18, %v13403_v14  ;;  %6740 = vmatpush.bf16.msra.mxu1 %v9685_v28  ;;  %v6810_v5 = vmul.f32 %v6809_v2, %v13295_v26  ;;  %vm6811_vm11 = vcmp.eq.f32.partialorder %v13295_v26, inf  ;;  %v9681_v45 = vld [vmem:[%s13662_s17 + $0xc0] sm:$0xff] }
 0x8b2   :  { %v7077_v1 = vmul.f32 %v13410_v53, %v7076_v31  ;;  %v7103_v43 = vmul.f32 %v7102_v38, %v12863_v37  ;;  %v6819_v37 = vmul.f32 0.5, %v6818_v22  ;;  %6705 = vmatpush.bf16.msra.mxu2 %v9657_v59  ;;  %v6814_v10 = vand.u32 2147483648, %v13295_v26 }
 0x8b3   :  { %v6830_v4 = vmul.f32 %v13445_v18, %v6829_v42  ;;  %6730 = vmatpush.bf16.msrb.mxu0 %v9674_v44  ;;  %v6812_v17 = vsel %vm6811_vm11, %v13295_v26, %v6810_v5  ;;  %vm6813_vm12 = vcmp.eq.f32.partialorder %v13295_v26, 0.0  ;;  %vm6823_vm13 = vcmp.eq.f32.partialorder %v13320_v56, inf }
 0x8b4   :  { %9281 = vmatpush.xpose.msk.msra.mxu3 %vm5939_vm10, %v7118_v23  ;;  %v7078_v30 = vadd.f32 %v13410_v53, %v7077_v1  ;;  %v6820_v40 = vsub.f32 1.5, %v6819_v37  ;;  %v6815_v50 = vsel %vm6813_vm12, %v6814_v10, %v6812_v17  ;;  %9746 = vrsqrt.f32 %v13508_v15 }
 0x8b5   :  { %v6831_v20 = vmul.f32 0.5, %v6830_v4  ;;  %v13513_v54 = vmax.f32 %v6815_v50, 1e-08  ;;  %v6826_v31 = vand.u32 2147483648, %v13320_v56  ;;  %vm6825_vm14 = vcmp.eq.f32.partialorder %v13320_v56, 0.0 }
 0x8b6   :  { %v7082_v25 = vsel %vm7081_vm8, %v13410_v53, %v7078_v30  ;;  %v9743_v53 = vpop.eup %9742  ;;  %v6821_v6 = vmul.f32 %v13381_v7, %v6820_v40  ;;  %v6210_v13 = vperm.slane %v13523_v47, 0  ;;  %vm6835_vm15 = vcmp.eq.f32.partialorder %v13403_v14, inf }
 0x8b7   :  { %v7087_v46 = vsel %vm7084_vm9, %v7086_v51, %v7082_v25  ;;  %v6841_v49 = vmul.f32 %v9743_v53, %v13464_v19  ;;  %6731 = vmatpush.bf16.msrb.mxu0 %v9673_v21  ;;  %v9745_v8 = vpop.eup %9744  ;;  %v6832_v48 = vsub.f32 1.5, %v6831_v20  ;;  %9748 = vrcp.f32 %v13513_v54 }
 0x8b8   :  { %9282 = vmatpush.xpose.msk.msra.mxu3 %vm5939_vm10, %v7103_v43  ;;  %v7088_v61 = vmul.f32 %v7087_v46, %v12850_v9  ;;  %v9684_v9 = vld [vmem:[%s13662_s17 + $0xd8] sm:$0xff]  ;;  %v6822_v63 = vmul.f32 %v6821_v6, %v13320_v56  ;;  %v6853_v26 = vmul.f32 %v9745_v8, %v13480_v41  ;;  %v6838_v12 = vand.u32 2147483648, %v13403_v14 }
 0x8b9   :  { %6741 = vmatpush.bf16.msra.mxu1 %v9684_v9  ;;  %v6842_v7 = vmul.f32 %v9743_v53, %v6841_v49  ;;  %v6833_v3 = vmul.f32 %v13445_v18, %v6832_v48  ;;  %v6211_v27 = vperm.slane %v13523_v47, 1  ;;  %vm6837_vm0 = vcmp.eq.f32.partialorder %v13403_v14, 0.0 }
 0x8ba   :  { %v6824_v16 = vsel %vm6823_vm13, %v13320_v56, %v6822_v63  ;;  %v6854_v52 = vmul.f32 %v9745_v8, %v6853_v26  ;;  %v9747_v1 = vpop.eup %9746  ;;  %v6212_v43 = vperm.slane %v13523_v47, 2  ;;  %vm6847_vm1 = vcmp.eq.f32.partialorder %v13464_v19, inf }
 0x8bb   :  { %v6843_v58 = vmul.f32 0.5, %v6842_v7  ;;  %v6827_v35 = vsel %vm6825_vm14, %v6826_v31, %v6824_v16  ;;  %v6834_v29 = vmul.f32 %v6833_v3, %v13403_v14  ;;  %v6865_v51 = vmul.f32 %v9747_v1, %v13508_v15 }
 0x8bc   :  { %9283 = vmatpush.xpose.msk.msra.mxu3 %vm5939_vm10, %v7088_v61  ;;  %v13530_v62 = vmax.f32 %v6827_v35, 1e-08  ;;  %v6855_v18 = vmul.f32 0.5, %v6854_v52  ;;  %v6850_v17 = vand.u32 2147483648, %v13464_v19  ;;  %vm6849_vm2 = vcmp.eq.f32.partialorder %v13464_v19, 0.0 }
 0x8bd   :  { %6742 = vmatpush.bf16.msra.mxu1 %v9683_v0  ;;  %v6844_v23 = vsub.f32 1.5, %v6843_v58  ;;  %v13533_v30 = vpop.eup %9748  ;;  %v6836_v22 = vsel %vm6835_vm15, %v13403_v14, %v6834_v29  ;;  %v6866_v61 = vmul.f32 %v9747_v1, %v6865_v51  ;;  %v6213_v50 = vperm.slane %v13523_v47, 3 }
 0x8be   :  { %9750 = vrcp.f32 %v13530_v62  ;;  %v6856_v34 = vsub.f32 1.5, %v6855_v18  ;;  %v6839_v25 = vsel %vm6837_vm0, %v6838_v12, %v6836_v22  ;;  %v6985_v59 = vmul.f32 %v13533_v30, %v13513_v54 }
 0x8bf   :  { %v6845_v56 = vmul.f32 %v9743_v53, %v6844_v23  ;;  %v13545_v9 = vmax.f32 %v6839_v25, 1e-08  ;;  %v6867_v0 = vmul.f32 0.5, %v6866_v61  ;;  %vm6859_vm3 = vcmp.eq.f32.partialorder %v13480_v41, inf }
 0x8c0   :  { %v6857_v44 = vmul.f32 %v9745_v8, %v6856_v34  ;;  %v6986_v4 = vsub.f32 1.0, %v6985_v59  ;;  %vm6990_vm4 = vweird.f32 %v13533_v30  ;;  %v6862_v52 = vand.u32 2147483648, %v13480_v41 }
 0x8c1   :  { %6743 = vmatpush.bf16.msra.mxu1 %v9682_v57  ;;  %v6846_v28 = vmul.f32 %v6845_v56, %v13464_v19  ;;  %9752 = vrcp.f32 %v13545_v9  ;;  %v6868_v7 = vsub.f32 1.5, %v6867_v0  ;;  %vm6861_vm5 = vcmp.eq.f32.partialorder %v13480_v41, 0.0 }
 0x8c2   :  { %v6858_v20 = vmul.f32 %v6857_v44, %v13480_v41  ;;  %v6987_v57 = vmul.f32 %v13533_v30, %v6986_v4  ;;  %vm6989_vm6 = vweird.f32 %v13513_v54  ;;  %v6993_v29 = vand.u32 2147483647, %v13513_v54 }
 0x8c3   :  { %v6848_v53 = vsel %vm6847_vm1, %v13464_v19, %v6846_v28  ;;  %v6869_v35 = vmul.f32 %v9747_v1, %v6868_v7  ;;  %vm6991_vm7 = vmor %vm6989_vm6, %vm6990_vm4  ;;  %vm6871_vm9 = vcmp.eq.f32.partialorder %v13508_v15, inf  ;;  %v6874_v25 = vand.u32 2147483648, %v13508_v15 }
 0x8c4   :  { %v13548_v21 = vpop.eup %9750  ;;  %v6851_v8 = vsel %vm6849_vm2, %v6850_v17, %v6848_v53  ;;  %v6860_v19 = vsel %vm6859_vm3, %v13480_v41, %v6858_v20  ;;  %v6988_v3 = vadd.f32 %v13533_v30, %v6987_v57  ;;  %vm6994_vm8 = vcmp.eq.f32.partialorder %v6993_v29, 8.507059e+37 }
 0x8c5   :  { %6744 = vmatpush.bf16.msra.mxu1 %v9681_v45  ;;  %v7000_v63 = vmul.f32 %v13548_v21, %v13530_v62  ;;  %v13561_v26 = vmax.f32 %v6851_v8, 1e-08  ;;  %v6863_v18 = vsel %vm6861_vm5, %v6862_v52, %v6860_v19  ;;  %v6870_v22 = vmul.f32 %v6869_v35, %v13508_v15 }
 0x8c6   :  { %v13578_v51 = vmax.f32 %v6863_v18, 1e-08  ;;  %vm7005_vm11 = vweird.f32 %v13548_v21  ;;  %vm7004_vm12 = vweird.f32 %v13530_v62  ;;  %v7008_v59 = vand.u32 2147483647, %v13530_v62 }
 0x8c7   :  { %v7001_v47 = vsub.f32 1.0, %v7000_v63  ;;  %v13565_v31 = vpop.eup %9752  ;;  %9754 = vrcp.f32 %v13561_v26  ;;  %v6872_v34 = vsel %vm6871_vm9, %v13508_v15, %v6870_v22  ;;  %vm6873_vm13 = vcmp.eq.f32.partialorder %v13508_v15, 0.0  ;;  %vm7006_vm14 = vmor %vm7004_vm12, %vm7005_vm11 }
 0x8c8   :  { %v7015_v1 = vmul.f32 %v13565_v31, %v13545_v9  ;;  %9756 = vrcp.f32 %v13578_v51  ;;  %v6875_v28 = vsel %vm6873_vm13, %v6874_v25, %v6872_v34  ;;  %vm7009_vm15 = vcmp.eq.f32.partialorder %v7008_v59, 8.507059e+37 }
 0x8c9   :  { %v7002_v56 = vmul.f32 %v13548_v21, %v7001_v47  ;;  %vm7020_vm0 = vweird.f32 %v13565_v31  ;;  %vm7019_vm1 = vweird.f32 %v13545_v9  ;;  %v7023_v4 = vand.u32 2147483647, %v13545_v9 }
 0x8ca   :  { %vm7021_vm2 = vmor %vm7019_vm1, %vm7020_vm0  ;;  %vm7034_vm5 = vweird.f32 %v13561_v26  ;;  %v7038_v8 = vand.u32 2147483647, %v13561_v26  ;;  %vm7049_vm9 = vweird.f32 %v13578_v51 }
 0x8cb   :  { %vm7024_vm3 = vcmp.eq.f32.partialorder %v7023_v4, 8.507059e+37 }
 0x8dc   :  { %v6387_v32 = vpop.f32.mrf.mxu1 }
 0x8dd   :  { %v6388_v38 = vadd.f32 %v6387_v32, %v6210_v13  ;;  %v6995_v13 = vand.u32 2147483648, %v13513_v54 }
 0x8df   :  { %v6430_v36 = vmax.f32 %v6388_v38, 0.0  ;;  %v6992_v38 = vsel %vm6991_vm7, %v13533_v30, %v6988_v3  ;;  %v6996_v41 = vor.u32 1.1754944e-38, %v6995_v13  ;;  %v7016_v30 = vsub.f32 1.0, %v7015_v1 }
 0x8e0   :  { %vm7039_vm7 = vcmp.eq.f32.partialorder %v7038_v8, 8.507059e+37 }
 0x8e1   :  { %v6434_v46 = vpack.c.bf16 %v6430_v36, %v6430_v36  ;;  %v6997_v12 = vsel %vm6994_vm8, %v6996_v41, %v6992_v38  ;;  %v7003_v36 = vadd.f32 %v13548_v21, %v7002_v56  ;;  %v6751_v38 = vld [vmem:[%s13664_s19] sm:$0xff] }
 0x8e2   :  { %v6400_v37 = vpop.f32.mrf.mxu2  ;;  %6775 = vmatpush.msrb.mxu2 %v6751_v38 }
 0x8e3   :  { %v6401_v2 = vadd.f32 %v6400_v37, %v6211_v27  ;;  %v6413_v42 = vpop.f32.mrf.mxu3  ;;  %6706 = vmatmul.bf16.vlgmr.msra.gmra.mxu2 %v6434_v46  ;;  %v9755_v27 = vpop.eup %9754  ;;  %v6998_v46 = vmul.f32 %v6997_v12, %v12927_v55  ;;  %v7007_v61 = vsel %vm7006_vm14, %v13548_v21, %v7003_v36  ;;  %v7017_v37 = vmul.f32 %v13565_v31, %v7016_v30 }
 0x8e4   :  { %v6414_v40 = vadd.f32 %v6413_v42, %v6212_v43  ;;  %v6389_v5 = vpop.f32.mrf.mxu1  ;;  %v7010_v43 = vand.u32 2147483648, %v13530_v62  ;;  %v6881_v55 = vmax.f32 %v6875_v28, 1e-08  ;;  %v9757_v15 = vpop.eup %9756  ;;  %vm7035_vm4 = vweird.f32 %v9755_v27 }
 0x8e5   :  { %v6431_v14 = vmax.f32 %v6401_v2, 0.0  ;;  %v7030_v2 = vmul.f32 %v9755_v27, %v13561_v26  ;;  %v7018_v62 = vadd.f32 %v13565_v31, %v7017_v37  ;;  %v7025_v5 = vand.u32 2147483648, %v13545_v9  ;;  %vm7036_vm6 = vmor %vm7034_vm5, %vm7035_vm4 }
 0x8e6   :  { %v6432_v6 = vmax.f32 %v6414_v40, 0.0  ;;  %v7011_v42 = vor.u32 1.1754944e-38, %v7010_v43  ;;  %9758 = vrcp.f32 %v6881_v55  ;;  %v7045_v0 = vmul.f32 %v9757_v15, %v13578_v51 }
 0x8e7   :  { %v6435_v49 = vpack.c.bf16 %v6431_v14, %v6431_v14  ;;  %v7031_v40 = vsub.f32 1.0, %v7030_v2  ;;  %v7022_v21 = vsel %vm7021_vm2, %v13565_v31, %v7018_v62  ;;  %vm7050_vm8 = vweird.f32 %v9757_v15 }
 0x8e8   :  { %v6436_v10 = vpack.c.bf16 %v6432_v6, %v6432_v6  ;;  %v7012_v44 = vsel %vm7009_vm15, %v7011_v42, %v7007_v61  ;;  %v7026_v6 = vor.u32 1.1754944e-38, %v7025_v5  ;;  %v7046_v20 = vsub.f32 1.0, %v7045_v0  ;;  %vm7051_vm11 = vmor %vm7049_vm9, %vm7050_vm8  ;;  %v13780_v61 = vld [vmem:[#allocation10_spill] sm:$0xff] }
 0x8e9   :  { %6719 = vmatmul.bf16.vlgmr.msrb.gmra.mxu3 %v6435_v49  ;;  %v7013_v14 = vmul.f32 %v7012_v44, %v12931_v24  ;;  %v7032_v53 = vmul.f32 %v9755_v27, %v7031_v40  ;;  %v7070_v35 = vand.u32 2147483648, %v6881_v55  ;;  %vm7064_vm14 = vweird.f32 %v6881_v55 }
 0x8ea   :  { %6732 = vmatmul.bf16.vlgmr.msrb.gmra.mxu0 %v6436_v10  ;;  %v6402_v48 = vpop.f32.mrf.mxu2  ;;  %v7027_v17 = vsel %vm7024_vm3, %v7026_v6, %v7022_v21  ;;  %v7040_v10 = vand.u32 2147483648, %v13561_v26  ;;  %v7047_v57 = vmul.f32 %v9757_v15, %v7046_v20  ;;  %v7053_v26 = vand.u32 2147483647, %v13578_v51  ;;  %v13783_v21 = vld [vmem:[#allocation13_spill] sm:$0xff]  ;;  %v13784_v6 = vld [vmem:[#allocation12_spill] sm:$0xff]  ;;  %v13785_v20 = vld [vmem:[#allocation11_spill] sm:$0xff] }
 0x8eb   :  { %v6415_v45 = vpop.f32.mrf.mxu3  ;;  %v7033_v49 = vadd.f32 %v9755_v27, %v7032_v53  ;;  %v7028_v9 = vmul.f32 %v7027_v17, %v12941_v60  ;;  %v7071_v29 = vor.u32 1.1754944e-38, %v7070_v35  ;;  %v7237_v37 = vmul.u32 24, %v13780_v61 }
 0x8ec   :  { %v6426_v16 = vpop.f32.mrf.mxu1  ;;  %v9759_v24 = vpop.eup %9758  ;;  %v7041_v7 = vor.u32 1.1754944e-38, %v7040_v10  ;;  %v7048_v45 = vadd.f32 %v9757_v15, %v7047_v57  ;;  %vm7054_vm12 = vcmp.eq.f32.partialorder %v7053_v26, 8.507059e+37  ;;  %vm13707_vm4 = vcmask 392192  }
 0x8ed   :  { %v6427_v58 = vadd.f32 %v6426_v16, %v6213_v50  ;;  %v7037_v50 = vsel %vm7036_vm6, %v9755_v27, %v7033_v49  ;;  %v7060_v63 = vmul.f32 %v9759_v24, %v6881_v55  ;;  %v7055_v16 = vand.u32 2147483648, %v13578_v51 }
 0x8ee   :  { %v7042_v48 = vsel %vm7039_vm7, %v7041_v7, %v7037_v50  ;;  %vm7065_vm13 = vweird.f32 %v9759_v24  ;;  %v7238_v42 = vadd.s32 2, %v7237_v37  ;;  %v121_v0 = vadd.s32 32, %v13780_v61  ;;  %v9711_v50 = vld [vmem:[%s13665_s20] ss:$0 sm:$0xff] }
 0x8ef   :  { %v6433_v23 = vmax.f32 %v6427_v58, 0.0  ;;  %v7061_v19 = vsub.f32 1.0, %v7060_v63  ;;  %v7043_v60 = vmul.f32 %v7042_v48, %v12964_v33  ;;  %v7052_v58 = vsel %vm7051_vm11, %v9757_v15, %v7048_v45  ;;  %vm7066_vm15 = vmor %vm7064_vm14, %vm7065_vm13 }
 0x8f0   :  { %v7056_v47 = vor.u32 1.1754944e-38, %v7055_v16  ;;  %v7240_v62 = vadd.s32 16, %v7238_v42  ;;  %v13782_v15 = vmov 0.0   ;;  %v118_v17 = vadd.s32 8, %v13780_v61 }
 0x8f1   :  { %v6437_v32 = vpack.c.bf16 %v6433_v23, %v6433_v23  ;;  %v7062_v3 = vmul.f32 %v9759_v24, %v7061_v19  ;;  %v7068_v23 = vand.u32 2147483647, %v6881_v55  ;;  %v13781_v55 = vlaneseq }
 0x8f2   :  { %v7057_v31 = vsel %vm7054_vm12, %v7056_v47, %v7052_v58  ;;  %v9851_v49 = vmov 1.0  }
 0x8f3   :  { %6745 = vmatmul.bf16.vlgmr.msra.gmra.mxu1 %v6437_v32  ;;  %v7063_v52 = vadd.f32 %v9759_v24, %v7062_v3  ;;  %v7058_v13 = vmul.f32 %v7057_v31, %v12957_v39  ;;  %vm7069_vm0 = vcmp.eq.f32.partialorder %v7068_v23, 8.507059e+37  ;;  %v9710_v39 = vld [vmem:[%s13663_s18] ss:$0 sm:$0xff]  ;;  %v7236_v44 = vand.u32 127, %v13781_v55  ;;  %s9852_s18 = smov 4  }
 0x8f4   :  { %v6428_v54 = vpop.f32.mrf.mxu1 }
 0x8f5   :  { %v7067_v33 = vsel %vm7066_vm15, %v9759_v24, %v7063_v52  ;;  %vm7239_vm1 = vcmp.ge.s32.totalorder %v7236_v44, %v7238_v42  ;;  %vm7241_vm2 = vcmp.lt.s32.totalorder %v7236_v44, %v7240_v62 }
 0x8f6   :  { %v7072_v18 = vsel %vm7069_vm0, %v7071_v29, %v7067_v33  ;;  %vm7242_vm3 = vmand %vm7239_vm1, %vm7241_vm2 }
 0x8f7   :  { %v7073_v32 = vmul.f32 %v7072_v18, %v12967_v11  ;;  %v9290_v5 = vsel %vm7242_vm3, 1.0, %v13782_v15 }
 0x8f9   :  { %9284 = vmatmul.msk.f32.vlgmr.msra.gmra.mxu3 %vm5939_vm10, %v6998_v46 }
 0x901   :  { %9285 = vmatmul.msk.f32.gmra.mxu3 %vm5939_vm10, %v7013_v14  ;;  %v7245_v14 = vmul.u32 24, %v7236_v44 }
 0x903   :  { %v7246_v4 = vadd.s32 2, %v7245_v14 }
 0x905   :  { %vm7252_vm5 = vcmp.ge.s32.totalorder %v13783_v21, %v7246_v4  ;;  %v7253_v53 = vadd.s32 16, %v7246_v4  ;;  %vm7250_vm6 = vcmp.ge.s32.totalorder %v13784_v6, %v7246_v4  ;;  %vm7251_vm8 = vcmp.ge.s32.totalorder %v121_v0, %v7246_v4 }
 0x906   :  { %vm7249_vm14 = vcmp.ge.s32.totalorder %v13785_v20, %v7246_v4  ;;  %vm7247_vm3 = vcmp.ge.s32.totalorder %v13780_v61, %v7246_v4 }
 0x907   :  { %vm7259_vm7 = vcmp.lt.s32.totalorder %v13783_v21, %v7253_v53  ;;  %vm7258_vm9 = vcmp.lt.s32.totalorder %v121_v0, %v7253_v53  ;;  %vm7257_vm11 = vcmp.lt.s32.totalorder %v13784_v6, %v7253_v53  ;;  %vm7256_vm15 = vcmp.lt.s32.totalorder %v13785_v20, %v7253_v53 }
 0x908   :  { %vm7265_vm12 = vmand %vm7252_vm5, %vm7259_vm7  ;;  %vm7255_vm1 = vcmp.lt.s32.totalorder %v118_v17, %v7253_v53 }
 0x909   :  { %9286 = vmatmul.msk.f32.gmra.mxu3 %vm5939_vm10, %v7028_v9  ;;  %9298 = vmatpush.msk.msra.mxu0 %vm7265_vm12, %v9851_v49  ;;  %vm7264_vm13 = vmand %vm7251_vm8, %vm7258_vm9  ;;  %vm13786_vm8 = vcmask 392192   ;;  %vm7332_vm9 = vcmask 48128  }
 0x90a   :  { %vm7263_vm0 = vmand %vm7250_vm6, %vm7257_vm11  ;;  %vm7330_vm6 = vcmask 31744  }
 0x90b   :  { %9299 = vmatpush.msk.msra.mxu0 %vm7264_vm13, %v9851_v49  ;;  %vm7262_vm2 = vmand %vm7249_vm14, %vm7256_vm15 }
 0x90d   :  { %9300 = vmatpush.msk.msra.mxu0 %vm7263_vm0, %v9851_v49 }
 0x90f   :  { %9301 = vmatpush.msk.msra.mxu0 %vm7262_vm2, %v9851_v49 }
 0x911   :  { %9287 = vmatmul.msk.f32.gmra.mxu3 %vm5939_vm10, %v7043_v60 }
 0x919   :  { %9288 = vmatmul.msk.f32.gmra.mxu3 %vm5939_vm10, %v7058_v13 }
 0x921   :  { %9289 = vmatmul.msk.f32.gmra.mxu3 %vm5939_vm10, %v7073_v32  ;;  %vm6756_vm10 = vcmask 64512  }
 0x966   :  { %v6707_v56 = vpop.f32.mrf.mxu2 }
 0x967   :  { %v6733_v1 = vpop.f32.mrf.mxu0  ;;  %v6708_v22 = vadd.f32 %v9710_v39, %v6707_v56 }
 0x96c   :  { %v6720_v41 = vpop.f32.mrf.mxu3 }
 0x96d   :  { %v6721_v51 = vadd.f32 %v6720_v41, %v6708_v22 }
 0x96e   :  { %v6709_v54 = vpop.f32.mrf.mxu2 }
 0x96f   :  { %v6735_v12 = vpop.f32.mrf.mxu0  ;;  %v6734_v36 = vadd.f32 %v6733_v1, %v6721_v51 }
 0x970   :  { %v6746_v11 = vpop.f32.mrf.mxu1 }
 0x971   :  { %v6747_v30 = vadd.f32 %v6746_v11, %v6734_v36 }
 0x973   :  { %v6750_v27 = vmax.f32 %v6747_v30, 0.0 }
 0x974   :  { %v6722_v34 = vpop.f32.mrf.mxu3 }
 0x975   :  { %9277 = vmatmul.msk.f32.vlgmr.msrb.gmra.mxu2 %vm6756_vm10, %v6750_v27  ;;  %vm7248_vm10 = vcmp.ge.s32.totalorder %v118_v17, %v7246_v4 }
 0x976   :  { %vm7261_vm5 = vmand %vm7248_vm10, %vm7255_vm1 }
 0x977   :  { %9302 = vmatpush.msk.msra.mxu0 %vm7261_vm5, %v9851_v49 }
 0x978   :  { %v6748_v43 = vpop.f32.mrf.mxu1 }
 0x97c   :  { %v7217_v25 = vpop.f32.mrf.mxu3 }
 0x984   :  { %v7220_v46 = vpop.f32.mrf.mxu3 }
 0x98c   :  { %v7223_v59 = vpop.f32.mrf.mxu3 }
 0x994   :  { %v7226_v28 = vpop.f32.mrf.mxu3 }
 0x99c   :  { %v7229_v2 = vpop.f32.mrf.mxu3 }
 0x9a4   :  { %v7232_v40 = vpop.f32.mrf.mxu3 }
 0x9a5   :  { %7292 = vmatpush.msra.mxu2 %v7232_v40 }
 0x9a7   :  { %7293 = vmatpush.msra.mxu2 %v7229_v2 }
 0x9a9   :  { %7294 = vmatpush.msra.mxu2 %v7226_v28 }
 0x9ab   :  { %7295 = vmatpush.msra.mxu2 %v7223_v59 }
 0x9ad   :  { %7296 = vmatpush.msra.mxu2 %v7220_v46 }
 0x9af   :  { %7297 = vmatpush.msra.mxu2 %v7217_v25 }
 0x9b0   :  { %9297 = vmatmul.msk.f32.vlgmr.msra.gmra.mxu2 %vm13707_vm4, %v9290_v5  ;;  %vm7254_vm4 = vcmp.lt.s32.totalorder %v13780_v61, %v7253_v53 }
 0x9b1   :  { %vm7260_vm7 = vmand %vm7247_vm3, %vm7254_vm4 }
 0x9b2   :  { %9303 = vmatpush.msk.msra.mxu0 %vm7260_vm7, %v9851_v49 }
 0x9f8   :  { %v6777_v24 = vpop.f32.mrf.mxu2 }
 0x9f9   :  { %v6778_v57 = vadd.f32 %v9711_v50, %v6777_v24 }
 0xa33   :  { %v7299_v10 = vpop.f32.mrf.mxu2 }
 0xa34   :  { %9304 = vmatmul.msk.f32.vlgmr.msra.gmra.mxu0 %vm13786_vm8, %v7299_v10 }
 0xab1   :  { %v7322_v9 = vpop.f32.mrf.mxu0 }
 0xab2   :  { %v7325_v8 = vmul.f32 0.00390625, %v7322_v9 }
 0xab4   :  { %7327 = vrot.lane.b32.xlu0 %v7325_v8, %s9852_s18 }
 0xb26   :  { %v7328_v63 = vpop.permute.xlu0 %7327 }
 0xb27   :  { %v7331_v7 = vsel %vm7330_vm6, %v6778_v57, %v7328_v63 }
 0xb28   :  { %v7333_v48 = vsel %vm7332_vm9, %v7331_v7, 0.0 }
 0xb29   :  { %7334 = vst [vmem:[%s13787_s24] sm:$0x3] %v7333_v48 }
 0xb2a   :  { %7339 = vsyncpa [#allocation4], 1 }
 0xb2b   :  { %7340 = vsyncpa [#allocation6], 1 }

</bundles_post_ra>
